<compile_context>
chip_gen: v7x
topology: tpu7x:2x2x1
jax: 0.10.0
libtpu: 0.0.40
codegen_flags: <defaults>
</compile_context>

<pallas_src>
import functools

import numpy as np

import jax
import jax.numpy as jnp
from jax.experimental import pallas as pl
from jax.experimental.pallas import tpu as pltpu

NEG_SLOPE = 0.01      # F.leaky_relu default
BN_EPS = 1e-5         # nn.BatchNorm2d default
NORM_EPS = 1e-6
NUM_BLOCKS = 16

# 3x3 conv taps (dh, dw), row-major so tap index t == kh*3 + kw.
TAPS = tuple((dh, dw) for dh in (-1, 0, 1) for dw in (-1, 0, 1))


# ---------------------------------------------------------------------------
# Fused Pallas kernel: whole forward pass, activations resident in VMEM/vregs
# ---------------------------------------------------------------------------
def _fused_forward_kernel(x_ref, w_ref, cb_ref, g_ref, bt_ref, ag_ref, ab_ref,
                          mask_ref, out_ref, *, width, channels):
    c = channels
    m = x_ref.shape[1]
    inv_m = 1.0 / m
    x = x_ref[...]

    def fused_stats(z):
        # One XLU lane-reduce yields per-channel sum(z) and sum(z^2):
        # (2C, M) = (8, M) stacked -> (8, 1).
        st = jnp.sum(jnp.concatenate([z, z * z], axis=0), axis=1, keepdims=True)
        s1 = st[:c]                                   # (C,1) sum z
        s2 = st[c:]                                   # (C,1) sum z^2
        mean = s1 * inv_m
        var = jnp.maximum(s2 * inv_m - mean * mean, 0.0)
        return mean, var, s2

    def block(y, blk):
        # conv_transpose(3x3, pad=1) == "SAME" conv with flipped/swap kernel.
        # Build the stacked (9C, M) operand: all 9 taps, in-layout zero padding
        # via precomputed border masks + static lane rotations.
        pieces = []
        for t, (dh, dw) in enumerate(TAPS):
            shift = dh * width + dw
            if shift == 0:
                pieces.append(y)                       # centre tap, no masking
            else:
                # piece[p] = y[p + shift] where the tap stays in-image, else 0.
                ys = pltpu.roll(y, shift=(-shift) % m, axis=1)
                pieces.append(ys * mask_ref[t:t + 1, :])
        stacked = jnp.concatenate(pieces, axis=0)      # (9C, M)
        # One MXU matmul per block (contraction 9C=36) replaces 9 tiny dots
        # and the 8-deep serial accumulation chain.
        z = jnp.dot(w_ref[blk], stacked, preferred_element_type=jnp.float32)
        z = z + cb_ref[:, blk:blk + 1]                 # conv bias, (C,1) bcast
        z = jnp.maximum(z, NEG_SLOPE * z)              # leaky_relu
        # Stats once on pre-scale z; Frobenius scale folded into the BN affine.
        mean, var, s2 = fused_stats(z)
        s = jnp.sqrt(jnp.sum(s2)) + NORM_EPS           # ||z||_F + 1e-6 (scalar)
        gamma = g_ref[:, blk:blk + 1]
        beta = bt_ref[:, blk:blk + 1]
        scale = gamma * (s * jax.lax.rsqrt(s * s * var + BN_EPS))
        return z * scale + (beta - mean * scale)       # single fused pass

    def skip_bn(y, i):
        mean, var, _ = fused_stats(y)
        gamma = ag_ref[:, i:i + 1]
        beta = ab_ref[:, i:i + 1]
        scale = gamma * jax.lax.rsqrt(var + BN_EPS)
        return y * scale + (beta - mean * scale)

    xa = skip_bn(x, 0)
    x = block(x, 0); x = block(x, 1); x = x + xa
    # bnA1 / bnA2 / bnA5 / bnA6 are computed in the PyTorch forward but never
    # consumed (overwritten before any add) -> dropped as dead code.
    x = block(x, 2); x = block(x, 3)
    x = block(x, 4); x = block(x, 5)
    xa = skip_bn(x, 3)
    x = block(x, 6); x = block(x, 7); x = x + xa
    xa = skip_bn(x, 4)
    x = block(x, 8); x = block(x, 9); x = x + xa
    x = block(x, 10); x = block(x, 11)
    x = block(x, 12); x = block(x, 13)
    xa = skip_bn(x, 7)
    x = block(x, 14); x = block(x, 15); x = x + xa
    out_ref[...] = x


# ---------------------------------------------------------------------------
# Host-side helpers
# ---------------------------------------------------------------------------
def _make_tap_masks(n, h, w):
    """(9, N*H*W) f32 masks: 1 where the shifted tap stays inside its image."""
    m = n * h * w
    pos = np.arange(m)
    q = pos % (h * w)
    hh = q // w
    ww = q % w
    masks = np.zeros((len(TAPS), m), np.float32)
    for t, (dh, dw) in enumerate(TAPS):
        valid = ((hh + dh >= 0) & (hh + dh < h) &
                 (ww + dw >= 0) & (ww + dw < w))
        masks[t] = valid.astype(np.float32)
    return jnp.asarray(masks)


def forward_nchw(x_nchw, params):
    n, c, h, w = x_nchw.shape
    m = n * h * w
    # One boundary layout change: NCHW -> (C, N*H*W) with M dense on lanes.
    x_cm = jnp.transpose(x_nchw, (1, 0, 2, 3)).reshape(c, m)
    masks = _make_tap_masks(n, h, w)

    kernel = functools.partial(_fused_forward_kernel, width=w, channels=c)

    def full(shape):
        return pl.BlockSpec(shape, lambda i, _n=len(shape): (0,) * _n)

    out_cm = pl.pallas_call(
        kernel,
        out_shape=jax.ShapeDtypeStruct((c, m), jnp.float32),
        grid=(1,),
        in_specs=[
            full((c, m)),                        # x, lane-dense (C, M)
            full((NUM_BLOCKS, c, 9 * c)),        # fused conv weights per block
            full((c, NUM_BLOCKS)),               # conv bias   (per-channel cols)
            full((c, NUM_BLOCKS)),               # bn gamma
            full((c, NUM_BLOCKS)),               # bn beta
            full((c, 8)),                        # bnA gamma
            full((c, 8)),                        # bnA beta
            full((9, m)),                        # tap masks
        ],
        out_specs=full((c, m)),
        compiler_params=pltpu.CompilerParams(
            dimension_semantics=("arbitrary",)),
    )(x_cm, params["conv_w_fused"], params["conv_b_t"],
      params["bn_g_t"], params["bn_b_t"],
      params["bnA_g_t"], params["bnA_b_t"], masks)
    return jnp.transpose(out_cm.reshape(c, n, h, w), (1, 0, 2, 3))


# ---------------------------------------------------------------------------
# Parameter setup (deterministic, synthetic)
# ---------------------------------------------------------------------------
def init_params(channels, key):
    C = channels
    kc, kb, kg, kb2, kag, kab = jax.random.split(key, 6)
    # ConvTranspose2d weights, PyTorch layout (Cin, Cout, kH, kW) per block.
    w_t = 0.2 * jax.random.normal(kc, (NUM_BLOCKS, C, C, 3, 3), jnp.float32)
    # Equivalent "SAME" conv weights, HWIO (for the reference):
    #   w_hwio[b,kh,kw,ci,co] = w_t[b,ci,co,2-kh,2-kw]
    w_hwio = jnp.transpose(jnp.flip(w_t, axis=(3, 4)), (0, 3, 4, 1, 2))
    # (block, tap, Cout, Cin) so that  y += W_tap @ x_shifted.
    w_taps = jnp.transpose(w_hwio, (0, 1, 2, 4, 3)).reshape(NUM_BLOCKS, 9, C, C)
    # Fused packing for the single per-block matmul: column index = t*C + ci.
    w_fused = jnp.transpose(w_taps, (0, 2, 1, 3)).reshape(NUM_BLOCKS, C, 9 * C)
    conv_b = 0.1 * jax.random.normal(kb, (NUM_BLOCKS, C), jnp.float32)
    bn_g = 1.0 + 0.1 * jax.random.normal(kg, (NUM_BLOCKS, C), jnp.float32)
    bn_b = 0.05 * jax.random.normal(kb2, (NUM_BLOCKS, C), jnp.float32)
    bnA_g = 1.0 + 0.1 * jax.random.normal(kag, (8, C), jnp.float32)
    bnA_b = 0.05 * jax.random.normal(kab, (8, C), jnp.float32)
    return dict(
        # reference-layout params
        conv_w_hwio=w_hwio, conv_b=conv_b, bn_g=bn_g, bn_b=bn_b,
        bnA_g=bnA_g, bnA_b=bnA_b,
        # kernel-layout (lane-dense) params
        conv_w_fused=w_fused, conv_b_t=conv_b.T,
        bn_g_t=bn_g.T, bn_b_t=bn_b.T, bnA_g_t=bnA_g.T, bnA_b_t=bnA_b.T)


# ---------------------------------------------------------------------------
# Pure-JAX reference (for correctness check)
# ---------------------------------------------------------------------------
def _block_ref(x, w_hwio, b, g, beta):
    y = jax.lax.conv_general_dilated(
        x, w_hwio, (1, 1), "SAME",
        dimension_numbers=("NHWC", "HWIO", "NHWC")) + b[None, None, None, :]
    y = jnp.where(y > 0, y, NEG_SLOPE * y)
    y = y * (jnp.sqrt(jnp.sum(y * y)) + NORM_EPS)
    mean = jnp.mean(y, axis=(0, 1, 2), keepdims=True)
    var = jnp.mean((y - mean) ** 2, axis=(0, 1, 2), keepdims=True)
    return (y - mean) * jax.lax.rsqrt(var + BN_EPS) * g + beta


def _bn_ref(x, g, beta):
    mean = jnp.mean(x, axis=(0, 1, 2), keepdims=True)
    var = jnp.mean((x - mean) ** 2, axis=(0, 1, 2), keepdims=True)
    return (x - mean) * jax.lax.rsqrt(var + BN_EPS) * g + beta


def forward_ref_nchw(x_nchw, p):
    x = jnp.transpose(x_nchw, (0, 2, 3, 1))          # NCHW -> NHWC

    def block(x, i):
        return _block_ref(x, p["conv_w_hwio"][i], p["conv_b"][i],
                          p["bn_g"][i], p["bn_b"][i])

    def bnA(x, i):
        return _bn_ref(x, p["bnA_g"][i], p["bnA_b"][i])

    xa = bnA(x, 0)
    x = block(x, 0); x = block(x, 1); x = x + xa
    x = block(x, 2); x = block(x, 3)
    x = block(x, 4); x = block(x, 5)
    xa = bnA(x, 3)
    x = block(x, 6); x = block(x, 7); x = x + xa
    xa = bnA(x, 4)
    x = block(x, 8); x = block(x, 9); x = x + xa
    x = block(x, 10); x = block(x, 11)
    x = block(x, 12); x = block(x, 13)
    xa = bnA(x, 7)
    x = block(x, 14); x = block(x, 15); x = x + xa
    return jnp.transpose(x, (0, 3, 1, 2))            # NHWC -> NCHW


# ---------------------------------------------------------------------------
if __name__ == "__main__":
    key = jax.random.PRNGKey(0)
    k_in, k_par = jax.random.split(key)

    channels = 4
    x = jax.random.normal(k_in, (2, channels, 16, 16), jnp.float32)   # NCHW
    params = init_params(channels, k_par)

    out = jax.block_until_ready(jax.jit(forward_nchw)(x, params))
    ref = jax.block_until_ready(jax.jit(forward_ref_nchw)(x, params))

    assert out.shape == x.shape, (out.shape, x.shape)
    assert bool(jnp.all(jnp.isfinite(out)))
    max_err = float(jnp.max(jnp.abs(out - ref)))
    assert bool(jnp.allclose(out, ref, rtol=1e-2, atol=1e-2)), max_err

    print("KERNEL_OK")
</pallas_src>

<mosaic_0001>
module attributes {stable_mosaic.version = 11 : i64} {
  func.func @_fused_forward_kernel(%arg0: i32, %arg1: memref<4x512xf32, #tpu.memory_space<vmem>>, %arg2: memref<16x4x36xf32, #tpu.memory_space<vmem>>, %arg3: memref<4x16xf32, #tpu.memory_space<vmem>>, %arg4: memref<4x16xf32, #tpu.memory_space<vmem>>, %arg5: memref<4x16xf32, #tpu.memory_space<vmem>>, %arg6: memref<4x8xf32, #tpu.memory_space<vmem>>, %arg7: memref<4x8xf32, #tpu.memory_space<vmem>>, %arg8: memref<9x512xf32, #tpu.memory_space<vmem>>, %arg9: memref<4x512xf32, #tpu.memory_space<vmem>>) attributes {dimension_semantics = [#tpu.dimension_semantics<arbitrary>], iteration_bounds = array<i64: 1>, scalar_prefetch = 0 : i64, scratch_operands = 0 : i64, tpu.core_type = #tpu.core_type<tc>, window_params = [{pipeline_mode = #tpu.pipeline_mode<synchronous>, transform_indices = @transform_0, window_bounds = array<i64: 4, 512>}, {pipeline_mode = #tpu.pipeline_mode<synchronous>, transform_indices = @transform_1, window_bounds = array<i64: 16, 4, 36>}, {pipeline_mode = #tpu.pipeline_mode<synchronous>, transform_indices = @transform_2, window_bounds = array<i64: 4, 16>}, {pipeline_mode = #tpu.pipeline_mode<synchronous>, transform_indices = @transform_3, window_bounds = array<i64: 4, 16>}, {pipeline_mode = #tpu.pipeline_mode<synchronous>, transform_indices = @transform_4, window_bounds = array<i64: 4, 16>}, {pipeline_mode = #tpu.pipeline_mode<synchronous>, transform_indices = @transform_5, window_bounds = array<i64: 4, 8>}, {pipeline_mode = #tpu.pipeline_mode<synchronous>, transform_indices = @transform_6, window_bounds = array<i64: 4, 8>}, {pipeline_mode = #tpu.pipeline_mode<synchronous>, transform_indices = @transform_7, window_bounds = array<i64: 9, 512>}, {pipeline_mode = #tpu.pipeline_mode<synchronous>, transform_indices = @transform_8, window_bounds = array<i64: 4, 512>}]} {
    %c0 = arith.constant 0 : index
    %c0_0 = arith.constant 0 : index
    %0 = vector.load %arg1[%c0, %c0_0] : memref<4x512xf32, #tpu.memory_space<vmem>>, vector<4x512xf32>
    %1 = arith.mulf %0, %0 : vector<4x512xf32>
    %2 = tpu.concatenate %0, %1 in 0 : vector<4x512xf32>, vector<4x512xf32> -> vector<8x512xf32>
    %cst = arith.constant dense<0.000000e+00> : vector<8xf32>
    %3 = vector.multi_reduction <add>, %2, %cst [1] : vector<8x512xf32> to vector<8xf32>
    %4 = vector.shape_cast %3 : vector<8xf32> to vector<8x1xf32>
    %5 = vector.extract_strided_slice %4 {offsets = [0, 0], sizes = [4, 1], strides = [1, 1]} : vector<8x1xf32> to vector<4x1xf32>
    %6 = vector.extract_strided_slice %4 {offsets = [4, 0], sizes = [4, 1], strides = [1, 1]} : vector<8x1xf32> to vector<4x1xf32>
    %cst_1 = arith.constant 0.001953125 : f32
    %7 = vector.broadcast %cst_1 : f32 to vector<4x1xf32>
    %8 = arith.mulf %5, %7 : vector<4x1xf32>
    %cst_2 = arith.constant 0.001953125 : f32
    %9 = vector.broadcast %cst_2 : f32 to vector<4x1xf32>
    %10 = arith.mulf %6, %9 : vector<4x1xf32>
    %11 = arith.mulf %8, %8 : vector<4x1xf32>
    %12 = arith.subf %10, %11 : vector<4x1xf32>
    %cst_3 = arith.constant 0.000000e+00 : f32
    %13 = vector.broadcast %cst_3 : f32 to vector<4x1xf32>
    %14 = arith.maximumf %12, %13 : vector<4x1xf32>
    %c0_4 = arith.constant 0 : index
    %c0_5 = arith.constant 0 : index
    %15 = vector.load %arg6[%c0_4, %c0_5] : memref<4x8xf32, #tpu.memory_space<vmem>>, vector<4x1xf32>
    %c0_6 = arith.constant 0 : index
    %c0_7 = arith.constant 0 : index
    %16 = vector.load %arg7[%c0_6, %c0_7] : memref<4x8xf32, #tpu.memory_space<vmem>>, vector<4x1xf32>
    %cst_8 = arith.constant 9.99999974E-6 : f32
    %17 = vector.broadcast %cst_8 : f32 to vector<4x1xf32>
    %18 = arith.addf %14, %17 : vector<4x1xf32>
    %19 = math.rsqrt %18 : vector<4x1xf32>
    %20 = arith.mulf %15, %19 : vector<4x1xf32>
    %21 = vector.broadcast %20 : vector<4x1xf32> to vector<4x512xf32>
    %22 = arith.mulf %0, %21 : vector<4x512xf32>
    %23 = arith.mulf %8, %20 : vector<4x1xf32>
    %24 = arith.subf %16, %23 : vector<4x1xf32>
    %25 = vector.broadcast %24 : vector<4x1xf32> to vector<4x512xf32>
    %26 = arith.addf %22, %25 : vector<4x512xf32>
    %c17_i32 = arith.constant 17 : i32
    %27 = tpu.dynamic_rotate %0 by %c17_i32 dim 1 : vector<4x512xf32>, i32 -> vector<4x512xf32>
    %c0_9 = arith.constant 0 : index
    %c0_10 = arith.constant 0 : index
    %28 = vector.load %arg8[%c0_9, %c0_10] : memref<9x512xf32, #tpu.memory_space<vmem>>, vector<1x512xf32>
    %29 = vector.broadcast %28 : vector<1x512xf32> to vector<4x512xf32>
    %30 = arith.mulf %27, %29 : vector<4x512xf32>
    %c16_i32 = arith.constant 16 : i32
    %31 = tpu.dynamic_rotate %0 by %c16_i32 dim 1 : vector<4x512xf32>, i32 -> vector<4x512xf32>
    %c1 = arith.constant 1 : index
    %c0_11 = arith.constant 0 : index
    %32 = vector.load %arg8[%c1, %c0_11] : memref<9x512xf32, #tpu.memory_space<vmem>>, vector<1x512xf32>
    %33 = vector.broadcast %32 : vector<1x512xf32> to vector<4x512xf32>
    %34 = arith.mulf %31, %33 : vector<4x512xf32>
    %c15_i32 = arith.constant 15 : i32
    %35 = tpu.dynamic_rotate %0 by %c15_i32 dim 1 : vector<4x512xf32>, i32 -> vector<4x512xf32>
    %c2 = arith.constant 2 : index
    %c0_12 = arith.constant 0 : index
    %36 = vector.load %arg8[%c2, %c0_12] : memref<9x512xf32, #tpu.memory_space<vmem>>, vector<1x512xf32>
    %37 = vector.broadcast %36 : vector<1x512xf32> to vector<4x512xf32>
    %38 = arith.mulf %35, %37 : vector<4x512xf32>
    %c1_i32 = arith.constant 1 : i32
    %39 = tpu.dynamic_rotate %0 by %c1_i32 dim 1 : vector<4x512xf32>, i32 -> vector<4x512xf32>
    %c3 = arith.constant 3 : index
    %c0_13 = arith.constant 0 : index
    %40 = vector.load %arg8[%c3, %c0_13] : memref<9x512xf32, #tpu.memory_space<vmem>>, vector<1x512xf32>
    %41 = vector.broadcast %40 : vector<1x512xf32> to vector<4x512xf32>
    %42 = arith.mulf %39, %41 : vector<4x512xf32>
    %c511_i32 = arith.constant 511 : i32
    %43 = tpu.dynamic_rotate %0 by %c511_i32 dim 1 : vector<4x512xf32>, i32 -> vector<4x512xf32>
    %c5 = arith.constant 5 : index
    %c0_14 = arith.constant 0 : index
    %44 = vector.load %arg8[%c5, %c0_14] : memref<9x512xf32, #tpu.memory_space<vmem>>, vector<1x512xf32>
    %45 = vector.broadcast %44 : vector<1x512xf32> to vector<4x512xf32>
    %46 = arith.mulf %43, %45 : vector<4x512xf32>
    %c497_i32 = arith.constant 497 : i32
    %47 = tpu.dynamic_rotate %0 by %c497_i32 dim 1 : vector<4x512xf32>, i32 -> vector<4x512xf32>
    %c6 = arith.constant 6 : index
    %c0_15 = arith.constant 0 : index
    %48 = vector.load %arg8[%c6, %c0_15] : memref<9x512xf32, #tpu.memory_space<vmem>>, vector<1x512xf32>
    %49 = vector.broadcast %48 : vector<1x512xf32> to vector<4x512xf32>
    %50 = arith.mulf %47, %49 : vector<4x512xf32>
    %c496_i32 = arith.constant 496 : i32
    %51 = tpu.dynamic_rotate %0 by %c496_i32 dim 1 : vector<4x512xf32>, i32 -> vector<4x512xf32>
    %c7 = arith.constant 7 : index
    %c0_16 = arith.constant 0 : index
    %52 = vector.load %arg8[%c7, %c0_16] : memref<9x512xf32, #tpu.memory_space<vmem>>, vector<1x512xf32>
    %53 = vector.broadcast %52 : vector<1x512xf32> to vector<4x512xf32>
    %54 = arith.mulf %51, %53 : vector<4x512xf32>
    %c495_i32 = arith.constant 495 : i32
    %55 = tpu.dynamic_rotate %0 by %c495_i32 dim 1 : vector<4x512xf32>, i32 -> vector<4x512xf32>
    %c8 = arith.constant 8 : index
    %c0_17 = arith.constant 0 : index
    %56 = vector.load %arg8[%c8, %c0_17] : memref<9x512xf32, #tpu.memory_space<vmem>>, vector<1x512xf32>
    %57 = vector.broadcast %56 : vector<1x512xf32> to vector<4x512xf32>
    %58 = arith.mulf %55, %57 : vector<4x512xf32>
    %59 = tpu.concatenate %30, %34, %38, %42, %0, %46, %50, %54, %58 in 0 : vector<4x512xf32>, vector<4x512xf32>, vector<4x512xf32>, vector<4x512xf32>, vector<4x512xf32>, vector<4x512xf32>, vector<4x512xf32>, vector<4x512xf32>, vector<4x512xf32> -> vector<36x512xf32>
    %c0_18 = arith.constant 0 : index
    %c0_19 = arith.constant 0 : index
    %c0_20 = arith.constant 0 : index
    %60 = vector.load %arg2[%c0_18, %c0_19, %c0_20] : memref<16x4x36xf32, #tpu.memory_space<vmem>>, vector<1x4x36xf32>
    %61 = vector.shape_cast %60 : vector<1x4x36xf32> to vector<4x36xf32>
    %cst_21 = arith.constant dense<0.000000e+00> : vector<4x512xf32>
    %62 = tpu.matmul %61, %59, %cst_21 {dimension_numbers = #tpu.dot_dimension_numbers<[1], [0], [0], [1], [0, 0, 1, 1], [], []>} : vector<4x36xf32>, vector<36x512xf32>, vector<4x512xf32> -> vector<4x512xf32>
    %c0_22 = arith.constant 0 : index
    %c0_23 = arith.constant 0 : index
    %63 = vector.load %arg3[%c0_22, %c0_23] : memref<4x16xf32, #tpu.memory_space<vmem>>, vector<4x1xf32>
    %64 = vector.broadcast %63 : vector<4x1xf32> to vector<4x512xf32>
    %65 = arith.addf %62, %64 : vector<4x512xf32>
    %cst_24 = arith.constant 0.00999999977 : f32
    %66 = vector.broadcast %cst_24 : f32 to vector<4x512xf32>
    %67 = arith.mulf %66, %65 : vector<4x512xf32>
    %68 = arith.maximumf %65, %67 : vector<4x512xf32>
    %69 = arith.mulf %68, %68 : vector<4x512xf32>
    %70 = tpu.concatenate %68, %69 in 0 : vector<4x512xf32>, vector<4x512xf32> -> vector<8x512xf32>
    %cst_25 = arith.constant dense<0.000000e+00> : vector<8xf32>
    %71 = vector.multi_reduction <add>, %70, %cst_25 [1] : vector<8x512xf32> to vector<8xf32>
    %72 = vector.shape_cast %71 : vector<8xf32> to vector<8x1xf32>
    %73 = vector.extract_strided_slice %72 {offsets = [0, 0], sizes = [4, 1], strides = [1, 1]} : vector<8x1xf32> to vector<4x1xf32>
    %74 = vector.extract_strided_slice %72 {offsets = [4, 0], sizes = [4, 1], strides = [1, 1]} : vector<8x1xf32> to vector<4x1xf32>
    %cst_26 = arith.constant 0.001953125 : f32
    %75 = vector.broadcast %cst_26 : f32 to vector<4x1xf32>
    %76 = arith.mulf %73, %75 : vector<4x1xf32>
    %cst_27 = arith.constant 0.001953125 : f32
    %77 = vector.broadcast %cst_27 : f32 to vector<4x1xf32>
    %78 = arith.mulf %74, %77 : vector<4x1xf32>
    %79 = arith.mulf %76, %76 : vector<4x1xf32>
    %80 = arith.subf %78, %79 : vector<4x1xf32>
    %cst_28 = arith.constant 0.000000e+00 : f32
    %81 = vector.broadcast %cst_28 : f32 to vector<4x1xf32>
    %82 = arith.maximumf %80, %81 : vector<4x1xf32>
    %83 = vector.shape_cast %74 : vector<4x1xf32> to vector<1x4x1xf32>
    %cst_29 = arith.constant dense<0.000000e+00> : vector<1xf32>
    %84 = vector.multi_reduction <add>, %83, %cst_29 [1, 2] : vector<1x4x1xf32> to vector<1xf32>
    %85 = vector.shape_cast %84 : vector<1xf32> to vector<1x1x1xf32>
    %86 = vector.extract %85[0, 0, 0] : f32 from vector<1x1x1xf32>
    %87 = math.sqrt %86 : f32
    %cst_30 = arith.constant 9.99999997E-7 : f32
    %88 = arith.addf %87, %cst_30 : f32
    %c0_31 = arith.constant 0 : index
    %c0_32 = arith.constant 0 : index
    %89 = vector.load %arg4[%c0_31, %c0_32] : memref<4x16xf32, #tpu.memory_space<vmem>>, vector<4x1xf32>
    %c0_33 = arith.constant 0 : index
    %c0_34 = arith.constant 0 : index
    %90 = vector.load %arg5[%c0_33, %c0_34] : memref<4x16xf32, #tpu.memory_space<vmem>>, vector<4x1xf32>
    %91 = arith.mulf %88, %88 : f32
    %92 = vector.broadcast %91 : f32 to vector<4x1xf32>
    %93 = arith.mulf %92, %82 : vector<4x1xf32>
    %cst_35 = arith.constant 9.99999974E-6 : f32
    %94 = vector.broadcast %cst_35 : f32 to vector<4x1xf32>
    %95 = arith.addf %93, %94 : vector<4x1xf32>
    %96 = math.rsqrt %95 : vector<4x1xf32>
    %97 = vector.broadcast %88 : f32 to vector<4x1xf32>
    %98 = arith.mulf %97, %96 : vector<4x1xf32>
    %99 = arith.mulf %89, %98 : vector<4x1xf32>
    %100 = vector.broadcast %99 : vector<4x1xf32> to vector<4x512xf32>
    %101 = arith.mulf %68, %100 : vector<4x512xf32>
    %102 = arith.mulf %76, %99 : vector<4x1xf32>
    %103 = arith.subf %90, %102 : vector<4x1xf32>
    %104 = vector.broadcast %103 : vector<4x1xf32> to vector<4x512xf32>
    %105 = arith.addf %101, %104 : vector<4x512xf32>
    %c17_i32_36 = arith.constant 17 : i32
    %106 = tpu.dynamic_rotate %105 by %c17_i32_36 dim 1 : vector<4x512xf32>, i32 -> vector<4x512xf32>
    %c0_37 = arith.constant 0 : index
    %c0_38 = arith.constant 0 : index
    %107 = vector.load %arg8[%c0_37, %c0_38] : memref<9x512xf32, #tpu.memory_space<vmem>>, vector<1x512xf32>
    %108 = vector.broadcast %107 : vector<1x512xf32> to vector<4x512xf32>
    %109 = arith.mulf %106, %108 : vector<4x512xf32>
    %c16_i32_39 = arith.constant 16 : i32
    %110 = tpu.dynamic_rotate %105 by %c16_i32_39 dim 1 : vector<4x512xf32>, i32 -> vector<4x512xf32>
    %c1_40 = arith.constant 1 : index
    %c0_41 = arith.constant 0 : index
    %111 = vector.load %arg8[%c1_40, %c0_41] : memref<9x512xf32, #tpu.memory_space<vmem>>, vector<1x512xf32>
    %112 = vector.broadcast %111 : vector<1x512xf32> to vector<4x512xf32>
    %113 = arith.mulf %110, %112 : vector<4x512xf32>
    %c15_i32_42 = arith.constant 15 : i32
    %114 = tpu.dynamic_rotate %105 by %c15_i32_42 dim 1 : vector<4x512xf32>, i32 -> vector<4x512xf32>
    %c2_43 = arith.constant 2 : index
    %c0_44 = arith.constant 0 : index
    %115 = vector.load %arg8[%c2_43, %c0_44] : memref<9x512xf32, #tpu.memory_space<vmem>>, vector<1x512xf32>
    %116 = vector.broadcast %115 : vector<1x512xf32> to vector<4x512xf32>
    %117 = arith.mulf %114, %116 : vector<4x512xf32>
    %c1_i32_45 = arith.constant 1 : i32
    %118 = tpu.dynamic_rotate %105 by %c1_i32_45 dim 1 : vector<4x512xf32>, i32 -> vector<4x512xf32>
    %c3_46 = arith.constant 3 : index
    %c0_47 = arith.constant 0 : index
    %119 = vector.load %arg8[%c3_46, %c0_47] : memref<9x512xf32, #tpu.memory_space<vmem>>, vector<1x512xf32>
    %120 = vector.broadcast %119 : vector<1x512xf32> to vector<4x512xf32>
    %121 = arith.mulf %118, %120 : vector<4x512xf32>
    %c511_i32_48 = arith.constant 511 : i32
    %122 = tpu.dynamic_rotate %105 by %c511_i32_48 dim 1 : vector<4x512xf32>, i32 -> vector<4x512xf32>
    %c5_49 = arith.constant 5 : index
    %c0_50 = arith.constant 0 : index
    %123 = vector.load %arg8[%c5_49, %c0_50] : memref<9x512xf32, #tpu.memory_space<vmem>>, vector<1x512xf32>
    %124 = vector.broadcast %123 : vector<1x512xf32> to vector<4x512xf32>
    %125 = arith.mulf %122, %124 : vector<4x512xf32>
    %c497_i32_51 = arith.constant 497 : i32
    %126 = tpu.dynamic_rotate %105 by %c497_i32_51 dim 1 : vector<4x512xf32>, i32 -> vector<4x512xf32>
    %c6_52 = arith.constant 6 : index
    %c0_53 = arith.constant 0 : index
    %127 = vector.load %arg8[%c6_52, %c0_53] : memref<9x512xf32, #tpu.memory_space<vmem>>, vector<1x512xf32>
    %128 = vector.broadcast %127 : vector<1x512xf32> to vector<4x512xf32>
    %129 = arith.mulf %126, %128 : vector<4x512xf32>
    %c496_i32_54 = arith.constant 496 : i32
    %130 = tpu.dynamic_rotate %105 by %c496_i32_54 dim 1 : vector<4x512xf32>, i32 -> vector<4x512xf32>
    %c7_55 = arith.constant 7 : index
    %c0_56 = arith.constant 0 : index
    %131 = vector.load %arg8[%c7_55, %c0_56] : memref<9x512xf32, #tpu.memory_space<vmem>>, vector<1x512xf32>
    %132 = vector.broadcast %131 : vector<1x512xf32> to vector<4x512xf32>
    %133 = arith.mulf %130, %132 : vector<4x512xf32>
    %c495_i32_57 = arith.constant 495 : i32
    %134 = tpu.dynamic_rotate %105 by %c495_i32_57 dim 1 : vector<4x512xf32>, i32 -> vector<4x512xf32>
    %c8_58 = arith.constant 8 : index
    %c0_59 = arith.constant 0 : index
    %135 = vector.load %arg8[%c8_58, %c0_59] : memref<9x512xf32, #tpu.memory_space<vmem>>, vector<1x512xf32>
    %136 = vector.broadcast %135 : vector<1x512xf32> to vector<4x512xf32>
    %137 = arith.mulf %134, %136 : vector<4x512xf32>
    %138 = tpu.concatenate %109, %113, %117, %121, %105, %125, %129, %133, %137 in 0 : vector<4x512xf32>, vector<4x512xf32>, vector<4x512xf32>, vector<4x512xf32>, vector<4x512xf32>, vector<4x512xf32>, vector<4x512xf32>, vector<4x512xf32>, vector<4x512xf32> -> vector<36x512xf32>
    %c1_60 = arith.constant 1 : index
    %c0_61 = arith.constant 0 : index
    %c0_62 = arith.constant 0 : index
    %139 = vector.load %arg2[%c1_60, %c0_61, %c0_62] : memref<16x4x36xf32, #tpu.memory_space<vmem>>, vector<1x4x36xf32>
    %140 = vector.shape_cast %139 : vector<1x4x36xf32> to vector<4x36xf32>
    %cst_63 = arith.constant dense<0.000000e+00> : vector<4x512xf32>
    %141 = tpu.matmul %140, %138, %cst_63 {dimension_numbers = #tpu.dot_dimension_numbers<[1], [0], [0], [1], [0, 0, 1, 1], [], []>} : vector<4x36xf32>, vector<36x512xf32>, vector<4x512xf32> -> vector<4x512xf32>
    %c0_64 = arith.constant 0 : index
    %c1_65 = arith.constant 1 : index
    %142 = vector.load %arg3[%c0_64, %c1_65] : memref<4x16xf32, #tpu.memory_space<vmem>>, vector<4x1xf32>
    %143 = vector.broadcast %142 : vector<4x1xf32> to vector<4x512xf32>
    %144 = arith.addf %141, %143 : vector<4x512xf32>
    %cst_66 = arith.constant 0.00999999977 : f32
    %145 = vector.broadcast %cst_66 : f32 to vector<4x512xf32>
    %146 = arith.mulf %145, %144 : vector<4x512xf32>
    %147 = arith.maximumf %144, %146 : vector<4x512xf32>
    %148 = arith.mulf %147, %147 : vector<4x512xf32>
    %149 = tpu.concatenate %147, %148 in 0 : vector<4x512xf32>, vector<4x512xf32> -> vector<8x512xf32>
    %cst_67 = arith.constant dense<0.000000e+00> : vector<8xf32>
    %150 = vector.multi_reduction <add>, %149, %cst_67 [1] : vector<8x512xf32> to vector<8xf32>
    %151 = vector.shape_cast %150 : vector<8xf32> to vector<8x1xf32>
    %152 = vector.extract_strided_slice %151 {offsets = [0, 0], sizes = [4, 1], strides = [1, 1]} : vector<8x1xf32> to vector<4x1xf32>
    %153 = vector.extract_strided_slice %151 {offsets = [4, 0], sizes = [4, 1], strides = [1, 1]} : vector<8x1xf32> to vector<4x1xf32>
    %cst_68 = arith.constant 0.001953125 : f32
    %154 = vector.broadcast %cst_68 : f32 to vector<4x1xf32>
    %155 = arith.mulf %152, %154 : vector<4x1xf32>
    %cst_69 = arith.constant 0.001953125 : f32
    %156 = vector.broadcast %cst_69 : f32 to vector<4x1xf32>
    %157 = arith.mulf %153, %156 : vector<4x1xf32>
    %158 = arith.mulf %155, %155 : vector<4x1xf32>
    %159 = arith.subf %157, %158 : vector<4x1xf32>
    %cst_70 = arith.constant 0.000000e+00 : f32
    %160 = vector.broadcast %cst_70 : f32 to vector<4x1xf32>
    %161 = arith.maximumf %159, %160 : vector<4x1xf32>
    %162 = vector.shape_cast %153 : vector<4x1xf32> to vector<1x4x1xf32>
    %cst_71 = arith.constant dense<0.000000e+00> : vector<1xf32>
    %163 = vector.multi_reduction <add>, %162, %cst_71 [1, 2] : vector<1x4x1xf32> to vector<1xf32>
    %164 = vector.shape_cast %163 : vector<1xf32> to vector<1x1x1xf32>
    %165 = vector.extract %164[0, 0, 0] : f32 from vector<1x1x1xf32>
    %166 = math.sqrt %165 : f32
    %cst_72 = arith.constant 9.99999997E-7 : f32
    %167 = arith.addf %166, %cst_72 : f32
    %c0_73 = arith.constant 0 : index
    %c1_74 = arith.constant 1 : index
    %168 = vector.load %arg4[%c0_73, %c1_74] : memref<4x16xf32, #tpu.memory_space<vmem>>, vector<4x1xf32>
    %c0_75 = arith.constant 0 : index
    %c1_76 = arith.constant 1 : index
    %169 = vector.load %arg5[%c0_75, %c1_76] : memref<4x16xf32, #tpu.memory_space<vmem>>, vector<4x1xf32>
    %170 = arith.mulf %167, %167 : f32
    %171 = vector.broadcast %170 : f32 to vector<4x1xf32>
    %172 = arith.mulf %171, %161 : vector<4x1xf32>
    %cst_77 = arith.constant 9.99999974E-6 : f32
    %173 = vector.broadcast %cst_77 : f32 to vector<4x1xf32>
    %174 = arith.addf %172, %173 : vector<4x1xf32>
    %175 = math.rsqrt %174 : vector<4x1xf32>
    %176 = vector.broadcast %167 : f32 to vector<4x1xf32>
    %177 = arith.mulf %176, %175 : vector<4x1xf32>
    %178 = arith.mulf %168, %177 : vector<4x1xf32>
    %179 = vector.broadcast %178 : vector<4x1xf32> to vector<4x512xf32>
    %180 = arith.mulf %147, %179 : vector<4x512xf32>
    %181 = arith.mulf %155, %178 : vector<4x1xf32>
    %182 = arith.subf %169, %181 : vector<4x1xf32>
    %183 = vector.broadcast %182 : vector<4x1xf32> to vector<4x512xf32>
    %184 = arith.addf %180, %183 : vector<4x512xf32>
    %185 = arith.addf %184, %26 : vector<4x512xf32>
    %c17_i32_78 = arith.constant 17 : i32
    %186 = tpu.dynamic_rotate %185 by %c17_i32_78 dim 1 : vector<4x512xf32>, i32 -> vector<4x512xf32>
    %c0_79 = arith.constant 0 : index
    %c0_80 = arith.constant 0 : index
    %187 = vector.load %arg8[%c0_79, %c0_80] : memref<9x512xf32, #tpu.memory_space<vmem>>, vector<1x512xf32>
    %188 = vector.broadcast %187 : vector<1x512xf32> to vector<4x512xf32>
    %189 = arith.mulf %186, %188 : vector<4x512xf32>
    %c16_i32_81 = arith.constant 16 : i32
    %190 = tpu.dynamic_rotate %185 by %c16_i32_81 dim 1 : vector<4x512xf32>, i32 -> vector<4x512xf32>
    %c1_82 = arith.constant 1 : index
    %c0_83 = arith.constant 0 : index
    %191 = vector.load %arg8[%c1_82, %c0_83] : memref<9x512xf32, #tpu.memory_space<vmem>>, vector<1x512xf32>
    %192 = vector.broadcast %191 : vector<1x512xf32> to vector<4x512xf32>
    %193 = arith.mulf %190, %192 : vector<4x512xf32>
    %c15_i32_84 = arith.constant 15 : i32
    %194 = tpu.dynamic_rotate %185 by %c15_i32_84 dim 1 : vector<4x512xf32>, i32 -> vector<4x512xf32>
    %c2_85 = arith.constant 2 : index
    %c0_86 = arith.constant 0 : index
    %195 = vector.load %arg8[%c2_85, %c0_86] : memref<9x512xf32, #tpu.memory_space<vmem>>, vector<1x512xf32>
    %196 = vector.broadcast %195 : vector<1x512xf32> to vector<4x512xf32>
    %197 = arith.mulf %194, %196 : vector<4x512xf32>
    %c1_i32_87 = arith.constant 1 : i32
    %198 = tpu.dynamic_rotate %185 by %c1_i32_87 dim 1 : vector<4x512xf32>, i32 -> vector<4x512xf32>
    %c3_88 = arith.constant 3 : index
    %c0_89 = arith.constant 0 : index
    %199 = vector.load %arg8[%c3_88, %c0_89] : memref<9x512xf32, #tpu.memory_space<vmem>>, vector<1x512xf32>
    %200 = vector.broadcast %199 : vector<1x512xf32> to vector<4x512xf32>
    %201 = arith.mulf %198, %200 : vector<4x512xf32>
    %c511_i32_90 = arith.constant 511 : i32
    %202 = tpu.dynamic_rotate %185 by %c511_i32_90 dim 1 : vector<4x512xf32>, i32 -> vector<4x512xf32>
    %c5_91 = arith.constant 5 : index
    %c0_92 = arith.constant 0 : index
    %203 = vector.load %arg8[%c5_91, %c0_92] : memref<9x512xf32, #tpu.memory_space<vmem>>, vector<1x512xf32>
    %204 = vector.broadcast %203 : vector<1x512xf32> to vector<4x512xf32>
    %205 = arith.mulf %202, %204 : vector<4x512xf32>
    %c497_i32_93 = arith.constant 497 : i32
    %206 = tpu.dynamic_rotate %185 by %c497_i32_93 dim 1 : vector<4x512xf32>, i32 -> vector<4x512xf32>
    %c6_94 = arith.constant 6 : index
    %c0_95 = arith.constant 0 : index
    %207 = vector.load %arg8[%c6_94, %c0_95] : memref<9x512xf32, #tpu.memory_space<vmem>>, vector<1x512xf32>
    %208 = vector.broadcast %207 : vector<1x512xf32> to vector<4x512xf32>
    %209 = arith.mulf %206, %208 : vector<4x512xf32>
    %c496_i32_96 = arith.constant 496 : i32
    %210 = tpu.dynamic_rotate %185 by %c496_i32_96 dim 1 : vector<4x512xf32>, i32 -> vector<4x512xf32>
    %c7_97 = arith.constant 7 : index
    %c0_98 = arith.constant 0 : index
    %211 = vector.load %arg8[%c7_97, %c0_98] : memref<9x512xf32, #tpu.memory_space<vmem>>, vector<1x512xf32>
    %212 = vector.broadcast %211 : vector<1x512xf32> to vector<4x512xf32>
    %213 = arith.mulf %210, %212 : vector<4x512xf32>
    %c495_i32_99 = arith.constant 495 : i32
    %214 = tpu.dynamic_rotate %185 by %c495_i32_99 dim 1 : vector<4x512xf32>, i32 -> vector<4x512xf32>
    %c8_100 = arith.constant 8 : index
    %c0_101 = arith.constant 0 : index
    %215 = vector.load %arg8[%c8_100, %c0_101] : memref<9x512xf32, #tpu.memory_space<vmem>>, vector<1x512xf32>
    %216 = vector.broadcast %215 : vector<1x512xf32> to vector<4x512xf32>
    %217 = arith.mulf %214, %216 : vector<4x512xf32>
    %218 = tpu.concatenate %189, %193, %197, %201, %185, %205, %209, %213, %217 in 0 : vector<4x512xf32>, vector<4x512xf32>, vector<4x512xf32>, vector<4x512xf32>, vector<4x512xf32>, vector<4x512xf32>, vector<4x512xf32>, vector<4x512xf32>, vector<4x512xf32> -> vector<36x512xf32>
    %c2_102 = arith.constant 2 : index
    %c0_103 = arith.constant 0 : index
    %c0_104 = arith.constant 0 : index
    %219 = vector.load %arg2[%c2_102, %c0_103, %c0_104] : memref<16x4x36xf32, #tpu.memory_space<vmem>>, vector<1x4x36xf32>
    %220 = vector.shape_cast %219 : vector<1x4x36xf32> to vector<4x36xf32>
    %cst_105 = arith.constant dense<0.000000e+00> : vector<4x512xf32>
    %221 = tpu.matmul %220, %218, %cst_105 {dimension_numbers = #tpu.dot_dimension_numbers<[1], [0], [0], [1], [0, 0, 1, 1], [], []>} : vector<4x36xf32>, vector<36x512xf32>, vector<4x512xf32> -> vector<4x512xf32>
    %c0_106 = arith.constant 0 : index
    %c2_107 = arith.constant 2 : index
    %222 = vector.load %arg3[%c0_106, %c2_107] : memref<4x16xf32, #tpu.memory_space<vmem>>, vector<4x1xf32>
    %223 = vector.broadcast %222 : vector<4x1xf32> to vector<4x512xf32>
    %224 = arith.addf %221, %223 : vector<4x512xf32>
    %cst_108 = arith.constant 0.00999999977 : f32
    %225 = vector.broadcast %cst_108 : f32 to vector<4x512xf32>
    %226 = arith.mulf %225, %224 : vector<4x512xf32>
    %227 = arith.maximumf %224, %226 : vector<4x512xf32>
    %228 = arith.mulf %227, %227 : vector<4x512xf32>
    %229 = tpu.concatenate %227, %228 in 0 : vector<4x512xf32>, vector<4x512xf32> -> vector<8x512xf32>
    %cst_109 = arith.constant dense<0.000000e+00> : vector<8xf32>
    %230 = vector.multi_reduction <add>, %229, %cst_109 [1] : vector<8x512xf32> to vector<8xf32>
    %231 = vector.shape_cast %230 : vector<8xf32> to vector<8x1xf32>
    %232 = vector.extract_strided_slice %231 {offsets = [0, 0], sizes = [4, 1], strides = [1, 1]} : vector<8x1xf32> to vector<4x1xf32>
    %233 = vector.extract_strided_slice %231 {offsets = [4, 0], sizes = [4, 1], strides = [1, 1]} : vector<8x1xf32> to vector<4x1xf32>
    %cst_110 = arith.constant 0.001953125 : f32
    %234 = vector.broadcast %cst_110 : f32 to vector<4x1xf32>
    %235 = arith.mulf %232, %234 : vector<4x1xf32>
    %cst_111 = arith.constant 0.001953125 : f32
    %236 = vector.broadcast %cst_111 : f32 to vector<4x1xf32>
    %237 = arith.mulf %233, %236 : vector<4x1xf32>
    %238 = arith.mulf %235, %235 : vector<4x1xf32>
    %239 = arith.subf %237, %238 : vector<4x1xf32>
    %cst_112 = arith.constant 0.000000e+00 : f32
    %240 = vector.broadcast %cst_112 : f32 to vector<4x1xf32>
    %241 = arith.maximumf %239, %240 : vector<4x1xf32>
    %242 = vector.shape_cast %233 : vector<4x1xf32> to vector<1x4x1xf32>
    %cst_113 = arith.constant dense<0.000000e+00> : vector<1xf32>
    %243 = vector.multi_reduction <add>, %242, %cst_113 [1, 2] : vector<1x4x1xf32> to vector<1xf32>
    %244 = vector.shape_cast %243 : vector<1xf32> to vector<1x1x1xf32>
    %245 = vector.extract %244[0, 0, 0] : f32 from vector<1x1x1xf32>
    %246 = math.sqrt %245 : f32
    %cst_114 = arith.constant 9.99999997E-7 : f32
    %247 = arith.addf %246, %cst_114 : f32
    %c0_115 = arith.constant 0 : index
    %c2_116 = arith.constant 2 : index
    %248 = vector.load %arg4[%c0_115, %c2_116] : memref<4x16xf32, #tpu.memory_space<vmem>>, vector<4x1xf32>
    %c0_117 = arith.constant 0 : index
    %c2_118 = arith.constant 2 : index
    %249 = vector.load %arg5[%c0_117, %c2_118] : memref<4x16xf32, #tpu.memory_space<vmem>>, vector<4x1xf32>
    %250 = arith.mulf %247, %247 : f32
    %251 = vector.broadcast %250 : f32 to vector<4x1xf32>
    %252 = arith.mulf %251, %241 : vector<4x1xf32>
    %cst_119 = arith.constant 9.99999974E-6 : f32
    %253 = vector.broadcast %cst_119 : f32 to vector<4x1xf32>
    %254 = arith.addf %252, %253 : vector<4x1xf32>
    %255 = math.rsqrt %254 : vector<4x1xf32>
    %256 = vector.broadcast %247 : f32 to vector<4x1xf32>
    %257 = arith.mulf %256, %255 : vector<4x1xf32>
    %258 = arith.mulf %248, %257 : vector<4x1xf32>
    %259 = vector.broadcast %258 : vector<4x1xf32> to vector<4x512xf32>
    %260 = arith.mulf %227, %259 : vector<4x512xf32>
    %261 = arith.mulf %235, %258 : vector<4x1xf32>
    %262 = arith.subf %249, %261 : vector<4x1xf32>
    %263 = vector.broadcast %262 : vector<4x1xf32> to vector<4x512xf32>
    %264 = arith.addf %260, %263 : vector<4x512xf32>
    %c17_i32_120 = arith.constant 17 : i32
    %265 = tpu.dynamic_rotate %264 by %c17_i32_120 dim 1 : vector<4x512xf32>, i32 -> vector<4x512xf32>
    %c0_121 = arith.constant 0 : index
    %c0_122 = arith.constant 0 : index
    %266 = vector.load %arg8[%c0_121, %c0_122] : memref<9x512xf32, #tpu.memory_space<vmem>>, vector<1x512xf32>
    %267 = vector.broadcast %266 : vector<1x512xf32> to vector<4x512xf32>
    %268 = arith.mulf %265, %267 : vector<4x512xf32>
    %c16_i32_123 = arith.constant 16 : i32
    %269 = tpu.dynamic_rotate %264 by %c16_i32_123 dim 1 : vector<4x512xf32>, i32 -> vector<4x512xf32>
    %c1_124 = arith.constant 1 : index
    %c0_125 = arith.constant 0 : index
    %270 = vector.load %arg8[%c1_124, %c0_125] : memref<9x512xf32, #tpu.memory_space<vmem>>, vector<1x512xf32>
    %271 = vector.broadcast %270 : vector<1x512xf32> to vector<4x512xf32>
    %272 = arith.mulf %269, %271 : vector<4x512xf32>
    %c15_i32_126 = arith.constant 15 : i32
    %273 = tpu.dynamic_rotate %264 by %c15_i32_126 dim 1 : vector<4x512xf32>, i32 -> vector<4x512xf32>
    %c2_127 = arith.constant 2 : index
    %c0_128 = arith.constant 0 : index
    %274 = vector.load %arg8[%c2_127, %c0_128] : memref<9x512xf32, #tpu.memory_space<vmem>>, vector<1x512xf32>
    %275 = vector.broadcast %274 : vector<1x512xf32> to vector<4x512xf32>
    %276 = arith.mulf %273, %275 : vector<4x512xf32>
    %c1_i32_129 = arith.constant 1 : i32
    %277 = tpu.dynamic_rotate %264 by %c1_i32_129 dim 1 : vector<4x512xf32>, i32 -> vector<4x512xf32>
    %c3_130 = arith.constant 3 : index
    %c0_131 = arith.constant 0 : index
    %278 = vector.load %arg8[%c3_130, %c0_131] : memref<9x512xf32, #tpu.memory_space<vmem>>, vector<1x512xf32>
    %279 = vector.broadcast %278 : vector<1x512xf32> to vector<4x512xf32>
    %280 = arith.mulf %277, %279 : vector<4x512xf32>
    %c511_i32_132 = arith.constant 511 : i32
    %281 = tpu.dynamic_rotate %264 by %c511_i32_132 dim 1 : vector<4x512xf32>, i32 -> vector<4x512xf32>
    %c5_133 = arith.constant 5 : index
    %c0_134 = arith.constant 0 : index
    %282 = vector.load %arg8[%c5_133, %c0_134] : memref<9x512xf32, #tpu.memory_space<vmem>>, vector<1x512xf32>
    %283 = vector.broadcast %282 : vector<1x512xf32> to vector<4x512xf32>
    %284 = arith.mulf %281, %283 : vector<4x512xf32>
    %c497_i32_135 = arith.constant 497 : i32
    %285 = tpu.dynamic_rotate %264 by %c497_i32_135 dim 1 : vector<4x512xf32>, i32 -> vector<4x512xf32>
    %c6_136 = arith.constant 6 : index
    %c0_137 = arith.constant 0 : index
    %286 = vector.load %arg8[%c6_136, %c0_137] : memref<9x512xf32, #tpu.memory_space<vmem>>, vector<1x512xf32>
    %287 = vector.broadcast %286 : vector<1x512xf32> to vector<4x512xf32>
    %288 = arith.mulf %285, %287 : vector<4x512xf32>
    %c496_i32_138 = arith.constant 496 : i32
    %289 = tpu.dynamic_rotate %264 by %c496_i32_138 dim 1 : vector<4x512xf32>, i32 -> vector<4x512xf32>
    %c7_139 = arith.constant 7 : index
    %c0_140 = arith.constant 0 : index
    %290 = vector.load %arg8[%c7_139, %c0_140] : memref<9x512xf32, #tpu.memory_space<vmem>>, vector<1x512xf32>
    %291 = vector.broadcast %290 : vector<1x512xf32> to vector<4x512xf32>
    %292 = arith.mulf %289, %291 : vector<4x512xf32>
    %c495_i32_141 = arith.constant 495 : i32
    %293 = tpu.dynamic_rotate %264 by %c495_i32_141 dim 1 : vector<4x512xf32>, i32 -> vector<4x512xf32>
    %c8_142 = arith.constant 8 : index
    %c0_143 = arith.constant 0 : index
    %294 = vector.load %arg8[%c8_142, %c0_143] : memref<9x512xf32, #tpu.memory_space<vmem>>, vector<1x512xf32>
    %295 = vector.broadcast %294 : vector<1x512xf32> to vector<4x512xf32>
    %296 = arith.mulf %293, %295 : vector<4x512xf32>
    %297 = tpu.concatenate %268, %272, %276, %280, %264, %284, %288, %292, %296 in 0 : vector<4x512xf32>, vector<4x512xf32>, vector<4x512xf32>, vector<4x512xf32>, vector<4x512xf32>, vector<4x512xf32>, vector<4x512xf32>, vector<4x512xf32>, vector<4x512xf32> -> vector<36x512xf32>
    %c3_144 = arith.constant 3 : index
    %c0_145 = arith.constant 0 : index
    %c0_146 = arith.constant 0 : index
    %298 = vector.load %arg2[%c3_144, %c0_145, %c0_146] : memref<16x4x36xf32, #tpu.memory_space<vmem>>, vector<1x4x36xf32>
    %299 = vector.shape_cast %298 : vector<1x4x36xf32> to vector<4x36xf32>
    %cst_147 = arith.constant dense<0.000000e+00> : vector<4x512xf32>
    %300 = tpu.matmul %299, %297, %cst_147 {dimension_numbers = #tpu.dot_dimension_numbers<[1], [0], [0], [1], [0, 0, 1, 1], [], []>} : vector<4x36xf32>, vector<36x512xf32>, vector<4x512xf32> -> vector<4x512xf32>
    %c0_148 = arith.constant 0 : index
    %c3_149 = arith.constant 3 : index
    %301 = vector.load %arg3[%c0_148, %c3_149] : memref<4x16xf32, #tpu.memory_space<vmem>>, vector<4x1xf32>
    %302 = vector.broadcast %301 : vector<4x1xf32> to vector<4x512xf32>
    %303 = arith.addf %300, %302 : vector<4x512xf32>
    %cst_150 = arith.constant 0.00999999977 : f32
    %304 = vector.broadcast %cst_150 : f32 to vector<4x512xf32>
    %305 = arith.mulf %304, %303 : vector<4x512xf32>
    %306 = arith.maximumf %303, %305 : vector<4x512xf32>
    %307 = arith.mulf %306, %306 : vector<4x512xf32>
    %308 = tpu.concatenate %306, %307 in 0 : vector<4x512xf32>, vector<4x512xf32> -> vector<8x512xf32>
    %cst_151 = arith.constant dense<0.000000e+00> : vector<8xf32>
    %309 = vector.multi_reduction <add>, %308, %cst_151 [1] : vector<8x512xf32> to vector<8xf32>
    %310 = vector.shape_cast %309 : vector<8xf32> to vector<8x1xf32>
    %311 = vector.extract_strided_slice %310 {offsets = [0, 0], sizes = [4, 1], strides = [1, 1]} : vector<8x1xf32> to vector<4x1xf32>
    %312 = vector.extract_strided_slice %310 {offsets = [4, 0], sizes = [4, 1], strides = [1, 1]} : vector<8x1xf32> to vector<4x1xf32>
    %cst_152 = arith.constant 0.001953125 : f32
    %313 = vector.broadcast %cst_152 : f32 to vector<4x1xf32>
    %314 = arith.mulf %311, %313 : vector<4x1xf32>
    %cst_153 = arith.constant 0.001953125 : f32
    %315 = vector.broadcast %cst_153 : f32 to vector<4x1xf32>
    %316 = arith.mulf %312, %315 : vector<4x1xf32>
    %317 = arith.mulf %314, %314 : vector<4x1xf32>
    %318 = arith.subf %316, %317 : vector<4x1xf32>
    %cst_154 = arith.constant 0.000000e+00 : f32
    %319 = vector.broadcast %cst_154 : f32 to vector<4x1xf32>
    %320 = arith.maximumf %318, %319 : vector<4x1xf32>
    %321 = vector.shape_cast %312 : vector<4x1xf32> to vector<1x4x1xf32>
    %cst_155 = arith.constant dense<0.000000e+00> : vector<1xf32>
    %322 = vector.multi_reduction <add>, %321, %cst_155 [1, 2] : vector<1x4x1xf32> to vector<1xf32>
    %323 = vector.shape_cast %322 : vector<1xf32> to vector<1x1x1xf32>
    %324 = vector.extract %323[0, 0, 0] : f32 from vector<1x1x1xf32>
    %325 = math.sqrt %324 : f32
    %cst_156 = arith.constant 9.99999997E-7 : f32
    %326 = arith.addf %325, %cst_156 : f32
    %c0_157 = arith.constant 0 : index
    %c3_158 = arith.constant 3 : index
    %327 = vector.load %arg4[%c0_157, %c3_158] : memref<4x16xf32, #tpu.memory_space<vmem>>, vector<4x1xf32>
    %c0_159 = arith.constant 0 : index
    %c3_160 = arith.constant 3 : index
    %328 = vector.load %arg5[%c0_159, %c3_160] : memref<4x16xf32, #tpu.memory_space<vmem>>, vector<4x1xf32>
    %329 = arith.mulf %326, %326 : f32
    %330 = vector.broadcast %329 : f32 to vector<4x1xf32>
    %331 = arith.mulf %330, %320 : vector<4x1xf32>
    %cst_161 = arith.constant 9.99999974E-6 : f32
    %332 = vector.broadcast %cst_161 : f32 to vector<4x1xf32>
    %333 = arith.addf %331, %332 : vector<4x1xf32>
    %334 = math.rsqrt %333 : vector<4x1xf32>
    %335 = vector.broadcast %326 : f32 to vector<4x1xf32>
    %336 = arith.mulf %335, %334 : vector<4x1xf32>
    %337 = arith.mulf %327, %336 : vector<4x1xf32>
    %338 = vector.broadcast %337 : vector<4x1xf32> to vector<4x512xf32>
    %339 = arith.mulf %306, %338 : vector<4x512xf32>
    %340 = arith.mulf %314, %337 : vector<4x1xf32>
    %341 = arith.subf %328, %340 : vector<4x1xf32>
    %342 = vector.broadcast %341 : vector<4x1xf32> to vector<4x512xf32>
    %343 = arith.addf %339, %342 : vector<4x512xf32>
    %c17_i32_162 = arith.constant 17 : i32
    %344 = tpu.dynamic_rotate %343 by %c17_i32_162 dim 1 : vector<4x512xf32>, i32 -> vector<4x512xf32>
    %c0_163 = arith.constant 0 : index
    %c0_164 = arith.constant 0 : index
    %345 = vector.load %arg8[%c0_163, %c0_164] : memref<9x512xf32, #tpu.memory_space<vmem>>, vector<1x512xf32>
    %346 = vector.broadcast %345 : vector<1x512xf32> to vector<4x512xf32>
    %347 = arith.mulf %344, %346 : vector<4x512xf32>
    %c16_i32_165 = arith.constant 16 : i32
    %348 = tpu.dynamic_rotate %343 by %c16_i32_165 dim 1 : vector<4x512xf32>, i32 -> vector<4x512xf32>
    %c1_166 = arith.constant 1 : index
    %c0_167 = arith.constant 0 : index
    %349 = vector.load %arg8[%c1_166, %c0_167] : memref<9x512xf32, #tpu.memory_space<vmem>>, vector<1x512xf32>
    %350 = vector.broadcast %349 : vector<1x512xf32> to vector<4x512xf32>
    %351 = arith.mulf %348, %350 : vector<4x512xf32>
    %c15_i32_168 = arith.constant 15 : i32
    %352 = tpu.dynamic_rotate %343 by %c15_i32_168 dim 1 : vector<4x512xf32>, i32 -> vector<4x512xf32>
    %c2_169 = arith.constant 2 : index
    %c0_170 = arith.constant 0 : index
    %353 = vector.load %arg8[%c2_169, %c0_170] : memref<9x512xf32, #tpu.memory_space<vmem>>, vector<1x512xf32>
    %354 = vector.broadcast %353 : vector<1x512xf32> to vector<4x512xf32>
    %355 = arith.mulf %352, %354 : vector<4x512xf32>
    %c1_i32_171 = arith.constant 1 : i32
    %356 = tpu.dynamic_rotate %343 by %c1_i32_171 dim 1 : vector<4x512xf32>, i32 -> vector<4x512xf32>
    %c3_172 = arith.constant 3 : index
    %c0_173 = arith.constant 0 : index
    %357 = vector.load %arg8[%c3_172, %c0_173] : memref<9x512xf32, #tpu.memory_space<vmem>>, vector<1x512xf32>
    %358 = vector.broadcast %357 : vector<1x512xf32> to vector<4x512xf32>
    %359 = arith.mulf %356, %358 : vector<4x512xf32>
    %c511_i32_174 = arith.constant 511 : i32
    %360 = tpu.dynamic_rotate %343 by %c511_i32_174 dim 1 : vector<4x512xf32>, i32 -> vector<4x512xf32>
    %c5_175 = arith.constant 5 : index
    %c0_176 = arith.constant 0 : index
    %361 = vector.load %arg8[%c5_175, %c0_176] : memref<9x512xf32, #tpu.memory_space<vmem>>, vector<1x512xf32>
    %362 = vector.broadcast %361 : vector<1x512xf32> to vector<4x512xf32>
    %363 = arith.mulf %360, %362 : vector<4x512xf32>
    %c497_i32_177 = arith.constant 497 : i32
    %364 = tpu.dynamic_rotate %343 by %c497_i32_177 dim 1 : vector<4x512xf32>, i32 -> vector<4x512xf32>
    %c6_178 = arith.constant 6 : index
    %c0_179 = arith.constant 0 : index
    %365 = vector.load %arg8[%c6_178, %c0_179] : memref<9x512xf32, #tpu.memory_space<vmem>>, vector<1x512xf32>
    %366 = vector.broadcast %365 : vector<1x512xf32> to vector<4x512xf32>
    %367 = arith.mulf %364, %366 : vector<4x512xf32>
    %c496_i32_180 = arith.constant 496 : i32
    %368 = tpu.dynamic_rotate %343 by %c496_i32_180 dim 1 : vector<4x512xf32>, i32 -> vector<4x512xf32>
    %c7_181 = arith.constant 7 : index
    %c0_182 = arith.constant 0 : index
    %369 = vector.load %arg8[%c7_181, %c0_182] : memref<9x512xf32, #tpu.memory_space<vmem>>, vector<1x512xf32>
    %370 = vector.broadcast %369 : vector<1x512xf32> to vector<4x512xf32>
    %371 = arith.mulf %368, %370 : vector<4x512xf32>
    %c495_i32_183 = arith.constant 495 : i32
    %372 = tpu.dynamic_rotate %343 by %c495_i32_183 dim 1 : vector<4x512xf32>, i32 -> vector<4x512xf32>
    %c8_184 = arith.constant 8 : index
    %c0_185 = arith.constant 0 : index
    %373 = vector.load %arg8[%c8_184, %c0_185] : memref<9x512xf32, #tpu.memory_space<vmem>>, vector<1x512xf32>
    %374 = vector.broadcast %373 : vector<1x512xf32> to vector<4x512xf32>
    %375 = arith.mulf %372, %374 : vector<4x512xf32>
    %376 = tpu.concatenate %347, %351, %355, %359, %343, %363, %367, %371, %375 in 0 : vector<4x512xf32>, vector<4x512xf32>, vector<4x512xf32>, vector<4x512xf32>, vector<4x512xf32>, vector<4x512xf32>, vector<4x512xf32>, vector<4x512xf32>, vector<4x512xf32> -> vector<36x512xf32>
    %c4 = arith.constant 4 : index
    %c0_186 = arith.constant 0 : index
    %c0_187 = arith.constant 0 : index
    %377 = vector.load %arg2[%c4, %c0_186, %c0_187] : memref<16x4x36xf32, #tpu.memory_space<vmem>>, vector<1x4x36xf32>
    %378 = vector.shape_cast %377 : vector<1x4x36xf32> to vector<4x36xf32>
    %cst_188 = arith.constant dense<0.000000e+00> : vector<4x512xf32>
    %379 = tpu.matmul %378, %376, %cst_188 {dimension_numbers = #tpu.dot_dimension_numbers<[1], [0], [0], [1], [0, 0, 1, 1], [], []>} : vector<4x36xf32>, vector<36x512xf32>, vector<4x512xf32> -> vector<4x512xf32>
    %c0_189 = arith.constant 0 : index
    %c4_190 = arith.constant 4 : index
    %380 = vector.load %arg3[%c0_189, %c4_190] : memref<4x16xf32, #tpu.memory_space<vmem>>, vector<4x1xf32>
    %381 = vector.broadcast %380 : vector<4x1xf32> to vector<4x512xf32>
    %382 = arith.addf %379, %381 : vector<4x512xf32>
    %cst_191 = arith.constant 0.00999999977 : f32
    %383 = vector.broadcast %cst_191 : f32 to vector<4x512xf32>
    %384 = arith.mulf %383, %382 : vector<4x512xf32>
    %385 = arith.maximumf %382, %384 : vector<4x512xf32>
    %386 = arith.mulf %385, %385 : vector<4x512xf32>
    %387 = tpu.concatenate %385, %386 in 0 : vector<4x512xf32>, vector<4x512xf32> -> vector<8x512xf32>
    %cst_192 = arith.constant dense<0.000000e+00> : vector<8xf32>
    %388 = vector.multi_reduction <add>, %387, %cst_192 [1] : vector<8x512xf32> to vector<8xf32>
    %389 = vector.shape_cast %388 : vector<8xf32> to vector<8x1xf32>
    %390 = vector.extract_strided_slice %389 {offsets = [0, 0], sizes = [4, 1], strides = [1, 1]} : vector<8x1xf32> to vector<4x1xf32>
    %391 = vector.extract_strided_slice %389 {offsets = [4, 0], sizes = [4, 1], strides = [1, 1]} : vector<8x1xf32> to vector<4x1xf32>
    %cst_193 = arith.constant 0.001953125 : f32
    %392 = vector.broadcast %cst_193 : f32 to vector<4x1xf32>
    %393 = arith.mulf %390, %392 : vector<4x1xf32>
    %cst_194 = arith.constant 0.001953125 : f32
    %394 = vector.broadcast %cst_194 : f32 to vector<4x1xf32>
    %395 = arith.mulf %391, %394 : vector<4x1xf32>
    %396 = arith.mulf %393, %393 : vector<4x1xf32>
    %397 = arith.subf %395, %396 : vector<4x1xf32>
    %cst_195 = arith.constant 0.000000e+00 : f32
    %398 = vector.broadcast %cst_195 : f32 to vector<4x1xf32>
    %399 = arith.maximumf %397, %398 : vector<4x1xf32>
    %400 = vector.shape_cast %391 : vector<4x1xf32> to vector<1x4x1xf32>
    %cst_196 = arith.constant dense<0.000000e+00> : vector<1xf32>
    %401 = vector.multi_reduction <add>, %400, %cst_196 [1, 2] : vector<1x4x1xf32> to vector<1xf32>
    %402 = vector.shape_cast %401 : vector<1xf32> to vector<1x1x1xf32>
    %403 = vector.extract %402[0, 0, 0] : f32 from vector<1x1x1xf32>
    %404 = math.sqrt %403 : f32
    %cst_197 = arith.constant 9.99999997E-7 : f32
    %405 = arith.addf %404, %cst_197 : f32
    %c0_198 = arith.constant 0 : index
    %c4_199 = arith.constant 4 : index
    %406 = vector.load %arg4[%c0_198, %c4_199] : memref<4x16xf32, #tpu.memory_space<vmem>>, vector<4x1xf32>
    %c0_200 = arith.constant 0 : index
    %c4_201 = arith.constant 4 : index
    %407 = vector.load %arg5[%c0_200, %c4_201] : memref<4x16xf32, #tpu.memory_space<vmem>>, vector<4x1xf32>
    %408 = arith.mulf %405, %405 : f32
    %409 = vector.broadcast %408 : f32 to vector<4x1xf32>
    %410 = arith.mulf %409, %399 : vector<4x1xf32>
    %cst_202 = arith.constant 9.99999974E-6 : f32
    %411 = vector.broadcast %cst_202 : f32 to vector<4x1xf32>
    %412 = arith.addf %410, %411 : vector<4x1xf32>
    %413 = math.rsqrt %412 : vector<4x1xf32>
    %414 = vector.broadcast %405 : f32 to vector<4x1xf32>
    %415 = arith.mulf %414, %413 : vector<4x1xf32>
    %416 = arith.mulf %406, %415 : vector<4x1xf32>
    %417 = vector.broadcast %416 : vector<4x1xf32> to vector<4x512xf32>
    %418 = arith.mulf %385, %417 : vector<4x512xf32>
    %419 = arith.mulf %393, %416 : vector<4x1xf32>
    %420 = arith.subf %407, %419 : vector<4x1xf32>
    %421 = vector.broadcast %420 : vector<4x1xf32> to vector<4x512xf32>
    %422 = arith.addf %418, %421 : vector<4x512xf32>
    %c17_i32_203 = arith.constant 17 : i32
    %423 = tpu.dynamic_rotate %422 by %c17_i32_203 dim 1 : vector<4x512xf32>, i32 -> vector<4x512xf32>
    %c0_204 = arith.constant 0 : index
    %c0_205 = arith.constant 0 : index
    %424 = vector.load %arg8[%c0_204, %c0_205] : memref<9x512xf32, #tpu.memory_space<vmem>>, vector<1x512xf32>
    %425 = vector.broadcast %424 : vector<1x512xf32> to vector<4x512xf32>
    %426 = arith.mulf %423, %425 : vector<4x512xf32>
    %c16_i32_206 = arith.constant 16 : i32
    %427 = tpu.dynamic_rotate %422 by %c16_i32_206 dim 1 : vector<4x512xf32>, i32 -> vector<4x512xf32>
    %c1_207 = arith.constant 1 : index
    %c0_208 = arith.constant 0 : index
    %428 = vector.load %arg8[%c1_207, %c0_208] : memref<9x512xf32, #tpu.memory_space<vmem>>, vector<1x512xf32>
    %429 = vector.broadcast %428 : vector<1x512xf32> to vector<4x512xf32>
    %430 = arith.mulf %427, %429 : vector<4x512xf32>
    %c15_i32_209 = arith.constant 15 : i32
    %431 = tpu.dynamic_rotate %422 by %c15_i32_209 dim 1 : vector<4x512xf32>, i32 -> vector<4x512xf32>
    %c2_210 = arith.constant 2 : index
    %c0_211 = arith.constant 0 : index
    %432 = vector.load %arg8[%c2_210, %c0_211] : memref<9x512xf32, #tpu.memory_space<vmem>>, vector<1x512xf32>
    %433 = vector.broadcast %432 : vector<1x512xf32> to vector<4x512xf32>
    %434 = arith.mulf %431, %433 : vector<4x512xf32>
    %c1_i32_212 = arith.constant 1 : i32
    %435 = tpu.dynamic_rotate %422 by %c1_i32_212 dim 1 : vector<4x512xf32>, i32 -> vector<4x512xf32>
    %c3_213 = arith.constant 3 : index
    %c0_214 = arith.constant 0 : index
    %436 = vector.load %arg8[%c3_213, %c0_214] : memref<9x512xf32, #tpu.memory_space<vmem>>, vector<1x512xf32>
    %437 = vector.broadcast %436 : vector<1x512xf32> to vector<4x512xf32>
    %438 = arith.mulf %435, %437 : vector<4x512xf32>
    %c511_i32_215 = arith.constant 511 : i32
    %439 = tpu.dynamic_rotate %422 by %c511_i32_215 dim 1 : vector<4x512xf32>, i32 -> vector<4x512xf32>
    %c5_216 = arith.constant 5 : index
    %c0_217 = arith.constant 0 : index
    %440 = vector.load %arg8[%c5_216, %c0_217] : memref<9x512xf32, #tpu.memory_space<vmem>>, vector<1x512xf32>
    %441 = vector.broadcast %440 : vector<1x512xf32> to vector<4x512xf32>
    %442 = arith.mulf %439, %441 : vector<4x512xf32>
    %c497_i32_218 = arith.constant 497 : i32
    %443 = tpu.dynamic_rotate %422 by %c497_i32_218 dim 1 : vector<4x512xf32>, i32 -> vector<4x512xf32>
    %c6_219 = arith.constant 6 : index
    %c0_220 = arith.constant 0 : index
    %444 = vector.load %arg8[%c6_219, %c0_220] : memref<9x512xf32, #tpu.memory_space<vmem>>, vector<1x512xf32>
    %445 = vector.broadcast %444 : vector<1x512xf32> to vector<4x512xf32>
    %446 = arith.mulf %443, %445 : vector<4x512xf32>
    %c496_i32_221 = arith.constant 496 : i32
    %447 = tpu.dynamic_rotate %422 by %c496_i32_221 dim 1 : vector<4x512xf32>, i32 -> vector<4x512xf32>
    %c7_222 = arith.constant 7 : index
    %c0_223 = arith.constant 0 : index
    %448 = vector.load %arg8[%c7_222, %c0_223] : memref<9x512xf32, #tpu.memory_space<vmem>>, vector<1x512xf32>
    %449 = vector.broadcast %448 : vector<1x512xf32> to vector<4x512xf32>
    %450 = arith.mulf %447, %449 : vector<4x512xf32>
    %c495_i32_224 = arith.constant 495 : i32
    %451 = tpu.dynamic_rotate %422 by %c495_i32_224 dim 1 : vector<4x512xf32>, i32 -> vector<4x512xf32>
    %c8_225 = arith.constant 8 : index
    %c0_226 = arith.constant 0 : index
    %452 = vector.load %arg8[%c8_225, %c0_226] : memref<9x512xf32, #tpu.memory_space<vmem>>, vector<1x512xf32>
    %453 = vector.broadcast %452 : vector<1x512xf32> to vector<4x512xf32>
    %454 = arith.mulf %451, %453 : vector<4x512xf32>
    %455 = tpu.concatenate %426, %430, %434, %438, %422, %442, %446, %450, %454 in 0 : vector<4x512xf32>, vector<4x512xf32>, vector<4x512xf32>, vector<4x512xf32>, vector<4x512xf32>, vector<4x512xf32>, vector<4x512xf32>, vector<4x512xf32>, vector<4x512xf32> -> vector<36x512xf32>
    %c5_227 = arith.constant 5 : index
    %c0_228 = arith.constant 0 : index
    %c0_229 = arith.constant 0 : index
    %456 = vector.load %arg2[%c5_227, %c0_228, %c0_229] : memref<16x4x36xf32, #tpu.memory_space<vmem>>, vector<1x4x36xf32>
    %457 = vector.shape_cast %456 : vector<1x4x36xf32> to vector<4x36xf32>
    %cst_230 = arith.constant dense<0.000000e+00> : vector<4x512xf32>
    %458 = tpu.matmul %457, %455, %cst_230 {dimension_numbers = #tpu.dot_dimension_numbers<[1], [0], [0], [1], [0, 0, 1, 1], [], []>} : vector<4x36xf32>, vector<36x512xf32>, vector<4x512xf32> -> vector<4x512xf32>
    %c0_231 = arith.constant 0 : index
    %c5_232 = arith.constant 5 : index
    %459 = vector.load %arg3[%c0_231, %c5_232] : memref<4x16xf32, #tpu.memory_space<vmem>>, vector<4x1xf32>
    %460 = vector.broadcast %459 : vector<4x1xf32> to vector<4x512xf32>
    %461 = arith.addf %458, %460 : vector<4x512xf32>
    %cst_233 = arith.constant 0.00999999977 : f32
    %462 = vector.broadcast %cst_233 : f32 to vector<4x512xf32>
    %463 = arith.mulf %462, %461 : vector<4x512xf32>
    %464 = arith.maximumf %461, %463 : vector<4x512xf32>
    %465 = arith.mulf %464, %464 : vector<4x512xf32>
    %466 = tpu.concatenate %464, %465 in 0 : vector<4x512xf32>, vector<4x512xf32> -> vector<8x512xf32>
    %cst_234 = arith.constant dense<0.000000e+00> : vector<8xf32>
    %467 = vector.multi_reduction <add>, %466, %cst_234 [1] : vector<8x512xf32> to vector<8xf32>
    %468 = vector.shape_cast %467 : vector<8xf32> to vector<8x1xf32>
    %469 = vector.extract_strided_slice %468 {offsets = [0, 0], sizes = [4, 1], strides = [1, 1]} : vector<8x1xf32> to vector<4x1xf32>
    %470 = vector.extract_strided_slice %468 {offsets = [4, 0], sizes = [4, 1], strides = [1, 1]} : vector<8x1xf32> to vector<4x1xf32>
    %cst_235 = arith.constant 0.001953125 : f32
    %471 = vector.broadcast %cst_235 : f32 to vector<4x1xf32>
    %472 = arith.mulf %469, %471 : vector<4x1xf32>
    %cst_236 = arith.constant 0.001953125 : f32
    %473 = vector.broadcast %cst_236 : f32 to vector<4x1xf32>
    %474 = arith.mulf %470, %473 : vector<4x1xf32>
    %475 = arith.mulf %472, %472 : vector<4x1xf32>
    %476 = arith.subf %474, %475 : vector<4x1xf32>
    %cst_237 = arith.constant 0.000000e+00 : f32
    %477 = vector.broadcast %cst_237 : f32 to vector<4x1xf32>
    %478 = arith.maximumf %476, %477 : vector<4x1xf32>
    %479 = vector.shape_cast %470 : vector<4x1xf32> to vector<1x4x1xf32>
    %cst_238 = arith.constant dense<0.000000e+00> : vector<1xf32>
    %480 = vector.multi_reduction <add>, %479, %cst_238 [1, 2] : vector<1x4x1xf32> to vector<1xf32>
    %481 = vector.shape_cast %480 : vector<1xf32> to vector<1x1x1xf32>
    %482 = vector.extract %481[0, 0, 0] : f32 from vector<1x1x1xf32>
    %483 = math.sqrt %482 : f32
    %cst_239 = arith.constant 9.99999997E-7 : f32
    %484 = arith.addf %483, %cst_239 : f32
    %c0_240 = arith.constant 0 : index
    %c5_241 = arith.constant 5 : index
    %485 = vector.load %arg4[%c0_240, %c5_241] : memref<4x16xf32, #tpu.memory_space<vmem>>, vector<4x1xf32>
    %c0_242 = arith.constant 0 : index
    %c5_243 = arith.constant 5 : index
    %486 = vector.load %arg5[%c0_242, %c5_243] : memref<4x16xf32, #tpu.memory_space<vmem>>, vector<4x1xf32>
    %487 = arith.mulf %484, %484 : f32
    %488 = vector.broadcast %487 : f32 to vector<4x1xf32>
    %489 = arith.mulf %488, %478 : vector<4x1xf32>
    %cst_244 = arith.constant 9.99999974E-6 : f32
    %490 = vector.broadcast %cst_244 : f32 to vector<4x1xf32>
    %491 = arith.addf %489, %490 : vector<4x1xf32>
    %492 = math.rsqrt %491 : vector<4x1xf32>
    %493 = vector.broadcast %484 : f32 to vector<4x1xf32>
    %494 = arith.mulf %493, %492 : vector<4x1xf32>
    %495 = arith.mulf %485, %494 : vector<4x1xf32>
    %496 = vector.broadcast %495 : vector<4x1xf32> to vector<4x512xf32>
    %497 = arith.mulf %464, %496 : vector<4x512xf32>
    %498 = arith.mulf %472, %495 : vector<4x1xf32>
    %499 = arith.subf %486, %498 : vector<4x1xf32>
    %500 = vector.broadcast %499 : vector<4x1xf32> to vector<4x512xf32>
    %501 = arith.addf %497, %500 : vector<4x512xf32>
    %502 = arith.mulf %501, %501 : vector<4x512xf32>
    %503 = tpu.concatenate %501, %502 in 0 : vector<4x512xf32>, vector<4x512xf32> -> vector<8x512xf32>
    %cst_245 = arith.constant dense<0.000000e+00> : vector<8xf32>
    %504 = vector.multi_reduction <add>, %503, %cst_245 [1] : vector<8x512xf32> to vector<8xf32>
    %505 = vector.shape_cast %504 : vector<8xf32> to vector<8x1xf32>
    %506 = vector.extract_strided_slice %505 {offsets = [0, 0], sizes = [4, 1], strides = [1, 1]} : vector<8x1xf32> to vector<4x1xf32>
    %507 = vector.extract_strided_slice %505 {offsets = [4, 0], sizes = [4, 1], strides = [1, 1]} : vector<8x1xf32> to vector<4x1xf32>
    %cst_246 = arith.constant 0.001953125 : f32
    %508 = vector.broadcast %cst_246 : f32 to vector<4x1xf32>
    %509 = arith.mulf %506, %508 : vector<4x1xf32>
    %cst_247 = arith.constant 0.001953125 : f32
    %510 = vector.broadcast %cst_247 : f32 to vector<4x1xf32>
    %511 = arith.mulf %507, %510 : vector<4x1xf32>
    %512 = arith.mulf %509, %509 : vector<4x1xf32>
    %513 = arith.subf %511, %512 : vector<4x1xf32>
    %cst_248 = arith.constant 0.000000e+00 : f32
    %514 = vector.broadcast %cst_248 : f32 to vector<4x1xf32>
    %515 = arith.maximumf %513, %514 : vector<4x1xf32>
    %c0_249 = arith.constant 0 : index
    %c3_250 = arith.constant 3 : index
    %516 = vector.load %arg6[%c0_249, %c3_250] : memref<4x8xf32, #tpu.memory_space<vmem>>, vector<4x1xf32>
    %c0_251 = arith.constant 0 : index
    %c3_252 = arith.constant 3 : index
    %517 = vector.load %arg7[%c0_251, %c3_252] : memref<4x8xf32, #tpu.memory_space<vmem>>, vector<4x1xf32>
    %cst_253 = arith.constant 9.99999974E-6 : f32
    %518 = vector.broadcast %cst_253 : f32 to vector<4x1xf32>
    %519 = arith.addf %515, %518 : vector<4x1xf32>
    %520 = math.rsqrt %519 : vector<4x1xf32>
    %521 = arith.mulf %516, %520 : vector<4x1xf32>
    %522 = vector.broadcast %521 : vector<4x1xf32> to vector<4x512xf32>
    %523 = arith.mulf %501, %522 : vector<4x512xf32>
    %524 = arith.mulf %509, %521 : vector<4x1xf32>
    %525 = arith.subf %517, %524 : vector<4x1xf32>
    %526 = vector.broadcast %525 : vector<4x1xf32> to vector<4x512xf32>
    %527 = arith.addf %523, %526 : vector<4x512xf32>
    %c17_i32_254 = arith.constant 17 : i32
    %528 = tpu.dynamic_rotate %501 by %c17_i32_254 dim 1 : vector<4x512xf32>, i32 -> vector<4x512xf32>
    %c0_255 = arith.constant 0 : index
    %c0_256 = arith.constant 0 : index
    %529 = vector.load %arg8[%c0_255, %c0_256] : memref<9x512xf32, #tpu.memory_space<vmem>>, vector<1x512xf32>
    %530 = vector.broadcast %529 : vector<1x512xf32> to vector<4x512xf32>
    %531 = arith.mulf %528, %530 : vector<4x512xf32>
    %c16_i32_257 = arith.constant 16 : i32
    %532 = tpu.dynamic_rotate %501 by %c16_i32_257 dim 1 : vector<4x512xf32>, i32 -> vector<4x512xf32>
    %c1_258 = arith.constant 1 : index
    %c0_259 = arith.constant 0 : index
    %533 = vector.load %arg8[%c1_258, %c0_259] : memref<9x512xf32, #tpu.memory_space<vmem>>, vector<1x512xf32>
    %534 = vector.broadcast %533 : vector<1x512xf32> to vector<4x512xf32>
    %535 = arith.mulf %532, %534 : vector<4x512xf32>
    %c15_i32_260 = arith.constant 15 : i32
    %536 = tpu.dynamic_rotate %501 by %c15_i32_260 dim 1 : vector<4x512xf32>, i32 -> vector<4x512xf32>
    %c2_261 = arith.constant 2 : index
    %c0_262 = arith.constant 0 : index
    %537 = vector.load %arg8[%c2_261, %c0_262] : memref<9x512xf32, #tpu.memory_space<vmem>>, vector<1x512xf32>
    %538 = vector.broadcast %537 : vector<1x512xf32> to vector<4x512xf32>
    %539 = arith.mulf %536, %538 : vector<4x512xf32>
    %c1_i32_263 = arith.constant 1 : i32
    %540 = tpu.dynamic_rotate %501 by %c1_i32_263 dim 1 : vector<4x512xf32>, i32 -> vector<4x512xf32>
    %c3_264 = arith.constant 3 : index
    %c0_265 = arith.constant 0 : index
    %541 = vector.load %arg8[%c3_264, %c0_265] : memref<9x512xf32, #tpu.memory_space<vmem>>, vector<1x512xf32>
    %542 = vector.broadcast %541 : vector<1x512xf32> to vector<4x512xf32>
    %543 = arith.mulf %540, %542 : vector<4x512xf32>
    %c511_i32_266 = arith.constant 511 : i32
    %544 = tpu.dynamic_rotate %501 by %c511_i32_266 dim 1 : vector<4x512xf32>, i32 -> vector<4x512xf32>
    %c5_267 = arith.constant 5 : index
    %c0_268 = arith.constant 0 : index
    %545 = vector.load %arg8[%c5_267, %c0_268] : memref<9x512xf32, #tpu.memory_space<vmem>>, vector<1x512xf32>
    %546 = vector.broadcast %545 : vector<1x512xf32> to vector<4x512xf32>
    %547 = arith.mulf %544, %546 : vector<4x512xf32>
    %c497_i32_269 = arith.constant 497 : i32
    %548 = tpu.dynamic_rotate %501 by %c497_i32_269 dim 1 : vector<4x512xf32>, i32 -> vector<4x512xf32>
    %c6_270 = arith.constant 6 : index
    %c0_271 = arith.constant 0 : index
    %549 = vector.load %arg8[%c6_270, %c0_271] : memref<9x512xf32, #tpu.memory_space<vmem>>, vector<1x512xf32>
    %550 = vector.broadcast %549 : vector<1x512xf32> to vector<4x512xf32>
    %551 = arith.mulf %548, %550 : vector<4x512xf32>
    %c496_i32_272 = arith.constant 496 : i32
    %552 = tpu.dynamic_rotate %501 by %c496_i32_272 dim 1 : vector<4x512xf32>, i32 -> vector<4x512xf32>
    %c7_273 = arith.constant 7 : index
    %c0_274 = arith.constant 0 : index
    %553 = vector.load %arg8[%c7_273, %c0_274] : memref<9x512xf32, #tpu.memory_space<vmem>>, vector<1x512xf32>
    %554 = vector.broadcast %553 : vector<1x512xf32> to vector<4x512xf32>
    %555 = arith.mulf %552, %554 : vector<4x512xf32>
    %c495_i32_275 = arith.constant 495 : i32
    %556 = tpu.dynamic_rotate %501 by %c495_i32_275 dim 1 : vector<4x512xf32>, i32 -> vector<4x512xf32>
    %c8_276 = arith.constant 8 : index
    %c0_277 = arith.constant 0 : index
    %557 = vector.load %arg8[%c8_276, %c0_277] : memref<9x512xf32, #tpu.memory_space<vmem>>, vector<1x512xf32>
    %558 = vector.broadcast %557 : vector<1x512xf32> to vector<4x512xf32>
    %559 = arith.mulf %556, %558 : vector<4x512xf32>
    %560 = tpu.concatenate %531, %535, %539, %543, %501, %547, %551, %555, %559 in 0 : vector<4x512xf32>, vector<4x512xf32>, vector<4x512xf32>, vector<4x512xf32>, vector<4x512xf32>, vector<4x512xf32>, vector<4x512xf32>, vector<4x512xf32>, vector<4x512xf32> -> vector<36x512xf32>
    %c6_278 = arith.constant 6 : index
    %c0_279 = arith.constant 0 : index
    %c0_280 = arith.constant 0 : index
    %561 = vector.load %arg2[%c6_278, %c0_279, %c0_280] : memref<16x4x36xf32, #tpu.memory_space<vmem>>, vector<1x4x36xf32>
    %562 = vector.shape_cast %561 : vector<1x4x36xf32> to vector<4x36xf32>
    %cst_281 = arith.constant dense<0.000000e+00> : vector<4x512xf32>
    %563 = tpu.matmul %562, %560, %cst_281 {dimension_numbers = #tpu.dot_dimension_numbers<[1], [0], [0], [1], [0, 0, 1, 1], [], []>} : vector<4x36xf32>, vector<36x512xf32>, vector<4x512xf32> -> vector<4x512xf32>
    %c0_282 = arith.constant 0 : index
    %c6_283 = arith.constant 6 : index
    %564 = vector.load %arg3[%c0_282, %c6_283] : memref<4x16xf32, #tpu.memory_space<vmem>>, vector<4x1xf32>
    %565 = vector.broadcast %564 : vector<4x1xf32> to vector<4x512xf32>
    %566 = arith.addf %563, %565 : vector<4x512xf32>
    %cst_284 = arith.constant 0.00999999977 : f32
    %567 = vector.broadcast %cst_284 : f32 to vector<4x512xf32>
    %568 = arith.mulf %567, %566 : vector<4x512xf32>
    %569 = arith.maximumf %566, %568 : vector<4x512xf32>
    %570 = arith.mulf %569, %569 : vector<4x512xf32>
    %571 = tpu.concatenate %569, %570 in 0 : vector<4x512xf32>, vector<4x512xf32> -> vector<8x512xf32>
    %cst_285 = arith.constant dense<0.000000e+00> : vector<8xf32>
    %572 = vector.multi_reduction <add>, %571, %cst_285 [1] : vector<8x512xf32> to vector<8xf32>
    %573 = vector.shape_cast %572 : vector<8xf32> to vector<8x1xf32>
    %574 = vector.extract_strided_slice %573 {offsets = [0, 0], sizes = [4, 1], strides = [1, 1]} : vector<8x1xf32> to vector<4x1xf32>
    %575 = vector.extract_strided_slice %573 {offsets = [4, 0], sizes = [4, 1], strides = [1, 1]} : vector<8x1xf32> to vector<4x1xf32>
    %cst_286 = arith.constant 0.001953125 : f32
    %576 = vector.broadcast %cst_286 : f32 to vector<4x1xf32>
    %577 = arith.mulf %574, %576 : vector<4x1xf32>
    %cst_287 = arith.constant 0.001953125 : f32
    %578 = vector.broadcast %cst_287 : f32 to vector<4x1xf32>
    %579 = arith.mulf %575, %578 : vector<4x1xf32>
    %580 = arith.mulf %577, %577 : vector<4x1xf32>
    %581 = arith.subf %579, %580 : vector<4x1xf32>
    %cst_288 = arith.constant 0.000000e+00 : f32
    %582 = vector.broadcast %cst_288 : f32 to vector<4x1xf32>
    %583 = arith.maximumf %581, %582 : vector<4x1xf32>
    %584 = vector.shape_cast %575 : vector<4x1xf32> to vector<1x4x1xf32>
    %cst_289 = arith.constant dense<0.000000e+00> : vector<1xf32>
    %585 = vector.multi_reduction <add>, %584, %cst_289 [1, 2] : vector<1x4x1xf32> to vector<1xf32>
    %586 = vector.shape_cast %585 : vector<1xf32> to vector<1x1x1xf32>
    %587 = vector.extract %586[0, 0, 0] : f32 from vector<1x1x1xf32>
    %588 = math.sqrt %587 : f32
    %cst_290 = arith.constant 9.99999997E-7 : f32
    %589 = arith.addf %588, %cst_290 : f32
    %c0_291 = arith.constant 0 : index
    %c6_292 = arith.constant 6 : index
    %590 = vector.load %arg4[%c0_291, %c6_292] : memref<4x16xf32, #tpu.memory_space<vmem>>, vector<4x1xf32>
    %c0_293 = arith.constant 0 : index
    %c6_294 = arith.constant 6 : index
    %591 = vector.load %arg5[%c0_293, %c6_294] : memref<4x16xf32, #tpu.memory_space<vmem>>, vector<4x1xf32>
    %592 = arith.mulf %589, %589 : f32
    %593 = vector.broadcast %592 : f32 to vector<4x1xf32>
    %594 = arith.mulf %593, %583 : vector<4x1xf32>
    %cst_295 = arith.constant 9.99999974E-6 : f32
    %595 = vector.broadcast %cst_295 : f32 to vector<4x1xf32>
    %596 = arith.addf %594, %595 : vector<4x1xf32>
    %597 = math.rsqrt %596 : vector<4x1xf32>
    %598 = vector.broadcast %589 : f32 to vector<4x1xf32>
    %599 = arith.mulf %598, %597 : vector<4x1xf32>
    %600 = arith.mulf %590, %599 : vector<4x1xf32>
    %601 = vector.broadcast %600 : vector<4x1xf32> to vector<4x512xf32>
    %602 = arith.mulf %569, %601 : vector<4x512xf32>
    %603 = arith.mulf %577, %600 : vector<4x1xf32>
    %604 = arith.subf %591, %603 : vector<4x1xf32>
    %605 = vector.broadcast %604 : vector<4x1xf32> to vector<4x512xf32>
    %606 = arith.addf %602, %605 : vector<4x512xf32>
    %c17_i32_296 = arith.constant 17 : i32
    %607 = tpu.dynamic_rotate %606 by %c17_i32_296 dim 1 : vector<4x512xf32>, i32 -> vector<4x512xf32>
    %c0_297 = arith.constant 0 : index
    %c0_298 = arith.constant 0 : index
    %608 = vector.load %arg8[%c0_297, %c0_298] : memref<9x512xf32, #tpu.memory_space<vmem>>, vector<1x512xf32>
    %609 = vector.broadcast %608 : vector<1x512xf32> to vector<4x512xf32>
    %610 = arith.mulf %607, %609 : vector<4x512xf32>
    %c16_i32_299 = arith.constant 16 : i32
    %611 = tpu.dynamic_rotate %606 by %c16_i32_299 dim 1 : vector<4x512xf32>, i32 -> vector<4x512xf32>
    %c1_300 = arith.constant 1 : index
    %c0_301 = arith.constant 0 : index
    %612 = vector.load %arg8[%c1_300, %c0_301] : memref<9x512xf32, #tpu.memory_space<vmem>>, vector<1x512xf32>
    %613 = vector.broadcast %612 : vector<1x512xf32> to vector<4x512xf32>
    %614 = arith.mulf %611, %613 : vector<4x512xf32>
    %c15_i32_302 = arith.constant 15 : i32
    %615 = tpu.dynamic_rotate %606 by %c15_i32_302 dim 1 : vector<4x512xf32>, i32 -> vector<4x512xf32>
    %c2_303 = arith.constant 2 : index
    %c0_304 = arith.constant 0 : index
    %616 = vector.load %arg8[%c2_303, %c0_304] : memref<9x512xf32, #tpu.memory_space<vmem>>, vector<1x512xf32>
    %617 = vector.broadcast %616 : vector<1x512xf32> to vector<4x512xf32>
    %618 = arith.mulf %615, %617 : vector<4x512xf32>
    %c1_i32_305 = arith.constant 1 : i32
    %619 = tpu.dynamic_rotate %606 by %c1_i32_305 dim 1 : vector<4x512xf32>, i32 -> vector<4x512xf32>
    %c3_306 = arith.constant 3 : index
    %c0_307 = arith.constant 0 : index
    %620 = vector.load %arg8[%c3_306, %c0_307] : memref<9x512xf32, #tpu.memory_space<vmem>>, vector<1x512xf32>
    %621 = vector.broadcast %620 : vector<1x512xf32> to vector<4x512xf32>
    %622 = arith.mulf %619, %621 : vector<4x512xf32>
    %c511_i32_308 = arith.constant 511 : i32
    %623 = tpu.dynamic_rotate %606 by %c511_i32_308 dim 1 : vector<4x512xf32>, i32 -> vector<4x512xf32>
    %c5_309 = arith.constant 5 : index
    %c0_310 = arith.constant 0 : index
    %624 = vector.load %arg8[%c5_309, %c0_310] : memref<9x512xf32, #tpu.memory_space<vmem>>, vector<1x512xf32>
    %625 = vector.broadcast %624 : vector<1x512xf32> to vector<4x512xf32>
    %626 = arith.mulf %623, %625 : vector<4x512xf32>
    %c497_i32_311 = arith.constant 497 : i32
    %627 = tpu.dynamic_rotate %606 by %c497_i32_311 dim 1 : vector<4x512xf32>, i32 -> vector<4x512xf32>
    %c6_312 = arith.constant 6 : index
    %c0_313 = arith.constant 0 : index
    %628 = vector.load %arg8[%c6_312, %c0_313] : memref<9x512xf32, #tpu.memory_space<vmem>>, vector<1x512xf32>
    %629 = vector.broadcast %628 : vector<1x512xf32> to vector<4x512xf32>
    %630 = arith.mulf %627, %629 : vector<4x512xf32>
    %c496_i32_314 = arith.constant 496 : i32
    %631 = tpu.dynamic_rotate %606 by %c496_i32_314 dim 1 : vector<4x512xf32>, i32 -> vector<4x512xf32>
    %c7_315 = arith.constant 7 : index
    %c0_316 = arith.constant 0 : index
    %632 = vector.load %arg8[%c7_315, %c0_316] : memref<9x512xf32, #tpu.memory_space<vmem>>, vector<1x512xf32>
    %633 = vector.broadcast %632 : vector<1x512xf32> to vector<4x512xf32>
    %634 = arith.mulf %631, %633 : vector<4x512xf32>
    %c495_i32_317 = arith.constant 495 : i32
    %635 = tpu.dynamic_rotate %606 by %c495_i32_317 dim 1 : vector<4x512xf32>, i32 -> vector<4x512xf32>
    %c8_318 = arith.constant 8 : index
    %c0_319 = arith.constant 0 : index
    %636 = vector.load %arg8[%c8_318, %c0_319] : memref<9x512xf32, #tpu.memory_space<vmem>>, vector<1x512xf32>
    %637 = vector.broadcast %636 : vector<1x512xf32> to vector<4x512xf32>
    %638 = arith.mulf %635, %637 : vector<4x512xf32>
    %639 = tpu.concatenate %610, %614, %618, %622, %606, %626, %630, %634, %638 in 0 : vector<4x512xf32>, vector<4x512xf32>, vector<4x512xf32>, vector<4x512xf32>, vector<4x512xf32>, vector<4x512xf32>, vector<4x512xf32>, vector<4x512xf32>, vector<4x512xf32> -> vector<36x512xf32>
    %c7_320 = arith.constant 7 : index
    %c0_321 = arith.constant 0 : index
    %c0_322 = arith.constant 0 : index
    %640 = vector.load %arg2[%c7_320, %c0_321, %c0_322] : memref<16x4x36xf32, #tpu.memory_space<vmem>>, vector<1x4x36xf32>
    %641 = vector.shape_cast %640 : vector<1x4x36xf32> to vector<4x36xf32>
    %cst_323 = arith.constant dense<0.000000e+00> : vector<4x512xf32>
    %642 = tpu.matmul %641, %639, %cst_323 {dimension_numbers = #tpu.dot_dimension_numbers<[1], [0], [0], [1], [0, 0, 1, 1], [], []>} : vector<4x36xf32>, vector<36x512xf32>, vector<4x512xf32> -> vector<4x512xf32>
    %c0_324 = arith.constant 0 : index
    %c7_325 = arith.constant 7 : index
    %643 = vector.load %arg3[%c0_324, %c7_325] : memref<4x16xf32, #tpu.memory_space<vmem>>, vector<4x1xf32>
    %644 = vector.broadcast %643 : vector<4x1xf32> to vector<4x512xf32>
    %645 = arith.addf %642, %644 : vector<4x512xf32>
    %cst_326 = arith.constant 0.00999999977 : f32
    %646 = vector.broadcast %cst_326 : f32 to vector<4x512xf32>
    %647 = arith.mulf %646, %645 : vector<4x512xf32>
    %648 = arith.maximumf %645, %647 : vector<4x512xf32>
    %649 = arith.mulf %648, %648 : vector<4x512xf32>
    %650 = tpu.concatenate %648, %649 in 0 : vector<4x512xf32>, vector<4x512xf32> -> vector<8x512xf32>
    %cst_327 = arith.constant dense<0.000000e+00> : vector<8xf32>
    %651 = vector.multi_reduction <add>, %650, %cst_327 [1] : vector<8x512xf32> to vector<8xf32>
    %652 = vector.shape_cast %651 : vector<8xf32> to vector<8x1xf32>
    %653 = vector.extract_strided_slice %652 {offsets = [0, 0], sizes = [4, 1], strides = [1, 1]} : vector<8x1xf32> to vector<4x1xf32>
    %654 = vector.extract_strided_slice %652 {offsets = [4, 0], sizes = [4, 1], strides = [1, 1]} : vector<8x1xf32> to vector<4x1xf32>
    %cst_328 = arith.constant 0.001953125 : f32
    %655 = vector.broadcast %cst_328 : f32 to vector<4x1xf32>
    %656 = arith.mulf %653, %655 : vector<4x1xf32>
    %cst_329 = arith.constant 0.001953125 : f32
    %657 = vector.broadcast %cst_329 : f32 to vector<4x1xf32>
    %658 = arith.mulf %654, %657 : vector<4x1xf32>
    %659 = arith.mulf %656, %656 : vector<4x1xf32>
    %660 = arith.subf %658, %659 : vector<4x1xf32>
    %cst_330 = arith.constant 0.000000e+00 : f32
    %661 = vector.broadcast %cst_330 : f32 to vector<4x1xf32>
    %662 = arith.maximumf %660, %661 : vector<4x1xf32>
    %663 = vector.shape_cast %654 : vector<4x1xf32> to vector<1x4x1xf32>
    %cst_331 = arith.constant dense<0.000000e+00> : vector<1xf32>
    %664 = vector.multi_reduction <add>, %663, %cst_331 [1, 2] : vector<1x4x1xf32> to vector<1xf32>
    %665 = vector.shape_cast %664 : vector<1xf32> to vector<1x1x1xf32>
    %666 = vector.extract %665[0, 0, 0] : f32 from vector<1x1x1xf32>
    %667 = math.sqrt %666 : f32
    %cst_332 = arith.constant 9.99999997E-7 : f32
    %668 = arith.addf %667, %cst_332 : f32
    %c0_333 = arith.constant 0 : index
    %c7_334 = arith.constant 7 : index
    %669 = vector.load %arg4[%c0_333, %c7_334] : memref<4x16xf32, #tpu.memory_space<vmem>>, vector<4x1xf32>
    %c0_335 = arith.constant 0 : index
    %c7_336 = arith.constant 7 : index
    %670 = vector.load %arg5[%c0_335, %c7_336] : memref<4x16xf32, #tpu.memory_space<vmem>>, vector<4x1xf32>
    %671 = arith.mulf %668, %668 : f32
    %672 = vector.broadcast %671 : f32 to vector<4x1xf32>
    %673 = arith.mulf %672, %662 : vector<4x1xf32>
    %cst_337 = arith.constant 9.99999974E-6 : f32
    %674 = vector.broadcast %cst_337 : f32 to vector<4x1xf32>
    %675 = arith.addf %673, %674 : vector<4x1xf32>
    %676 = math.rsqrt %675 : vector<4x1xf32>
    %677 = vector.broadcast %668 : f32 to vector<4x1xf32>
    %678 = arith.mulf %677, %676 : vector<4x1xf32>
    %679 = arith.mulf %669, %678 : vector<4x1xf32>
    %680 = vector.broadcast %679 : vector<4x1xf32> to vector<4x512xf32>
    %681 = arith.mulf %648, %680 : vector<4x512xf32>
    %682 = arith.mulf %656, %679 : vector<4x1xf32>
    %683 = arith.subf %670, %682 : vector<4x1xf32>
    %684 = vector.broadcast %683 : vector<4x1xf32> to vector<4x512xf32>
    %685 = arith.addf %681, %684 : vector<4x512xf32>
    %686 = arith.addf %685, %527 : vector<4x512xf32>
    %687 = arith.mulf %686, %686 : vector<4x512xf32>
    %688 = tpu.concatenate %686, %687 in 0 : vector<4x512xf32>, vector<4x512xf32> -> vector<8x512xf32>
    %cst_338 = arith.constant dense<0.000000e+00> : vector<8xf32>
    %689 = vector.multi_reduction <add>, %688, %cst_338 [1] : vector<8x512xf32> to vector<8xf32>
    %690 = vector.shape_cast %689 : vector<8xf32> to vector<8x1xf32>
    %691 = vector.extract_strided_slice %690 {offsets = [0, 0], sizes = [4, 1], strides = [1, 1]} : vector<8x1xf32> to vector<4x1xf32>
    %692 = vector.extract_strided_slice %690 {offsets = [4, 0], sizes = [4, 1], strides = [1, 1]} : vector<8x1xf32> to vector<4x1xf32>
    %cst_339 = arith.constant 0.001953125 : f32
    %693 = vector.broadcast %cst_339 : f32 to vector<4x1xf32>
    %694 = arith.mulf %691, %693 : vector<4x1xf32>
    %cst_340 = arith.constant 0.001953125 : f32
    %695 = vector.broadcast %cst_340 : f32 to vector<4x1xf32>
    %696 = arith.mulf %692, %695 : vector<4x1xf32>
    %697 = arith.mulf %694, %694 : vector<4x1xf32>
    %698 = arith.subf %696, %697 : vector<4x1xf32>
    %cst_341 = arith.constant 0.000000e+00 : f32
    %699 = vector.broadcast %cst_341 : f32 to vector<4x1xf32>
    %700 = arith.maximumf %698, %699 : vector<4x1xf32>
    %c0_342 = arith.constant 0 : index
    %c4_343 = arith.constant 4 : index
    %701 = vector.load %arg6[%c0_342, %c4_343] : memref<4x8xf32, #tpu.memory_space<vmem>>, vector<4x1xf32>
    %c0_344 = arith.constant 0 : index
    %c4_345 = arith.constant 4 : index
    %702 = vector.load %arg7[%c0_344, %c4_345] : memref<4x8xf32, #tpu.memory_space<vmem>>, vector<4x1xf32>
    %cst_346 = arith.constant 9.99999974E-6 : f32
    %703 = vector.broadcast %cst_346 : f32 to vector<4x1xf32>
    %704 = arith.addf %700, %703 : vector<4x1xf32>
    %705 = math.rsqrt %704 : vector<4x1xf32>
    %706 = arith.mulf %701, %705 : vector<4x1xf32>
    %707 = vector.broadcast %706 : vector<4x1xf32> to vector<4x512xf32>
    %708 = arith.mulf %686, %707 : vector<4x512xf32>
    %709 = arith.mulf %694, %706 : vector<4x1xf32>
    %710 = arith.subf %702, %709 : vector<4x1xf32>
    %711 = vector.broadcast %710 : vector<4x1xf32> to vector<4x512xf32>
    %712 = arith.addf %708, %711 : vector<4x512xf32>
    %c17_i32_347 = arith.constant 17 : i32
    %713 = tpu.dynamic_rotate %686 by %c17_i32_347 dim 1 : vector<4x512xf32>, i32 -> vector<4x512xf32>
    %c0_348 = arith.constant 0 : index
    %c0_349 = arith.constant 0 : index
    %714 = vector.load %arg8[%c0_348, %c0_349] : memref<9x512xf32, #tpu.memory_space<vmem>>, vector<1x512xf32>
    %715 = vector.broadcast %714 : vector<1x512xf32> to vector<4x512xf32>
    %716 = arith.mulf %713, %715 : vector<4x512xf32>
    %c16_i32_350 = arith.constant 16 : i32
    %717 = tpu.dynamic_rotate %686 by %c16_i32_350 dim 1 : vector<4x512xf32>, i32 -> vector<4x512xf32>
    %c1_351 = arith.constant 1 : index
    %c0_352 = arith.constant 0 : index
    %718 = vector.load %arg8[%c1_351, %c0_352] : memref<9x512xf32, #tpu.memory_space<vmem>>, vector<1x512xf32>
    %719 = vector.broadcast %718 : vector<1x512xf32> to vector<4x512xf32>
    %720 = arith.mulf %717, %719 : vector<4x512xf32>
    %c15_i32_353 = arith.constant 15 : i32
    %721 = tpu.dynamic_rotate %686 by %c15_i32_353 dim 1 : vector<4x512xf32>, i32 -> vector<4x512xf32>
    %c2_354 = arith.constant 2 : index
    %c0_355 = arith.constant 0 : index
    %722 = vector.load %arg8[%c2_354, %c0_355] : memref<9x512xf32, #tpu.memory_space<vmem>>, vector<1x512xf32>
    %723 = vector.broadcast %722 : vector<1x512xf32> to vector<4x512xf32>
    %724 = arith.mulf %721, %723 : vector<4x512xf32>
    %c1_i32_356 = arith.constant 1 : i32
    %725 = tpu.dynamic_rotate %686 by %c1_i32_356 dim 1 : vector<4x512xf32>, i32 -> vector<4x512xf32>
    %c3_357 = arith.constant 3 : index
    %c0_358 = arith.constant 0 : index
    %726 = vector.load %arg8[%c3_357, %c0_358] : memref<9x512xf32, #tpu.memory_space<vmem>>, vector<1x512xf32>
    %727 = vector.broadcast %726 : vector<1x512xf32> to vector<4x512xf32>
    %728 = arith.mulf %725, %727 : vector<4x512xf32>
    %c511_i32_359 = arith.constant 511 : i32
    %729 = tpu.dynamic_rotate %686 by %c511_i32_359 dim 1 : vector<4x512xf32>, i32 -> vector<4x512xf32>
    %c5_360 = arith.constant 5 : index
    %c0_361 = arith.constant 0 : index
    %730 = vector.load %arg8[%c5_360, %c0_361] : memref<9x512xf32, #tpu.memory_space<vmem>>, vector<1x512xf32>
    %731 = vector.broadcast %730 : vector<1x512xf32> to vector<4x512xf32>
    %732 = arith.mulf %729, %731 : vector<4x512xf32>
    %c497_i32_362 = arith.constant 497 : i32
    %733 = tpu.dynamic_rotate %686 by %c497_i32_362 dim 1 : vector<4x512xf32>, i32 -> vector<4x512xf32>
    %c6_363 = arith.constant 6 : index
    %c0_364 = arith.constant 0 : index
    %734 = vector.load %arg8[%c6_363, %c0_364] : memref<9x512xf32, #tpu.memory_space<vmem>>, vector<1x512xf32>
    %735 = vector.broadcast %734 : vector<1x512xf32> to vector<4x512xf32>
    %736 = arith.mulf %733, %735 : vector<4x512xf32>
    %c496_i32_365 = arith.constant 496 : i32
    %737 = tpu.dynamic_rotate %686 by %c496_i32_365 dim 1 : vector<4x512xf32>, i32 -> vector<4x512xf32>
    %c7_366 = arith.constant 7 : index
    %c0_367 = arith.constant 0 : index
    %738 = vector.load %arg8[%c7_366, %c0_367] : memref<9x512xf32, #tpu.memory_space<vmem>>, vector<1x512xf32>
    %739 = vector.broadcast %738 : vector<1x512xf32> to vector<4x512xf32>
    %740 = arith.mulf %737, %739 : vector<4x512xf32>
    %c495_i32_368 = arith.constant 495 : i32
    %741 = tpu.dynamic_rotate %686 by %c495_i32_368 dim 1 : vector<4x512xf32>, i32 -> vector<4x512xf32>
    %c8_369 = arith.constant 8 : index
    %c0_370 = arith.constant 0 : index
    %742 = vector.load %arg8[%c8_369, %c0_370] : memref<9x512xf32, #tpu.memory_space<vmem>>, vector<1x512xf32>
    %743 = vector.broadcast %742 : vector<1x512xf32> to vector<4x512xf32>
    %744 = arith.mulf %741, %743 : vector<4x512xf32>
    %745 = tpu.concatenate %716, %720, %724, %728, %686, %732, %736, %740, %744 in 0 : vector<4x512xf32>, vector<4x512xf32>, vector<4x512xf32>, vector<4x512xf32>, vector<4x512xf32>, vector<4x512xf32>, vector<4x512xf32>, vector<4x512xf32>, vector<4x512xf32> -> vector<36x512xf32>
    %c8_371 = arith.constant 8 : index
    %c0_372 = arith.constant 0 : index
    %c0_373 = arith.constant 0 : index
    %746 = vector.load %arg2[%c8_371, %c0_372, %c0_373] : memref<16x4x36xf32, #tpu.memory_space<vmem>>, vector<1x4x36xf32>
    %747 = vector.shape_cast %746 : vector<1x4x36xf32> to vector<4x36xf32>
    %cst_374 = arith.constant dense<0.000000e+00> : vector<4x512xf32>
    %748 = tpu.matmul %747, %745, %cst_374 {dimension_numbers = #tpu.dot_dimension_numbers<[1], [0], [0], [1], [0, 0, 1, 1], [], []>} : vector<4x36xf32>, vector<36x512xf32>, vector<4x512xf32> -> vector<4x512xf32>
    %c0_375 = arith.constant 0 : index
    %c8_376 = arith.constant 8 : index
    %749 = vector.load %arg3[%c0_375, %c8_376] : memref<4x16xf32, #tpu.memory_space<vmem>>, vector<4x1xf32>
    %750 = vector.broadcast %749 : vector<4x1xf32> to vector<4x512xf32>
    %751 = arith.addf %748, %750 : vector<4x512xf32>
    %cst_377 = arith.constant 0.00999999977 : f32
    %752 = vector.broadcast %cst_377 : f32 to vector<4x512xf32>
    %753 = arith.mulf %752, %751 : vector<4x512xf32>
    %754 = arith.maximumf %751, %753 : vector<4x512xf32>
    %755 = arith.mulf %754, %754 : vector<4x512xf32>
    %756 = tpu.concatenate %754, %755 in 0 : vector<4x512xf32>, vector<4x512xf32> -> vector<8x512xf32>
    %cst_378 = arith.constant dense<0.000000e+00> : vector<8xf32>
    %757 = vector.multi_reduction <add>, %756, %cst_378 [1] : vector<8x512xf32> to vector<8xf32>
    %758 = vector.shape_cast %757 : vector<8xf32> to vector<8x1xf32>
    %759 = vector.extract_strided_slice %758 {offsets = [0, 0], sizes = [4, 1], strides = [1, 1]} : vector<8x1xf32> to vector<4x1xf32>
    %760 = vector.extract_strided_slice %758 {offsets = [4, 0], sizes = [4, 1], strides = [1, 1]} : vector<8x1xf32> to vector<4x1xf32>
    %cst_379 = arith.constant 0.001953125 : f32
    %761 = vector.broadcast %cst_379 : f32 to vector<4x1xf32>
    %762 = arith.mulf %759, %761 : vector<4x1xf32>
    %cst_380 = arith.constant 0.001953125 : f32
    %763 = vector.broadcast %cst_380 : f32 to vector<4x1xf32>
    %764 = arith.mulf %760, %763 : vector<4x1xf32>
    %765 = arith.mulf %762, %762 : vector<4x1xf32>
    %766 = arith.subf %764, %765 : vector<4x1xf32>
    %cst_381 = arith.constant 0.000000e+00 : f32
    %767 = vector.broadcast %cst_381 : f32 to vector<4x1xf32>
    %768 = arith.maximumf %766, %767 : vector<4x1xf32>
    %769 = vector.shape_cast %760 : vector<4x1xf32> to vector<1x4x1xf32>
    %cst_382 = arith.constant dense<0.000000e+00> : vector<1xf32>
    %770 = vector.multi_reduction <add>, %769, %cst_382 [1, 2] : vector<1x4x1xf32> to vector<1xf32>
    %771 = vector.shape_cast %770 : vector<1xf32> to vector<1x1x1xf32>
    %772 = vector.extract %771[0, 0, 0] : f32 from vector<1x1x1xf32>
    %773 = math.sqrt %772 : f32
    %cst_383 = arith.constant 9.99999997E-7 : f32
    %774 = arith.addf %773, %cst_383 : f32
    %c0_384 = arith.constant 0 : index
    %c8_385 = arith.constant 8 : index
    %775 = vector.load %arg4[%c0_384, %c8_385] : memref<4x16xf32, #tpu.memory_space<vmem>>, vector<4x1xf32>
    %c0_386 = arith.constant 0 : index
    %c8_387 = arith.constant 8 : index
    %776 = vector.load %arg5[%c0_386, %c8_387] : memref<4x16xf32, #tpu.memory_space<vmem>>, vector<4x1xf32>
    %777 = arith.mulf %774, %774 : f32
    %778 = vector.broadcast %777 : f32 to vector<4x1xf32>
    %779 = arith.mulf %778, %768 : vector<4x1xf32>
    %cst_388 = arith.constant 9.99999974E-6 : f32
    %780 = vector.broadcast %cst_388 : f32 to vector<4x1xf32>
    %781 = arith.addf %779, %780 : vector<4x1xf32>
    %782 = math.rsqrt %781 : vector<4x1xf32>
    %783 = vector.broadcast %774 : f32 to vector<4x1xf32>
    %784 = arith.mulf %783, %782 : vector<4x1xf32>
    %785 = arith.mulf %775, %784 : vector<4x1xf32>
    %786 = vector.broadcast %785 : vector<4x1xf32> to vector<4x512xf32>
    %787 = arith.mulf %754, %786 : vector<4x512xf32>
    %788 = arith.mulf %762, %785 : vector<4x1xf32>
    %789 = arith.subf %776, %788 : vector<4x1xf32>
    %790 = vector.broadcast %789 : vector<4x1xf32> to vector<4x512xf32>
    %791 = arith.addf %787, %790 : vector<4x512xf32>
    %c17_i32_389 = arith.constant 17 : i32
    %792 = tpu.dynamic_rotate %791 by %c17_i32_389 dim 1 : vector<4x512xf32>, i32 -> vector<4x512xf32>
    %c0_390 = arith.constant 0 : index
    %c0_391 = arith.constant 0 : index
    %793 = vector.load %arg8[%c0_390, %c0_391] : memref<9x512xf32, #tpu.memory_space<vmem>>, vector<1x512xf32>
    %794 = vector.broadcast %793 : vector<1x512xf32> to vector<4x512xf32>
    %795 = arith.mulf %792, %794 : vector<4x512xf32>
    %c16_i32_392 = arith.constant 16 : i32
    %796 = tpu.dynamic_rotate %791 by %c16_i32_392 dim 1 : vector<4x512xf32>, i32 -> vector<4x512xf32>
    %c1_393 = arith.constant 1 : index
    %c0_394 = arith.constant 0 : index
    %797 = vector.load %arg8[%c1_393, %c0_394] : memref<9x512xf32, #tpu.memory_space<vmem>>, vector<1x512xf32>
    %798 = vector.broadcast %797 : vector<1x512xf32> to vector<4x512xf32>
    %799 = arith.mulf %796, %798 : vector<4x512xf32>
    %c15_i32_395 = arith.constant 15 : i32
    %800 = tpu.dynamic_rotate %791 by %c15_i32_395 dim 1 : vector<4x512xf32>, i32 -> vector<4x512xf32>
    %c2_396 = arith.constant 2 : index
    %c0_397 = arith.constant 0 : index
    %801 = vector.load %arg8[%c2_396, %c0_397] : memref<9x512xf32, #tpu.memory_space<vmem>>, vector<1x512xf32>
    %802 = vector.broadcast %801 : vector<1x512xf32> to vector<4x512xf32>
    %803 = arith.mulf %800, %802 : vector<4x512xf32>
    %c1_i32_398 = arith.constant 1 : i32
    %804 = tpu.dynamic_rotate %791 by %c1_i32_398 dim 1 : vector<4x512xf32>, i32 -> vector<4x512xf32>
    %c3_399 = arith.constant 3 : index
    %c0_400 = arith.constant 0 : index
    %805 = vector.load %arg8[%c3_399, %c0_400] : memref<9x512xf32, #tpu.memory_space<vmem>>, vector<1x512xf32>
    %806 = vector.broadcast %805 : vector<1x512xf32> to vector<4x512xf32>
    %807 = arith.mulf %804, %806 : vector<4x512xf32>
    %c511_i32_401 = arith.constant 511 : i32
    %808 = tpu.dynamic_rotate %791 by %c511_i32_401 dim 1 : vector<4x512xf32>, i32 -> vector<4x512xf32>
    %c5_402 = arith.constant 5 : index
    %c0_403 = arith.constant 0 : index
    %809 = vector.load %arg8[%c5_402, %c0_403] : memref<9x512xf32, #tpu.memory_space<vmem>>, vector<1x512xf32>
    %810 = vector.broadcast %809 : vector<1x512xf32> to vector<4x512xf32>
    %811 = arith.mulf %808, %810 : vector<4x512xf32>
    %c497_i32_404 = arith.constant 497 : i32
    %812 = tpu.dynamic_rotate %791 by %c497_i32_404 dim 1 : vector<4x512xf32>, i32 -> vector<4x512xf32>
    %c6_405 = arith.constant 6 : index
    %c0_406 = arith.constant 0 : index
    %813 = vector.load %arg8[%c6_405, %c0_406] : memref<9x512xf32, #tpu.memory_space<vmem>>, vector<1x512xf32>
    %814 = vector.broadcast %813 : vector<1x512xf32> to vector<4x512xf32>
    %815 = arith.mulf %812, %814 : vector<4x512xf32>
    %c496_i32_407 = arith.constant 496 : i32
    %816 = tpu.dynamic_rotate %791 by %c496_i32_407 dim 1 : vector<4x512xf32>, i32 -> vector<4x512xf32>
    %c7_408 = arith.constant 7 : index
    %c0_409 = arith.constant 0 : index
    %817 = vector.load %arg8[%c7_408, %c0_409] : memref<9x512xf32, #tpu.memory_space<vmem>>, vector<1x512xf32>
    %818 = vector.broadcast %817 : vector<1x512xf32> to vector<4x512xf32>
    %819 = arith.mulf %816, %818 : vector<4x512xf32>
    %c495_i32_410 = arith.constant 495 : i32
    %820 = tpu.dynamic_rotate %791 by %c495_i32_410 dim 1 : vector<4x512xf32>, i32 -> vector<4x512xf32>
    %c8_411 = arith.constant 8 : index
    %c0_412 = arith.constant 0 : index
    %821 = vector.load %arg8[%c8_411, %c0_412] : memref<9x512xf32, #tpu.memory_space<vmem>>, vector<1x512xf32>
    %822 = vector.broadcast %821 : vector<1x512xf32> to vector<4x512xf32>
    %823 = arith.mulf %820, %822 : vector<4x512xf32>
    %824 = tpu.concatenate %795, %799, %803, %807, %791, %811, %815, %819, %823 in 0 : vector<4x512xf32>, vector<4x512xf32>, vector<4x512xf32>, vector<4x512xf32>, vector<4x512xf32>, vector<4x512xf32>, vector<4x512xf32>, vector<4x512xf32>, vector<4x512xf32> -> vector<36x512xf32>
    %c9 = arith.constant 9 : index
    %c0_413 = arith.constant 0 : index
    %c0_414 = arith.constant 0 : index
    %825 = vector.load %arg2[%c9, %c0_413, %c0_414] : memref<16x4x36xf32, #tpu.memory_space<vmem>>, vector<1x4x36xf32>
    %826 = vector.shape_cast %825 : vector<1x4x36xf32> to vector<4x36xf32>
    %cst_415 = arith.constant dense<0.000000e+00> : vector<4x512xf32>
    %827 = tpu.matmul %826, %824, %cst_415 {dimension_numbers = #tpu.dot_dimension_numbers<[1], [0], [0], [1], [0, 0, 1, 1], [], []>} : vector<4x36xf32>, vector<36x512xf32>, vector<4x512xf32> -> vector<4x512xf32>
    %c0_416 = arith.constant 0 : index
    %c9_417 = arith.constant 9 : index
    %828 = vector.load %arg3[%c0_416, %c9_417] : memref<4x16xf32, #tpu.memory_space<vmem>>, vector<4x1xf32>
    %829 = vector.broadcast %828 : vector<4x1xf32> to vector<4x512xf32>
    %830 = arith.addf %827, %829 : vector<4x512xf32>
    %cst_418 = arith.constant 0.00999999977 : f32
    %831 = vector.broadcast %cst_418 : f32 to vector<4x512xf32>
    %832 = arith.mulf %831, %830 : vector<4x512xf32>
    %833 = arith.maximumf %830, %832 : vector<4x512xf32>
    %834 = arith.mulf %833, %833 : vector<4x512xf32>
    %835 = tpu.concatenate %833, %834 in 0 : vector<4x512xf32>, vector<4x512xf32> -> vector<8x512xf32>
    %cst_419 = arith.constant dense<0.000000e+00> : vector<8xf32>
    %836 = vector.multi_reduction <add>, %835, %cst_419 [1] : vector<8x512xf32> to vector<8xf32>
    %837 = vector.shape_cast %836 : vector<8xf32> to vector<8x1xf32>
    %838 = vector.extract_strided_slice %837 {offsets = [0, 0], sizes = [4, 1], strides = [1, 1]} : vector<8x1xf32> to vector<4x1xf32>
    %839 = vector.extract_strided_slice %837 {offsets = [4, 0], sizes = [4, 1], strides = [1, 1]} : vector<8x1xf32> to vector<4x1xf32>
    %cst_420 = arith.constant 0.001953125 : f32
    %840 = vector.broadcast %cst_420 : f32 to vector<4x1xf32>
    %841 = arith.mulf %838, %840 : vector<4x1xf32>
    %cst_421 = arith.constant 0.001953125 : f32
    %842 = vector.broadcast %cst_421 : f32 to vector<4x1xf32>
    %843 = arith.mulf %839, %842 : vector<4x1xf32>
    %844 = arith.mulf %841, %841 : vector<4x1xf32>
    %845 = arith.subf %843, %844 : vector<4x1xf32>
    %cst_422 = arith.constant 0.000000e+00 : f32
    %846 = vector.broadcast %cst_422 : f32 to vector<4x1xf32>
    %847 = arith.maximumf %845, %846 : vector<4x1xf32>
    %848 = vector.shape_cast %839 : vector<4x1xf32> to vector<1x4x1xf32>
    %cst_423 = arith.constant dense<0.000000e+00> : vector<1xf32>
    %849 = vector.multi_reduction <add>, %848, %cst_423 [1, 2] : vector<1x4x1xf32> to vector<1xf32>
    %850 = vector.shape_cast %849 : vector<1xf32> to vector<1x1x1xf32>
    %851 = vector.extract %850[0, 0, 0] : f32 from vector<1x1x1xf32>
    %852 = math.sqrt %851 : f32
    %cst_424 = arith.constant 9.99999997E-7 : f32
    %853 = arith.addf %852, %cst_424 : f32
    %c0_425 = arith.constant 0 : index
    %c9_426 = arith.constant 9 : index
    %854 = vector.load %arg4[%c0_425, %c9_426] : memref<4x16xf32, #tpu.memory_space<vmem>>, vector<4x1xf32>
    %c0_427 = arith.constant 0 : index
    %c9_428 = arith.constant 9 : index
    %855 = vector.load %arg5[%c0_427, %c9_428] : memref<4x16xf32, #tpu.memory_space<vmem>>, vector<4x1xf32>
    %856 = arith.mulf %853, %853 : f32
    %857 = vector.broadcast %856 : f32 to vector<4x1xf32>
    %858 = arith.mulf %857, %847 : vector<4x1xf32>
    %cst_429 = arith.constant 9.99999974E-6 : f32
    %859 = vector.broadcast %cst_429 : f32 to vector<4x1xf32>
    %860 = arith.addf %858, %859 : vector<4x1xf32>
    %861 = math.rsqrt %860 : vector<4x1xf32>
    %862 = vector.broadcast %853 : f32 to vector<4x1xf32>
    %863 = arith.mulf %862, %861 : vector<4x1xf32>
    %864 = arith.mulf %854, %863 : vector<4x1xf32>
    %865 = vector.broadcast %864 : vector<4x1xf32> to vector<4x512xf32>
    %866 = arith.mulf %833, %865 : vector<4x512xf32>
    %867 = arith.mulf %841, %864 : vector<4x1xf32>
    %868 = arith.subf %855, %867 : vector<4x1xf32>
    %869 = vector.broadcast %868 : vector<4x1xf32> to vector<4x512xf32>
    %870 = arith.addf %866, %869 : vector<4x512xf32>
    %871 = arith.addf %870, %712 : vector<4x512xf32>
    %c17_i32_430 = arith.constant 17 : i32
    %872 = tpu.dynamic_rotate %871 by %c17_i32_430 dim 1 : vector<4x512xf32>, i32 -> vector<4x512xf32>
    %c0_431 = arith.constant 0 : index
    %c0_432 = arith.constant 0 : index
    %873 = vector.load %arg8[%c0_431, %c0_432] : memref<9x512xf32, #tpu.memory_space<vmem>>, vector<1x512xf32>
    %874 = vector.broadcast %873 : vector<1x512xf32> to vector<4x512xf32>
    %875 = arith.mulf %872, %874 : vector<4x512xf32>
    %c16_i32_433 = arith.constant 16 : i32
    %876 = tpu.dynamic_rotate %871 by %c16_i32_433 dim 1 : vector<4x512xf32>, i32 -> vector<4x512xf32>
    %c1_434 = arith.constant 1 : index
    %c0_435 = arith.constant 0 : index
    %877 = vector.load %arg8[%c1_434, %c0_435] : memref<9x512xf32, #tpu.memory_space<vmem>>, vector<1x512xf32>
    %878 = vector.broadcast %877 : vector<1x512xf32> to vector<4x512xf32>
    %879 = arith.mulf %876, %878 : vector<4x512xf32>
    %c15_i32_436 = arith.constant 15 : i32
    %880 = tpu.dynamic_rotate %871 by %c15_i32_436 dim 1 : vector<4x512xf32>, i32 -> vector<4x512xf32>
    %c2_437 = arith.constant 2 : index
    %c0_438 = arith.constant 0 : index
    %881 = vector.load %arg8[%c2_437, %c0_438] : memref<9x512xf32, #tpu.memory_space<vmem>>, vector<1x512xf32>
    %882 = vector.broadcast %881 : vector<1x512xf32> to vector<4x512xf32>
    %883 = arith.mulf %880, %882 : vector<4x512xf32>
    %c1_i32_439 = arith.constant 1 : i32
    %884 = tpu.dynamic_rotate %871 by %c1_i32_439 dim 1 : vector<4x512xf32>, i32 -> vector<4x512xf32>
    %c3_440 = arith.constant 3 : index
    %c0_441 = arith.constant 0 : index
    %885 = vector.load %arg8[%c3_440, %c0_441] : memref<9x512xf32, #tpu.memory_space<vmem>>, vector<1x512xf32>
    %886 = vector.broadcast %885 : vector<1x512xf32> to vector<4x512xf32>
    %887 = arith.mulf %884, %886 : vector<4x512xf32>
    %c511_i32_442 = arith.constant 511 : i32
    %888 = tpu.dynamic_rotate %871 by %c511_i32_442 dim 1 : vector<4x512xf32>, i32 -> vector<4x512xf32>
    %c5_443 = arith.constant 5 : index
    %c0_444 = arith.constant 0 : index
    %889 = vector.load %arg8[%c5_443, %c0_444] : memref<9x512xf32, #tpu.memory_space<vmem>>, vector<1x512xf32>
    %890 = vector.broadcast %889 : vector<1x512xf32> to vector<4x512xf32>
    %891 = arith.mulf %888, %890 : vector<4x512xf32>
    %c497_i32_445 = arith.constant 497 : i32
    %892 = tpu.dynamic_rotate %871 by %c497_i32_445 dim 1 : vector<4x512xf32>, i32 -> vector<4x512xf32>
    %c6_446 = arith.constant 6 : index
    %c0_447 = arith.constant 0 : index
    %893 = vector.load %arg8[%c6_446, %c0_447] : memref<9x512xf32, #tpu.memory_space<vmem>>, vector<1x512xf32>
    %894 = vector.broadcast %893 : vector<1x512xf32> to vector<4x512xf32>
    %895 = arith.mulf %892, %894 : vector<4x512xf32>
    %c496_i32_448 = arith.constant 496 : i32
    %896 = tpu.dynamic_rotate %871 by %c496_i32_448 dim 1 : vector<4x512xf32>, i32 -> vector<4x512xf32>
    %c7_449 = arith.constant 7 : index
    %c0_450 = arith.constant 0 : index
    %897 = vector.load %arg8[%c7_449, %c0_450] : memref<9x512xf32, #tpu.memory_space<vmem>>, vector<1x512xf32>
    %898 = vector.broadcast %897 : vector<1x512xf32> to vector<4x512xf32>
    %899 = arith.mulf %896, %898 : vector<4x512xf32>
    %c495_i32_451 = arith.constant 495 : i32
    %900 = tpu.dynamic_rotate %871 by %c495_i32_451 dim 1 : vector<4x512xf32>, i32 -> vector<4x512xf32>
    %c8_452 = arith.constant 8 : index
    %c0_453 = arith.constant 0 : index
    %901 = vector.load %arg8[%c8_452, %c0_453] : memref<9x512xf32, #tpu.memory_space<vmem>>, vector<1x512xf32>
    %902 = vector.broadcast %901 : vector<1x512xf32> to vector<4x512xf32>
    %903 = arith.mulf %900, %902 : vector<4x512xf32>
    %904 = tpu.concatenate %875, %879, %883, %887, %871, %891, %895, %899, %903 in 0 : vector<4x512xf32>, vector<4x512xf32>, vector<4x512xf32>, vector<4x512xf32>, vector<4x512xf32>, vector<4x512xf32>, vector<4x512xf32>, vector<4x512xf32>, vector<4x512xf32> -> vector<36x512xf32>
    %c10 = arith.constant 10 : index
    %c0_454 = arith.constant 0 : index
    %c0_455 = arith.constant 0 : index
    %905 = vector.load %arg2[%c10, %c0_454, %c0_455] : memref<16x4x36xf32, #tpu.memory_space<vmem>>, vector<1x4x36xf32>
    %906 = vector.shape_cast %905 : vector<1x4x36xf32> to vector<4x36xf32>
    %cst_456 = arith.constant dense<0.000000e+00> : vector<4x512xf32>
    %907 = tpu.matmul %906, %904, %cst_456 {dimension_numbers = #tpu.dot_dimension_numbers<[1], [0], [0], [1], [0, 0, 1, 1], [], []>} : vector<4x36xf32>, vector<36x512xf32>, vector<4x512xf32> -> vector<4x512xf32>
    %c0_457 = arith.constant 0 : index
    %c10_458 = arith.constant 10 : index
    %908 = vector.load %arg3[%c0_457, %c10_458] : memref<4x16xf32, #tpu.memory_space<vmem>>, vector<4x1xf32>
    %909 = vector.broadcast %908 : vector<4x1xf32> to vector<4x512xf32>
    %910 = arith.addf %907, %909 : vector<4x512xf32>
    %cst_459 = arith.constant 0.00999999977 : f32
    %911 = vector.broadcast %cst_459 : f32 to vector<4x512xf32>
    %912 = arith.mulf %911, %910 : vector<4x512xf32>
    %913 = arith.maximumf %910, %912 : vector<4x512xf32>
    %914 = arith.mulf %913, %913 : vector<4x512xf32>
    %915 = tpu.concatenate %913, %914 in 0 : vector<4x512xf32>, vector<4x512xf32> -> vector<8x512xf32>
    %cst_460 = arith.constant dense<0.000000e+00> : vector<8xf32>
    %916 = vector.multi_reduction <add>, %915, %cst_460 [1] : vector<8x512xf32> to vector<8xf32>
    %917 = vector.shape_cast %916 : vector<8xf32> to vector<8x1xf32>
    %918 = vector.extract_strided_slice %917 {offsets = [0, 0], sizes = [4, 1], strides = [1, 1]} : vector<8x1xf32> to vector<4x1xf32>
    %919 = vector.extract_strided_slice %917 {offsets = [4, 0], sizes = [4, 1], strides = [1, 1]} : vector<8x1xf32> to vector<4x1xf32>
    %cst_461 = arith.constant 0.001953125 : f32
    %920 = vector.broadcast %cst_461 : f32 to vector<4x1xf32>
    %921 = arith.mulf %918, %920 : vector<4x1xf32>
    %cst_462 = arith.constant 0.001953125 : f32
    %922 = vector.broadcast %cst_462 : f32 to vector<4x1xf32>
    %923 = arith.mulf %919, %922 : vector<4x1xf32>
    %924 = arith.mulf %921, %921 : vector<4x1xf32>
    %925 = arith.subf %923, %924 : vector<4x1xf32>
    %cst_463 = arith.constant 0.000000e+00 : f32
    %926 = vector.broadcast %cst_463 : f32 to vector<4x1xf32>
    %927 = arith.maximumf %925, %926 : vector<4x1xf32>
    %928 = vector.shape_cast %919 : vector<4x1xf32> to vector<1x4x1xf32>
    %cst_464 = arith.constant dense<0.000000e+00> : vector<1xf32>
    %929 = vector.multi_reduction <add>, %928, %cst_464 [1, 2] : vector<1x4x1xf32> to vector<1xf32>
    %930 = vector.shape_cast %929 : vector<1xf32> to vector<1x1x1xf32>
    %931 = vector.extract %930[0, 0, 0] : f32 from vector<1x1x1xf32>
    %932 = math.sqrt %931 : f32
    %cst_465 = arith.constant 9.99999997E-7 : f32
    %933 = arith.addf %932, %cst_465 : f32
    %c0_466 = arith.constant 0 : index
    %c10_467 = arith.constant 10 : index
    %934 = vector.load %arg4[%c0_466, %c10_467] : memref<4x16xf32, #tpu.memory_space<vmem>>, vector<4x1xf32>
    %c0_468 = arith.constant 0 : index
    %c10_469 = arith.constant 10 : index
    %935 = vector.load %arg5[%c0_468, %c10_469] : memref<4x16xf32, #tpu.memory_space<vmem>>, vector<4x1xf32>
    %936 = arith.mulf %933, %933 : f32
    %937 = vector.broadcast %936 : f32 to vector<4x1xf32>
    %938 = arith.mulf %937, %927 : vector<4x1xf32>
    %cst_470 = arith.constant 9.99999974E-6 : f32
    %939 = vector.broadcast %cst_470 : f32 to vector<4x1xf32>
    %940 = arith.addf %938, %939 : vector<4x1xf32>
    %941 = math.rsqrt %940 : vector<4x1xf32>
    %942 = vector.broadcast %933 : f32 to vector<4x1xf32>
    %943 = arith.mulf %942, %941 : vector<4x1xf32>
    %944 = arith.mulf %934, %943 : vector<4x1xf32>
    %945 = vector.broadcast %944 : vector<4x1xf32> to vector<4x512xf32>
    %946 = arith.mulf %913, %945 : vector<4x512xf32>
    %947 = arith.mulf %921, %944 : vector<4x1xf32>
    %948 = arith.subf %935, %947 : vector<4x1xf32>
    %949 = vector.broadcast %948 : vector<4x1xf32> to vector<4x512xf32>
    %950 = arith.addf %946, %949 : vector<4x512xf32>
    %c17_i32_471 = arith.constant 17 : i32
    %951 = tpu.dynamic_rotate %950 by %c17_i32_471 dim 1 : vector<4x512xf32>, i32 -> vector<4x512xf32>
    %c0_472 = arith.constant 0 : index
    %c0_473 = arith.constant 0 : index
    %952 = vector.load %arg8[%c0_472, %c0_473] : memref<9x512xf32, #tpu.memory_space<vmem>>, vector<1x512xf32>
    %953 = vector.broadcast %952 : vector<1x512xf32> to vector<4x512xf32>
    %954 = arith.mulf %951, %953 : vector<4x512xf32>
    %c16_i32_474 = arith.constant 16 : i32
    %955 = tpu.dynamic_rotate %950 by %c16_i32_474 dim 1 : vector<4x512xf32>, i32 -> vector<4x512xf32>
    %c1_475 = arith.constant 1 : index
    %c0_476 = arith.constant 0 : index
    %956 = vector.load %arg8[%c1_475, %c0_476] : memref<9x512xf32, #tpu.memory_space<vmem>>, vector<1x512xf32>
    %957 = vector.broadcast %956 : vector<1x512xf32> to vector<4x512xf32>
    %958 = arith.mulf %955, %957 : vector<4x512xf32>
    %c15_i32_477 = arith.constant 15 : i32
    %959 = tpu.dynamic_rotate %950 by %c15_i32_477 dim 1 : vector<4x512xf32>, i32 -> vector<4x512xf32>
    %c2_478 = arith.constant 2 : index
    %c0_479 = arith.constant 0 : index
    %960 = vector.load %arg8[%c2_478, %c0_479] : memref<9x512xf32, #tpu.memory_space<vmem>>, vector<1x512xf32>
    %961 = vector.broadcast %960 : vector<1x512xf32> to vector<4x512xf32>
    %962 = arith.mulf %959, %961 : vector<4x512xf32>
    %c1_i32_480 = arith.constant 1 : i32
    %963 = tpu.dynamic_rotate %950 by %c1_i32_480 dim 1 : vector<4x512xf32>, i32 -> vector<4x512xf32>
    %c3_481 = arith.constant 3 : index
    %c0_482 = arith.constant 0 : index
    %964 = vector.load %arg8[%c3_481, %c0_482] : memref<9x512xf32, #tpu.memory_space<vmem>>, vector<1x512xf32>
    %965 = vector.broadcast %964 : vector<1x512xf32> to vector<4x512xf32>
    %966 = arith.mulf %963, %965 : vector<4x512xf32>
    %c511_i32_483 = arith.constant 511 : i32
    %967 = tpu.dynamic_rotate %950 by %c511_i32_483 dim 1 : vector<4x512xf32>, i32 -> vector<4x512xf32>
    %c5_484 = arith.constant 5 : index
    %c0_485 = arith.constant 0 : index
    %968 = vector.load %arg8[%c5_484, %c0_485] : memref<9x512xf32, #tpu.memory_space<vmem>>, vector<1x512xf32>
    %969 = vector.broadcast %968 : vector<1x512xf32> to vector<4x512xf32>
    %970 = arith.mulf %967, %969 : vector<4x512xf32>
    %c497_i32_486 = arith.constant 497 : i32
    %971 = tpu.dynamic_rotate %950 by %c497_i32_486 dim 1 : vector<4x512xf32>, i32 -> vector<4x512xf32>
    %c6_487 = arith.constant 6 : index
    %c0_488 = arith.constant 0 : index
    %972 = vector.load %arg8[%c6_487, %c0_488] : memref<9x512xf32, #tpu.memory_space<vmem>>, vector<1x512xf32>
    %973 = vector.broadcast %972 : vector<1x512xf32> to vector<4x512xf32>
    %974 = arith.mulf %971, %973 : vector<4x512xf32>
    %c496_i32_489 = arith.constant 496 : i32
    %975 = tpu.dynamic_rotate %950 by %c496_i32_489 dim 1 : vector<4x512xf32>, i32 -> vector<4x512xf32>
    %c7_490 = arith.constant 7 : index
    %c0_491 = arith.constant 0 : index
    %976 = vector.load %arg8[%c7_490, %c0_491] : memref<9x512xf32, #tpu.memory_space<vmem>>, vector<1x512xf32>
    %977 = vector.broadcast %976 : vector<1x512xf32> to vector<4x512xf32>
    %978 = arith.mulf %975, %977 : vector<4x512xf32>
    %c495_i32_492 = arith.constant 495 : i32
    %979 = tpu.dynamic_rotate %950 by %c495_i32_492 dim 1 : vector<4x512xf32>, i32 -> vector<4x512xf32>
    %c8_493 = arith.constant 8 : index
    %c0_494 = arith.constant 0 : index
    %980 = vector.load %arg8[%c8_493, %c0_494] : memref<9x512xf32, #tpu.memory_space<vmem>>, vector<1x512xf32>
    %981 = vector.broadcast %980 : vector<1x512xf32> to vector<4x512xf32>
    %982 = arith.mulf %979, %981 : vector<4x512xf32>
    %983 = tpu.concatenate %954, %958, %962, %966, %950, %970, %974, %978, %982 in 0 : vector<4x512xf32>, vector<4x512xf32>, vector<4x512xf32>, vector<4x512xf32>, vector<4x512xf32>, vector<4x512xf32>, vector<4x512xf32>, vector<4x512xf32>, vector<4x512xf32> -> vector<36x512xf32>
    %c11 = arith.constant 11 : index
    %c0_495 = arith.constant 0 : index
    %c0_496 = arith.constant 0 : index
    %984 = vector.load %arg2[%c11, %c0_495, %c0_496] : memref<16x4x36xf32, #tpu.memory_space<vmem>>, vector<1x4x36xf32>
    %985 = vector.shape_cast %984 : vector<1x4x36xf32> to vector<4x36xf32>
    %cst_497 = arith.constant dense<0.000000e+00> : vector<4x512xf32>
    %986 = tpu.matmul %985, %983, %cst_497 {dimension_numbers = #tpu.dot_dimension_numbers<[1], [0], [0], [1], [0, 0, 1, 1], [], []>} : vector<4x36xf32>, vector<36x512xf32>, vector<4x512xf32> -> vector<4x512xf32>
    %c0_498 = arith.constant 0 : index
    %c11_499 = arith.constant 11 : index
    %987 = vector.load %arg3[%c0_498, %c11_499] : memref<4x16xf32, #tpu.memory_space<vmem>>, vector<4x1xf32>
    %988 = vector.broadcast %987 : vector<4x1xf32> to vector<4x512xf32>
    %989 = arith.addf %986, %988 : vector<4x512xf32>
    %cst_500 = arith.constant 0.00999999977 : f32
    %990 = vector.broadcast %cst_500 : f32 to vector<4x512xf32>
    %991 = arith.mulf %990, %989 : vector<4x512xf32>
    %992 = arith.maximumf %989, %991 : vector<4x512xf32>
    %993 = arith.mulf %992, %992 : vector<4x512xf32>
    %994 = tpu.concatenate %992, %993 in 0 : vector<4x512xf32>, vector<4x512xf32> -> vector<8x512xf32>
    %cst_501 = arith.constant dense<0.000000e+00> : vector<8xf32>
    %995 = vector.multi_reduction <add>, %994, %cst_501 [1] : vector<8x512xf32> to vector<8xf32>
    %996 = vector.shape_cast %995 : vector<8xf32> to vector<8x1xf32>
    %997 = vector.extract_strided_slice %996 {offsets = [0, 0], sizes = [4, 1], strides = [1, 1]} : vector<8x1xf32> to vector<4x1xf32>
    %998 = vector.extract_strided_slice %996 {offsets = [4, 0], sizes = [4, 1], strides = [1, 1]} : vector<8x1xf32> to vector<4x1xf32>
    %cst_502 = arith.constant 0.001953125 : f32
    %999 = vector.broadcast %cst_502 : f32 to vector<4x1xf32>
    %1000 = arith.mulf %997, %999 : vector<4x1xf32>
    %cst_503 = arith.constant 0.001953125 : f32
    %1001 = vector.broadcast %cst_503 : f32 to vector<4x1xf32>
    %1002 = arith.mulf %998, %1001 : vector<4x1xf32>
    %1003 = arith.mulf %1000, %1000 : vector<4x1xf32>
    %1004 = arith.subf %1002, %1003 : vector<4x1xf32>
    %cst_504 = arith.constant 0.000000e+00 : f32
    %1005 = vector.broadcast %cst_504 : f32 to vector<4x1xf32>
    %1006 = arith.maximumf %1004, %1005 : vector<4x1xf32>
    %1007 = vector.shape_cast %998 : vector<4x1xf32> to vector<1x4x1xf32>
    %cst_505 = arith.constant dense<0.000000e+00> : vector<1xf32>
    %1008 = vector.multi_reduction <add>, %1007, %cst_505 [1, 2] : vector<1x4x1xf32> to vector<1xf32>
    %1009 = vector.shape_cast %1008 : vector<1xf32> to vector<1x1x1xf32>
    %1010 = vector.extract %1009[0, 0, 0] : f32 from vector<1x1x1xf32>
    %1011 = math.sqrt %1010 : f32
    %cst_506 = arith.constant 9.99999997E-7 : f32
    %1012 = arith.addf %1011, %cst_506 : f32
    %c0_507 = arith.constant 0 : index
    %c11_508 = arith.constant 11 : index
    %1013 = vector.load %arg4[%c0_507, %c11_508] : memref<4x16xf32, #tpu.memory_space<vmem>>, vector<4x1xf32>
    %c0_509 = arith.constant 0 : index
    %c11_510 = arith.constant 11 : index
    %1014 = vector.load %arg5[%c0_509, %c11_510] : memref<4x16xf32, #tpu.memory_space<vmem>>, vector<4x1xf32>
    %1015 = arith.mulf %1012, %1012 : f32
    %1016 = vector.broadcast %1015 : f32 to vector<4x1xf32>
    %1017 = arith.mulf %1016, %1006 : vector<4x1xf32>
    %cst_511 = arith.constant 9.99999974E-6 : f32
    %1018 = vector.broadcast %cst_511 : f32 to vector<4x1xf32>
    %1019 = arith.addf %1017, %1018 : vector<4x1xf32>
    %1020 = math.rsqrt %1019 : vector<4x1xf32>
    %1021 = vector.broadcast %1012 : f32 to vector<4x1xf32>
    %1022 = arith.mulf %1021, %1020 : vector<4x1xf32>
    %1023 = arith.mulf %1013, %1022 : vector<4x1xf32>
    %1024 = vector.broadcast %1023 : vector<4x1xf32> to vector<4x512xf32>
    %1025 = arith.mulf %992, %1024 : vector<4x512xf32>
    %1026 = arith.mulf %1000, %1023 : vector<4x1xf32>
    %1027 = arith.subf %1014, %1026 : vector<4x1xf32>
    %1028 = vector.broadcast %1027 : vector<4x1xf32> to vector<4x512xf32>
    %1029 = arith.addf %1025, %1028 : vector<4x512xf32>
    %c17_i32_512 = arith.constant 17 : i32
    %1030 = tpu.dynamic_rotate %1029 by %c17_i32_512 dim 1 : vector<4x512xf32>, i32 -> vector<4x512xf32>
    %c0_513 = arith.constant 0 : index
    %c0_514 = arith.constant 0 : index
    %1031 = vector.load %arg8[%c0_513, %c0_514] : memref<9x512xf32, #tpu.memory_space<vmem>>, vector<1x512xf32>
    %1032 = vector.broadcast %1031 : vector<1x512xf32> to vector<4x512xf32>
    %1033 = arith.mulf %1030, %1032 : vector<4x512xf32>
    %c16_i32_515 = arith.constant 16 : i32
    %1034 = tpu.dynamic_rotate %1029 by %c16_i32_515 dim 1 : vector<4x512xf32>, i32 -> vector<4x512xf32>
    %c1_516 = arith.constant 1 : index
    %c0_517 = arith.constant 0 : index
    %1035 = vector.load %arg8[%c1_516, %c0_517] : memref<9x512xf32, #tpu.memory_space<vmem>>, vector<1x512xf32>
    %1036 = vector.broadcast %1035 : vector<1x512xf32> to vector<4x512xf32>
    %1037 = arith.mulf %1034, %1036 : vector<4x512xf32>
    %c15_i32_518 = arith.constant 15 : i32
    %1038 = tpu.dynamic_rotate %1029 by %c15_i32_518 dim 1 : vector<4x512xf32>, i32 -> vector<4x512xf32>
    %c2_519 = arith.constant 2 : index
    %c0_520 = arith.constant 0 : index
    %1039 = vector.load %arg8[%c2_519, %c0_520] : memref<9x512xf32, #tpu.memory_space<vmem>>, vector<1x512xf32>
    %1040 = vector.broadcast %1039 : vector<1x512xf32> to vector<4x512xf32>
    %1041 = arith.mulf %1038, %1040 : vector<4x512xf32>
    %c1_i32_521 = arith.constant 1 : i32
    %1042 = tpu.dynamic_rotate %1029 by %c1_i32_521 dim 1 : vector<4x512xf32>, i32 -> vector<4x512xf32>
    %c3_522 = arith.constant 3 : index
    %c0_523 = arith.constant 0 : index
    %1043 = vector.load %arg8[%c3_522, %c0_523] : memref<9x512xf32, #tpu.memory_space<vmem>>, vector<1x512xf32>
    %1044 = vector.broadcast %1043 : vector<1x512xf32> to vector<4x512xf32>
    %1045 = arith.mulf %1042, %1044 : vector<4x512xf32>
    %c511_i32_524 = arith.constant 511 : i32
    %1046 = tpu.dynamic_rotate %1029 by %c511_i32_524 dim 1 : vector<4x512xf32>, i32 -> vector<4x512xf32>
    %c5_525 = arith.constant 5 : index
    %c0_526 = arith.constant 0 : index
    %1047 = vector.load %arg8[%c5_525, %c0_526] : memref<9x512xf32, #tpu.memory_space<vmem>>, vector<1x512xf32>
    %1048 = vector.broadcast %1047 : vector<1x512xf32> to vector<4x512xf32>
    %1049 = arith.mulf %1046, %1048 : vector<4x512xf32>
    %c497_i32_527 = arith.constant 497 : i32
    %1050 = tpu.dynamic_rotate %1029 by %c497_i32_527 dim 1 : vector<4x512xf32>, i32 -> vector<4x512xf32>
    %c6_528 = arith.constant 6 : index
    %c0_529 = arith.constant 0 : index
    %1051 = vector.load %arg8[%c6_528, %c0_529] : memref<9x512xf32, #tpu.memory_space<vmem>>, vector<1x512xf32>
    %1052 = vector.broadcast %1051 : vector<1x512xf32> to vector<4x512xf32>
    %1053 = arith.mulf %1050, %1052 : vector<4x512xf32>
    %c496_i32_530 = arith.constant 496 : i32
    %1054 = tpu.dynamic_rotate %1029 by %c496_i32_530 dim 1 : vector<4x512xf32>, i32 -> vector<4x512xf32>
    %c7_531 = arith.constant 7 : index
    %c0_532 = arith.constant 0 : index
    %1055 = vector.load %arg8[%c7_531, %c0_532] : memref<9x512xf32, #tpu.memory_space<vmem>>, vector<1x512xf32>
    %1056 = vector.broadcast %1055 : vector<1x512xf32> to vector<4x512xf32>
    %1057 = arith.mulf %1054, %1056 : vector<4x512xf32>
    %c495_i32_533 = arith.constant 495 : i32
    %1058 = tpu.dynamic_rotate %1029 by %c495_i32_533 dim 1 : vector<4x512xf32>, i32 -> vector<4x512xf32>
    %c8_534 = arith.constant 8 : index
    %c0_535 = arith.constant 0 : index
    %1059 = vector.load %arg8[%c8_534, %c0_535] : memref<9x512xf32, #tpu.memory_space<vmem>>, vector<1x512xf32>
    %1060 = vector.broadcast %1059 : vector<1x512xf32> to vector<4x512xf32>
    %1061 = arith.mulf %1058, %1060 : vector<4x512xf32>
    %1062 = tpu.concatenate %1033, %1037, %1041, %1045, %1029, %1049, %1053, %1057, %1061 in 0 : vector<4x512xf32>, vector<4x512xf32>, vector<4x512xf32>, vector<4x512xf32>, vector<4x512xf32>, vector<4x512xf32>, vector<4x512xf32>, vector<4x512xf32>, vector<4x512xf32> -> vector<36x512xf32>
    %c12 = arith.constant 12 : index
    %c0_536 = arith.constant 0 : index
    %c0_537 = arith.constant 0 : index
    %1063 = vector.load %arg2[%c12, %c0_536, %c0_537] : memref<16x4x36xf32, #tpu.memory_space<vmem>>, vector<1x4x36xf32>
    %1064 = vector.shape_cast %1063 : vector<1x4x36xf32> to vector<4x36xf32>
    %cst_538 = arith.constant dense<0.000000e+00> : vector<4x512xf32>
    %1065 = tpu.matmul %1064, %1062, %cst_538 {dimension_numbers = #tpu.dot_dimension_numbers<[1], [0], [0], [1], [0, 0, 1, 1], [], []>} : vector<4x36xf32>, vector<36x512xf32>, vector<4x512xf32> -> vector<4x512xf32>
    %c0_539 = arith.constant 0 : index
    %c12_540 = arith.constant 12 : index
    %1066 = vector.load %arg3[%c0_539, %c12_540] : memref<4x16xf32, #tpu.memory_space<vmem>>, vector<4x1xf32>
    %1067 = vector.broadcast %1066 : vector<4x1xf32> to vector<4x512xf32>
    %1068 = arith.addf %1065, %1067 : vector<4x512xf32>
    %cst_541 = arith.constant 0.00999999977 : f32
    %1069 = vector.broadcast %cst_541 : f32 to vector<4x512xf32>
    %1070 = arith.mulf %1069, %1068 : vector<4x512xf32>
    %1071 = arith.maximumf %1068, %1070 : vector<4x512xf32>
    %1072 = arith.mulf %1071, %1071 : vector<4x512xf32>
    %1073 = tpu.concatenate %1071, %1072 in 0 : vector<4x512xf32>, vector<4x512xf32> -> vector<8x512xf32>
    %cst_542 = arith.constant dense<0.000000e+00> : vector<8xf32>
    %1074 = vector.multi_reduction <add>, %1073, %cst_542 [1] : vector<8x512xf32> to vector<8xf32>
    %1075 = vector.shape_cast %1074 : vector<8xf32> to vector<8x1xf32>
    %1076 = vector.extract_strided_slice %1075 {offsets = [0, 0], sizes = [4, 1], strides = [1, 1]} : vector<8x1xf32> to vector<4x1xf32>
    %1077 = vector.extract_strided_slice %1075 {offsets = [4, 0], sizes = [4, 1], strides = [1, 1]} : vector<8x1xf32> to vector<4x1xf32>
    %cst_543 = arith.constant 0.001953125 : f32
    %1078 = vector.broadcast %cst_543 : f32 to vector<4x1xf32>
    %1079 = arith.mulf %1076, %1078 : vector<4x1xf32>
    %cst_544 = arith.constant 0.001953125 : f32
    %1080 = vector.broadcast %cst_544 : f32 to vector<4x1xf32>
    %1081 = arith.mulf %1077, %1080 : vector<4x1xf32>
    %1082 = arith.mulf %1079, %1079 : vector<4x1xf32>
    %1083 = arith.subf %1081, %1082 : vector<4x1xf32>
    %cst_545 = arith.constant 0.000000e+00 : f32
    %1084 = vector.broadcast %cst_545 : f32 to vector<4x1xf32>
    %1085 = arith.maximumf %1083, %1084 : vector<4x1xf32>
    %1086 = vector.shape_cast %1077 : vector<4x1xf32> to vector<1x4x1xf32>
    %cst_546 = arith.constant dense<0.000000e+00> : vector<1xf32>
    %1087 = vector.multi_reduction <add>, %1086, %cst_546 [1, 2] : vector<1x4x1xf32> to vector<1xf32>
    %1088 = vector.shape_cast %1087 : vector<1xf32> to vector<1x1x1xf32>
    %1089 = vector.extract %1088[0, 0, 0] : f32 from vector<1x1x1xf32>
    %1090 = math.sqrt %1089 : f32
    %cst_547 = arith.constant 9.99999997E-7 : f32
    %1091 = arith.addf %1090, %cst_547 : f32
    %c0_548 = arith.constant 0 : index
    %c12_549 = arith.constant 12 : index
    %1092 = vector.load %arg4[%c0_548, %c12_549] : memref<4x16xf32, #tpu.memory_space<vmem>>, vector<4x1xf32>
    %c0_550 = arith.constant 0 : index
    %c12_551 = arith.constant 12 : index
    %1093 = vector.load %arg5[%c0_550, %c12_551] : memref<4x16xf32, #tpu.memory_space<vmem>>, vector<4x1xf32>
    %1094 = arith.mulf %1091, %1091 : f32
    %1095 = vector.broadcast %1094 : f32 to vector<4x1xf32>
    %1096 = arith.mulf %1095, %1085 : vector<4x1xf32>
    %cst_552 = arith.constant 9.99999974E-6 : f32
    %1097 = vector.broadcast %cst_552 : f32 to vector<4x1xf32>
    %1098 = arith.addf %1096, %1097 : vector<4x1xf32>
    %1099 = math.rsqrt %1098 : vector<4x1xf32>
    %1100 = vector.broadcast %1091 : f32 to vector<4x1xf32>
    %1101 = arith.mulf %1100, %1099 : vector<4x1xf32>
    %1102 = arith.mulf %1092, %1101 : vector<4x1xf32>
    %1103 = vector.broadcast %1102 : vector<4x1xf32> to vector<4x512xf32>
    %1104 = arith.mulf %1071, %1103 : vector<4x512xf32>
    %1105 = arith.mulf %1079, %1102 : vector<4x1xf32>
    %1106 = arith.subf %1093, %1105 : vector<4x1xf32>
    %1107 = vector.broadcast %1106 : vector<4x1xf32> to vector<4x512xf32>
    %1108 = arith.addf %1104, %1107 : vector<4x512xf32>
    %c17_i32_553 = arith.constant 17 : i32
    %1109 = tpu.dynamic_rotate %1108 by %c17_i32_553 dim 1 : vector<4x512xf32>, i32 -> vector<4x512xf32>
    %c0_554 = arith.constant 0 : index
    %c0_555 = arith.constant 0 : index
    %1110 = vector.load %arg8[%c0_554, %c0_555] : memref<9x512xf32, #tpu.memory_space<vmem>>, vector<1x512xf32>
    %1111 = vector.broadcast %1110 : vector<1x512xf32> to vector<4x512xf32>
    %1112 = arith.mulf %1109, %1111 : vector<4x512xf32>
    %c16_i32_556 = arith.constant 16 : i32
    %1113 = tpu.dynamic_rotate %1108 by %c16_i32_556 dim 1 : vector<4x512xf32>, i32 -> vector<4x512xf32>
    %c1_557 = arith.constant 1 : index
    %c0_558 = arith.constant 0 : index
    %1114 = vector.load %arg8[%c1_557, %c0_558] : memref<9x512xf32, #tpu.memory_space<vmem>>, vector<1x512xf32>
    %1115 = vector.broadcast %1114 : vector<1x512xf32> to vector<4x512xf32>
    %1116 = arith.mulf %1113, %1115 : vector<4x512xf32>
    %c15_i32_559 = arith.constant 15 : i32
    %1117 = tpu.dynamic_rotate %1108 by %c15_i32_559 dim 1 : vector<4x512xf32>, i32 -> vector<4x512xf32>
    %c2_560 = arith.constant 2 : index
    %c0_561 = arith.constant 0 : index
    %1118 = vector.load %arg8[%c2_560, %c0_561] : memref<9x512xf32, #tpu.memory_space<vmem>>, vector<1x512xf32>
    %1119 = vector.broadcast %1118 : vector<1x512xf32> to vector<4x512xf32>
    %1120 = arith.mulf %1117, %1119 : vector<4x512xf32>
    %c1_i32_562 = arith.constant 1 : i32
    %1121 = tpu.dynamic_rotate %1108 by %c1_i32_562 dim 1 : vector<4x512xf32>, i32 -> vector<4x512xf32>
    %c3_563 = arith.constant 3 : index
    %c0_564 = arith.constant 0 : index
    %1122 = vector.load %arg8[%c3_563, %c0_564] : memref<9x512xf32, #tpu.memory_space<vmem>>, vector<1x512xf32>
    %1123 = vector.broadcast %1122 : vector<1x512xf32> to vector<4x512xf32>
    %1124 = arith.mulf %1121, %1123 : vector<4x512xf32>
    %c511_i32_565 = arith.constant 511 : i32
    %1125 = tpu.dynamic_rotate %1108 by %c511_i32_565 dim 1 : vector<4x512xf32>, i32 -> vector<4x512xf32>
    %c5_566 = arith.constant 5 : index
    %c0_567 = arith.constant 0 : index
    %1126 = vector.load %arg8[%c5_566, %c0_567] : memref<9x512xf32, #tpu.memory_space<vmem>>, vector<1x512xf32>
    %1127 = vector.broadcast %1126 : vector<1x512xf32> to vector<4x512xf32>
    %1128 = arith.mulf %1125, %1127 : vector<4x512xf32>
    %c497_i32_568 = arith.constant 497 : i32
    %1129 = tpu.dynamic_rotate %1108 by %c497_i32_568 dim 1 : vector<4x512xf32>, i32 -> vector<4x512xf32>
    %c6_569 = arith.constant 6 : index
    %c0_570 = arith.constant 0 : index
    %1130 = vector.load %arg8[%c6_569, %c0_570] : memref<9x512xf32, #tpu.memory_space<vmem>>, vector<1x512xf32>
    %1131 = vector.broadcast %1130 : vector<1x512xf32> to vector<4x512xf32>
    %1132 = arith.mulf %1129, %1131 : vector<4x512xf32>
    %c496_i32_571 = arith.constant 496 : i32
    %1133 = tpu.dynamic_rotate %1108 by %c496_i32_571 dim 1 : vector<4x512xf32>, i32 -> vector<4x512xf32>
    %c7_572 = arith.constant 7 : index
    %c0_573 = arith.constant 0 : index
    %1134 = vector.load %arg8[%c7_572, %c0_573] : memref<9x512xf32, #tpu.memory_space<vmem>>, vector<1x512xf32>
    %1135 = vector.broadcast %1134 : vector<1x512xf32> to vector<4x512xf32>
    %1136 = arith.mulf %1133, %1135 : vector<4x512xf32>
    %c495_i32_574 = arith.constant 495 : i32
    %1137 = tpu.dynamic_rotate %1108 by %c495_i32_574 dim 1 : vector<4x512xf32>, i32 -> vector<4x512xf32>
    %c8_575 = arith.constant 8 : index
    %c0_576 = arith.constant 0 : index
    %1138 = vector.load %arg8[%c8_575, %c0_576] : memref<9x512xf32, #tpu.memory_space<vmem>>, vector<1x512xf32>
    %1139 = vector.broadcast %1138 : vector<1x512xf32> to vector<4x512xf32>
    %1140 = arith.mulf %1137, %1139 : vector<4x512xf32>
    %1141 = tpu.concatenate %1112, %1116, %1120, %1124, %1108, %1128, %1132, %1136, %1140 in 0 : vector<4x512xf32>, vector<4x512xf32>, vector<4x512xf32>, vector<4x512xf32>, vector<4x512xf32>, vector<4x512xf32>, vector<4x512xf32>, vector<4x512xf32>, vector<4x512xf32> -> vector<36x512xf32>
    %c13 = arith.constant 13 : index
    %c0_577 = arith.constant 0 : index
    %c0_578 = arith.constant 0 : index
    %1142 = vector.load %arg2[%c13, %c0_577, %c0_578] : memref<16x4x36xf32, #tpu.memory_space<vmem>>, vector<1x4x36xf32>
    %1143 = vector.shape_cast %1142 : vector<1x4x36xf32> to vector<4x36xf32>
    %cst_579 = arith.constant dense<0.000000e+00> : vector<4x512xf32>
    %1144 = tpu.matmul %1143, %1141, %cst_579 {dimension_numbers = #tpu.dot_dimension_numbers<[1], [0], [0], [1], [0, 0, 1, 1], [], []>} : vector<4x36xf32>, vector<36x512xf32>, vector<4x512xf32> -> vector<4x512xf32>
    %c0_580 = arith.constant 0 : index
    %c13_581 = arith.constant 13 : index
    %1145 = vector.load %arg3[%c0_580, %c13_581] : memref<4x16xf32, #tpu.memory_space<vmem>>, vector<4x1xf32>
    %1146 = vector.broadcast %1145 : vector<4x1xf32> to vector<4x512xf32>
    %1147 = arith.addf %1144, %1146 : vector<4x512xf32>
    %cst_582 = arith.constant 0.00999999977 : f32
    %1148 = vector.broadcast %cst_582 : f32 to vector<4x512xf32>
    %1149 = arith.mulf %1148, %1147 : vector<4x512xf32>
    %1150 = arith.maximumf %1147, %1149 : vector<4x512xf32>
    %1151 = arith.mulf %1150, %1150 : vector<4x512xf32>
    %1152 = tpu.concatenate %1150, %1151 in 0 : vector<4x512xf32>, vector<4x512xf32> -> vector<8x512xf32>
    %cst_583 = arith.constant dense<0.000000e+00> : vector<8xf32>
    %1153 = vector.multi_reduction <add>, %1152, %cst_583 [1] : vector<8x512xf32> to vector<8xf32>
    %1154 = vector.shape_cast %1153 : vector<8xf32> to vector<8x1xf32>
    %1155 = vector.extract_strided_slice %1154 {offsets = [0, 0], sizes = [4, 1], strides = [1, 1]} : vector<8x1xf32> to vector<4x1xf32>
    %1156 = vector.extract_strided_slice %1154 {offsets = [4, 0], sizes = [4, 1], strides = [1, 1]} : vector<8x1xf32> to vector<4x1xf32>
    %cst_584 = arith.constant 0.001953125 : f32
    %1157 = vector.broadcast %cst_584 : f32 to vector<4x1xf32>
    %1158 = arith.mulf %1155, %1157 : vector<4x1xf32>
    %cst_585 = arith.constant 0.001953125 : f32
    %1159 = vector.broadcast %cst_585 : f32 to vector<4x1xf32>
    %1160 = arith.mulf %1156, %1159 : vector<4x1xf32>
    %1161 = arith.mulf %1158, %1158 : vector<4x1xf32>
    %1162 = arith.subf %1160, %1161 : vector<4x1xf32>
    %cst_586 = arith.constant 0.000000e+00 : f32
    %1163 = vector.broadcast %cst_586 : f32 to vector<4x1xf32>
    %1164 = arith.maximumf %1162, %1163 : vector<4x1xf32>
    %1165 = vector.shape_cast %1156 : vector<4x1xf32> to vector<1x4x1xf32>
    %cst_587 = arith.constant dense<0.000000e+00> : vector<1xf32>
    %1166 = vector.multi_reduction <add>, %1165, %cst_587 [1, 2] : vector<1x4x1xf32> to vector<1xf32>
    %1167 = vector.shape_cast %1166 : vector<1xf32> to vector<1x1x1xf32>
    %1168 = vector.extract %1167[0, 0, 0] : f32 from vector<1x1x1xf32>
    %1169 = math.sqrt %1168 : f32
    %cst_588 = arith.constant 9.99999997E-7 : f32
    %1170 = arith.addf %1169, %cst_588 : f32
    %c0_589 = arith.constant 0 : index
    %c13_590 = arith.constant 13 : index
    %1171 = vector.load %arg4[%c0_589, %c13_590] : memref<4x16xf32, #tpu.memory_space<vmem>>, vector<4x1xf32>
    %c0_591 = arith.constant 0 : index
    %c13_592 = arith.constant 13 : index
    %1172 = vector.load %arg5[%c0_591, %c13_592] : memref<4x16xf32, #tpu.memory_space<vmem>>, vector<4x1xf32>
    %1173 = arith.mulf %1170, %1170 : f32
    %1174 = vector.broadcast %1173 : f32 to vector<4x1xf32>
    %1175 = arith.mulf %1174, %1164 : vector<4x1xf32>
    %cst_593 = arith.constant 9.99999974E-6 : f32
    %1176 = vector.broadcast %cst_593 : f32 to vector<4x1xf32>
    %1177 = arith.addf %1175, %1176 : vector<4x1xf32>
    %1178 = math.rsqrt %1177 : vector<4x1xf32>
    %1179 = vector.broadcast %1170 : f32 to vector<4x1xf32>
    %1180 = arith.mulf %1179, %1178 : vector<4x1xf32>
    %1181 = arith.mulf %1171, %1180 : vector<4x1xf32>
    %1182 = vector.broadcast %1181 : vector<4x1xf32> to vector<4x512xf32>
    %1183 = arith.mulf %1150, %1182 : vector<4x512xf32>
    %1184 = arith.mulf %1158, %1181 : vector<4x1xf32>
    %1185 = arith.subf %1172, %1184 : vector<4x1xf32>
    %1186 = vector.broadcast %1185 : vector<4x1xf32> to vector<4x512xf32>
    %1187 = arith.addf %1183, %1186 : vector<4x512xf32>
    %1188 = arith.mulf %1187, %1187 : vector<4x512xf32>
    %1189 = tpu.concatenate %1187, %1188 in 0 : vector<4x512xf32>, vector<4x512xf32> -> vector<8x512xf32>
    %cst_594 = arith.constant dense<0.000000e+00> : vector<8xf32>
    %1190 = vector.multi_reduction <add>, %1189, %cst_594 [1] : vector<8x512xf32> to vector<8xf32>
    %1191 = vector.shape_cast %1190 : vector<8xf32> to vector<8x1xf32>
    %1192 = vector.extract_strided_slice %1191 {offsets = [0, 0], sizes = [4, 1], strides = [1, 1]} : vector<8x1xf32> to vector<4x1xf32>
    %1193 = vector.extract_strided_slice %1191 {offsets = [4, 0], sizes = [4, 1], strides = [1, 1]} : vector<8x1xf32> to vector<4x1xf32>
    %cst_595 = arith.constant 0.001953125 : f32
    %1194 = vector.broadcast %cst_595 : f32 to vector<4x1xf32>
    %1195 = arith.mulf %1192, %1194 : vector<4x1xf32>
    %cst_596 = arith.constant 0.001953125 : f32
    %1196 = vector.broadcast %cst_596 : f32 to vector<4x1xf32>
    %1197 = arith.mulf %1193, %1196 : vector<4x1xf32>
    %1198 = arith.mulf %1195, %1195 : vector<4x1xf32>
    %1199 = arith.subf %1197, %1198 : vector<4x1xf32>
    %cst_597 = arith.constant 0.000000e+00 : f32
    %1200 = vector.broadcast %cst_597 : f32 to vector<4x1xf32>
    %1201 = arith.maximumf %1199, %1200 : vector<4x1xf32>
    %c0_598 = arith.constant 0 : index
    %c7_599 = arith.constant 7 : index
    %1202 = vector.load %arg6[%c0_598, %c7_599] : memref<4x8xf32, #tpu.memory_space<vmem>>, vector<4x1xf32>
    %c0_600 = arith.constant 0 : index
    %c7_601 = arith.constant 7 : index
    %1203 = vector.load %arg7[%c0_600, %c7_601] : memref<4x8xf32, #tpu.memory_space<vmem>>, vector<4x1xf32>
    %cst_602 = arith.constant 9.99999974E-6 : f32
    %1204 = vector.broadcast %cst_602 : f32 to vector<4x1xf32>
    %1205 = arith.addf %1201, %1204 : vector<4x1xf32>
    %1206 = math.rsqrt %1205 : vector<4x1xf32>
    %1207 = arith.mulf %1202, %1206 : vector<4x1xf32>
    %1208 = vector.broadcast %1207 : vector<4x1xf32> to vector<4x512xf32>
    %1209 = arith.mulf %1187, %1208 : vector<4x512xf32>
    %1210 = arith.mulf %1195, %1207 : vector<4x1xf32>
    %1211 = arith.subf %1203, %1210 : vector<4x1xf32>
    %1212 = vector.broadcast %1211 : vector<4x1xf32> to vector<4x512xf32>
    %1213 = arith.addf %1209, %1212 : vector<4x512xf32>
    %c17_i32_603 = arith.constant 17 : i32
    %1214 = tpu.dynamic_rotate %1187 by %c17_i32_603 dim 1 : vector<4x512xf32>, i32 -> vector<4x512xf32>
    %c0_604 = arith.constant 0 : index
    %c0_605 = arith.constant 0 : index
    %1215 = vector.load %arg8[%c0_604, %c0_605] : memref<9x512xf32, #tpu.memory_space<vmem>>, vector<1x512xf32>
    %1216 = vector.broadcast %1215 : vector<1x512xf32> to vector<4x512xf32>
    %1217 = arith.mulf %1214, %1216 : vector<4x512xf32>
    %c16_i32_606 = arith.constant 16 : i32
    %1218 = tpu.dynamic_rotate %1187 by %c16_i32_606 dim 1 : vector<4x512xf32>, i32 -> vector<4x512xf32>
    %c1_607 = arith.constant 1 : index
    %c0_608 = arith.constant 0 : index
    %1219 = vector.load %arg8[%c1_607, %c0_608] : memref<9x512xf32, #tpu.memory_space<vmem>>, vector<1x512xf32>
    %1220 = vector.broadcast %1219 : vector<1x512xf32> to vector<4x512xf32>
    %1221 = arith.mulf %1218, %1220 : vector<4x512xf32>
    %c15_i32_609 = arith.constant 15 : i32
    %1222 = tpu.dynamic_rotate %1187 by %c15_i32_609 dim 1 : vector<4x512xf32>, i32 -> vector<4x512xf32>
    %c2_610 = arith.constant 2 : index
    %c0_611 = arith.constant 0 : index
    %1223 = vector.load %arg8[%c2_610, %c0_611] : memref<9x512xf32, #tpu.memory_space<vmem>>, vector<1x512xf32>
    %1224 = vector.broadcast %1223 : vector<1x512xf32> to vector<4x512xf32>
    %1225 = arith.mulf %1222, %1224 : vector<4x512xf32>
    %c1_i32_612 = arith.constant 1 : i32
    %1226 = tpu.dynamic_rotate %1187 by %c1_i32_612 dim 1 : vector<4x512xf32>, i32 -> vector<4x512xf32>
    %c3_613 = arith.constant 3 : index
    %c0_614 = arith.constant 0 : index
    %1227 = vector.load %arg8[%c3_613, %c0_614] : memref<9x512xf32, #tpu.memory_space<vmem>>, vector<1x512xf32>
    %1228 = vector.broadcast %1227 : vector<1x512xf32> to vector<4x512xf32>
    %1229 = arith.mulf %1226, %1228 : vector<4x512xf32>
    %c511_i32_615 = arith.constant 511 : i32
    %1230 = tpu.dynamic_rotate %1187 by %c511_i32_615 dim 1 : vector<4x512xf32>, i32 -> vector<4x512xf32>
    %c5_616 = arith.constant 5 : index
    %c0_617 = arith.constant 0 : index
    %1231 = vector.load %arg8[%c5_616, %c0_617] : memref<9x512xf32, #tpu.memory_space<vmem>>, vector<1x512xf32>
    %1232 = vector.broadcast %1231 : vector<1x512xf32> to vector<4x512xf32>
    %1233 = arith.mulf %1230, %1232 : vector<4x512xf32>
    %c497_i32_618 = arith.constant 497 : i32
    %1234 = tpu.dynamic_rotate %1187 by %c497_i32_618 dim 1 : vector<4x512xf32>, i32 -> vector<4x512xf32>
    %c6_619 = arith.constant 6 : index
    %c0_620 = arith.constant 0 : index
    %1235 = vector.load %arg8[%c6_619, %c0_620] : memref<9x512xf32, #tpu.memory_space<vmem>>, vector<1x512xf32>
    %1236 = vector.broadcast %1235 : vector<1x512xf32> to vector<4x512xf32>
    %1237 = arith.mulf %1234, %1236 : vector<4x512xf32>
    %c496_i32_621 = arith.constant 496 : i32
    %1238 = tpu.dynamic_rotate %1187 by %c496_i32_621 dim 1 : vector<4x512xf32>, i32 -> vector<4x512xf32>
    %c7_622 = arith.constant 7 : index
    %c0_623 = arith.constant 0 : index
    %1239 = vector.load %arg8[%c7_622, %c0_623] : memref<9x512xf32, #tpu.memory_space<vmem>>, vector<1x512xf32>
    %1240 = vector.broadcast %1239 : vector<1x512xf32> to vector<4x512xf32>
    %1241 = arith.mulf %1238, %1240 : vector<4x512xf32>
    %c495_i32_624 = arith.constant 495 : i32
    %1242 = tpu.dynamic_rotate %1187 by %c495_i32_624 dim 1 : vector<4x512xf32>, i32 -> vector<4x512xf32>
    %c8_625 = arith.constant 8 : index
    %c0_626 = arith.constant 0 : index
    %1243 = vector.load %arg8[%c8_625, %c0_626] : memref<9x512xf32, #tpu.memory_space<vmem>>, vector<1x512xf32>
    %1244 = vector.broadcast %1243 : vector<1x512xf32> to vector<4x512xf32>
    %1245 = arith.mulf %1242, %1244 : vector<4x512xf32>
    %1246 = tpu.concatenate %1217, %1221, %1225, %1229, %1187, %1233, %1237, %1241, %1245 in 0 : vector<4x512xf32>, vector<4x512xf32>, vector<4x512xf32>, vector<4x512xf32>, vector<4x512xf32>, vector<4x512xf32>, vector<4x512xf32>, vector<4x512xf32>, vector<4x512xf32> -> vector<36x512xf32>
    %c14 = arith.constant 14 : index
    %c0_627 = arith.constant 0 : index
    %c0_628 = arith.constant 0 : index
    %1247 = vector.load %arg2[%c14, %c0_627, %c0_628] : memref<16x4x36xf32, #tpu.memory_space<vmem>>, vector<1x4x36xf32>
    %1248 = vector.shape_cast %1247 : vector<1x4x36xf32> to vector<4x36xf32>
    %cst_629 = arith.constant dense<0.000000e+00> : vector<4x512xf32>
    %1249 = tpu.matmul %1248, %1246, %cst_629 {dimension_numbers = #tpu.dot_dimension_numbers<[1], [0], [0], [1], [0, 0, 1, 1], [], []>} : vector<4x36xf32>, vector<36x512xf32>, vector<4x512xf32> -> vector<4x512xf32>
    %c0_630 = arith.constant 0 : index
    %c14_631 = arith.constant 14 : index
    %1250 = vector.load %arg3[%c0_630, %c14_631] : memref<4x16xf32, #tpu.memory_space<vmem>>, vector<4x1xf32>
    %1251 = vector.broadcast %1250 : vector<4x1xf32> to vector<4x512xf32>
    %1252 = arith.addf %1249, %1251 : vector<4x512xf32>
    %cst_632 = arith.constant 0.00999999977 : f32
    %1253 = vector.broadcast %cst_632 : f32 to vector<4x512xf32>
    %1254 = arith.mulf %1253, %1252 : vector<4x512xf32>
    %1255 = arith.maximumf %1252, %1254 : vector<4x512xf32>
    %1256 = arith.mulf %1255, %1255 : vector<4x512xf32>
    %1257 = tpu.concatenate %1255, %1256 in 0 : vector<4x512xf32>, vector<4x512xf32> -> vector<8x512xf32>
    %cst_633 = arith.constant dense<0.000000e+00> : vector<8xf32>
    %1258 = vector.multi_reduction <add>, %1257, %cst_633 [1] : vector<8x512xf32> to vector<8xf32>
    %1259 = vector.shape_cast %1258 : vector<8xf32> to vector<8x1xf32>
    %1260 = vector.extract_strided_slice %1259 {offsets = [0, 0], sizes = [4, 1], strides = [1, 1]} : vector<8x1xf32> to vector<4x1xf32>
    %1261 = vector.extract_strided_slice %1259 {offsets = [4, 0], sizes = [4, 1], strides = [1, 1]} : vector<8x1xf32> to vector<4x1xf32>
    %cst_634 = arith.constant 0.001953125 : f32
    %1262 = vector.broadcast %cst_634 : f32 to vector<4x1xf32>
    %1263 = arith.mulf %1260, %1262 : vector<4x1xf32>
    %cst_635 = arith.constant 0.001953125 : f32
    %1264 = vector.broadcast %cst_635 : f32 to vector<4x1xf32>
    %1265 = arith.mulf %1261, %1264 : vector<4x1xf32>
    %1266 = arith.mulf %1263, %1263 : vector<4x1xf32>
    %1267 = arith.subf %1265, %1266 : vector<4x1xf32>
    %cst_636 = arith.constant 0.000000e+00 : f32
    %1268 = vector.broadcast %cst_636 : f32 to vector<4x1xf32>
    %1269 = arith.maximumf %1267, %1268 : vector<4x1xf32>
    %1270 = vector.shape_cast %1261 : vector<4x1xf32> to vector<1x4x1xf32>
    %cst_637 = arith.constant dense<0.000000e+00> : vector<1xf32>
    %1271 = vector.multi_reduction <add>, %1270, %cst_637 [1, 2] : vector<1x4x1xf32> to vector<1xf32>
    %1272 = vector.shape_cast %1271 : vector<1xf32> to vector<1x1x1xf32>
    %1273 = vector.extract %1272[0, 0, 0] : f32 from vector<1x1x1xf32>
    %1274 = math.sqrt %1273 : f32
    %cst_638 = arith.constant 9.99999997E-7 : f32
    %1275 = arith.addf %1274, %cst_638 : f32
    %c0_639 = arith.constant 0 : index
    %c14_640 = arith.constant 14 : index
    %1276 = vector.load %arg4[%c0_639, %c14_640] : memref<4x16xf32, #tpu.memory_space<vmem>>, vector<4x1xf32>
    %c0_641 = arith.constant 0 : index
    %c14_642 = arith.constant 14 : index
    %1277 = vector.load %arg5[%c0_641, %c14_642] : memref<4x16xf32, #tpu.memory_space<vmem>>, vector<4x1xf32>
    %1278 = arith.mulf %1275, %1275 : f32
    %1279 = vector.broadcast %1278 : f32 to vector<4x1xf32>
    %1280 = arith.mulf %1279, %1269 : vector<4x1xf32>
    %cst_643 = arith.constant 9.99999974E-6 : f32
    %1281 = vector.broadcast %cst_643 : f32 to vector<4x1xf32>
    %1282 = arith.addf %1280, %1281 : vector<4x1xf32>
    %1283 = math.rsqrt %1282 : vector<4x1xf32>
    %1284 = vector.broadcast %1275 : f32 to vector<4x1xf32>
    %1285 = arith.mulf %1284, %1283 : vector<4x1xf32>
    %1286 = arith.mulf %1276, %1285 : vector<4x1xf32>
    %1287 = vector.broadcast %1286 : vector<4x1xf32> to vector<4x512xf32>
    %1288 = arith.mulf %1255, %1287 : vector<4x512xf32>
    %1289 = arith.mulf %1263, %1286 : vector<4x1xf32>
    %1290 = arith.subf %1277, %1289 : vector<4x1xf32>
    %1291 = vector.broadcast %1290 : vector<4x1xf32> to vector<4x512xf32>
    %1292 = arith.addf %1288, %1291 : vector<4x512xf32>
    %c17_i32_644 = arith.constant 17 : i32
    %1293 = tpu.dynamic_rotate %1292 by %c17_i32_644 dim 1 : vector<4x512xf32>, i32 -> vector<4x512xf32>
    %c0_645 = arith.constant 0 : index
    %c0_646 = arith.constant 0 : index
    %1294 = vector.load %arg8[%c0_645, %c0_646] : memref<9x512xf32, #tpu.memory_space<vmem>>, vector<1x512xf32>
    %1295 = vector.broadcast %1294 : vector<1x512xf32> to vector<4x512xf32>
    %1296 = arith.mulf %1293, %1295 : vector<4x512xf32>
    %c16_i32_647 = arith.constant 16 : i32
    %1297 = tpu.dynamic_rotate %1292 by %c16_i32_647 dim 1 : vector<4x512xf32>, i32 -> vector<4x512xf32>
    %c1_648 = arith.constant 1 : index
    %c0_649 = arith.constant 0 : index
    %1298 = vector.load %arg8[%c1_648, %c0_649] : memref<9x512xf32, #tpu.memory_space<vmem>>, vector<1x512xf32>
    %1299 = vector.broadcast %1298 : vector<1x512xf32> to vector<4x512xf32>
    %1300 = arith.mulf %1297, %1299 : vector<4x512xf32>
    %c15_i32_650 = arith.constant 15 : i32
    %1301 = tpu.dynamic_rotate %1292 by %c15_i32_650 dim 1 : vector<4x512xf32>, i32 -> vector<4x512xf32>
    %c2_651 = arith.constant 2 : index
    %c0_652 = arith.constant 0 : index
    %1302 = vector.load %arg8[%c2_651, %c0_652] : memref<9x512xf32, #tpu.memory_space<vmem>>, vector<1x512xf32>
    %1303 = vector.broadcast %1302 : vector<1x512xf32> to vector<4x512xf32>
    %1304 = arith.mulf %1301, %1303 : vector<4x512xf32>
    %c1_i32_653 = arith.constant 1 : i32
    %1305 = tpu.dynamic_rotate %1292 by %c1_i32_653 dim 1 : vector<4x512xf32>, i32 -> vector<4x512xf32>
    %c3_654 = arith.constant 3 : index
    %c0_655 = arith.constant 0 : index
    %1306 = vector.load %arg8[%c3_654, %c0_655] : memref<9x512xf32, #tpu.memory_space<vmem>>, vector<1x512xf32>
    %1307 = vector.broadcast %1306 : vector<1x512xf32> to vector<4x512xf32>
    %1308 = arith.mulf %1305, %1307 : vector<4x512xf32>
    %c511_i32_656 = arith.constant 511 : i32
    %1309 = tpu.dynamic_rotate %1292 by %c511_i32_656 dim 1 : vector<4x512xf32>, i32 -> vector<4x512xf32>
    %c5_657 = arith.constant 5 : index
    %c0_658 = arith.constant 0 : index
    %1310 = vector.load %arg8[%c5_657, %c0_658] : memref<9x512xf32, #tpu.memory_space<vmem>>, vector<1x512xf32>
    %1311 = vector.broadcast %1310 : vector<1x512xf32> to vector<4x512xf32>
    %1312 = arith.mulf %1309, %1311 : vector<4x512xf32>
    %c497_i32_659 = arith.constant 497 : i32
    %1313 = tpu.dynamic_rotate %1292 by %c497_i32_659 dim 1 : vector<4x512xf32>, i32 -> vector<4x512xf32>
    %c6_660 = arith.constant 6 : index
    %c0_661 = arith.constant 0 : index
    %1314 = vector.load %arg8[%c6_660, %c0_661] : memref<9x512xf32, #tpu.memory_space<vmem>>, vector<1x512xf32>
    %1315 = vector.broadcast %1314 : vector<1x512xf32> to vector<4x512xf32>
    %1316 = arith.mulf %1313, %1315 : vector<4x512xf32>
    %c496_i32_662 = arith.constant 496 : i32
    %1317 = tpu.dynamic_rotate %1292 by %c496_i32_662 dim 1 : vector<4x512xf32>, i32 -> vector<4x512xf32>
    %c7_663 = arith.constant 7 : index
    %c0_664 = arith.constant 0 : index
    %1318 = vector.load %arg8[%c7_663, %c0_664] : memref<9x512xf32, #tpu.memory_space<vmem>>, vector<1x512xf32>
    %1319 = vector.broadcast %1318 : vector<1x512xf32> to vector<4x512xf32>
    %1320 = arith.mulf %1317, %1319 : vector<4x512xf32>
    %c495_i32_665 = arith.constant 495 : i32
    %1321 = tpu.dynamic_rotate %1292 by %c495_i32_665 dim 1 : vector<4x512xf32>, i32 -> vector<4x512xf32>
    %c8_666 = arith.constant 8 : index
    %c0_667 = arith.constant 0 : index
    %1322 = vector.load %arg8[%c8_666, %c0_667] : memref<9x512xf32, #tpu.memory_space<vmem>>, vector<1x512xf32>
    %1323 = vector.broadcast %1322 : vector<1x512xf32> to vector<4x512xf32>
    %1324 = arith.mulf %1321, %1323 : vector<4x512xf32>
    %1325 = tpu.concatenate %1296, %1300, %1304, %1308, %1292, %1312, %1316, %1320, %1324 in 0 : vector<4x512xf32>, vector<4x512xf32>, vector<4x512xf32>, vector<4x512xf32>, vector<4x512xf32>, vector<4x512xf32>, vector<4x512xf32>, vector<4x512xf32>, vector<4x512xf32> -> vector<36x512xf32>
    %c15 = arith.constant 15 : index
    %c0_668 = arith.constant 0 : index
    %c0_669 = arith.constant 0 : index
    %1326 = vector.load %arg2[%c15, %c0_668, %c0_669] : memref<16x4x36xf32, #tpu.memory_space<vmem>>, vector<1x4x36xf32>
    %1327 = vector.shape_cast %1326 : vector<1x4x36xf32> to vector<4x36xf32>
    %cst_670 = arith.constant dense<0.000000e+00> : vector<4x512xf32>
    %1328 = tpu.matmul %1327, %1325, %cst_670 {dimension_numbers = #tpu.dot_dimension_numbers<[1], [0], [0], [1], [0, 0, 1, 1], [], []>} : vector<4x36xf32>, vector<36x512xf32>, vector<4x512xf32> -> vector<4x512xf32>
    %c0_671 = arith.constant 0 : index
    %c15_672 = arith.constant 15 : index
    %1329 = vector.load %arg3[%c0_671, %c15_672] : memref<4x16xf32, #tpu.memory_space<vmem>>, vector<4x1xf32>
    %1330 = vector.broadcast %1329 : vector<4x1xf32> to vector<4x512xf32>
    %1331 = arith.addf %1328, %1330 : vector<4x512xf32>
    %cst_673 = arith.constant 0.00999999977 : f32
    %1332 = vector.broadcast %cst_673 : f32 to vector<4x512xf32>
    %1333 = arith.mulf %1332, %1331 : vector<4x512xf32>
    %1334 = arith.maximumf %1331, %1333 : vector<4x512xf32>
    %1335 = arith.mulf %1334, %1334 : vector<4x512xf32>
    %1336 = tpu.concatenate %1334, %1335 in 0 : vector<4x512xf32>, vector<4x512xf32> -> vector<8x512xf32>
    %cst_674 = arith.constant dense<0.000000e+00> : vector<8xf32>
    %1337 = vector.multi_reduction <add>, %1336, %cst_674 [1] : vector<8x512xf32> to vector<8xf32>
    %1338 = vector.shape_cast %1337 : vector<8xf32> to vector<8x1xf32>
    %1339 = vector.extract_strided_slice %1338 {offsets = [0, 0], sizes = [4, 1], strides = [1, 1]} : vector<8x1xf32> to vector<4x1xf32>
    %1340 = vector.extract_strided_slice %1338 {offsets = [4, 0], sizes = [4, 1], strides = [1, 1]} : vector<8x1xf32> to vector<4x1xf32>
    %cst_675 = arith.constant 0.001953125 : f32
    %1341 = vector.broadcast %cst_675 : f32 to vector<4x1xf32>
    %1342 = arith.mulf %1339, %1341 : vector<4x1xf32>
    %cst_676 = arith.constant 0.001953125 : f32
    %1343 = vector.broadcast %cst_676 : f32 to vector<4x1xf32>
    %1344 = arith.mulf %1340, %1343 : vector<4x1xf32>
    %1345 = arith.mulf %1342, %1342 : vector<4x1xf32>
    %1346 = arith.subf %1344, %1345 : vector<4x1xf32>
    %cst_677 = arith.constant 0.000000e+00 : f32
    %1347 = vector.broadcast %cst_677 : f32 to vector<4x1xf32>
    %1348 = arith.maximumf %1346, %1347 : vector<4x1xf32>
    %1349 = vector.shape_cast %1340 : vector<4x1xf32> to vector<1x4x1xf32>
    %cst_678 = arith.constant dense<0.000000e+00> : vector<1xf32>
    %1350 = vector.multi_reduction <add>, %1349, %cst_678 [1, 2] : vector<1x4x1xf32> to vector<1xf32>
    %1351 = vector.shape_cast %1350 : vector<1xf32> to vector<1x1x1xf32>
    %1352 = vector.extract %1351[0, 0, 0] : f32 from vector<1x1x1xf32>
    %1353 = math.sqrt %1352 : f32
    %cst_679 = arith.constant 9.99999997E-7 : f32
    %1354 = arith.addf %1353, %cst_679 : f32
    %c0_680 = arith.constant 0 : index
    %c15_681 = arith.constant 15 : index
    %1355 = vector.load %arg4[%c0_680, %c15_681] : memref<4x16xf32, #tpu.memory_space<vmem>>, vector<4x1xf32>
    %c0_682 = arith.constant 0 : index
    %c15_683 = arith.constant 15 : index
    %1356 = vector.load %arg5[%c0_682, %c15_683] : memref<4x16xf32, #tpu.memory_space<vmem>>, vector<4x1xf32>
    %1357 = arith.mulf %1354, %1354 : f32
    %1358 = vector.broadcast %1357 : f32 to vector<4x1xf32>
    %1359 = arith.mulf %1358, %1348 : vector<4x1xf32>
    %cst_684 = arith.constant 9.99999974E-6 : f32
    %1360 = vector.broadcast %cst_684 : f32 to vector<4x1xf32>
    %1361 = arith.addf %1359, %1360 : vector<4x1xf32>
    %1362 = math.rsqrt %1361 : vector<4x1xf32>
    %1363 = vector.broadcast %1354 : f32 to vector<4x1xf32>
    %1364 = arith.mulf %1363, %1362 : vector<4x1xf32>
    %1365 = arith.mulf %1355, %1364 : vector<4x1xf32>
    %1366 = vector.broadcast %1365 : vector<4x1xf32> to vector<4x512xf32>
    %1367 = arith.mulf %1334, %1366 : vector<4x512xf32>
    %1368 = arith.mulf %1342, %1365 : vector<4x1xf32>
    %1369 = arith.subf %1356, %1368 : vector<4x1xf32>
    %1370 = vector.broadcast %1369 : vector<4x1xf32> to vector<4x512xf32>
    %1371 = arith.addf %1367, %1370 : vector<4x512xf32>
    %1372 = arith.addf %1371, %1213 : vector<4x512xf32>
    %c0_685 = arith.constant 0 : index
    %c0_686 = arith.constant 0 : index
    %1373 = vector.load %arg9[%c0_685, %c0_686] : memref<4x512xf32, #tpu.memory_space<vmem>>, vector<4x512xf32>
    tpu.vector_store %arg9[%c0_685, %c0_686], %1372 {strides = array<i32>} : memref<4x512xf32, #tpu.memory_space<vmem>>, vector<4x512xf32>,
    return
  }
  func.func @transform_0(%arg0: i32) -> (i32, i32) {
    %c0_i32 = arith.constant 0 : i32
    %c0_i32_0 = arith.constant 0 : i32
    %c0_i32_1 = arith.constant 0 : i32
    return %c0_i32, %c0_i32_0 : i32, i32
  }
  func.func @transform_1(%arg0: i32) -> (i32, i32, i32) {
    %c0_i32 = arith.constant 0 : i32
    %c0_i32_0 = arith.constant 0 : i32
    %c0_i32_1 = arith.constant 0 : i32
    %c0_i32_2 = arith.constant 0 : i32
    return %c0_i32, %c0_i32_0, %c0_i32_1 : i32, i32, i32
  }
  func.func @transform_2(%arg0: i32) -> (i32, i32) {
    %c0_i32 = arith.constant 0 : i32
    %c0_i32_0 = arith.constant 0 : i32
    %c0_i32_1 = arith.constant 0 : i32
    return %c0_i32, %c0_i32_0 : i32, i32
  }
  func.func @transform_3(%arg0: i32) -> (i32, i32) {
    %c0_i32 = arith.constant 0 : i32
    %c0_i32_0 = arith.constant 0 : i32
    %c0_i32_1 = arith.constant 0 : i32
    return %c0_i32, %c0_i32_0 : i32, i32
  }
  func.func @transform_4(%arg0: i32) -> (i32, i32) {
    %c0_i32 = arith.constant 0 : i32
    %c0_i32_0 = arith.constant 0 : i32
    %c0_i32_1 = arith.constant 0 : i32
    return %c0_i32, %c0_i32_0 : i32, i32
  }
  func.func @transform_5(%arg0: i32) -> (i32, i32) {
    %c0_i32 = arith.constant 0 : i32
    %c0_i32_0 = arith.constant 0 : i32
    %c0_i32_1 = arith.constant 0 : i32
    return %c0_i32, %c0_i32_0 : i32, i32
  }
  func.func @transform_6(%arg0: i32) -> (i32, i32) {
    %c0_i32 = arith.constant 0 : i32
    %c0_i32_0 = arith.constant 0 : i32
    %c0_i32_1 = arith.constant 0 : i32
    return %c0_i32, %c0_i32_0 : i32, i32
  }
  func.func @transform_7(%arg0: i32) -> (i32, i32) {
    %c0_i32 = arith.constant 0 : i32
    %c0_i32_0 = arith.constant 0 : i32
    %c0_i32_1 = arith.constant 0 : i32
    return %c0_i32, %c0_i32_0 : i32, i32
  }
  func.func @transform_8(%arg0: i32) -> (i32, i32) {
    %c0_i32 = arith.constant 0 : i32
    %c0_i32_0 = arith.constant 0 : i32
    %c0_i32_1 = arith.constant 0 : i32
    return %c0_i32, %c0_i32_0 : i32, i32
  }
}

</mosaic_0001>

<bundles_post_ra>
// kernel: forward_nchw.1
= control target key start
LH: loop header
LB: loop body
LE: loop exit
PB: predicated region body
PF: predicated region fallthrough
CT: control target
= control target key end

     0   :  { %s8348_s29 = smov 1   ;;  %s8349_s30 = smov 16   ;;  %v12592_v4 = vmov 0.0   ;;  %v8356_v5 = vmov 0   ;;  %v77_v7 = vlaneseq  ;;  %vm45_vm4 = vcmask 1043456   ;;  %s12582_s0 = inlined_call_operand.vmem [shape: f32[4,512], index: 0, kind: input, shape index: {}]   ;;  %s12583_s2 = inlined_call_operand.vmem [shape: f32[4,16], index: 2, kind: input, shape index: {}]   ;;  %s12584_s7 = inlined_call_operand.vmem [shape: f32[9,512], index: 7, kind: input, shape index: {}]   ;;  %s12585_s1 = inlined_call_operand.vmem [shape: f32[16,4,36], index: 1, kind: input, shape index: {}]   ;;  %s12586_s3 = inlined_call_operand.vmem [shape: f32[4,16], index: 3, kind: input, shape index: {}]   ;;  %s12587_s4 = inlined_call_operand.vmem [shape: f32[4,16], index: 4, kind: input, shape index: {}]   ;;  %s12588_s5 = inlined_call_operand.vmem [shape: f32[4,8], index: 5, kind: input, shape index: {}]   ;;  %s12589_s6 = inlined_call_operand.vmem [shape: f32[4,8], index: 6, kind: input, shape index: {}]   ;;  %s12590_s8 = inlined_call_operand.vmem [shape: f32[4,512], index: 8, kind: output, shape index: {}]  }
   0x1   :  { %v8435_v0 = vld [vmem:[%s12582_s0] sm:$0xff]  ;;  %v8448_v2 = vld [vmem:[%s12582_s0 + $0x8] sm:$0xff]  ;;  %s8350_s11 = smov 17   ;;  %s8351_s12 = smov 15   ;;  %572 = vmatprep.mubr.f32.mxu0 %v12592_v4  ;;  %643 = vmatprep.mubr.f32.mxu1 %v12592_v4  ;;  %vm492_vm9 = vcmask 293888   ;;  %vm693_vm10 = vcmask 3072  }
   0x2   :  { %221 = vrot.lane.b32.xlu1 %v8435_v0, %s8348_s29  ;;  %141 = vrot.lane.b32.xlu0 %v8435_v0, %s8349_s30  ;;  %v8443_v1 = vcombine.high %v8435_v0, %v8435_v0  ;;  %v8456_v3 = vcombine.high %v8448_v2, %v8448_v2  ;;  %s8352_s13 = smov 127   ;;  %s8353_s14 = smov 112   ;;  %v8519_v6 = vld [vmem:[%s12583_s2] sm:$0xf]  ;;  %v8522_v10 = vshrl.u32 %v77_v7, 7  ;;  %v8524_v11 = vand.u32 127, %v77_v7 }
   0x3   :  { %s8354_s15 = smov 113   ;;  %8211 = vset.pattern.permute.xlu0 %v8356_v5  ;;  %8212 = vset.pattern.permute.xlu1 %v8356_v5  ;;  %s8357_s16 = smov 111   ;;  %v7736_v15 = vld [vmem:[%s12584_s7 + $0x3] ss:$8 sm:$0xf] }
   0x4   :  { %12649 = vst [vmem:[#allocation2_spill] sm:$0xff] %v8522_v10  ;;  %v8529_v14 = vsub.s32 1, %v8522_v10  ;;  %v7734_v16 = vld [vmem:[%s12584_s7 + $0x1] ss:$8 sm:$0xf]  ;;  %vm149_vm0 = vcmp.lt.s32.totalorder %v8524_v11, 16 }
   0x5   :  { %vm229_vm1 = vcmp.lt.s32.totalorder %v8524_v11, 1  ;;  %v8542_v19 = vld [vmem:[%s12584_s7] ss:$8 sm:$0xf]  ;;  %vm110_vm2 = vcmp.lt.s32.totalorder %v8524_v11, 17  ;;  %v8568_v28 = vsub.s32 0, %v8522_v10 }
   0x6   :  { %223 = vrot.lane.b32.xlu1 %v8443_v1, %s8348_s29  ;;  %143 = vrot.lane.b32.xlu0 %v8443_v1, %s8349_s30  ;;  %v8546_v20 = vrot.slane %v7736_v15, %v8529_v14  ;;  %v8549_v21 = vrot.slane %v7734_v16, %v8529_v14  ;;  %v8559_v24 = vld [vmem:[%s12584_s7 + $0x2] ss:$8 sm:$0xf]  ;;  %v8565_v26 = vrot.slane %v8542_v19, %v8529_v14  ;;  %vm189_vm3 = vcmp.lt.s32.totalorder %v8524_v11, 15  ;;  %s8363_s17 = smov 3  }
   0x7   :  { %v8578_v32 = vrot.slane %v8559_v24, %v8529_v14  ;;  %v8584_v36 = vrot.slane %v7736_v15, %v8568_v28  ;;  %v8590_v40 = vrot.slane %v7734_v16, %v8568_v28  ;;  %v8599_v45 = vrot.slane %v8542_v19, %v8568_v28 }
   0x8   :  { %12650 = vst [vmem:[#allocation3_spill] sm:$0xff] %v8546_v20  ;;  %12651 = vst [vmem:[#allocation4_spill] sm:$0xff] %v8549_v21  ;;  %v8609_v53 = vrot.slane %v8559_v24, %v8568_v28  ;;  %v8612_v54 = vsub.s32 2, %v8522_v10  ;;  %v8615_v55 = vsub.s32 3, %v8522_v10  ;;  %vm269_vm5 = vcmp.lt.s32.totalorder %v8524_v11, 127 }
   0x9   :  { %12652 = vst [vmem:[#allocation5_spill] sm:$0xff] %v8565_v26  ;;  %12653 = vst [vmem:[#allocation6_spill] sm:$0xff] %v8578_v32  ;;  %vm349_vm6 = vcmp.lt.s32.totalorder %v8524_v11, 112  ;;  %vm309_vm7 = vcmp.lt.s32.totalorder %v8524_v11, 113  ;;  %vm389_vm8 = vcmp.lt.s32.totalorder %v8524_v11, 111 }
   0xa   :  { %227 = vrot.lane.b32.xlu1 %v8456_v3, %s8348_s29  ;;  %147 = vrot.lane.b32.xlu0 %v8456_v3, %s8349_s30  ;;  %12654 = vst [vmem:[#allocation7_spill] sm:$0xff] %v8584_v36  ;;  %12655 = vst [vmem:[#allocation8_spill] sm:$0xff] %v8590_v40  ;;  %v8622_v63 = vrot.slane %v7734_v16, %v8612_v54  ;;  %v8625_v5 = vrot.slane %v7734_v16, %v8615_v55 }
   0xb   :  { %12656 = vst [vmem:[#allocation9_spill] sm:$0xff] %v8599_v45  ;;  %v8628_v7 = vrot.slane %v7736_v15, %v8612_v54 }
   0xe   :  { %102 = vrot.lane.b32.xlu1 %v8443_v1, %s8350_s11  ;;  %100 = vrot.lane.b32.xlu0 %v8435_v0, %s8350_s11 }
  0x12   :  { %183 = vrot.lane.b32.xlu1 %v8443_v1, %s8351_s12  ;;  %181 = vrot.lane.b32.xlu0 %v8435_v0, %s8351_s12 }
  0x16   :  { %145 = vrot.lane.b32.xlu1 %v8448_v2, %s8349_s30  ;;  %106 = vrot.lane.b32.xlu0 %v8456_v3, %s8350_s11 }
  0x1a   :  { %225 = vrot.lane.b32.xlu1 %v8448_v2, %s8348_s29  ;;  %187 = vrot.lane.b32.xlu0 %v8456_v3, %s8351_s12 }
  0x1e   :  { %265 = vrot.lane.b32.xlu1 %v8448_v2, %s8352_s13  ;;  %263 = vrot.lane.b32.xlu0 %v8443_v1, %s8352_s13 }
  0x22   :  { %345 = vrot.lane.b32.xlu1 %v8448_v2, %s8353_s14  ;;  %343 = vrot.lane.b32.xlu0 %v8443_v1, %s8353_s14 }
  0x26   :  { %185 = vrot.lane.b32.xlu1 %v8448_v2, %s8351_s12  ;;  %104 = vrot.lane.b32.xlu0 %v8448_v2, %s8350_s11 }
  0x2a   :  { %341 = vrot.lane.b32.xlu1 %v8435_v0, %s8353_s14  ;;  %261 = vrot.lane.b32.xlu0 %v8435_v0, %s8352_s13 }
  0x2e   :  { %305 = vrot.lane.b32.xlu1 %v8448_v2, %s8354_s15  ;;  %303 = vrot.lane.b32.xlu0 %v8443_v1, %s8354_s15 }
  0x32   :  { %301 = vrot.lane.b32.xlu1 %v8435_v0, %s8354_s15  ;;  %267 = vrot.lane.b32.xlu0 %v8456_v3, %s8352_s13 }
  0x36   :  { %307 = vrot.lane.b32.xlu1 %v8456_v3, %s8354_s15  ;;  %347 = vrot.lane.b32.xlu0 %v8456_v3, %s8353_s14 }
  0x3a   :  { %385 = vrot.lane.b32.xlu1 %v8448_v2, %s8357_s16  ;;  %383 = vrot.lane.b32.xlu0 %v8443_v1, %s8357_s16 }
  0x3e   :  { %387 = vrot.lane.b32.xlu1 %v8456_v3, %s8357_s16  ;;  %381 = vrot.lane.b32.xlu0 %v8435_v0, %s8357_s16 }
  0x42   :  { %489 = vperm.xlu0 %8211, %v8519_v6  }
  0x74   :  { %v222_v8 = vpop.permute.xlu1 %221  ;;  %v142_v9 = vpop.permute.xlu0 %141 }
  0x78   :  { %v8526_v12 = vpop.permute.xlu1 %223  ;;  %v144_v13 = vpop.permute.xlu0 %143 }
  0x79   :  { %v232_v22 = vsel %vm229_vm1, %v222_v8, %v8526_v12  ;;  %v152_v23 = vsel %vm149_vm0, %v142_v9, %v144_v13 }
  0x7a   :  { %v258_v30 = vmul.f32 %v8546_v20, %v232_v22  ;;  %v178_v31 = vmul.f32 %v8549_v21, %v152_v23 }
  0x7c   :  { %v228_v17 = vpop.permute.xlu1 %227  ;;  %v148_v18 = vpop.permute.xlu0 %147  ;;  %v438_v38 = vrot.slane %v258_v30, 4  ;;  %v426_v39 = vrot.slane %v178_v31, 4 }
  0x7d   :  { %v233_v42 = vsel %vm229_vm1, %v228_v17, %v222_v8  ;;  %v153_v43 = vsel %vm149_vm0, %v148_v18, %v142_v9  ;;  %v8633_v9 = vrot.slane %v7736_v15, %v8615_v55 }
  0x7e   :  { %v257_v51 = vmul.f32 %v8584_v36, %v233_v42  ;;  %v177_v52 = vmul.f32 %v8590_v40, %v153_v43  ;;  %v8671_v42 = vrot.slane %v8542_v19, %v8612_v54  ;;  %v8675_v43 = vrot.slane %v8542_v19, %v8615_v55 }
  0x80   :  { %v8561_v25 = vpop.permute.xlu1 %102  ;;  %v101_v27 = vpop.permute.xlu0 %100  ;;  %v437_v60 = vrot.slane %v257_v51, 4  ;;  %v425_v61 = vrot.slane %v177_v52, 4 }
  0x81   :  { %v113_v29 = vsel %vm110_vm2, %v101_v27, %v8561_v25 }
  0x82   :  { %v138_v33 = vmul.f32 %v8565_v26, %v113_v29 }
  0x84   :  { %v8581_v34 = vpop.permute.xlu1 %183  ;;  %v182_v35 = vpop.permute.xlu0 %181  ;;  %v470_v47 = vsel %vm45_vm4, %v138_v33, %v426_v39  ;;  %v8663_v39 = vrot.slane %v8559_v24, %v8612_v54 }
  0x85   :  { %v192_v37 = vsel %vm189_vm3, %v182_v35, %v8581_v34 }
  0x86   :  { %v218_v41 = vmul.f32 %v8578_v32, %v192_v37 }
  0x88   :  { %v146_v44 = vpop.permute.xlu1 %145  ;;  %v107_v46 = vpop.permute.xlu0 %106  ;;  %v474_v48 = vsel %vm45_vm4, %v218_v41, %v438_v38  ;;  %v8667_v41 = vrot.slane %v8559_v24, %v8615_v55 }
  0x89   :  { %v114_v49 = vsel %vm110_vm2, %v107_v46, %v101_v27  ;;  %v7852_v50 = vpack.c.bf16 %v474_v48, %v470_v47  ;;  %v151_v8 = vsel %vm149_vm0, %v144_v13, %v146_v44  ;;  %v150_v16 = vsel %vm149_vm0, %v146_v44, %v148_v18  ;;  %v7737_v18 = vld [vmem:[%s12584_s7 + $0x5] ss:$8 sm:$0xf] }
  0x8a   :  { %v137_v56 = vmul.f32 %v8599_v45, %v114_v49  ;;  %v179_v15 = vmul.f32 %v8622_v63, %v151_v8  ;;  %v180_v33 = vmul.f32 %v8625_v5, %v150_v16  ;;  %v8679_v47 = vrot.slane %v7737_v18, %v8529_v14 }
  0x8b   :  { %7853 = vmatprep.subr.bf16.mxu0 %v7852_v50 }
  0x8c   :  { %v226_v57 = vpop.permute.xlu1 %225  ;;  %v188_v58 = vpop.permute.xlu0 %187  ;;  %v469_v27 = vsel %vm45_vm4, %v137_v56, %v425_v61  ;;  %v427_v44 = vrot.slane %v179_v15, 4  ;;  %v428_v24 = vrot.slane %v180_v33, 4 }
  0x8d   :  { %v193_v59 = vsel %vm189_vm3, %v188_v58, %v182_v35  ;;  %v230_v30 = vsel %vm229_vm1, %v226_v57, %v228_v17  ;;  %v231_v13 = vsel %vm229_vm1, %v8526_v12, %v226_v57  ;;  %v8658_v12 = vld [vmem:[%s12584_s7 + $0x7] ss:$8 sm:$0xf] }
  0x8e   :  { %v217_v62 = vmul.f32 %v8609_v53, %v193_v59  ;;  %v259_v35 = vmul.f32 %v8628_v7, %v231_v13  ;;  %v260_v37 = vmul.f32 %v8633_v9, %v230_v30  ;;  %v8683_v48 = vrot.slane %v8658_v12, %v8529_v14 }
  0x90   :  { %v8635_v22 = vpop.permute.xlu1 %265  ;;  %v264_v23 = vpop.permute.xlu0 %263  ;;  %v473_v29 = vsel %vm45_vm4, %v217_v62, %v437_v60  ;;  %v439_v49 = vrot.slane %v259_v35, 4  ;;  %v440_v50 = vrot.slane %v260_v37, 4 }
  0x91   :  { %v7854_v31 = vpack.c.bf16 %v473_v29, %v469_v27  ;;  %v271_v51 = vsel %vm269_vm5, %v264_v23, %v8635_v22 }
  0x93   :  { %7855 = vmatpush1.bf16.msra.mxu0 %v7854_v31 }
  0x94   :  { %v8653_v38 = vpop.permute.xlu1 %345  ;;  %v344_v17 = vpop.permute.xlu0 %343 }
  0x98   :  { %v186_v52 = vpop.permute.xlu1 %185  ;;  %v105_v19 = vpop.permute.xlu0 %104 }
  0x99   :  { %v190_v56 = vsel %vm189_vm3, %v186_v52, %v188_v58  ;;  %v191_v57 = vsel %vm189_vm3, %v8581_v34, %v186_v52  ;;  %v111_v59 = vsel %vm110_vm2, %v105_v19, %v107_v46  ;;  %v112_v60 = vsel %vm110_vm2, %v8561_v25, %v105_v19  ;;  %v7738_v25 = vld [vmem:[%s12584_s7 + $0x6] ss:$8 sm:$0xf] }
  0x9a   :  { %v219_v61 = vmul.f32 %v8663_v39, %v191_v57  ;;  %v220_v62 = vmul.f32 %v8667_v41, %v190_v56  ;;  %v139_v8 = vmul.f32 %v8671_v42, %v112_v60  ;;  %v140_v27 = vmul.f32 %v8675_v43, %v111_v59 }
  0x9b   :  { %v298_v58 = vmul.f32 %v8679_v47, %v271_v51  ;;  %v351_v34 = vsel %vm349_vm6, %v344_v17, %v8653_v38  ;;  %v8708_v46 = vrot.slane %v8658_v12, %v8568_v28  ;;  %v8722_v52 = vrot.slane %v7737_v18, %v8568_v28 }
  0x9c   :  { %v342_v29 = vpop.permute.xlu1 %341  ;;  %v262_v16 = vpop.permute.xlu0 %261  ;;  %v472_v30 = vsel %vm45_vm4, %v140_v27, %v428_v24  ;;  %v476_v13 = vsel %vm45_vm4, %v220_v62, %v440_v50  ;;  %v471_v31 = vsel %vm45_vm4, %v139_v8, %v427_v44  ;;  %v475_v15 = vsel %vm45_vm4, %v219_v61, %v439_v49 }
  0x9d   :  { %v352_v33 = vsel %vm349_vm6, %v342_v29, %v344_v17  ;;  %v7860_v35 = vpack.c.bf16 %v476_v13, %v472_v30  ;;  %v7862_v37 = vpack.c.bf16 %v475_v15, %v471_v31  ;;  %v378_v51 = vmul.f32 %v8683_v48, %v351_v34 }
  0x9e   :  { %v8725_v24 = vrot.slane %v7738_v25, %v8529_v14  ;;  %v272_v44 = vsel %vm269_vm5, %v262_v16, %v264_v23  ;;  %v450_v49 = vrot.slane %v298_v58, 4  ;;  %v377_v50 = vmul.f32 %v8708_v46, %v352_v33 }
  0x9f   :  { %7861 = vmatprep.subr.bf16.mxu1 %v7860_v35  ;;  %v8733_v57 = vrot.slane %v7738_v25, %v8568_v28  ;;  %v8736_v59 = vrot.slane %v7737_v18, %v8612_v54  ;;  %v462_v60 = vrot.slane %v378_v51, 4  ;;  %v297_v61 = vmul.f32 %v8722_v52, %v272_v44 }
  0xa0   :  { %v306_v17 = vpop.permute.xlu1 %305  ;;  %7863 = vmatpush1.bf16.msra.mxu1 %v7862_v37  ;;  %v304_v19 = vpop.permute.xlu0 %303  ;;  %v8741_v62 = vrot.slane %v7737_v18, %v8615_v55  ;;  %v8745_v8 = vrot.slane %v8658_v12, %v8612_v54  ;;  %v461_v27 = vrot.slane %v377_v50, 4  ;;  %v478_v30 = vsel %vm45_vm4, %v8443_v1, %v450_v49  ;;  %v7740_v37 = vld [vmem:[%s12584_s7 + $0x20] ss:$8 sm:$0xf] }
  0xa1   :  { %v311_v56 = vsel %vm309_vm7, %v304_v19, %v306_v17  ;;  %v8752_v31 = vrot.slane %v8658_v12, %v8615_v55  ;;  %v449_v51 = vrot.slane %v297_v61, 4  ;;  %v8776_v61 = vrot.slane %v7740_v37, %v8529_v14 }
  0xa2   :  { %v338_v23 = vmul.f32 %v8725_v24, %v311_v56 }
  0xa3   :  { %v477_v14 = vsel %vm45_vm4, %v8435_v0, %v449_v51 }
  0xa4   :  { %v302_v58 = vpop.permute.xlu1 %301  ;;  %v268_v34 = vpop.permute.xlu0 %267  ;;  %v482_v13 = vsel %vm45_vm4, %v338_v23, %v462_v60 }
  0xa5   :  { %v312_v18 = vsel %vm309_vm7, %v302_v58, %v304_v19  ;;  %v270_v15 = vsel %vm269_vm5, %v8635_v22, %v268_v34  ;;  %v273_v33 = vsel %vm269_vm5, %v268_v34, %v262_v16  ;;  %v7856_v35 = vpack.c.bf16 %v482_v13, %v478_v30 }
  0xa6   :  { %v337_v44 = vmul.f32 %v8733_v57, %v312_v18  ;;  %v299_v12 = vmul.f32 %v8736_v59, %v270_v15  ;;  %v300_v49 = vmul.f32 %v8741_v62, %v273_v33  ;;  %v8769_v22 = vrot.slane %v7738_v25, %v8612_v54 }
  0xa7   :  { %7857 = vmatprep.subr.bf16.mxu0 %v7856_v35  ;;  %v8772_v16 = vrot.slane %v7738_v25, %v8615_v55 }
  0xa8   :  { %v452_v50 = vrot.slane %v300_v49, 4  ;;  %v308_v19 = vpop.permute.xlu1 %307  ;;  %v348_v56 = vpop.permute.xlu0 %347  ;;  %v481_v60 = vsel %vm45_vm4, %v337_v44, %v461_v27  ;;  %v451_v13 = vrot.slane %v299_v12, 4  ;;  %v8796_v12 = vrot.slane %v7740_v37, %v8568_v28 }
  0xa9   :  { %v310_v23 = vsel %vm309_vm7, %v306_v17, %v308_v19  ;;  %v313_v34 = vsel %vm309_vm7, %v308_v19, %v302_v58  ;;  %v350_v30 = vsel %vm349_vm6, %v8653_v38, %v348_v56  ;;  %v353_v25 = vsel %vm349_vm6, %v348_v56, %v342_v29 }
  0xaa   :  { %v379_v18 = vmul.f32 %v8745_v8, %v350_v30  ;;  %v380_v27 = vmul.f32 %v8752_v31, %v353_v25  ;;  %v7858_v15 = vpack.c.bf16 %v481_v60, %v477_v14  ;;  %v339_v17 = vmul.f32 %v8769_v22, %v310_v23 }
  0xab   :  { %v340_v58 = vmul.f32 %v8772_v16, %v313_v34  ;;  %v8799_v49 = vrot.slane %v7740_v37, %v8615_v55  ;;  %v480_v0 = vsel %vm45_vm4, %v8456_v3, %v452_v50  ;;  %v479_v56 = vsel %vm45_vm4, %v8448_v2, %v451_v13 }
  0xac   :  { %v463_v33 = vrot.slane %v379_v18, 4  ;;  %v464_v35 = vrot.slane %v380_v27, 4  ;;  %v386_v44 = vpop.permute.xlu1 %385  ;;  %v384_v38 = vpop.permute.xlu0 %383  ;;  %7859 = vmatpush1.bf16.msra.mxu0 %v7858_v15  ;;  %v8809_v28 = vrot.slane %v7740_v37, %v8612_v54  ;;  %v485_v54 = vld [vmem:[%s12585_s1] sm:$0xf] }
  0xad   :  { %v391_v29 = vsel %vm389_vm8, %v384_v38, %v386_v44 }
  0xae   :  { %v418_v51 = vmul.f32 %v8776_v61, %v391_v29  ;;  %v484_v19 = vsel %vm45_vm4, %v340_v58, %v464_v35  ;;  %v483_v60 = vsel %vm45_vm4, %v339_v17, %v463_v33 }
  0xaf   :  { %v7864_v23 = vpack.c.bf16 %v484_v19, %v480_v0  ;;  %v7866_v34 = vpack.c.bf16 %v483_v60, %v479_v56 }
  0xb0   :  { %v388_v30 = vpop.permute.xlu1 %387  ;;  %7741 = vmatprep.subr.msk.mxu0 %vm45_vm4, %v418_v51  ;;  %v382_v55 = vpop.permute.xlu0 %381 }
  0xb1   :  { %v390_v50 = vsel %vm389_vm8, %v386_v44, %v388_v30  ;;  %v392_v25 = vsel %vm389_vm8, %v382_v55, %v384_v38  ;;  %v393_v2 = vsel %vm389_vm8, %v388_v30, %v382_v55  ;;  %7865 = vmatprep.subr.bf16.mxu1 %v7864_v23 }
  0xb2   :  { %v417_v13 = vmul.f32 %v8796_v12, %v392_v25  ;;  %v420_v18 = vmul.f32 %v8799_v49, %v393_v2  ;;  %7867 = vmatpush1.bf16.msra.mxu1 %v7866_v34  ;;  %v419_v37 = vmul.f32 %v8809_v28, %v390_v50 }
  0xb4   :  { %7742 = vmatpush1.msk.msra.mxu0 %vm45_vm4, %v417_v13  ;;  %7744 = vmatprep.subr.msk.mxu1 %vm45_vm4, %v420_v18 }
  0xb5   :  { %7743 = vmatmul.mubr.msk.f32.vlgmr.msra.gmra.mrb[0].mxu0 %vm492_vm9, %v485_v54 }
  0xb6   :  { %7745 = vmatpush1.msk.msra.mxu1 %vm45_vm4, %v419_v37  ;;  %1024 = vmatprep.mubr.f32.mxu0 %v12592_v4 }
  0xb7   :  { %7746 = vmatmul.mubr.msk.f32.vlgmr.msra.gmra.mrb[0].mxu1 %vm492_vm9, %v485_v54 }
  0xb8   :  { %1095 = vmatprep.mubr.f32.mxu1 %v12592_v4 }
  0xc1   :  { %v490_v27 = vpop.permute.xlu0 %489 }
 0x188   :  { %v574_v14 = vpop.f32.mrb[0].mxu0 }
 0x189   :  { %v575_v15 = vadd.f32 %v574_v14, %v490_v27  ;;  %v576_v17 = vpop.f32.mrb[1].mxu0 }
 0x18a   :  { %v577_v58 = vadd.f32 %v576_v17, %v490_v27  ;;  %v645_v33 = vpop.f32.mrb[0].mxu1 }
 0x18b   :  { %v650_v35 = vmul.f32 0.01, %v575_v15  ;;  %v646_v44 = vadd.f32 %v645_v33, %v490_v27  ;;  %v647_v38 = vpop.f32.mrb[1].mxu1 }
 0x18c   :  { %v651_v29 = vmul.f32 0.01, %v577_v58  ;;  %v648_v0 = vadd.f32 %v647_v38, %v490_v27 }
 0x18d   :  { %v8831_v51 = vmax.f32 %v575_v15, %v650_v35  ;;  %v652_v19 = vmul.f32 0.01, %v646_v44 }
 0x18e   :  { %v8833_v56 = vmax.f32 %v577_v58, %v651_v29  ;;  %v653_v60 = vmul.f32 0.01, %v648_v0 }
 0x18f   :  { %v8835_v23 = vmax.f32 %v646_v44, %v652_v19  ;;  %v658_v34 = vmul.f32 %v8831_v51, %v8831_v51 }
 0x190   :  { %v659_v30 = vmul.f32 %v8833_v56, %v8833_v56  ;;  %v8841_v55 = vmax.f32 %v648_v0, %v653_v60 }
 0x191   :  { %v660_v50 = vmul.f32 %v8835_v23, %v8835_v23  ;;  %v666_v25 = vrot.slane %v658_v34, 4 }
 0x192   :  { %v667_v2 = vrot.slane %v659_v30, 4  ;;  %v661_v13 = vmul.f32 %v8841_v55, %v8841_v55 }
 0x193   :  { %v668_v18 = vrot.slane %v660_v50, 4  ;;  %v674_v54 = vsel %vm45_vm4, %v8831_v51, %v666_v25 }
 0x194   :  { %v669_v37 = vrot.slane %v661_v13, 4  ;;  %v675_v27 = vsel %vm45_vm4, %v8833_v56, %v667_v2 }
 0x195   :  { %v676_v14 = vsel %vm45_vm4, %v8835_v23, %v668_v18  ;;  %v678_v15 = vadd.f32 %v675_v27, %v674_v54 }
 0x196   :  { %v677_v58 = vsel %vm45_vm4, %v8841_v55, %v669_v37 }
 0x197   :  { %v679_v17 = vadd.f32 %v678_v15, %v676_v14 }
 0x199   :  { %v680_v33 = vadd.f32 %v679_v17, %v677_v58 }
 0x19b   :  { %681 = vadd.xlane.f32.xlu1 %v680_v33 }
 0x228   :  { %v682_v35 = vpop.xlane.xlu1 %681 }
 0x229   :  { %v691_v44 = vrot.slane %v682_v35, 4  ;;  %v683_v27 = vmul.f32 0.001953125, %v682_v35 }
 0x22b   :  { %v694_v38 = vsel %vm693_vm10, %v691_v44, 0.0  ;;  %v684_v14 = vmul.f32 %v683_v27, %v683_v27 }
 0x22c   :  { %695 = vadd.xlane.f32.xlu0 %v694_v38 }
 0x22d   :  { %v686_v15 = vrot.slane %v684_v14, 4 }
 0x22f   :  { %v688_v17 = vsub.f32 %v683_v27, %v686_v15 }
 0x231   :  { %v689_v58 = vmax.f32 %v688_v17, 0.0 }
 0x2b9   :  { %v696_v29 = vpop.xlane.xlu0 %695 }
 0x2ba   :  { %v697_v0 = vrot.slane %v696_v29, 4 }
 0x2bc   :  { %v698_v19 = vadd.f32 %v697_v0, %v696_v29 }
 0x2be   :  { %v699_v60 = vrot.slane %v698_v19, 2 }
 0x2c0   :  { %v700_v34 = vadd.f32 %v699_v60, %v698_v19  ;;  %v8859_v60 = vld [vmem:[%s12586_s3] sm:$0xf] }
 0x2c2   :  { %v701_v30 = vrot.slane %v700_v34, 1 }
 0x2c4   :  { %v702_v50 = vadd.f32 %v701_v30, %v700_v34  ;;  %v8865_v30 = vld [vmem:[%s12587_s4] sm:$0xf] }
 0x2c6   :  { %8108 = vpush %v702_v50 }
 0x2f7   :  { %s8109_s22 = spop %8108 }
 0x2f8   :  { %v704_v25 = vstv %s8109_s22 }
 0x2f9   :  { %8252 = vrsqrt.f32 %v704_v25  ;;  %vm707_vm11 = vcmp.eq.f32.partialorder %v704_v25, inf  ;;  %v710_v18 = vand.u32 2147483648, %v704_v25  ;;  %vm709_vm12 = vcmp.eq.f32.partialorder %v704_v25, 0.0 }
 0x303   :  { %v8253_v2 = vpop.eup %8252 }
 0x304   :  { %v706_v13 = vmul.f32 %v8253_v2, %v704_v25 }
 0x306   :  { %v708_v54 = vsel %vm707_vm11, %v704_v25, %v706_v13 }
 0x307   :  { %v711_v37 = vsel %vm709_vm12, %v710_v18, %v708_v54 }
 0x308   :  { %8110 = vpush %v711_v37 }
 0x339   :  { %s8111_s23 = spop %8110 }
 0x33a   :  { %s713_s24 = sadd.f32 1e-06, %s8111_s23 }
 0x33c   :  { %s716_s25 = smul.f32 %s713_s24, %s713_s24  ;;  %v721_v0 = vstv %s713_s24 }
 0x33e   :  { %v717_v33 = vstv %s716_s25 }
 0x33f   :  { %v718_v44 = vmul.f32 %v717_v33, %v689_v58 }
 0x341   :  { %v719_v38 = vadd.f32 1e-05, %v718_v44 }
 0x343   :  { %8254 = vrsqrt.f32 %v719_v38 }
 0x34d   :  { %v8255_v29 = vpop.eup %8254 }
 0x34e   :  { %v722_v19 = vmul.f32 %v8255_v29, %v721_v0 }
 0x350   :  { %v724_v35 = vrot.slane %v722_v19, 4 }
 0x352   :  { %v726_v34 = vmul.f32 %v724_v35, %v8859_v60 }
 0x354   :  { %729 = vperm.xlu1 %8212, %v726_v34   ;;  %v736_v50 = vmul.f32 %v726_v34, %v683_v27 }
 0x356   :  { %v737_v25 = vsub.f32 %v8865_v30, %v736_v50 }
 0x358   :  { %740 = vperm.xlu0 %8211, %v737_v25  }
 0x3d3   :  { %v730_v2 = vpop.permute.xlu1 %729 }
 0x3d4   :  { %v732_v13 = vmul.f32 %v730_v2, %v8831_v51  ;;  %v733_v37 = vmul.f32 %v730_v2, %v8833_v56  ;;  %v735_v14 = vmul.f32 %v730_v2, %v8841_v55  ;;  %v734_v51 = vmul.f32 %v730_v2, %v8835_v23 }
 0x3d5   :  { %v12591_v23 = vmov 1  }
 0x3d6   :  { %8213 = vset.pattern.permute.xlu0 %v12591_v23 }
 0x3d7   :  { %v741_v18 = vpop.permute.xlu0 %740 }
 0x3d8   :  { %v8869_v54 = vadd.f32 %v741_v18, %v732_v13  ;;  %v8877_v27 = vadd.f32 %v741_v18, %v733_v37  ;;  %v8879_v15 = vadd.f32 %v741_v18, %v735_v14  ;;  %v8902_v56 = vadd.f32 %v741_v18, %v734_v51 }
 0x3da   :  { %795 = vrot.lane.b32.xlu0 %v8869_v54, %s8348_s29  ;;  %763 = vrot.lane.b32.xlu1 %v8869_v54, %s8349_s30 }
 0x3de   :  { %769 = vrot.lane.b32.xlu0 %v8879_v15, %s8349_s30  ;;  %765 = vrot.lane.b32.xlu1 %v8877_v27, %s8349_s30 }
 0x3e2   :  { %747 = vrot.lane.b32.xlu0 %v8869_v54, %s8350_s11  ;;  %797 = vrot.lane.b32.xlu1 %v8877_v27, %s8348_s29 }
 0x3e6   :  { %779 = vrot.lane.b32.xlu0 %v8869_v54, %s8351_s12  ;;  %801 = vrot.lane.b32.xlu1 %v8879_v15, %s8348_s29 }
 0x3ea   :  { %753 = vrot.lane.b32.xlu0 %v8879_v15, %s8350_s11  ;;  %749 = vrot.lane.b32.xlu1 %v8877_v27, %s8350_s11 }
 0x3ee   :  { %785 = vrot.lane.b32.xlu0 %v8879_v15, %s8351_s12  ;;  %781 = vrot.lane.b32.xlu1 %v8877_v27, %s8351_s12 }
 0x3f2   :  { %813 = vrot.lane.b32.xlu0 %v8877_v27, %s8352_s13  ;;  %767 = vrot.lane.b32.xlu1 %v8902_v56, %s8349_s30 }
 0x3f6   :  { %845 = vrot.lane.b32.xlu0 %v8877_v27, %s8353_s14  ;;  %799 = vrot.lane.b32.xlu1 %v8902_v56, %s8348_s29 }
 0x3fa   :  { %751 = vrot.lane.b32.xlu0 %v8902_v56, %s8350_s11  ;;  %815 = vrot.lane.b32.xlu1 %v8902_v56, %s8352_s13 }
 0x3fe   :  { %811 = vrot.lane.b32.xlu0 %v8869_v54, %s8352_s13  ;;  %847 = vrot.lane.b32.xlu1 %v8902_v56, %s8353_s14 }
 0x402   :  { %829 = vrot.lane.b32.xlu0 %v8877_v27, %s8354_s15  ;;  %783 = vrot.lane.b32.xlu1 %v8902_v56, %s8351_s12 }
 0x406   :  { %817 = vrot.lane.b32.xlu0 %v8879_v15, %s8352_s13  ;;  %843 = vrot.lane.b32.xlu1 %v8869_v54, %s8353_s14 }
 0x40a   :  { %849 = vrot.lane.b32.xlu0 %v8879_v15, %s8353_s14  ;;  %831 = vrot.lane.b32.xlu1 %v8902_v56, %s8354_s15 }
 0x40e   :  { %861 = vrot.lane.b32.xlu0 %v8877_v27, %s8357_s16  ;;  %827 = vrot.lane.b32.xlu1 %v8869_v54, %s8354_s15 }
 0x412   :  { %859 = vrot.lane.b32.xlu0 %v8869_v54, %s8357_s16  ;;  %833 = vrot.lane.b32.xlu1 %v8879_v15, %s8354_s15 }
 0x416   :  { %863 = vrot.lane.b32.xlu1 %v8902_v56, %s8357_s16  ;;  %942 = vperm.xlu0 %8213, %v8519_v6  }
 0x41a   :  { %865 = vrot.lane.b32.xlu1 %v8879_v15, %s8357_s16 }
 0x44c   :  { %v796_v55 = vpop.permute.xlu0 %795  ;;  %v764_v17 = vpop.permute.xlu1 %763 }
 0x450   :  { %v770_v58 = vpop.permute.xlu0 %769  ;;  %v766_v33 = vpop.permute.xlu1 %765 }
 0x451   :  { %v774_v19 = vsel %vm149_vm0, %v770_v58, %v764_v17  ;;  %v773_v35 = vsel %vm149_vm0, %v764_v17, %v766_v33 }
 0x452   :  { %v775_v2 = vmul.f32 %v774_v19, %v8590_v40  ;;  %v776_v13 = vmul.f32 %v773_v35, %v8549_v21 }
 0x454   :  { %v748_v44 = vpop.permute.xlu0 %747  ;;  %v798_v38 = vpop.permute.xlu1 %797  ;;  %v879_v10 = vrot.slane %v775_v2, 4  ;;  %v880_v19 = vrot.slane %v776_v13, 4 }
 0x455   :  { %v805_v6 = vsel %vm229_vm1, %v796_v55, %v798_v38 }
 0x456   :  { %v808_v14 = vmul.f32 %v805_v6, %v8546_v20 }
 0x458   :  { %v780_v29 = vpop.permute.xlu0 %779  ;;  %v802_v0 = vpop.permute.xlu1 %801  ;;  %v892_v21 = vrot.slane %v808_v14, 4 }
 0x459   :  { %v806_v34 = vsel %vm229_vm1, %v802_v0, %v796_v55 }
 0x45a   :  { %v807_v51 = vmul.f32 %v806_v34, %v8584_v36 }
 0x45c   :  { %v754_v50 = vpop.permute.xlu0 %753  ;;  %v750_v25 = vpop.permute.xlu1 %749 }
 0x45d   :  { %v758_v18 = vsel %vm110_vm2, %v754_v50, %v748_v44  ;;  %v757_v37 = vsel %vm110_vm2, %v748_v44, %v750_v25  ;;  %v891_v44 = vrot.slane %v807_v51, 4 }
 0x45e   :  { %v759_v17 = vmul.f32 %v758_v18, %v8599_v45  ;;  %v760_v55 = vmul.f32 %v757_v37, %v8565_v26 }
 0x460   :  { %v786_v23 = vpop.permute.xlu0 %785  ;;  %v782_v4 = vpop.permute.xlu1 %781  ;;  %v924_v37 = vsel %vm45_vm4, %v760_v55, %v880_v19  ;;  %v923_v2 = vsel %vm45_vm4, %v759_v17, %v879_v10 }
 0x461   :  { %v790_v35 = vsel %vm189_vm3, %v786_v23, %v780_v29  ;;  %v789_v40 = vsel %vm189_vm3, %v780_v29, %v782_v4 }
 0x462   :  { %v791_v6 = vmul.f32 %v790_v35, %v8609_v53  ;;  %v792_v34 = vmul.f32 %v789_v40, %v8578_v32 }
 0x464   :  { %v814_v36 = vpop.permute.xlu0 %813  ;;  %v768_v18 = vpop.permute.xlu1 %767  ;;  %v928_v45 = vsel %vm45_vm4, %v792_v34, %v892_v21  ;;  %v927_v13 = vsel %vm45_vm4, %v791_v6, %v891_v44 }
 0x465   :  { %v7868_v26 = vpack.c.bf16 %v928_v45, %v924_v37  ;;  %v7870_v20 = vpack.c.bf16 %v927_v13, %v923_v2  ;;  %v771_v40 = vsel %vm149_vm0, %v768_v18, %v770_v58  ;;  %v772_v10 = vsel %vm149_vm0, %v766_v33, %v768_v18 }
 0x466   :  { %v778_v45 = vmul.f32 %v771_v40, %v8625_v5  ;;  %v777_v44 = vmul.f32 %v772_v10, %v8622_v63 }
 0x467   :  { %7869 = vmatprep.subr.bf16.mxu0 %v7868_v26 }
 0x468   :  { %v846_v29 = vpop.permute.xlu0 %845  ;;  %7871 = vmatpush1.bf16.msra.mxu0 %v7870_v20  ;;  %v800_v14 = vpop.permute.xlu1 %799  ;;  %v881_v40 = vrot.slane %v777_v44, 4 }
 0x469   :  { %v803_v55 = vsel %vm229_vm1, %v800_v14, %v802_v0  ;;  %v804_v21 = vsel %vm229_vm1, %v798_v38, %v800_v14  ;;  %v882_v38 = vrot.slane %v778_v45, 4 }
 0x46a   :  { %v809_v19 = vmul.f32 %v804_v21, %v8628_v7  ;;  %v810_v58 = vmul.f32 %v803_v55, %v8633_v9 }
 0x46c   :  { %v752_v51 = vpop.permute.xlu0 %751  ;;  %v816_v35 = vpop.permute.xlu1 %815  ;;  %v893_v13 = vrot.slane %v809_v19, 4 }
 0x46d   :  { %v755_v20 = vsel %vm110_vm2, %v752_v51, %v754_v50  ;;  %v756_v0 = vsel %vm110_vm2, %v750_v25, %v752_v51  ;;  %v820_v37 = vsel %vm269_vm5, %v814_v36, %v816_v35  ;;  %v894_v25 = vrot.slane %v810_v58, 4 }
 0x46e   :  { %v762_v6 = vmul.f32 %v755_v20, %v8675_v43  ;;  %v761_v18 = vmul.f32 %v756_v0, %v8671_v42  ;;  %v824_v21 = vmul.f32 %v820_v37, %v8679_v47 }
 0x470   :  { %v812_v26 = vpop.permute.xlu0 %811  ;;  %v848_v17 = vpop.permute.xlu1 %847  ;;  %v926_v20 = vsel %vm45_vm4, %v762_v6, %v882_v38  ;;  %v925_v0 = vsel %vm45_vm4, %v761_v18, %v881_v40 }
 0x471   :  { %v852_v55 = vsel %vm349_vm6, %v846_v29, %v848_v17  ;;  %v821_v19 = vsel %vm269_vm5, %v812_v26, %v814_v36 }
 0x472   :  { %v856_v44 = vmul.f32 %v852_v55, %v8683_v48  ;;  %v823_v38 = vmul.f32 %v821_v19, %v8722_v52 }
 0x474   :  { %v830_v33 = vpop.permute.xlu0 %829  ;;  %v784_v34 = vpop.permute.xlu1 %783  ;;  %v903_v55 = vrot.slane %v823_v38, 4 }
 0x475   :  { %v787_v50 = vsel %vm189_vm3, %v784_v34, %v786_v23  ;;  %v788_v2 = vsel %vm189_vm3, %v782_v4, %v784_v34 }
 0x476   :  { %v793_v14 = vmul.f32 %v788_v2, %v8663_v39  ;;  %v794_v51 = vmul.f32 %v787_v50, %v8667_v41  ;;  %v904_v50 = vrot.slane %v824_v21, 4 }
 0x478   :  { %v818_v10 = vpop.permute.xlu0 %817  ;;  %v844_v45 = vpop.permute.xlu1 %843  ;;  %v930_v23 = vsel %vm45_vm4, %v794_v51, %v894_v25  ;;  %v929_v4 = vsel %vm45_vm4, %v793_v14, %v893_v13  ;;  %v916_v25 = vrot.slane %v856_v44, 4 }
 0x479   :  { %v7876_v58 = vpack.c.bf16 %v930_v23, %v926_v20  ;;  %v7878_v34 = vpack.c.bf16 %v929_v4, %v925_v0  ;;  %v853_v37 = vsel %vm349_vm6, %v844_v45, %v846_v29  ;;  %v822_v6 = vsel %vm269_vm5, %v818_v10, %v812_v26 }
 0x47a   :  { %v819_v36 = vsel %vm269_vm5, %v816_v35, %v818_v10  ;;  %v855_v14 = vmul.f32 %v853_v37, %v8708_v46  ;;  %v826_v51 = vmul.f32 %v822_v6, %v8741_v62  ;;  %v932_v20 = vsel %vm45_vm4, %v8877_v27, %v904_v50 }
 0x47b   :  { %7877 = vmatprep.subr.bf16.mxu1 %v7876_v58  ;;  %v825_v21 = vmul.f32 %v819_v36, %v8736_v59  ;;  %v931_v27 = vsel %vm45_vm4, %v8869_v54, %v903_v55 }
 0x47c   :  { %v850_v2 = vpop.permute.xlu0 %849  ;;  %7879 = vmatpush1.bf16.msra.mxu1 %v7878_v34  ;;  %v832_v13 = vpop.permute.xlu1 %831  ;;  %v915_v58 = vrot.slane %v855_v14, 4  ;;  %v906_v44 = vrot.slane %v826_v51, 4 }
 0x47d   :  { %v836_v18 = vsel %vm309_vm7, %v830_v33, %v832_v13  ;;  %v851_v40 = vsel %vm349_vm6, %v848_v17, %v850_v2  ;;  %v854_v26 = vsel %vm349_vm6, %v850_v2, %v844_v45  ;;  %v905_v34 = vrot.slane %v825_v21, 4 }
 0x47e   :  { %v840_v29 = vmul.f32 %v836_v18, %v8725_v24  ;;  %v857_v17 = vmul.f32 %v851_v40, %v8745_v8  ;;  %v858_v0 = vmul.f32 %v854_v26, %v8752_v31  ;;  %v934_v54 = vsel %vm45_vm4, %v8879_v15, %v906_v44 }
 0x47f   :  { %v933_v40 = vsel %vm45_vm4, %v8902_v56, %v905_v34 }
 0x480   :  { %v862_v35 = vpop.permute.xlu0 %861  ;;  %v828_v10 = vpop.permute.xlu1 %827  ;;  %v936_v23 = vsel %vm45_vm4, %v840_v29, %v916_v25  ;;  %v917_v36 = vrot.slane %v857_v17, 4  ;;  %v918_v18 = vrot.slane %v858_v0, 4  ;;  %v12657_v17 = vmov 0.0  }
 0x481   :  { %v837_v4 = vsel %vm309_vm7, %v828_v10, %v830_v33  ;;  %v7872_v19 = vpack.c.bf16 %v936_v23, %v932_v20  ;;  %v7747_v23 = vld [vmem:[%s12585_s1 + $0x4] sm:$0xf] }
 0x482   :  { %v839_v45 = vmul.f32 %v837_v4, %v8733_v57 }
 0x483   :  { %7873 = vmatprep.subr.bf16.mxu0 %v7872_v19 }
 0x484   :  { %v834_v37 = vpop.permute.xlu1 %833  ;;  %v935_v50 = vsel %vm45_vm4, %v839_v45, %v915_v58  ;;  %v860_v38 = vpop.permute.xlu0 %859 }
 0x485   :  { %v835_v33 = vsel %vm309_vm7, %v832_v13, %v834_v37  ;;  %v838_v6 = vsel %vm309_vm7, %v834_v37, %v828_v10  ;;  %v7874_v2 = vpack.c.bf16 %v935_v50, %v931_v27  ;;  %v869_v29 = vsel %vm389_vm8, %v860_v38, %v862_v35  ;;  %v9076_v37 = vld [vmem:[%s12582_s0] sm:$0xff] }
 0x486   :  { %v841_v25 = vmul.f32 %v835_v33, %v8769_v22  ;;  %v842_v14 = vmul.f32 %v838_v6, %v8772_v16  ;;  %v871_v15 = vmul.f32 %v869_v29, %v8796_v12  ;;  %v31_v27 = vmul.f32 %v9076_v37, %v9076_v37 }
 0x487   :  { %7875 = vmatpush1.bf16.msra.mxu0 %v7874_v2  ;;  %v9083_v2 = vld [vmem:[%s12582_s0 + $0x8] sm:$0xff]  ;;  %s8361_s0 = smov 2  }
 0x488   :  { %v864_v51 = vpop.permute.xlu1 %863  ;;  %v938_v13 = vsel %vm45_vm4, %v842_v14, %v918_v18  ;;  %v937_v26 = vsel %vm45_vm4, %v841_v25, %v917_v36  ;;  %v32_v36 = vmul.f32 %v9083_v2, %v9083_v2 }
 0x489   :  { %v868_v55 = vsel %vm389_vm8, %v862_v35, %v864_v51  ;;  %v7880_v21 = vpack.c.bf16 %v938_v13, %v934_v54  ;;  %v7882_v10 = vpack.c.bf16 %v937_v26, %v933_v40  ;;  %v41_v54 = vcombine.low %v31_v27, %v31_v27 }
 0x48a   :  { %v872_v20 = vmul.f32 %v868_v55, %v8776_v61 }
 0x48b   :  { %7881 = vmatprep.subr.bf16.mxu1 %v7880_v21  ;;  %v42_v21 = vcombine.low %v32_v36, %v32_v36 }
 0x48c   :  { %7748 = vmatprep.subr.msk.mxu0 %vm45_vm4, %v872_v20  ;;  %7883 = vmatpush1.bf16.msra.mxu1 %v7882_v10  ;;  %v866_v56 = vpop.permute.xlu1 %865 }
 0x48d   :  { %v867_v4 = vsel %vm389_vm8, %v864_v51, %v866_v56  ;;  %v870_v35 = vsel %vm389_vm8, %v866_v56, %v860_v38  ;;  %7749 = vmatpush1.msk.msra.mxu0 %vm45_vm4, %v871_v15  ;;  %v46_v15 = vsel %vm45_vm4, %v9076_v37, %v41_v54 }
 0x48e   :  { %v873_v19 = vmul.f32 %v867_v4, %v8809_v28  ;;  %v874_v58 = vmul.f32 %v870_v35, %v8799_v49  ;;  %7750 = vmatmul.mubr.msk.f32.vlgmr.msra.gmra.mrb[2].mxu0 %vm492_vm9, %v7747_v23 }
 0x48f   :  { %1487 = vmatprep.mubr.f32.mxu0 %v12657_v17 }
 0x490   :  { %7751 = vmatprep.subr.msk.mxu1 %vm45_vm4, %v874_v58 }
 0x491   :  { %7752 = vmatpush1.msk.msra.mxu1 %vm45_vm4, %v873_v19 }
 0x492   :  { %7753 = vmatmul.mubr.msk.f32.vlgmr.msra.gmra.mrb[2].mxu1 %vm492_vm9, %v7747_v23  ;;  %v47_v23 = vsel %vm45_vm4, %v8443_v1, %v31_v27  ;;  %v48_v1 = vsel %vm45_vm4, %v9083_v2, %v42_v21 }
 0x493   :  { %1558 = vmatprep.mubr.f32.mxu1 %v12657_v17 }
 0x495   :  { %v943_v0 = vpop.permute.xlu0 %942 }
 0x561   :  { %v1026_v45 = vpop.f32.mrb[2].mxu0 }
 0x562   :  { %v1027_v44 = vadd.f32 %v1026_v45, %v943_v0  ;;  %v1028_v34 = vpop.f32.mrb[3].mxu0  ;;  %v50_v45 = vadd.f32 %v47_v23, %v46_v15 }
 0x563   :  { %v1029_v50 = vadd.f32 %v1028_v34, %v943_v0 }
 0x564   :  { %v1102_v38 = vmul.f32 0.01, %v1027_v44 }
 0x565   :  { %v1103_v33 = vmul.f32 0.01, %v1029_v50  ;;  %v1097_v6 = vpop.f32.mrb[2].mxu1 }
 0x566   :  { %v9087_v18 = vmax.f32 %v1027_v44, %v1102_v38  ;;  %v1098_v25 = vadd.f32 %v1097_v6, %v943_v0  ;;  %v1099_v14 = vpop.f32.mrb[3].mxu1  ;;  %v51_v6 = vadd.f32 %v50_v45, %v48_v1 }
 0x567   :  { %v9089_v29 = vmax.f32 %v1029_v50, %v1103_v33  ;;  %v1100_v51 = vadd.f32 %v1099_v14, %v943_v0 }
 0x568   :  { %v1110_v13 = vmul.f32 %v9087_v18, %v9087_v18  ;;  %v1104_v40 = vmul.f32 0.01, %v1098_v25 }
 0x569   :  { %v1111_v26 = vmul.f32 %v9089_v29, %v9089_v29  ;;  %v1105_v55 = vmul.f32 0.01, %v1100_v51 }
 0x56a   :  { %v1118_v10 = vrot.slane %v1110_v13, 4  ;;  %v9095_v20 = vmax.f32 %v1098_v25, %v1104_v40  ;;  %v49_v25 = vsel %vm45_vm4, %v8456_v3, %v32_v36  ;;  %v62_v3 = vld [vmem:[%s12588_s5] sm:$0xf] }
 0x56b   :  { %v1119_v56 = vrot.slane %v1111_v26, 4  ;;  %v9101_v4 = vmax.f32 %v1100_v51, %v1105_v55  ;;  %v52_v54 = vadd.f32 %v51_v6, %v49_v25 }
 0x56c   :  { %v1112_v35 = vmul.f32 %v9095_v20, %v9095_v20  ;;  %v1126_v19 = vsel %vm45_vm4, %v9087_v18, %v1118_v10 }
 0x56d   :  { %v1113_v58 = vmul.f32 %v9101_v4, %v9101_v4  ;;  %v1127_v0 = vsel %vm45_vm4, %v9089_v29, %v1119_v56 }
 0x56e   :  { %v1120_v44 = vrot.slane %v1112_v35, 4  ;;  %v1130_v34 = vadd.f32 %v1127_v0, %v1126_v19 }
 0x56f   :  { %v1121_v27 = vrot.slane %v1113_v58, 4  ;;  %v63_v58 = vld [vmem:[%s12589_s6] sm:$0xf] }
 0x570   :  { %v1128_v50 = vsel %vm45_vm4, %v9095_v20, %v1120_v44  ;;  %v12658_v44 = vmov 1  }
 0x571   :  { %v1129_v38 = vsel %vm45_vm4, %v9101_v4, %v1121_v27  ;;  %v1131_v33 = vadd.f32 %v1130_v34, %v1128_v50 }
 0x573   :  { %v1132_v14 = vadd.f32 %v1131_v33, %v1129_v38 }
 0x575   :  { %1133 = vadd.xlane.f32.xlu1 %v1132_v14 }
 0x579   :  { %53 = vadd.xlane.f32.xlu1 %v52_v54 }
 0x602   :  { %v1134_v51 = vpop.xlane.xlu1 %1133 }
 0x603   :  { %v1143_v13 = vrot.slane %v1134_v51, 4 }
 0x605   :  { %v1145_v40 = vsel %vm693_vm10, %v1143_v13, 0.0 }
 0x606   :  { %1146 = vadd.xlane.f32.xlu0 %v1145_v40  ;;  %v54_v26 = vpop.xlane.xlu1 %53 }
 0x607   :  { %v55_v55 = vmul.f32 0.001953125, %v54_v26 }
 0x609   :  { %v56_v21 = vmul.f32 %v55_v55, %v55_v55 }
 0x60b   :  { %v58_v10 = vrot.slane %v56_v21, 4 }
 0x60d   :  { %v60_v15 = vsub.f32 %v55_v55, %v58_v10 }
 0x60f   :  { %v61_v23 = vmax.f32 %v60_v15, 0.0 }
 0x611   :  { %v64_v56 = vadd.f32 1e-05, %v61_v23 }
 0x613   :  { %8256 = vrsqrt.f32 %v64_v56 }
 0x61d   :  { %v8257_v35 = vpop.eup %8256 }
 0x61e   :  { %v67_v36 = vrot.slane %v8257_v35, 4 }
 0x620   :  { %v69_v19 = vmul.f32 %v67_v36, %v62_v3 }
 0x622   :  { %72 = vperm.xlu1 %8212, %v69_v19   ;;  %v84_v0 = vmul.f32 %v69_v19, %v55_v55  ;;  %v1135_v55 = vmul.f32 0.001953125, %v1134_v51 }
 0x624   :  { %v85_v45 = vsub.f32 %v63_v58, %v84_v0  ;;  %v1136_v21 = vmul.f32 %v1135_v55, %v1135_v55 }
 0x626   :  { %88 = vperm.xlu1 %8212, %v85_v45   ;;  %v1138_v10 = vrot.slane %v1136_v21, 4 }
 0x628   :  { %v1140_v15 = vsub.f32 %v1135_v55, %v1138_v10 }
 0x62a   :  { %8214 = vset.pattern.permute.xlu1 %v12658_v44  ;;  %v1141_v23 = vmax.f32 %v1140_v15, 0.0 }
 0x693   :  { %v1147_v34 = vpop.xlane.xlu0 %1146 }
 0x694   :  { %v1148_v1 = vrot.slane %v1147_v34, 4 }
 0x696   :  { %v1149_v27 = vadd.f32 %v1148_v1, %v1147_v34  ;;  %v8359_v1 = vmov 839922192  }
 0x698   :  { %v1150_v50 = vrot.slane %v1149_v27, 2 }
 0x69a   :  { %v1151_v38 = vadd.f32 %v1150_v50, %v1149_v27  ;;  %v75_v27 = vunpack.c.l.s4 %v8359_v1 }
 0x69c   :  { %v1152_v33 = vrot.slane %v1151_v38, 1  ;;  %v76_v50 = vunpack.c.0.s8 %v75_v27 }
 0x69e   :  { %v1153_v6 = vadd.f32 %v1152_v33, %v1151_v38  ;;  %v12659_v33 = vld [vmem:[#allocation2_spill] sm:$0xff] }
 0x6a0   :  { %8112 = vpush %v1153_v6  ;;  %v79_v6 = vsub.s32 %v76_v50, %v12659_v33 }
 0x6a1   :  { %v73_v38 = vpop.permute.xlu1 %72 }
 0x6d1   :  { %s8113_s24 = spop %8112 }
 0x6d2   :  { %v1155_v25 = vstv %s8113_s24  ;;  %s8365_s24 = smov 4  }
 0x6d3   :  { %8258 = vrsqrt.f32 %v1155_v25  ;;  %vm1158_vm13 = vcmp.eq.f32.partialorder %v1155_v25, inf  ;;  %v1161_v13 = vand.u32 2147483648, %v1155_v25  ;;  %vm1160_vm14 = vcmp.eq.f32.partialorder %v1155_v25, 0.0 }
 0x6dd   :  { %v8259_v14 = vpop.eup %8258 }
 0x6de   :  { %v1157_v54 = vmul.f32 %v8259_v14, %v1155_v25  ;;  %v80_v14 = vrot.slane %v73_v38, %v79_v6 }
 0x6e0   :  { %v1159_v40 = vsel %vm1158_vm13, %v1155_v25, %v1157_v54  ;;  %v89_v25 = vpop.permute.xlu1 %88 }
 0x6e1   :  { %v1162_v26 = vsel %vm1160_vm14, %v1161_v13, %v1159_v40  ;;  %v96_v54 = vrot.slane %v89_v25, %v79_v6  ;;  %v82_v13 = vmul.f32 %v9076_v37, %v80_v14  ;;  %v12660_v25 = vld [vmem:[#allocation4_spill] sm:$0xff] }
 0x6e2   :  { %8114 = vpush %v1162_v26 }
 0x6e3   :  { %v98_v26 = vadd.f32 %v96_v54, %v82_v13 }
 0x713   :  { %s8115_s25 = spop %8114 }
 0x714   :  { %s1164_s26 = sadd.f32 1e-06, %s8115_s25 }
 0x716   :  { %s1165_s27 = smul.f32 %s1164_s26, %s1164_s26  ;;  %v1170_v19 = vstv %s1164_s26 }
 0x718   :  { %v1166_v56 = vstv %s1165_s27 }
 0x719   :  { %v1167_v35 = vmul.f32 %v1166_v56, %v1141_v23  ;;  %v83_v23 = vmul.f32 %v9083_v2, %v80_v14 }
 0x71b   :  { %v1168_v3 = vadd.f32 1e-05, %v1167_v35 }
 0x71d   :  { %8260 = vrsqrt.f32 %v1168_v3  ;;  %v99_v3 = vadd.f32 %v96_v54, %v83_v23  ;;  %v12661_v54 = vld [vmem:[#allocation3_spill] sm:$0xff] }
 0x727   :  { %v8261_v36 = vpop.eup %8260 }
 0x728   :  { %v1171_v58 = vmul.f32 %v8261_v36, %v1170_v19 }
 0x72a   :  { %v1173_v0 = vrot.slane %v1171_v58, 4  ;;  %v9212_v58 = vld [vmem:[%s12583_s2] sm:$0xf] }
 0x72c   :  { %1174 = vrot.lane.b32.xlu0 %v1173_v0, %s8348_s29 }
 0x79e   :  { %v1175_v45 = vpop.permute.xlu0 %1174 }
 0x79f   :  { %v1177_v51 = vmul.f32 %v1175_v45, %v8859_v60 }
 0x7a1   :  { %v1187_v44 = vmul.f32 %v1177_v51, %v1135_v55  ;;  %1180 = vperm.xlu0 %8213, %v1177_v51  }
 0x7a3   :  { %v1188_v34 = vsub.f32 %v8865_v30, %v1187_v44  ;;  %v1200_v30 = vcombine.high %v98_v26, %v98_v26 }
 0x7a5   :  { %1191 = vperm.xlu1 %8214, %v1188_v34  }
 0x820   :  { %v1181_v40 = vpop.permute.xlu0 %1180 }
 0x821   :  { %v1183_v60 = vmul.f32 %v1181_v40, %v9087_v18  ;;  %v1184_v55 = vmul.f32 %v1181_v40, %v9089_v29  ;;  %v1186_v36 = vmul.f32 %v1181_v40, %v9101_v4  ;;  %v1201_v18 = vcombine.high %v99_v3, %v99_v3 }
 0x822   :  { %v1185_v29 = vmul.f32 %v1181_v40, %v9095_v20  ;;  %v8360_v20 = vmov 2   ;;  %v12662_v40 = vld [vmem:[#allocation5_spill] sm:$0xff] }
 0x823   :  { %8215 = vset.pattern.permute.xlu0 %v8360_v20  ;;  %8216 = vset.pattern.permute.xlu1 %v8360_v20 }
 0x824   :  { %v1192_v21 = vpop.permute.xlu1 %1191 }
 0x825   :  { %v1194_v10 = vadd.f32 %v1192_v21, %v1183_v60  ;;  %v1195_v15 = vadd.f32 %v1192_v21, %v1184_v55  ;;  %v1197_v37 = vadd.f32 %v1192_v21, %v1186_v36  ;;  %v1196_v4 = vadd.f32 %v1192_v21, %v1185_v29 }
 0x827   :  { %v9135_v56 = vadd.f32 %v1194_v10, %v98_v26  ;;  %v9137_v35 = vadd.f32 %v1200_v30, %v1195_v15  ;;  %v9148_v2 = vadd.f32 %v1201_v18, %v1197_v37  ;;  %v9163_v19 = vadd.f32 %v1196_v4, %v99_v3 }
 0x829   :  { %1226 = vrot.lane.b32.xlu1 %v9137_v35, %s8349_s30  ;;  %1224 = vrot.lane.b32.xlu0 %v9135_v56, %s8349_s30 }
 0x82d   :  { %1258 = vrot.lane.b32.xlu1 %v9137_v35, %s8348_s29  ;;  %1256 = vrot.lane.b32.xlu0 %v9135_v56, %s8348_s29 }
 0x831   :  { %1262 = vrot.lane.b32.xlu1 %v9148_v2, %s8348_s29  ;;  %1230 = vrot.lane.b32.xlu0 %v9148_v2, %s8349_s30 }
 0x835   :  { %1210 = vrot.lane.b32.xlu1 %v9137_v35, %s8350_s11  ;;  %1208 = vrot.lane.b32.xlu0 %v9135_v56, %s8350_s11 }
 0x839   :  { %1242 = vrot.lane.b32.xlu1 %v9137_v35, %s8351_s12  ;;  %1240 = vrot.lane.b32.xlu0 %v9135_v56, %s8351_s12 }
 0x83d   :  { %1228 = vrot.lane.b32.xlu1 %v9163_v19, %s8349_s30  ;;  %1214 = vrot.lane.b32.xlu0 %v9148_v2, %s8350_s11 }
 0x841   :  { %1260 = vrot.lane.b32.xlu1 %v9163_v19, %s8348_s29  ;;  %1246 = vrot.lane.b32.xlu0 %v9148_v2, %s8351_s12 }
 0x845   :  { %1276 = vrot.lane.b32.xlu1 %v9163_v19, %s8352_s13  ;;  %1274 = vrot.lane.b32.xlu0 %v9137_v35, %s8352_s13 }
 0x849   :  { %1308 = vrot.lane.b32.xlu1 %v9163_v19, %s8353_s14  ;;  %1306 = vrot.lane.b32.xlu0 %v9137_v35, %s8353_s14 }
 0x84d   :  { %1244 = vrot.lane.b32.xlu1 %v9163_v19, %s8351_s12  ;;  %1212 = vrot.lane.b32.xlu0 %v9163_v19, %s8350_s11 }
 0x851   :  { %1304 = vrot.lane.b32.xlu1 %v9135_v56, %s8353_s14  ;;  %1272 = vrot.lane.b32.xlu0 %v9135_v56, %s8352_s13 }
 0x855   :  { %1292 = vrot.lane.b32.xlu1 %v9163_v19, %s8354_s15  ;;  %1290 = vrot.lane.b32.xlu0 %v9137_v35, %s8354_s15 }
 0x859   :  { %1288 = vrot.lane.b32.xlu1 %v9135_v56, %s8354_s15  ;;  %1278 = vrot.lane.b32.xlu0 %v9148_v2, %s8352_s13 }
 0x85d   :  { %1294 = vrot.lane.b32.xlu1 %v9148_v2, %s8354_s15  ;;  %1310 = vrot.lane.b32.xlu0 %v9148_v2, %s8353_s14 }
 0x861   :  { %1324 = vrot.lane.b32.xlu1 %v9163_v19, %s8357_s16  ;;  %1322 = vrot.lane.b32.xlu0 %v9137_v35, %s8357_s16 }
 0x865   :  { %1326 = vrot.lane.b32.xlu1 %v9148_v2, %s8357_s16  ;;  %1320 = vrot.lane.b32.xlu0 %v9135_v56, %s8357_s16 }
 0x869   :  { %1405 = vperm.xlu0 %8215, %v9212_v58  }
 0x89b   :  { %v1227_v0 = vpop.permute.xlu1 %1226  ;;  %v1225_v45 = vpop.permute.xlu0 %1224 }
 0x89c   :  { %v1234_v27 = vsel %vm149_vm0, %v1225_v45, %v1227_v0 }
 0x89d   :  { %v1237_v14 = vmul.f32 %v1234_v27, %v12660_v25  ;;  %v12663_v27 = vld [vmem:[#allocation7_spill] sm:$0xff] }
 0x89f   :  { %v1259_v51 = vpop.permute.xlu1 %1258  ;;  %v1257_v44 = vpop.permute.xlu0 %1256  ;;  %v1341_v30 = vrot.slane %v1237_v14, 4 }
 0x8a0   :  { %v1266_v50 = vsel %vm229_vm1, %v1257_v44, %v1259_v51 }
 0x8a1   :  { %v1269_v13 = vmul.f32 %v1266_v50, %v12661_v54 }
 0x8a3   :  { %v1263_v34 = vpop.permute.xlu1 %1262  ;;  %v1231_v1 = vpop.permute.xlu0 %1230  ;;  %v1353_v10 = vrot.slane %v1269_v13, 4  ;;  %v12665_v13 = vld [vmem:[#allocation9_spill] sm:$0xff] }
 0x8a4   :  { %v1267_v23 = vsel %vm229_vm1, %v1263_v34, %v1257_v44  ;;  %v1235_v3 = vsel %vm149_vm0, %v1231_v1, %v1225_v45 }
 0x8a5   :  { %v1268_v50 = vmul.f32 %v1267_v23, %v12663_v27 }
 0x8a7   :  { %v1211_v38 = vpop.permute.xlu1 %1210  ;;  %v1209_v33 = vpop.permute.xlu0 %1208 }
 0x8a8   :  { %v1218_v6 = vsel %vm110_vm2, %v1209_v33, %v1211_v38 }
 0x8a9   :  { %v1221_v26 = vmul.f32 %v1218_v6, %v12662_v40  ;;  %v12664_v6 = vld [vmem:[#allocation8_spill] sm:$0xff]  ;;  %v1352_v40 = vrot.slane %v1268_v50, 4 }
 0x8aa   :  { %v1236_v14 = vmul.f32 %v1235_v3, %v12664_v6 }
 0x8ab   :  { %v1243_v60 = vpop.permute.xlu1 %1242  ;;  %v1241_v55 = vpop.permute.xlu0 %1240  ;;  %v1385_v18 = vsel %vm45_vm4, %v1221_v26, %v1341_v30 }
 0x8ac   :  { %v1250_v21 = vsel %vm189_vm3, %v1241_v55, %v1243_v60  ;;  %v1340_v26 = vrot.slane %v1236_v14, 4 }
 0x8ad   :  { %v1253_v15 = vmul.f32 %v1250_v21, %v8578_v32 }
 0x8af   :  { %v1229_v36 = vpop.permute.xlu1 %1228  ;;  %v1215_v37 = vpop.permute.xlu0 %1214  ;;  %v1389_v29 = vsel %vm45_vm4, %v1253_v15, %v1353_v10 }
 0x8b0   :  { %v1219_v4 = vsel %vm110_vm2, %v1215_v37, %v1209_v33  ;;  %v7884_v20 = vpack.c.bf16 %v1389_v29, %v1385_v18  ;;  %v1233_v33 = vsel %vm149_vm0, %v1227_v0, %v1229_v36  ;;  %v1232_v18 = vsel %vm149_vm0, %v1229_v36, %v1231_v1 }
 0x8b1   :  { %v1220_v44 = vmul.f32 %v1219_v4, %v12665_v13  ;;  %v1239_v0 = vmul.f32 %v1232_v18, %v8625_v5 }
 0x8b2   :  { %7885 = vmatprep.subr.bf16.mxu0 %v7884_v20  ;;  %v1238_v20 = vmul.f32 %v1233_v33, %v8622_v63 }
 0x8b3   :  { %v1261_v21 = vpop.permute.xlu1 %1260  ;;  %v1247_v32 = vpop.permute.xlu0 %1246  ;;  %v1384_v23 = vsel %vm45_vm4, %v1220_v44, %v1340_v26  ;;  %v1343_v1 = vrot.slane %v1239_v0, 4 }
 0x8b4   :  { %v1251_v45 = vsel %vm189_vm3, %v1247_v32, %v1241_v55  ;;  %v1264_v29 = vsel %vm229_vm1, %v1261_v21, %v1263_v34  ;;  %v1265_v55 = vsel %vm229_vm1, %v1259_v51, %v1261_v21 }
 0x8b5   :  { %v1252_v30 = vmul.f32 %v1251_v45, %v8609_v53  ;;  %v1270_v50 = vmul.f32 %v1265_v55, %v8628_v7  ;;  %v1271_v14 = vmul.f32 %v1264_v29, %v8633_v9  ;;  %v1342_v45 = vrot.slane %v1238_v20, 4 }
 0x8b7   :  { %v1277_v10 = vpop.permute.xlu1 %1276  ;;  %v1275_v15 = vpop.permute.xlu0 %1274  ;;  %v1388_v3 = vsel %vm45_vm4, %v1252_v30, %v1352_v40  ;;  %v1354_v36 = vrot.slane %v1270_v50, 4  ;;  %v1355_v26 = vrot.slane %v1271_v14, 4 }
 0x8b8   :  { %v7886_v4 = vpack.c.bf16 %v1388_v3, %v1384_v23  ;;  %v1281_v34 = vsel %vm269_vm5, %v1275_v15, %v1277_v10 }
 0x8b9   :  { %v1285_v20 = vmul.f32 %v1281_v34, %v8679_v47 }
 0x8ba   :  { %7887 = vmatpush1.bf16.msra.mxu0 %v7886_v4 }
 0x8bb   :  { %v1309_v40 = vpop.permute.xlu1 %1308  ;;  %v1307_v44 = vpop.permute.xlu0 %1306 }
 0x8bf   :  { %v1245_v51 = vpop.permute.xlu1 %1244  ;;  %v1213_v21 = vpop.permute.xlu0 %1212 }
 0x8c0   :  { %v1248_v30 = vsel %vm189_vm3, %v1245_v51, %v1247_v32  ;;  %v1249_v33 = vsel %vm189_vm3, %v1243_v60, %v1245_v51  ;;  %v1216_v23 = vsel %vm110_vm2, %v1213_v21, %v1215_v37  ;;  %v1217_v3 = vsel %vm110_vm2, %v1211_v38, %v1213_v21 }
 0x8c1   :  { %v1254_v18 = vmul.f32 %v1249_v33, %v8663_v39  ;;  %v1255_v29 = vmul.f32 %v1248_v30, %v8667_v41  ;;  %v1222_v55 = vmul.f32 %v1217_v3, %v8671_v42  ;;  %v1223_v4 = vmul.f32 %v1216_v23, %v8675_v43 }
 0x8c2   :  { %v1313_v32 = vsel %vm349_vm6, %v1307_v44, %v1309_v40  ;;  %v1365_v23 = vrot.slane %v1285_v20, 4 }
 0x8c3   :  { %v1305_v60 = vpop.permute.xlu1 %1304  ;;  %v1273_v0 = vpop.permute.xlu0 %1272  ;;  %v1387_v37 = vsel %vm45_vm4, %v1223_v4, %v1343_v1  ;;  %v1391_v50 = vsel %vm45_vm4, %v1255_v29, %v1355_v26  ;;  %v1386_v38 = vsel %vm45_vm4, %v1222_v55, %v1342_v45  ;;  %v1390_v14 = vsel %vm45_vm4, %v1254_v18, %v1354_v36 }
 0x8c4   :  { %v1314_v51 = vsel %vm349_vm6, %v1305_v60, %v1307_v44  ;;  %v7892_v21 = vpack.c.bf16 %v1391_v50, %v1387_v37  ;;  %v7894_v30 = vpack.c.bf16 %v1390_v14, %v1386_v38  ;;  %v1317_v34 = vmul.f32 %v1313_v32, %v8683_v48 }
 0x8c5   :  { %v1282_v33 = vsel %vm269_vm5, %v1273_v0, %v1275_v15  ;;  %v1316_v1 = vmul.f32 %v1314_v51, %v8708_v46  ;;  %v1393_v15 = vsel %vm45_vm4, %v9137_v35, %v1365_v23 }
 0x8c6   :  { %7893 = vmatprep.subr.bf16.mxu1 %v7892_v21  ;;  %v1377_v36 = vrot.slane %v1317_v34, 4  ;;  %v1284_v44 = vmul.f32 %v1282_v33, %v8722_v52 }
 0x8c7   :  { %v1293_v3 = vpop.permute.xlu1 %1292  ;;  %7895 = vmatpush1.bf16.msra.mxu1 %v7894_v30  ;;  %v1291_v26 = vpop.permute.xlu0 %1290  ;;  %v1376_v29 = vrot.slane %v1316_v1, 4 }
 0x8c8   :  { %v1297_v45 = vsel %vm309_vm7, %v1291_v26, %v1293_v3  ;;  %v1364_v14 = vrot.slane %v1284_v44, 4 }
 0x8c9   :  { %v1301_v18 = vmul.f32 %v1297_v45, %v8725_v24 }
 0x8cb   :  { %v1289_v55 = vpop.permute.xlu1 %1288  ;;  %v1279_v4 = vpop.permute.xlu0 %1278  ;;  %v1397_v20 = vsel %vm45_vm4, %v1301_v18, %v1377_v36  ;;  %v1392_v18 = vsel %vm45_vm4, %v9135_v56, %v1364_v14 }
 0x8cc   :  { %v1298_v32 = vsel %vm309_vm7, %v1289_v55, %v1291_v26  ;;  %v1280_v37 = vsel %vm269_vm5, %v1277_v10, %v1279_v4  ;;  %v1283_v50 = vsel %vm269_vm5, %v1279_v4, %v1273_v0  ;;  %v7888_v38 = vpack.c.bf16 %v1397_v20, %v1393_v15 }
 0x8cd   :  { %v1300_v51 = vmul.f32 %v1298_v32, %v8733_v57  ;;  %v1286_v21 = vmul.f32 %v1280_v37, %v8736_v59  ;;  %v1287_v30 = vmul.f32 %v1283_v50, %v8741_v62 }
 0x8ce   :  { %7889 = vmatprep.subr.bf16.mxu0 %v7888_v38 }
 0x8cf   :  { %v1367_v35 = vrot.slane %v1287_v30, 4  ;;  %v1295_v34 = vpop.permute.xlu1 %1294  ;;  %v1311_v33 = vpop.permute.xlu0 %1310  ;;  %v1396_v23 = vsel %vm45_vm4, %v1300_v51, %v1376_v29  ;;  %v1366_v45 = vrot.slane %v1286_v21, 4 }
 0x8d0   :  { %v1296_v10 = vsel %vm309_vm7, %v1293_v3, %v1295_v34  ;;  %v1299_v0 = vsel %vm309_vm7, %v1295_v34, %v1289_v55  ;;  %v1312_v1 = vsel %vm349_vm6, %v1309_v40, %v1311_v33  ;;  %v1315_v26 = vsel %vm349_vm6, %v1311_v33, %v1305_v60 }
 0x8d1   :  { %v1318_v36 = vmul.f32 %v1312_v1, %v8745_v8  ;;  %v1319_v44 = vmul.f32 %v1315_v26, %v8752_v31  ;;  %v7890_v29 = vpack.c.bf16 %v1396_v23, %v1392_v18  ;;  %v1302_v3 = vmul.f32 %v1296_v10, %v8769_v22  ;;  %v7754_v23 = vld [vmem:[%s12585_s1 + $0x8] sm:$0xf] }
 0x8d2   :  { %v1303_v4 = vmul.f32 %v1299_v0, %v8772_v16  ;;  %v1395_v32 = vsel %vm45_vm4, %v9148_v2, %v1367_v35  ;;  %v1394_v50 = vsel %vm45_vm4, %v9163_v19, %v1366_v45 }
 0x8d3   :  { %v1378_v55 = vrot.slane %v1318_v36, 4  ;;  %v1379_v15 = vrot.slane %v1319_v44, 4  ;;  %v1325_v20 = vpop.permute.xlu1 %1324  ;;  %v1323_v40 = vpop.permute.xlu0 %1322  ;;  %7891 = vmatpush1.bf16.msra.mxu0 %v7890_v29 }
 0x8d4   :  { %v1329_v60 = vsel %vm389_vm8, %v1323_v40, %v1325_v20 }
 0x8d5   :  { %v1333_v37 = vmul.f32 %v1329_v60, %v8776_v61  ;;  %v1399_v56 = vsel %vm45_vm4, %v1303_v4, %v1379_v15  ;;  %v1398_v38 = vsel %vm45_vm4, %v1302_v3, %v1378_v55 }
 0x8d6   :  { %v7896_v14 = vpack.c.bf16 %v1399_v56, %v1395_v32  ;;  %v7898_v51 = vpack.c.bf16 %v1398_v38, %v1394_v50 }
 0x8d7   :  { %v1327_v21 = vpop.permute.xlu1 %1326  ;;  %7755 = vmatprep.subr.msk.mxu0 %vm45_vm4, %v1333_v37  ;;  %v1321_v30 = vpop.permute.xlu0 %1320 }
 0x8d8   :  { %v1328_v34 = vsel %vm389_vm8, %v1325_v20, %v1327_v21  ;;  %v1330_v2 = vsel %vm389_vm8, %v1321_v30, %v1323_v40  ;;  %v1331_v35 = vsel %vm389_vm8, %v1327_v21, %v1321_v30  ;;  %7897 = vmatprep.subr.bf16.mxu1 %v7896_v14 }
 0x8d9   :  { %v1332_v19 = vmul.f32 %v1330_v2, %v8796_v12  ;;  %v1335_v33 = vmul.f32 %v1331_v35, %v8799_v49  ;;  %7899 = vmatpush1.bf16.msra.mxu1 %v7898_v51  ;;  %v1334_v10 = vmul.f32 %v1328_v34, %v8809_v28 }
 0x8db   :  { %7756 = vmatpush1.msk.msra.mxu0 %vm45_vm4, %v1332_v19  ;;  %7758 = vmatprep.subr.msk.mxu1 %vm45_vm4, %v1335_v33 }
 0x8dc   :  { %7757 = vmatmul.mubr.msk.f32.vlgmr.msra.gmra.mrb[4].mxu0 %vm492_vm9, %v7754_v23 }
 0x8dd   :  { %7759 = vmatpush1.msk.msra.mxu1 %vm45_vm4, %v1334_v10  ;;  %1940 = vmatprep.mubr.f32.mxu0 %v12657_v17 }
 0x8de   :  { %7760 = vmatmul.mubr.msk.f32.vlgmr.msra.gmra.mrb[4].mxu1 %vm492_vm9, %v7754_v23 }
 0x8df   :  { %2011 = vmatprep.mubr.f32.mxu1 %v12657_v17 }
 0x8e8   :  { %v1406_v0 = vpop.permute.xlu0 %1405 }
 0x9af   :  { %v1489_v1 = vpop.f32.mrb[4].mxu0 }
 0x9b0   :  { %v1490_v26 = vadd.f32 %v1489_v1, %v1406_v0  ;;  %v1491_v45 = vpop.f32.mrb[5].mxu0 }
 0x9b1   :  { %v1492_v36 = vadd.f32 %v1491_v45, %v1406_v0  ;;  %v1560_v44 = vpop.f32.mrb[4].mxu1 }
 0x9b2   :  { %v1565_v18 = vmul.f32 0.01, %v1490_v26  ;;  %v1561_v29 = vadd.f32 %v1560_v44, %v1406_v0  ;;  %v1562_v3 = vpop.f32.mrb[5].mxu1 }
 0x9b3   :  { %v1566_v4 = vmul.f32 0.01, %v1492_v36  ;;  %v1563_v55 = vadd.f32 %v1562_v3, %v1406_v0 }
 0x9b4   :  { %v9342_v15 = vmax.f32 %v1490_v26, %v1565_v18  ;;  %v1567_v20 = vmul.f32 0.01, %v1561_v29 }
 0x9b5   :  { %v9344_v40 = vmax.f32 %v1492_v36, %v1566_v4  ;;  %v1568_v60 = vmul.f32 0.01, %v1563_v55 }
 0x9b6   :  { %v9346_v32 = vmax.f32 %v1561_v29, %v1567_v20  ;;  %v1573_v37 = vmul.f32 %v9342_v15, %v9342_v15 }
 0x9b7   :  { %v1574_v56 = vmul.f32 %v9344_v40, %v9344_v40  ;;  %v9352_v50 = vmax.f32 %v1563_v55, %v1568_v60 }
 0x9b8   :  { %v1575_v38 = vmul.f32 %v9346_v32, %v9346_v32  ;;  %v1581_v14 = vrot.slane %v1573_v37, 4 }
 0x9b9   :  { %v1582_v51 = vrot.slane %v1574_v56, 4  ;;  %v1576_v21 = vmul.f32 %v9352_v50, %v9352_v50 }
 0x9ba   :  { %v1583_v30 = vrot.slane %v1575_v38, 4  ;;  %v1589_v34 = vsel %vm45_vm4, %v9342_v15, %v1581_v14 }
 0x9bb   :  { %v1590_v2 = vsel %vm45_vm4, %v9344_v40, %v1582_v51  ;;  %v1584_v35 = vrot.slane %v1576_v21, 4 }
 0x9bc   :  { %v1591_v19 = vsel %vm45_vm4, %v9346_v32, %v1583_v30  ;;  %v1593_v33 = vadd.f32 %v1590_v2, %v1589_v34 }
 0x9bd   :  { %v1592_v10 = vsel %vm45_vm4, %v9352_v50, %v1584_v35 }
 0x9be   :  { %v1594_v23 = vadd.f32 %v1593_v33, %v1591_v19 }
 0x9c0   :  { %v1595_v0 = vadd.f32 %v1594_v23, %v1592_v10 }
 0x9c2   :  { %1596 = vadd.xlane.f32.xlu1 %v1595_v0 }
 0xa4f   :  { %v1597_v1 = vpop.xlane.xlu1 %1596 }
 0xa50   :  { %v1606_v26 = vrot.slane %v1597_v1, 4  ;;  %v1598_v51 = vmul.f32 0.001953125, %v1597_v1  ;;  %v9370_v1 = vld [vmem:[%s12586_s3] sm:$0xf] }
 0xa52   :  { %v1608_v45 = vsel %vm693_vm10, %v1606_v26, 0.0  ;;  %v1599_v21 = vmul.f32 %v1598_v51, %v1598_v51 }
 0xa53   :  { %1609 = vadd.xlane.f32.xlu0 %v1608_v45 }
 0xa54   :  { %v1601_v30 = vrot.slane %v1599_v21, 4 }
 0xa56   :  { %v1603_v34 = vsub.f32 %v1598_v51, %v1601_v30 }
 0xa58   :  { %v1604_v2 = vmax.f32 %v1603_v34, 0.0 }
 0xae0   :  { %v1610_v36 = vpop.xlane.xlu0 %1609 }
 0xae1   :  { %v1611_v44 = vrot.slane %v1610_v36, 4 }
 0xae3   :  { %v1612_v18 = vadd.f32 %v1611_v44, %v1610_v36  ;;  %v9376_v44 = vld [vmem:[%s12587_s4] sm:$0xf] }
 0xae5   :  { %v1613_v29 = vrot.slane %v1612_v18, 2 }
 0xae7   :  { %v1614_v3 = vadd.f32 %v1613_v29, %v1612_v18 }
 0xae9   :  { %v1615_v4 = vrot.slane %v1614_v3, 1 }
 0xaeb   :  { %v1616_v55 = vadd.f32 %v1615_v4, %v1614_v3 }
 0xaed   :  { %8116 = vpush %v1616_v55 }
 0xb1e   :  { %s8117_s18 = spop %8116 }
 0xb1f   :  { %v1618_v20 = vstv %s8117_s18 }
 0xb20   :  { %8262 = vrsqrt.f32 %v1618_v20  ;;  %vm1621_vm15 = vcmp.eq.f32.partialorder %v1618_v20, inf  ;;  %v1624_v56 = vand.u32 2147483648, %v1618_v20  ;;  %vm1623_vm11 = vcmp.eq.f32.partialorder %v1618_v20, 0.0 }
 0xb2a   :  { %v8263_v60 = vpop.eup %8262 }
 0xb2b   :  { %v1620_v37 = vmul.f32 %v8263_v60, %v1618_v20 }
 0xb2d   :  { %v1622_v38 = vsel %vm1621_vm15, %v1618_v20, %v1620_v37 }
 0xb2e   :  { %v1625_v14 = vsel %vm1623_vm11, %v1624_v56, %v1622_v38 }
 0xb2f   :  { %8118 = vpush %v1625_v14 }
 0xb60   :  { %s8119_s19 = spop %8118 }
 0xb61   :  { %s1627_s20 = sadd.f32 1e-06, %s8119_s19 }
 0xb63   :  { %s1630_s7 = smul.f32 %s1627_s20, %s1627_s20  ;;  %v1635_v10 = vstv %s1627_s20 }
 0xb65   :  { %v1631_v35 = vstv %s1630_s7 }
 0xb66   :  { %v1632_v19 = vmul.f32 %v1631_v35, %v1604_v2 }
 0xb68   :  { %v1633_v33 = vadd.f32 1e-05, %v1632_v19 }
 0xb6a   :  { %8264 = vrsqrt.f32 %v1633_v33 }
 0xb74   :  { %v8265_v23 = vpop.eup %8264 }
 0xb75   :  { %v1636_v0 = vmul.f32 %v8265_v23, %v1635_v10 }
 0xb77   :  { %v1638_v26 = vrot.slane %v1636_v0, 4  ;;  %v12666_v0 = vld [vmem:[#allocation5_spill] sm:$0xff] }
 0xb79   :  { %1639 = vrot.lane.b32.xlu1 %v1638_v26, %s8361_s0 }
 0xbeb   :  { %v1640_v45 = vpop.permute.xlu1 %1639 }
 0xbec   :  { %v1642_v36 = vmul.f32 %v1640_v45, %v9370_v1 }
 0xbee   :  { %v1652_v18 = vmul.f32 %v1642_v36, %v1598_v51  ;;  %1645 = vperm.xlu0 %8215, %v1642_v36  }
 0xbf0   :  { %v1653_v29 = vsub.f32 %v9376_v44, %v1652_v18 }
 0xbf2   :  { %1656 = vperm.xlu1 %8216, %v1653_v29  }
 0xc6d   :  { %v1646_v3 = vpop.permute.xlu0 %1645 }
 0xc6e   :  { %v1648_v4 = vmul.f32 %v1646_v3, %v9342_v15  ;;  %v1649_v55 = vmul.f32 %v1646_v3, %v9344_v40  ;;  %v1651_v56 = vmul.f32 %v1646_v3, %v9352_v50  ;;  %v1650_v40 = vmul.f32 %v1646_v3, %v9346_v32 }
 0xc6f   :  { %v12609_v32 = vmov 3  }
 0xc70   :  { %8217 = vset.pattern.permute.xlu1 %v12609_v32  ;;  %8218 = vset.pattern.permute.xlu0 %v12609_v32 }
 0xc71   :  { %v1657_v20 = vpop.permute.xlu1 %1656 }
 0xc72   :  { %v9381_v60 = vadd.f32 %v1657_v20, %v1648_v4  ;;  %v9383_v37 = vadd.f32 %v1657_v20, %v1649_v55  ;;  %v9394_v15 = vadd.f32 %v1657_v20, %v1651_v56  ;;  %v9409_v50 = vadd.f32 %v1657_v20, %v1650_v40  ;;  %v12667_v4 = vld [vmem:[#allocation6_spill] sm:$0xff] }
 0xc74   :  { %1681 = vrot.lane.b32.xlu0 %v9383_v37, %s8349_s30  ;;  %1679 = vrot.lane.b32.xlu1 %v9381_v60, %s8349_s30 }
 0xc78   :  { %1713 = vrot.lane.b32.xlu0 %v9383_v37, %s8348_s29  ;;  %1711 = vrot.lane.b32.xlu1 %v9381_v60, %s8348_s29 }
 0xc7c   :  { %1717 = vrot.lane.b32.xlu0 %v9394_v15, %s8348_s29  ;;  %1685 = vrot.lane.b32.xlu1 %v9394_v15, %s8349_s30 }
 0xc80   :  { %1665 = vrot.lane.b32.xlu0 %v9383_v37, %s8350_s11  ;;  %1663 = vrot.lane.b32.xlu1 %v9381_v60, %s8350_s11 }
 0xc84   :  { %1697 = vrot.lane.b32.xlu0 %v9383_v37, %s8351_s12  ;;  %1695 = vrot.lane.b32.xlu1 %v9381_v60, %s8351_s12 }
 0xc88   :  { %1683 = vrot.lane.b32.xlu0 %v9409_v50, %s8349_s30  ;;  %1669 = vrot.lane.b32.xlu1 %v9394_v15, %s8350_s11 }
 0xc8c   :  { %1715 = vrot.lane.b32.xlu0 %v9409_v50, %s8348_s29  ;;  %1701 = vrot.lane.b32.xlu1 %v9394_v15, %s8351_s12 }
 0xc90   :  { %1731 = vrot.lane.b32.xlu0 %v9409_v50, %s8352_s13  ;;  %1729 = vrot.lane.b32.xlu1 %v9383_v37, %s8352_s13 }
 0xc94   :  { %1763 = vrot.lane.b32.xlu0 %v9409_v50, %s8353_s14  ;;  %1761 = vrot.lane.b32.xlu1 %v9383_v37, %s8353_s14 }
 0xc98   :  { %1699 = vrot.lane.b32.xlu0 %v9409_v50, %s8351_s12  ;;  %1667 = vrot.lane.b32.xlu1 %v9409_v50, %s8350_s11 }
 0xc9c   :  { %1759 = vrot.lane.b32.xlu0 %v9381_v60, %s8353_s14  ;;  %1727 = vrot.lane.b32.xlu1 %v9381_v60, %s8352_s13 }
 0xca0   :  { %1747 = vrot.lane.b32.xlu0 %v9409_v50, %s8354_s15  ;;  %1745 = vrot.lane.b32.xlu1 %v9383_v37, %s8354_s15 }
 0xca4   :  { %1743 = vrot.lane.b32.xlu0 %v9381_v60, %s8354_s15  ;;  %1733 = vrot.lane.b32.xlu1 %v9394_v15, %s8352_s13 }
 0xca8   :  { %1749 = vrot.lane.b32.xlu0 %v9394_v15, %s8354_s15  ;;  %1765 = vrot.lane.b32.xlu1 %v9394_v15, %s8353_s14 }
 0xcac   :  { %1779 = vrot.lane.b32.xlu0 %v9409_v50, %s8357_s16  ;;  %1777 = vrot.lane.b32.xlu1 %v9383_v37, %s8357_s16 }
 0xcb0   :  { %1781 = vrot.lane.b32.xlu0 %v9394_v15, %s8357_s16  ;;  %1775 = vrot.lane.b32.xlu1 %v9381_v60, %s8357_s16 }
 0xcb4   :  { %1858 = vperm.xlu1 %8217, %v9212_v58  }
 0xce6   :  { %v1682_v38 = vpop.permute.xlu0 %1681  ;;  %v1680_v14 = vpop.permute.xlu1 %1679 }
 0xce7   :  { %v1689_v2 = vsel %vm149_vm0, %v1680_v14, %v1682_v38 }
 0xce8   :  { %v1692_v10 = vmul.f32 %v1689_v2, %v12660_v25 }
 0xcea   :  { %v1714_v51 = vpop.permute.xlu0 %1713  ;;  %v1712_v21 = vpop.permute.xlu1 %1711  ;;  %v1796_v29 = vrot.slane %v1692_v10, 4 }
 0xceb   :  { %v1721_v35 = vsel %vm229_vm1, %v1712_v21, %v1714_v51 }
 0xcec   :  { %v1724_v58 = vmul.f32 %v1721_v35, %v12661_v54 }
 0xcee   :  { %v1718_v30 = vpop.permute.xlu0 %1717  ;;  %v1686_v34 = vpop.permute.xlu1 %1685  ;;  %v1808_v3 = vrot.slane %v1724_v58, 4 }
 0xcef   :  { %v1722_v20 = vsel %vm229_vm1, %v1718_v30, %v1712_v21  ;;  %v1690_v56 = vsel %vm149_vm0, %v1686_v34, %v1680_v14 }
 0xcf0   :  { %v1723_v10 = vmul.f32 %v1722_v20, %v12663_v27  ;;  %v1691_v58 = vmul.f32 %v1690_v56, %v12664_v6 }
 0xcf2   :  { %v1666_v19 = vpop.permute.xlu0 %1665  ;;  %v1664_v33 = vpop.permute.xlu1 %1663  ;;  %v1807_v54 = vrot.slane %v1723_v10, 4 }
 0xcf3   :  { %v1673_v23 = vsel %vm110_vm2, %v1664_v33, %v1666_v19 }
 0xcf4   :  { %v1676_v26 = vmul.f32 %v1673_v23, %v12666_v0 }
 0xcf6   :  { %v1698_v45 = vpop.permute.xlu0 %1697  ;;  %v1696_v36 = vpop.permute.xlu1 %1695  ;;  %v1840_v35 = vsel %vm45_vm4, %v1676_v26, %v1796_v29  ;;  %v1795_v26 = vrot.slane %v1691_v58, 4 }
 0xcf7   :  { %v1705_v18 = vsel %vm189_vm3, %v1696_v36, %v1698_v45 }
 0xcf8   :  { %v1708_v55 = vmul.f32 %v1705_v18, %v12667_v4 }
 0xcfa   :  { %v1684_v40 = vpop.permute.xlu0 %1683  ;;  %v1670_v2 = vpop.permute.xlu1 %1669  ;;  %v1844_v23 = vsel %vm45_vm4, %v1708_v55, %v1808_v3 }
 0xcfb   :  { %v1674_v32 = vsel %vm110_vm2, %v1670_v2, %v1664_v33  ;;  %v7900_v0 = vpack.c.bf16 %v1844_v23, %v1840_v35  ;;  %v1688_v33 = vsel %vm149_vm0, %v1682_v38, %v1684_v40 }
 0xcfc   :  { %v1675_v21 = vmul.f32 %v1674_v32, %v12665_v13  ;;  %v1687_v32 = vsel %vm149_vm0, %v1684_v40, %v1686_v34  ;;  %v1693_v23 = vmul.f32 %v1688_v33, %v8622_v63 }
 0xcfd   :  { %7901 = vmatprep.subr.bf16.mxu0 %v7900_v0  ;;  %v1694_v38 = vmul.f32 %v1687_v32, %v8625_v5 }
 0xcfe   :  { %v1716_v18 = vpop.permute.xlu0 %1715  ;;  %v1702_v4 = vpop.permute.xlu1 %1701  ;;  %v1839_v20 = vsel %vm45_vm4, %v1675_v21, %v1795_v26 }
 0xcff   :  { %v1706_v14 = vsel %vm189_vm3, %v1702_v4, %v1696_v36  ;;  %v1719_v56 = vsel %vm229_vm1, %v1716_v18, %v1718_v30  ;;  %v1720_v36 = vsel %vm229_vm1, %v1714_v51, %v1716_v18  ;;  %v1798_v34 = vrot.slane %v1694_v38, 4 }
 0xd00   :  { %v1707_v29 = vmul.f32 %v1706_v14, %v8609_v53  ;;  %v1725_v10 = vmul.f32 %v1720_v36, %v8628_v7  ;;  %v1726_v58 = vmul.f32 %v1719_v56, %v8633_v9  ;;  %v1797_v14 = vrot.slane %v1693_v23, 4 }
 0xd02   :  { %v1732_v3 = vpop.permute.xlu0 %1731  ;;  %v1730_v55 = vpop.permute.xlu1 %1729  ;;  %v1843_v0 = vsel %vm45_vm4, %v1707_v29, %v1807_v54  ;;  %v1809_v40 = vrot.slane %v1725_v10, 4  ;;  %v1810_v26 = vrot.slane %v1726_v58, 4 }
 0xd03   :  { %v7902_v35 = vpack.c.bf16 %v1843_v0, %v1839_v20  ;;  %v1736_v30 = vsel %vm269_vm5, %v1730_v55, %v1732_v3 }
 0xd04   :  { %v1740_v23 = vmul.f32 %v1736_v30, %v8679_v47 }
 0xd05   :  { %7903 = vmatpush1.bf16.msra.mxu0 %v7902_v35 }
 0xd06   :  { %v1764_v54 = vpop.permute.xlu0 %1763  ;;  %v1762_v21 = vpop.permute.xlu1 %1761 }
 0xd0a   :  { %v1700_v51 = vpop.permute.xlu0 %1699  ;;  %v1668_v18 = vpop.permute.xlu1 %1667 }
 0xd0b   :  { %v1703_v29 = vsel %vm189_vm3, %v1700_v51, %v1702_v4  ;;  %v1704_v33 = vsel %vm189_vm3, %v1698_v45, %v1700_v51  ;;  %v1671_v20 = vsel %vm110_vm2, %v1668_v18, %v1670_v2  ;;  %v1672_v0 = vsel %vm110_vm2, %v1666_v19, %v1668_v18 }
 0xd0c   :  { %v1709_v32 = vmul.f32 %v1704_v33, %v8663_v39  ;;  %v1710_v56 = vmul.f32 %v1703_v29, %v8667_v41  ;;  %v1677_v36 = vmul.f32 %v1672_v0, %v8671_v42  ;;  %v1678_v35 = vmul.f32 %v1671_v20, %v8675_v43 }
 0xd0d   :  { %v1768_v4 = vsel %vm349_vm6, %v1762_v21, %v1764_v54  ;;  %v1820_v20 = vrot.slane %v1740_v23, 4 }
 0xd0e   :  { %v1760_v45 = vpop.permute.xlu0 %1759  ;;  %v1728_v38 = vpop.permute.xlu1 %1727  ;;  %v1842_v2 = vsel %vm45_vm4, %v1678_v35, %v1798_v34  ;;  %v1846_v10 = vsel %vm45_vm4, %v1710_v56, %v1810_v26  ;;  %v1841_v19 = vsel %vm45_vm4, %v1677_v36, %v1797_v14  ;;  %v1845_v58 = vsel %vm45_vm4, %v1709_v32, %v1809_v40 }
 0xd0f   :  { %v1769_v51 = vsel %vm349_vm6, %v1760_v45, %v1762_v21  ;;  %v7908_v18 = vpack.c.bf16 %v1846_v10, %v1842_v2  ;;  %v7910_v29 = vpack.c.bf16 %v1845_v58, %v1841_v19  ;;  %v1772_v30 = vmul.f32 %v1768_v4, %v8683_v48 }
 0xd10   :  { %v1737_v33 = vsel %vm269_vm5, %v1728_v38, %v1730_v55  ;;  %v1771_v34 = vmul.f32 %v1769_v51, %v8708_v46  ;;  %v1848_v55 = vsel %vm45_vm4, %v9383_v37, %v1820_v20 }
 0xd11   :  { %7909 = vmatprep.subr.bf16.mxu1 %v7908_v18  ;;  %v1832_v40 = vrot.slane %v1772_v30, 4  ;;  %v1739_v21 = vmul.f32 %v1737_v33, %v8722_v52 }
 0xd12   :  { %v1748_v0 = vpop.permute.xlu0 %1747  ;;  %7911 = vmatpush1.bf16.msra.mxu1 %v7910_v29  ;;  %v1746_v26 = vpop.permute.xlu1 %1745  ;;  %v1831_v56 = vrot.slane %v1771_v34, 4 }
 0xd13   :  { %v1752_v14 = vsel %vm309_vm7, %v1746_v26, %v1748_v0  ;;  %v1819_v58 = vrot.slane %v1739_v21, 4 }
 0xd14   :  { %v1756_v32 = vmul.f32 %v1752_v14, %v8725_v24 }
 0xd16   :  { %v1744_v36 = vpop.permute.xlu0 %1743  ;;  %v1734_v35 = vpop.permute.xlu1 %1733  ;;  %v1852_v23 = vsel %vm45_vm4, %v1756_v32, %v1832_v40  ;;  %v1847_v32 = vsel %vm45_vm4, %v9381_v60, %v1819_v58 }
 0xd17   :  { %v1753_v4 = vsel %vm309_vm7, %v1744_v36, %v1746_v26  ;;  %v1735_v2 = vsel %vm269_vm5, %v1732_v3, %v1734_v35  ;;  %v1738_v10 = vsel %vm269_vm5, %v1734_v35, %v1728_v38  ;;  %v7904_v19 = vpack.c.bf16 %v1852_v23, %v1848_v55 }
 0xd18   :  { %v1755_v51 = vmul.f32 %v1753_v4, %v8733_v57  ;;  %v1741_v18 = vmul.f32 %v1735_v2, %v8736_v59  ;;  %v1742_v29 = vmul.f32 %v1738_v10, %v8741_v62 }
 0xd19   :  { %7905 = vmatprep.subr.bf16.mxu0 %v7904_v19 }
 0xd1a   :  { %v1822_v37 = vrot.slane %v1742_v29, 4  ;;  %v1750_v30 = vpop.permute.xlu0 %1749  ;;  %v1766_v33 = vpop.permute.xlu1 %1765  ;;  %v1851_v20 = vsel %vm45_vm4, %v1755_v51, %v1831_v56  ;;  %v1821_v14 = vrot.slane %v1741_v18, 4 }
 0xd1b   :  { %v1751_v3 = vsel %vm309_vm7, %v1748_v0, %v1750_v30  ;;  %v1754_v38 = vsel %vm309_vm7, %v1750_v30, %v1744_v36  ;;  %v1767_v34 = vsel %vm349_vm6, %v1764_v54, %v1766_v33  ;;  %v1770_v26 = vsel %vm349_vm6, %v1766_v33, %v1760_v45 }
 0xd1c   :  { %v1773_v40 = vmul.f32 %v1767_v34, %v8745_v8  ;;  %v1774_v21 = vmul.f32 %v1770_v26, %v8752_v31  ;;  %v7906_v56 = vpack.c.bf16 %v1851_v20, %v1847_v32  ;;  %v1757_v0 = vmul.f32 %v1751_v3, %v8769_v22  ;;  %v7761_v20 = vld [vmem:[%s12585_s1 + $0xc] sm:$0xf] }
 0xd1d   :  { %v1758_v35 = vmul.f32 %v1754_v38, %v8772_v16  ;;  %v1850_v4 = vsel %vm45_vm4, %v9394_v15, %v1822_v37  ;;  %v1849_v10 = vsel %vm45_vm4, %v9409_v50, %v1821_v14 }
 0xd1e   :  { %v1833_v36 = vrot.slane %v1773_v40, 4  ;;  %v1834_v55 = vrot.slane %v1774_v21, 4  ;;  %v1780_v23 = vpop.permute.xlu0 %1779  ;;  %v1778_v54 = vpop.permute.xlu1 %1777  ;;  %7907 = vmatpush1.bf16.msra.mxu0 %v7906_v56 }
 0xd1f   :  { %v1784_v45 = vsel %vm389_vm8, %v1778_v54, %v1780_v23 }
 0xd20   :  { %v1788_v2 = vmul.f32 %v1784_v45, %v8776_v61  ;;  %v1854_v60 = vsel %vm45_vm4, %v1758_v35, %v1834_v55  ;;  %v1853_v19 = vsel %vm45_vm4, %v1757_v0, %v1833_v36 }
 0xd21   :  { %v7912_v58 = vpack.c.bf16 %v1854_v60, %v1850_v4  ;;  %v7914_v51 = vpack.c.bf16 %v1853_v19, %v1849_v10 }
 0xd22   :  { %v1782_v18 = vpop.permute.xlu0 %1781  ;;  %7762 = vmatprep.subr.msk.mxu0 %vm45_vm4, %v1788_v2  ;;  %v1776_v29 = vpop.permute.xlu1 %1775 }
 0xd23   :  { %v1783_v30 = vsel %vm389_vm8, %v1780_v23, %v1782_v18  ;;  %v1785_v15 = vsel %vm389_vm8, %v1776_v29, %v1778_v54  ;;  %v1786_v37 = vsel %vm389_vm8, %v1782_v18, %v1776_v29  ;;  %7913 = vmatprep.subr.bf16.mxu1 %v7912_v58 }
 0xd24   :  { %v1787_v50 = vmul.f32 %v1785_v15, %v8796_v12  ;;  %v1790_v33 = vmul.f32 %v1786_v37, %v8799_v49  ;;  %7915 = vmatpush1.bf16.msra.mxu1 %v7914_v51  ;;  %v1789_v3 = vmul.f32 %v1783_v30, %v8809_v28 }
 0xd26   :  { %7763 = vmatpush1.msk.msra.mxu0 %vm45_vm4, %v1787_v50  ;;  %7765 = vmatprep.subr.msk.mxu1 %vm45_vm4, %v1790_v33 }
 0xd27   :  { %7764 = vmatmul.mubr.msk.f32.vlgmr.msra.gmra.mrb[6].mxu0 %vm492_vm9, %v7761_v20 }
 0xd28   :  { %7766 = vmatpush1.msk.msra.mxu1 %vm45_vm4, %v1789_v3  ;;  %2391 = vmatprep.mubr.f32.mxu0 %v12657_v17 }
 0xd29   :  { %7767 = vmatmul.mubr.msk.f32.vlgmr.msra.gmra.mrb[6].mxu1 %vm492_vm9, %v7761_v20 }
 0xd2a   :  { %2462 = vmatprep.mubr.f32.mxu1 %v12657_v17 }
 0xd33   :  { %v1859_v38 = vpop.permute.xlu1 %1858 }
 0xdfa   :  { %v1942_v34 = vpop.f32.mrb[6].mxu0 }
 0xdfb   :  { %v1943_v26 = vadd.f32 %v1942_v34, %v1859_v38  ;;  %v1944_v14 = vpop.f32.mrb[7].mxu0 }
 0xdfc   :  { %v1945_v40 = vadd.f32 %v1944_v14, %v1859_v38  ;;  %v2013_v21 = vpop.f32.mrb[6].mxu1 }
 0xdfd   :  { %v2018_v32 = vmul.f32 0.01, %v1943_v26  ;;  %v2014_v56 = vadd.f32 %v2013_v21, %v1859_v38  ;;  %v2015_v0 = vpop.f32.mrb[7].mxu1 }
 0xdfe   :  { %v2019_v35 = vmul.f32 0.01, %v1945_v40  ;;  %v2016_v36 = vadd.f32 %v2015_v0, %v1859_v38 }
 0xdff   :  { %v9585_v55 = vmax.f32 %v1943_v26, %v2018_v32  ;;  %v2020_v23 = vmul.f32 0.01, %v2014_v56 }
 0xe00   :  { %v9587_v54 = vmax.f32 %v1945_v40, %v2019_v35  ;;  %v2021_v45 = vmul.f32 0.01, %v2016_v36 }
 0xe01   :  { %v9589_v4 = vmax.f32 %v2014_v56, %v2020_v23  ;;  %v2026_v2 = vmul.f32 %v9585_v55, %v9585_v55 }
 0xe02   :  { %v2027_v60 = vmul.f32 %v9587_v54, %v9587_v54  ;;  %v9595_v10 = vmax.f32 %v2016_v36, %v2021_v45 }
 0xe03   :  { %v2028_v19 = vmul.f32 %v9589_v4, %v9589_v4  ;;  %v2034_v58 = vrot.slane %v2026_v2, 4 }
 0xe04   :  { %v2035_v51 = vrot.slane %v2027_v60, 4  ;;  %v2029_v18 = vmul.f32 %v9595_v10, %v9595_v10 }
 0xe05   :  { %v2036_v29 = vrot.slane %v2028_v19, 4  ;;  %v2042_v30 = vsel %vm45_vm4, %v9585_v55, %v2034_v58 }
 0xe06   :  { %v2043_v15 = vsel %vm45_vm4, %v9587_v54, %v2035_v51  ;;  %v2037_v37 = vrot.slane %v2029_v18, 4 }
 0xe07   :  { %v2044_v50 = vsel %vm45_vm4, %v9589_v4, %v2036_v29  ;;  %v2046_v33 = vadd.f32 %v2043_v15, %v2042_v30 }
 0xe08   :  { %v2045_v3 = vsel %vm45_vm4, %v9595_v10, %v2037_v37 }
 0xe09   :  { %v2047_v20 = vadd.f32 %v2046_v33, %v2044_v50 }
 0xe0b   :  { %v2048_v38 = vadd.f32 %v2047_v20, %v2045_v3 }
 0xe0d   :  { %2049 = vadd.xlane.f32.xlu0 %v2048_v38 }
 0xe9a   :  { %v2050_v34 = vpop.xlane.xlu0 %2049 }
 0xe9b   :  { %v2059_v26 = vrot.slane %v2050_v34, 4  ;;  %v2051_v51 = vmul.f32 0.001953125, %v2050_v34 }
 0xe9d   :  { %v2061_v14 = vsel %vm693_vm10, %v2059_v26, 0.0  ;;  %v2052_v18 = vmul.f32 %v2051_v51, %v2051_v51 }
 0xe9e   :  { %2062 = vadd.xlane.f32.xlu1 %v2061_v14 }
 0xe9f   :  { %v2054_v29 = vrot.slane %v2052_v18, 4 }
 0xea1   :  { %v2056_v30 = vsub.f32 %v2051_v51, %v2054_v29 }
 0xea3   :  { %v2057_v15 = vmax.f32 %v2056_v30, 0.0 }
 0xf2b   :  { %v2063_v40 = vpop.xlane.xlu1 %2062 }
 0xf2c   :  { %v2064_v21 = vrot.slane %v2063_v40, 4 }
 0xf2e   :  { %v2065_v32 = vadd.f32 %v2064_v21, %v2063_v40 }
 0xf30   :  { %v2066_v56 = vrot.slane %v2065_v32, 2 }
 0xf32   :  { %v2067_v0 = vadd.f32 %v2066_v56, %v2065_v32 }
 0xf34   :  { %v2068_v35 = vrot.slane %v2067_v0, 1 }
 0xf36   :  { %v2069_v36 = vadd.f32 %v2068_v35, %v2067_v0 }
 0xf38   :  { %8120 = vpush %v2069_v36 }
 0xf69   :  { %s8121_s27 = spop %8120 }
 0xf6a   :  { %v2071_v23 = vstv %s8121_s27 }
 0xf6b   :  { %8266 = vrsqrt.f32 %v2071_v23  ;;  %vm2074_vm12 = vcmp.eq.f32.partialorder %v2071_v23, inf  ;;  %v2077_v60 = vand.u32 2147483648, %v2071_v23  ;;  %vm2076_vm13 = vcmp.eq.f32.partialorder %v2071_v23, 0.0 }
 0xf75   :  { %v8267_v45 = vpop.eup %8266 }
 0xf76   :  { %v2073_v2 = vmul.f32 %v8267_v45, %v2071_v23 }
 0xf78   :  { %v2075_v19 = vsel %vm2074_vm12, %v2071_v23, %v2073_v2 }
 0xf79   :  { %v2078_v58 = vsel %vm2076_vm13, %v2077_v60, %v2075_v19 }
 0xf7a   :  { %8122 = vpush %v2078_v58 }
 0xfab   :  { %s8123_s28 = spop %8122 }
 0xfac   :  { %s2080_s9 = sadd.f32 1e-06, %s8123_s28 }
 0xfae   :  { %s2081_s10 = smul.f32 %s2080_s9, %s2080_s9  ;;  %v2086_v3 = vstv %s2080_s9 }
 0xfb0   :  { %v2082_v37 = vstv %s2081_s10  ;;  %s8369_s10 = smov 6  }
 0xfb1   :  { %v2083_v50 = vmul.f32 %v2082_v37, %v2057_v15 }
 0xfb3   :  { %v2084_v33 = vadd.f32 1e-05, %v2083_v50 }
 0xfb5   :  { %8268 = vrsqrt.f32 %v2084_v33 }
 0xfbf   :  { %v8269_v20 = vpop.eup %8268 }
 0xfc0   :  { %v2087_v38 = vmul.f32 %v8269_v20, %v2086_v3 }
 0xfc2   :  { %v2089_v26 = vrot.slane %v2087_v38, 4 }
 0xfc4   :  { %2090 = vrot.lane.b32.xlu0 %v2089_v26, %s8363_s17 }
0x1036   :  { %v2091_v14 = vpop.permute.xlu0 %2090 }
0x1037   :  { %v2093_v34 = vmul.f32 %v2091_v14, %v9370_v1 }
0x1039   :  { %v2103_v40 = vmul.f32 %v2093_v34, %v2051_v51  ;;  %2096 = vperm.xlu1 %8217, %v2093_v34   ;;  %v12668_v34 = vld [vmem:[#allocation3_spill] sm:$0xff] }
0x103b   :  { %v2104_v21 = vsub.f32 %v9376_v44, %v2103_v40 }
0x103d   :  { %2107 = vperm.xlu0 %8218, %v2104_v21  }
0x10b8   :  { %v2097_v32 = vpop.permute.xlu1 %2096 }
0x10b9   :  { %v2099_v56 = vmul.f32 %v2097_v32, %v9585_v55  ;;  %v2100_v36 = vmul.f32 %v2097_v32, %v9587_v54  ;;  %v2102_v23 = vmul.f32 %v2097_v32, %v9595_v10  ;;  %v2101_v55 = vmul.f32 %v2097_v32, %v9589_v4  ;;  %v9692_v10 = vld [vmem:[%s12583_s2] sm:$0xf] }
0x10ba   :  { %v12611_v4 = vmov 4  }
0x10bb   :  { %8219 = vset.pattern.permute.xlu0 %v12611_v4  ;;  %8220 = vset.pattern.permute.xlu1 %v12611_v4  ;;  %v12670_v4 = vld [vmem:[#allocation6_spill] sm:$0xff] }
0x10bc   :  { %v2108_v0 = vpop.permute.xlu0 %2107 }
0x10bd   :  { %v9614_v35 = vadd.f32 %v2108_v0, %v2099_v56  ;;  %v9622_v1 = vadd.f32 %v2108_v0, %v2100_v36  ;;  %v9624_v44 = vadd.f32 %v2108_v0, %v2102_v23  ;;  %v9647_v54 = vadd.f32 %v2108_v0, %v2101_v55  ;;  %v12669_v56 = vld [vmem:[#allocation5_spill] sm:$0xff] }
0x10bf   :  { %2162 = vrot.lane.b32.xlu0 %v9614_v35, %s8348_s29  ;;  %2130 = vrot.lane.b32.xlu1 %v9614_v35, %s8349_s30 }
0x10c3   :  { %2136 = vrot.lane.b32.xlu0 %v9624_v44, %s8349_s30  ;;  %2132 = vrot.lane.b32.xlu1 %v9622_v1, %s8349_s30 }
0x10c7   :  { %2114 = vrot.lane.b32.xlu0 %v9614_v35, %s8350_s11  ;;  %2164 = vrot.lane.b32.xlu1 %v9622_v1, %s8348_s29 }
0x10cb   :  { %2146 = vrot.lane.b32.xlu0 %v9614_v35, %s8351_s12  ;;  %2168 = vrot.lane.b32.xlu1 %v9624_v44, %s8348_s29 }
0x10cf   :  { %2120 = vrot.lane.b32.xlu0 %v9624_v44, %s8350_s11  ;;  %2116 = vrot.lane.b32.xlu1 %v9622_v1, %s8350_s11 }
0x10d3   :  { %2152 = vrot.lane.b32.xlu0 %v9624_v44, %s8351_s12  ;;  %2148 = vrot.lane.b32.xlu1 %v9622_v1, %s8351_s12 }
0x10d7   :  { %2180 = vrot.lane.b32.xlu0 %v9622_v1, %s8352_s13  ;;  %2134 = vrot.lane.b32.xlu1 %v9647_v54, %s8349_s30 }
0x10db   :  { %2212 = vrot.lane.b32.xlu0 %v9622_v1, %s8353_s14  ;;  %2166 = vrot.lane.b32.xlu1 %v9647_v54, %s8348_s29 }
0x10df   :  { %2118 = vrot.lane.b32.xlu0 %v9647_v54, %s8350_s11  ;;  %2182 = vrot.lane.b32.xlu1 %v9647_v54, %s8352_s13 }
0x10e3   :  { %2178 = vrot.lane.b32.xlu0 %v9614_v35, %s8352_s13  ;;  %2214 = vrot.lane.b32.xlu1 %v9647_v54, %s8353_s14 }
0x10e7   :  { %2196 = vrot.lane.b32.xlu0 %v9622_v1, %s8354_s15  ;;  %2150 = vrot.lane.b32.xlu1 %v9647_v54, %s8351_s12 }
0x10eb   :  { %2184 = vrot.lane.b32.xlu0 %v9624_v44, %s8352_s13  ;;  %2210 = vrot.lane.b32.xlu1 %v9614_v35, %s8353_s14 }
0x10ef   :  { %2216 = vrot.lane.b32.xlu0 %v9624_v44, %s8353_s14  ;;  %2198 = vrot.lane.b32.xlu1 %v9647_v54, %s8354_s15 }
0x10f3   :  { %2228 = vrot.lane.b32.xlu0 %v9622_v1, %s8357_s16  ;;  %2194 = vrot.lane.b32.xlu1 %v9614_v35, %s8354_s15 }
0x10f7   :  { %2226 = vrot.lane.b32.xlu0 %v9614_v35, %s8357_s16  ;;  %2200 = vrot.lane.b32.xlu1 %v9624_v44, %s8354_s15 }
0x10fb   :  { %2230 = vrot.lane.b32.xlu1 %v9647_v54, %s8357_s16  ;;  %2309 = vperm.xlu0 %8219, %v9692_v10  }
0x10ff   :  { %2232 = vrot.lane.b32.xlu1 %v9624_v44, %s8357_s16 }
0x1131   :  { %v2163_v45 = vpop.permute.xlu0 %2162  ;;  %v2131_v2 = vpop.permute.xlu1 %2130 }
0x1135   :  { %v2137_v60 = vpop.permute.xlu0 %2136  ;;  %v2133_v19 = vpop.permute.xlu1 %2132 }
0x1136   :  { %v2141_v30 = vsel %vm149_vm0, %v2137_v60, %v2131_v2  ;;  %v2140_v15 = vsel %vm149_vm0, %v2131_v2, %v2133_v19 }
0x1137   :  { %v2142_v3 = vmul.f32 %v2141_v30, %v12664_v6  ;;  %v2143_v38 = vmul.f32 %v2140_v15, %v12660_v25 }
0x1139   :  { %v2115_v58 = vpop.permute.xlu0 %2114  ;;  %v2165_v51 = vpop.permute.xlu1 %2164  ;;  %v2246_v55 = vrot.slane %v2142_v3, 4 }
0x113a   :  { %v2172_v37 = vsel %vm229_vm1, %v2163_v45, %v2165_v51 }
0x113b   :  { %v2175_v40 = vmul.f32 %v2172_v37, %v12668_v34 }
0x113d   :  { %v2147_v18 = vpop.permute.xlu0 %2146  ;;  %v2169_v29 = vpop.permute.xlu1 %2168  ;;  %v2259_v15 = vrot.slane %v2175_v40, 4 }
0x113e   :  { %v2173_v50 = vsel %vm229_vm1, %v2169_v29, %v2163_v45  ;;  %v2247_v45 = vrot.slane %v2143_v38, 4 }
0x113f   :  { %v2174_v21 = vmul.f32 %v2173_v50, %v12663_v27 }
0x1141   :  { %v2121_v33 = vpop.permute.xlu0 %2120  ;;  %v2117_v20 = vpop.permute.xlu1 %2116 }
0x1142   :  { %v2125_v26 = vsel %vm110_vm2, %v2121_v33, %v2115_v58  ;;  %v2124_v14 = vsel %vm110_vm2, %v2115_v58, %v2117_v20  ;;  %v2258_v58 = vrot.slane %v2174_v21, 4 }
0x1143   :  { %v2126_v32 = vmul.f32 %v2125_v26, %v12665_v13  ;;  %v2127_v0 = vmul.f32 %v2124_v14, %v12669_v56 }
0x1145   :  { %v2153_v36 = vpop.permute.xlu0 %2152  ;;  %v2149_v23 = vpop.permute.xlu1 %2148  ;;  %v2291_v14 = vsel %vm45_vm4, %v2127_v0, %v2247_v45  ;;  %v2290_v3 = vsel %vm45_vm4, %v2126_v32, %v2246_v55 }
0x1146   :  { %v2157_v2 = vsel %vm189_vm3, %v2153_v36, %v2147_v18  ;;  %v2156_v30 = vsel %vm189_vm3, %v2147_v18, %v2149_v23 }
0x1147   :  { %v2158_v37 = vmul.f32 %v2157_v2, %v8609_v53  ;;  %v2159_v50 = vmul.f32 %v2156_v30, %v12670_v4 }
0x1149   :  { %v2181_v6 = vpop.permute.xlu0 %2180  ;;  %v2135_v26 = vpop.permute.xlu1 %2134  ;;  %v2295_v13 = vsel %vm45_vm4, %v2159_v50, %v2259_v15  ;;  %v2294_v38 = vsel %vm45_vm4, %v2158_v37, %v2258_v58 }
0x114a   :  { %v7916_v27 = vpack.c.bf16 %v2295_v13, %v2291_v14  ;;  %v7918_v56 = vpack.c.bf16 %v2294_v38, %v2290_v3  ;;  %v2138_v30 = vsel %vm149_vm0, %v2135_v26, %v2137_v60  ;;  %v2139_v32 = vsel %vm149_vm0, %v2133_v19, %v2135_v26 }
0x114b   :  { %v2145_v13 = vmul.f32 %v2138_v30, %v8625_v5  ;;  %v2144_v58 = vmul.f32 %v2139_v32, %v8622_v63 }
0x114c   :  { %7917 = vmatprep.subr.bf16.mxu0 %v7916_v27 }
0x114d   :  { %v2213_v18 = vpop.permute.xlu0 %2212  ;;  %7919 = vmatpush1.bf16.msra.mxu0 %v7918_v56  ;;  %v2167_v40 = vpop.permute.xlu1 %2166  ;;  %v2248_v30 = vrot.slane %v2144_v58, 4 }
0x114e   :  { %v2170_v0 = vsel %vm229_vm1, %v2167_v40, %v2169_v29  ;;  %v2171_v45 = vsel %vm229_vm1, %v2165_v51, %v2167_v40  ;;  %v2249_v51 = vrot.slane %v2145_v13, 4 }
0x114f   :  { %v2176_v15 = vmul.f32 %v2171_v45, %v8628_v7  ;;  %v2177_v60 = vmul.f32 %v2170_v0, %v8633_v9 }
0x1151   :  { %v2119_v21 = vpop.permute.xlu0 %2118  ;;  %v2183_v2 = vpop.permute.xlu1 %2182  ;;  %v2260_v38 = vrot.slane %v2176_v15, 4 }
0x1152   :  { %v2122_v56 = vsel %vm110_vm2, %v2119_v21, %v2121_v33  ;;  %v2123_v29 = vsel %vm110_vm2, %v2117_v20, %v2119_v21  ;;  %v2187_v14 = vsel %vm269_vm5, %v2181_v6, %v2183_v2  ;;  %v2261_v20 = vrot.slane %v2177_v60, 4 }
0x1153   :  { %v2129_v37 = vmul.f32 %v2122_v56, %v8675_v43  ;;  %v2128_v26 = vmul.f32 %v2123_v29, %v8671_v42  ;;  %v2191_v45 = vmul.f32 %v2187_v14, %v8679_v47 }
0x1155   :  { %v2179_v27 = vpop.permute.xlu0 %2178  ;;  %v2215_v55 = vpop.permute.xlu1 %2214  ;;  %v2293_v56 = vsel %vm45_vm4, %v2129_v37, %v2249_v51  ;;  %v2292_v29 = vsel %vm45_vm4, %v2128_v26, %v2248_v30 }
0x1156   :  { %v2219_v0 = vsel %vm349_vm6, %v2213_v18, %v2215_v55  ;;  %v2188_v15 = vsel %vm269_vm5, %v2179_v27, %v2181_v6 }
0x1157   :  { %v2223_v58 = vmul.f32 %v2219_v0, %v8683_v48  ;;  %v2190_v51 = vmul.f32 %v2188_v15, %v8722_v52 }
0x1159   :  { %v2197_v19 = vpop.permute.xlu0 %2196  ;;  %v2151_v50 = vpop.permute.xlu1 %2150  ;;  %v2270_v0 = vrot.slane %v2190_v51, 4 }
0x115a   :  { %v2154_v33 = vsel %vm189_vm3, %v2151_v50, %v2153_v36  ;;  %v2155_v3 = vsel %vm189_vm3, %v2149_v23, %v2151_v50 }
0x115b   :  { %v2160_v40 = vmul.f32 %v2155_v3, %v8663_v39  ;;  %v2161_v21 = vmul.f32 %v2154_v33, %v8667_v41  ;;  %v2271_v33 = vrot.slane %v2191_v45, 4 }
0x115d   :  { %v2185_v32 = vpop.permute.xlu0 %2184  ;;  %v2211_v13 = vpop.permute.xlu1 %2210  ;;  %v2297_v36 = vsel %vm45_vm4, %v2161_v21, %v2261_v20  ;;  %v2296_v23 = vsel %vm45_vm4, %v2160_v40, %v2260_v38  ;;  %v2283_v20 = vrot.slane %v2223_v58, 4 }
0x115e   :  { %v7924_v60 = vpack.c.bf16 %v2297_v36, %v2293_v56  ;;  %v7926_v50 = vpack.c.bf16 %v2296_v23, %v2292_v29  ;;  %v2220_v14 = vsel %vm349_vm6, %v2211_v13, %v2213_v18  ;;  %v2189_v37 = vsel %vm269_vm5, %v2185_v32, %v2179_v27 }
0x115f   :  { %v2186_v6 = vsel %vm269_vm5, %v2183_v2, %v2185_v32  ;;  %v2222_v40 = vmul.f32 %v2220_v14, %v8708_v46  ;;  %v2193_v21 = vmul.f32 %v2189_v37, %v8741_v62  ;;  %v2299_v56 = vsel %vm45_vm4, %v9622_v1, %v2271_v33 }
0x1160   :  { %7925 = vmatprep.subr.bf16.mxu1 %v7924_v60  ;;  %v2192_v45 = vmul.f32 %v2186_v6, %v8736_v59  ;;  %v2298_v1 = vsel %vm45_vm4, %v9614_v35, %v2270_v0 }
0x1161   :  { %v2217_v3 = vpop.permute.xlu0 %2216  ;;  %7927 = vmatpush1.bf16.msra.mxu1 %v7926_v50  ;;  %v2199_v38 = vpop.permute.xlu1 %2198  ;;  %v2282_v60 = vrot.slane %v2222_v40, 4  ;;  %v2273_v58 = vrot.slane %v2193_v21, 4 }
0x1162   :  { %v2203_v26 = vsel %vm309_vm7, %v2197_v19, %v2199_v38  ;;  %v2218_v30 = vsel %vm349_vm6, %v2215_v55, %v2217_v3  ;;  %v2221_v27 = vsel %vm349_vm6, %v2217_v3, %v2211_v13  ;;  %v2272_v50 = vrot.slane %v2192_v45, 4 }
0x1163   :  { %v2207_v18 = vmul.f32 %v2203_v26, %v8725_v24  ;;  %v2224_v55 = vmul.f32 %v2218_v30, %v8745_v8  ;;  %v2225_v29 = vmul.f32 %v2221_v27, %v8752_v31  ;;  %v2301_v35 = vsel %vm45_vm4, %v9624_v44, %v2273_v58 }
0x1164   :  { %v2300_v30 = vsel %vm45_vm4, %v9647_v54, %v2272_v50 }
0x1165   :  { %v2229_v2 = vpop.permute.xlu0 %2228  ;;  %v2195_v32 = vpop.permute.xlu1 %2194  ;;  %v2303_v36 = vsel %vm45_vm4, %v2207_v18, %v2283_v20  ;;  %v2284_v6 = vrot.slane %v2224_v55, 4  ;;  %v2285_v26 = vrot.slane %v2225_v29, 4 }
0x1166   :  { %v2204_v23 = vsel %vm309_vm7, %v2195_v32, %v2197_v19  ;;  %v7920_v15 = vpack.c.bf16 %v2303_v36, %v2299_v56  ;;  %v7768_v36 = vld [vmem:[%s12585_s1 + $0x10] sm:$0xf] }
0x1167   :  { %v2206_v13 = vmul.f32 %v2204_v23, %v8733_v57 }
0x1168   :  { %7921 = vmatprep.subr.bf16.mxu0 %v7920_v15 }
0x1169   :  { %v2201_v14 = vpop.permute.xlu1 %2200  ;;  %v2302_v33 = vsel %vm45_vm4, %v2206_v13, %v2282_v60  ;;  %v2227_v51 = vpop.permute.xlu0 %2226 }
0x116a   :  { %v2202_v19 = vsel %vm309_vm7, %v2199_v38, %v2201_v14  ;;  %v2205_v37 = vsel %vm309_vm7, %v2201_v14, %v2195_v32  ;;  %v7922_v3 = vpack.c.bf16 %v2302_v33, %v2298_v1  ;;  %v2236_v18 = vsel %vm389_vm8, %v2227_v51, %v2229_v2 }
0x116b   :  { %v2208_v20 = vmul.f32 %v2202_v19, %v8769_v22  ;;  %v2209_v40 = vmul.f32 %v2205_v37, %v8772_v16  ;;  %v2238_v44 = vmul.f32 %v2236_v18, %v8796_v12 }
0x116c   :  { %7923 = vmatpush1.bf16.msra.mxu0 %v7922_v3 }
0x116d   :  { %v2231_v21 = vpop.permute.xlu1 %2230  ;;  %v2305_v38 = vsel %vm45_vm4, %v2209_v40, %v2285_v26  ;;  %v2304_v27 = vsel %vm45_vm4, %v2208_v20, %v2284_v6 }
0x116e   :  { %v2235_v0 = vsel %vm389_vm8, %v2229_v2, %v2231_v21  ;;  %v7928_v45 = vpack.c.bf16 %v2305_v38, %v2301_v35  ;;  %v7930_v32 = vpack.c.bf16 %v2304_v27, %v2300_v30 }
0x116f   :  { %v2239_v56 = vmul.f32 %v2235_v0, %v8776_v61 }
0x1170   :  { %7929 = vmatprep.subr.bf16.mxu1 %v7928_v45 }
0x1171   :  { %7769 = vmatprep.subr.msk.mxu0 %vm45_vm4, %v2239_v56  ;;  %7931 = vmatpush1.bf16.msra.mxu1 %v7930_v32  ;;  %v2233_v54 = vpop.permute.xlu1 %2232 }
0x1172   :  { %v2234_v23 = vsel %vm389_vm8, %v2231_v21, %v2233_v54  ;;  %v2237_v2 = vsel %vm389_vm8, %v2233_v54, %v2227_v51  ;;  %7770 = vmatpush1.msk.msra.mxu0 %vm45_vm4, %v2238_v44 }
0x1173   :  { %v2240_v15 = vmul.f32 %v2234_v23, %v8809_v28  ;;  %v2241_v60 = vmul.f32 %v2237_v2, %v8799_v49  ;;  %7771 = vmatmul.mubr.msk.f32.vlgmr.msra.gmra.mrb[8].mxu0 %vm492_vm9, %v7768_v36 }
0x1174   :  { %2842 = vmatprep.mubr.f32.mxu0 %v12657_v17 }
0x1175   :  { %7772 = vmatprep.subr.msk.mxu1 %vm45_vm4, %v2241_v60 }
0x1176   :  { %7773 = vmatpush1.msk.msra.mxu1 %vm45_vm4, %v2240_v15 }
0x1177   :  { %7774 = vmatmul.mubr.msk.f32.vlgmr.msra.gmra.mrb[8].mxu1 %vm492_vm9, %v7768_v36 }
0x1178   :  { %2913 = vmatprep.mubr.f32.mxu1 %v12657_v17 }
0x117a   :  { %v2310_v55 = vpop.permute.xlu0 %2309 }
0x1246   :  { %v2393_v29 = vpop.f32.mrb[8].mxu0 }
0x1247   :  { %v2394_v13 = vadd.f32 %v2393_v29, %v2310_v55  ;;  %v2395_v58 = vpop.f32.mrb[9].mxu0 }
0x1248   :  { %v2396_v50 = vadd.f32 %v2395_v58, %v2310_v55 }
0x1249   :  { %v2469_v14 = vmul.f32 0.01, %v2394_v13 }
0x124a   :  { %v2470_v1 = vmul.f32 0.01, %v2396_v50  ;;  %v2464_v33 = vpop.f32.mrb[8].mxu1 }
0x124b   :  { %v9824_v51 = vmax.f32 %v2394_v13, %v2469_v14  ;;  %v2465_v19 = vadd.f32 %v2464_v33, %v2310_v55  ;;  %v2466_v37 = vpop.f32.mrb[9].mxu1 }
0x124c   :  { %v9826_v3 = vmax.f32 %v2396_v50, %v2470_v1  ;;  %v2467_v6 = vadd.f32 %v2466_v37, %v2310_v55 }
0x124d   :  { %v2477_v26 = vmul.f32 %v9824_v51, %v9824_v51  ;;  %v2471_v20 = vmul.f32 0.01, %v2465_v19 }
0x124e   :  { %v2478_v40 = vmul.f32 %v9826_v3, %v9826_v3  ;;  %v2472_v35 = vmul.f32 0.01, %v2467_v6 }
0x124f   :  { %v2485_v18 = vrot.slane %v2477_v26, 4  ;;  %v9832_v21 = vmax.f32 %v2465_v19, %v2471_v20 }
0x1250   :  { %v2486_v38 = vrot.slane %v2478_v40, 4  ;;  %v9834_v30 = vmax.f32 %v2467_v6, %v2472_v35 }
0x1251   :  { %v2493_v27 = vsel %vm45_vm4, %v9824_v51, %v2485_v18  ;;  %v2479_v0 = vmul.f32 %v9832_v21, %v9832_v21 }
0x1252   :  { %v2494_v45 = vsel %vm45_vm4, %v9826_v3, %v2486_v38  ;;  %v2480_v32 = vmul.f32 %v9834_v30, %v9834_v30 }
0x1253   :  { %v2487_v56 = vrot.slane %v2479_v0, 4  ;;  %v2497_v44 = vadd.f32 %v2494_v45, %v2493_v27 }
0x1254   :  { %v2488_v36 = vrot.slane %v2480_v32, 4 }
0x1255   :  { %v2495_v54 = vsel %vm45_vm4, %v9832_v21, %v2487_v56 }
0x1256   :  { %v2496_v23 = vsel %vm45_vm4, %v9834_v30, %v2488_v36  ;;  %v2498_v2 = vadd.f32 %v2497_v44, %v2495_v54 }
0x1258   :  { %v2499_v15 = vadd.f32 %v2498_v2, %v2496_v23 }
0x125a   :  { %2500 = vadd.xlane.f32.xlu1 %v2499_v15 }
0x12e7   :  { %v2501_v60 = vpop.xlane.xlu1 %2500 }
0x12e8   :  { %v2510_v55 = vrot.slane %v2501_v60, 4  ;;  %v2502_v18 = vmul.f32 0.001953125, %v2501_v60  ;;  %v9853_v60 = vld [vmem:[%s12586_s3] sm:$0xf] }
0x12ea   :  { %v2512_v29 = vsel %vm693_vm10, %v2510_v55, 0.0  ;;  %v2503_v38 = vmul.f32 %v2502_v18, %v2502_v18 }
0x12eb   :  { %2513 = vadd.xlane.f32.xlu0 %v2512_v29 }
0x12ec   :  { %v2505_v27 = vrot.slane %v2503_v38, 4 }
0x12ee   :  { %v2507_v0 = vsub.f32 %v2502_v18, %v2505_v27 }
0x12f0   :  { %v2508_v45 = vmax.f32 %v2507_v0, 0.0 }
0x1378   :  { %v2514_v13 = vpop.xlane.xlu0 %2513 }
0x1379   :  { %v2515_v58 = vrot.slane %v2514_v13, 4 }
0x137b   :  { %v2516_v50 = vadd.f32 %v2515_v58, %v2514_v13  ;;  %v9859_v13 = vld [vmem:[%s12587_s4] sm:$0xf] }
0x137d   :  { %v2517_v14 = vrot.slane %v2516_v50, 2 }
0x137f   :  { %v2518_v1 = vadd.f32 %v2517_v14, %v2516_v50 }
0x1381   :  { %v2519_v33 = vrot.slane %v2518_v1, 1 }
0x1383   :  { %v2520_v19 = vadd.f32 %v2519_v33, %v2518_v1 }
0x1385   :  { %8124 = vpush %v2520_v19 }
0x13b6   :  { %s8125_s0 = spop %8124 }
0x13b7   :  { %v2522_v37 = vstv %s8125_s0  ;;  %s8367_s0 = smov 5  }
0x13b8   :  { %8270 = vrsqrt.f32 %v2522_v37  ;;  %vm2525_vm14 = vcmp.eq.f32.partialorder %v2522_v37, inf  ;;  %v2528_v20 = vand.u32 2147483648, %v2522_v37  ;;  %vm2527_vm15 = vcmp.eq.f32.partialorder %v2522_v37, 0.0 }
0x13c2   :  { %v8271_v6 = vpop.eup %8270 }
0x13c3   :  { %v2524_v26 = vmul.f32 %v8271_v6, %v2522_v37 }
0x13c5   :  { %v2526_v40 = vsel %vm2525_vm14, %v2522_v37, %v2524_v26 }
0x13c6   :  { %v2529_v35 = vsel %vm2527_vm15, %v2528_v20, %v2526_v40 }
0x13c7   :  { %8126 = vpush %v2529_v35 }
0x13f8   :  { %s8127_s21 = spop %8126 }
0x13f9   :  { %s2531_s22 = sadd.f32 1e-06, %s8127_s21 }
0x13fb   :  { %s2532_s23 = smul.f32 %s2531_s22, %s2531_s22  ;;  %v2537_v54 = vstv %s2531_s22 }
0x13fd   :  { %v2533_v32 = vstv %s2532_s23 }
0x13fe   :  { %v2534_v56 = vmul.f32 %v2533_v32, %v2508_v45 }
0x1400   :  { %v2535_v44 = vadd.f32 1e-05, %v2534_v56 }
0x1402   :  { %8272 = vrsqrt.f32 %v2535_v44 }
0x140c   :  { %v8273_v36 = vpop.eup %8272 }
0x140d   :  { %v2538_v23 = vmul.f32 %v8273_v36, %v2537_v54  ;;  %v12671_v36 = vld [vmem:[#allocation5_spill] sm:$0xff] }
0x140f   :  { %v2540_v2 = vrot.slane %v2538_v23, 4 }
0x1411   :  { %2541 = vrot.lane.b32.xlu1 %v2540_v2, %s8365_s24 }
0x1483   :  { %v2542_v15 = vpop.permute.xlu1 %2541 }
0x1484   :  { %v2544_v55 = vmul.f32 %v9853_v60, %v2542_v15 }
0x1486   :  { %v2554_v29 = vmul.f32 %v2544_v55, %v2502_v18  ;;  %2547 = vperm.xlu0 %8219, %v2544_v55  }
0x1488   :  { %v2555_v58 = vsub.f32 %v9859_v13, %v2554_v29 }
0x148a   :  { %2558 = vperm.xlu1 %8220, %v2555_v58  }
0x1505   :  { %v2548_v50 = vpop.permute.xlu0 %2547 }
0x1506   :  { %v2550_v14 = vmul.f32 %v2548_v50, %v9824_v51  ;;  %v2551_v1 = vmul.f32 %v2548_v50, %v9826_v3  ;;  %v2553_v6 = vmul.f32 %v2548_v50, %v9834_v30  ;;  %v2552_v3 = vmul.f32 %v2548_v50, %v9832_v21 }
0x1507   :  { %v8366_v21 = vmov 5  }
0x1508   :  { %8221 = vset.pattern.permute.xlu1 %v8366_v21  ;;  %8222 = vset.pattern.permute.xlu0 %v8366_v21 }
0x1509   :  { %v2559_v33 = vpop.permute.xlu1 %2558 }
0x150a   :  { %v9864_v19 = vadd.f32 %v2559_v33, %v2550_v14  ;;  %v9866_v37 = vadd.f32 %v2559_v33, %v2551_v1  ;;  %v9877_v51 = vadd.f32 %v2559_v33, %v2553_v6  ;;  %v9892_v30 = vadd.f32 %v2559_v33, %v2552_v3 }
0x150c   :  { %2583 = vrot.lane.b32.xlu0 %v9866_v37, %s8349_s30  ;;  %2581 = vrot.lane.b32.xlu1 %v9864_v19, %s8349_s30 }
0x1510   :  { %2615 = vrot.lane.b32.xlu0 %v9866_v37, %s8348_s29  ;;  %2613 = vrot.lane.b32.xlu1 %v9864_v19, %s8348_s29 }
0x1514   :  { %2619 = vrot.lane.b32.xlu0 %v9877_v51, %s8348_s29  ;;  %2587 = vrot.lane.b32.xlu1 %v9877_v51, %s8349_s30 }
0x1518   :  { %2567 = vrot.lane.b32.xlu0 %v9866_v37, %s8350_s11  ;;  %2565 = vrot.lane.b32.xlu1 %v9864_v19, %s8350_s11 }
0x151c   :  { %2599 = vrot.lane.b32.xlu0 %v9866_v37, %s8351_s12  ;;  %2597 = vrot.lane.b32.xlu1 %v9864_v19, %s8351_s12 }
0x1520   :  { %2585 = vrot.lane.b32.xlu0 %v9892_v30, %s8349_s30  ;;  %2571 = vrot.lane.b32.xlu1 %v9877_v51, %s8350_s11 }
0x1524   :  { %2617 = vrot.lane.b32.xlu0 %v9892_v30, %s8348_s29  ;;  %2603 = vrot.lane.b32.xlu1 %v9877_v51, %s8351_s12 }
0x1528   :  { %2633 = vrot.lane.b32.xlu0 %v9892_v30, %s8352_s13  ;;  %2631 = vrot.lane.b32.xlu1 %v9866_v37, %s8352_s13 }
0x152c   :  { %2665 = vrot.lane.b32.xlu0 %v9892_v30, %s8353_s14  ;;  %2663 = vrot.lane.b32.xlu1 %v9866_v37, %s8353_s14 }
0x1530   :  { %2601 = vrot.lane.b32.xlu0 %v9892_v30, %s8351_s12  ;;  %2569 = vrot.lane.b32.xlu1 %v9892_v30, %s8350_s11 }
0x1534   :  { %2661 = vrot.lane.b32.xlu0 %v9864_v19, %s8353_s14  ;;  %2629 = vrot.lane.b32.xlu1 %v9864_v19, %s8352_s13 }
0x1538   :  { %2649 = vrot.lane.b32.xlu0 %v9892_v30, %s8354_s15  ;;  %2647 = vrot.lane.b32.xlu1 %v9866_v37, %s8354_s15 }
0x153c   :  { %2645 = vrot.lane.b32.xlu0 %v9864_v19, %s8354_s15  ;;  %2635 = vrot.lane.b32.xlu1 %v9877_v51, %s8352_s13 }
0x1540   :  { %2651 = vrot.lane.b32.xlu0 %v9877_v51, %s8354_s15  ;;  %2667 = vrot.lane.b32.xlu1 %v9877_v51, %s8353_s14 }
0x1544   :  { %2681 = vrot.lane.b32.xlu0 %v9892_v30, %s8357_s16  ;;  %2679 = vrot.lane.b32.xlu1 %v9866_v37, %s8357_s16 }
0x1548   :  { %2683 = vrot.lane.b32.xlu0 %v9877_v51, %s8357_s16  ;;  %2677 = vrot.lane.b32.xlu1 %v9864_v19, %s8357_s16 }
0x154c   :  { %2760 = vperm.xlu1 %8221, %v9692_v10  }
0x157e   :  { %v2584_v26 = vpop.permute.xlu0 %2583  ;;  %v2582_v20 = vpop.permute.xlu1 %2581 }
0x157f   :  { %v2591_v27 = vsel %vm149_vm0, %v2582_v20, %v2584_v26 }
0x1580   :  { %v2594_v44 = vmul.f32 %v2591_v27, %v12660_v25 }
0x1582   :  { %v2616_v40 = vpop.permute.xlu0 %2615  ;;  %v2614_v35 = vpop.permute.xlu1 %2613  ;;  %v2698_v55 = vrot.slane %v2594_v44, 4  ;;  %v12673_v44 = vld [vmem:[#allocation8_spill] sm:$0xff] }
0x1583   :  { %v2623_v0 = vsel %vm229_vm1, %v2614_v35, %v2616_v40 }
0x1584   :  { %v2626_v10 = vmul.f32 %v2623_v0, %v12668_v34  ;;  %v12672_v0 = vld [vmem:[#allocation7_spill] sm:$0xff] }
0x1586   :  { %v2620_v18 = vpop.permute.xlu0 %2619  ;;  %v2588_v38 = vpop.permute.xlu1 %2587  ;;  %v2710_v29 = vrot.slane %v2626_v10, 4 }
0x1587   :  { %v2624_v50 = vsel %vm229_vm1, %v2620_v18, %v2614_v35  ;;  %v2592_v14 = vsel %vm149_vm0, %v2588_v38, %v2582_v20 }
0x1588   :  { %v2593_v10 = vmul.f32 %v2592_v14, %v12673_v44 }
0x158a   :  { %v2568_v45 = vpop.permute.xlu0 %2567  ;;  %v2566_v32 = vpop.permute.xlu1 %2565 }
0x158b   :  { %v2575_v56 = vsel %vm110_vm2, %v2566_v32, %v2568_v45 }
0x158c   :  { %v2578_v54 = vmul.f32 %v2575_v56, %v12671_v36  ;;  %v2625_v56 = vmul.f32 %v2624_v50, %v12672_v0 }
0x158e   :  { %v2600_v23 = vpop.permute.xlu0 %2599  ;;  %v2598_v2 = vpop.permute.xlu1 %2597  ;;  %v2742_v6 = vsel %vm45_vm4, %v2578_v54, %v2698_v55  ;;  %v2709_v34 = vrot.slane %v2625_v56, 4  ;;  %v2697_v54 = vrot.slane %v2593_v10, 4 }
0x158f   :  { %v2607_v15 = vsel %vm189_vm3, %v2598_v2, %v2600_v23 }
0x1590   :  { %v2610_v58 = vmul.f32 %v2607_v15, %v12670_v4  ;;  %v12674_v15 = vld [vmem:[#allocation9_spill] sm:$0xff] }
0x1592   :  { %v2586_v1 = vpop.permute.xlu0 %2585  ;;  %v2572_v33 = vpop.permute.xlu1 %2571  ;;  %v2746_v3 = vsel %vm45_vm4, %v2610_v58, %v2710_v29 }
0x1593   :  { %v2576_v21 = vsel %vm110_vm2, %v2572_v33, %v2566_v32  ;;  %v7932_v27 = vpack.c.bf16 %v2746_v3, %v2742_v6  ;;  %v2590_v32 = vsel %vm149_vm0, %v2584_v26, %v2586_v1  ;;  %v2589_v6 = vsel %vm149_vm0, %v2586_v1, %v2588_v38 }
0x1594   :  { %v2577_v35 = vmul.f32 %v2576_v21, %v12674_v15  ;;  %v2596_v26 = vmul.f32 %v2589_v6, %v8625_v5 }
0x1595   :  { %7933 = vmatprep.subr.bf16.mxu0 %v7932_v27  ;;  %v2595_v27 = vmul.f32 %v2590_v32, %v8622_v63 }
0x1596   :  { %v2618_v4 = vpop.permute.xlu0 %2617  ;;  %v2604_v36 = vpop.permute.xlu1 %2603  ;;  %v2741_v50 = vsel %vm45_vm4, %v2577_v35, %v2697_v54  ;;  %v2700_v38 = vrot.slane %v2596_v26, 4 }
0x1597   :  { %v2608_v20 = vsel %vm189_vm3, %v2604_v36, %v2598_v2  ;;  %v2621_v3 = vsel %vm229_vm1, %v2618_v4, %v2620_v18  ;;  %v2622_v2 = vsel %vm229_vm1, %v2616_v40, %v2618_v4 }
0x1598   :  { %v2609_v55 = vmul.f32 %v2608_v20, %v8609_v53  ;;  %v2627_v56 = vmul.f32 %v2622_v2, %v8628_v7  ;;  %v2628_v10 = vmul.f32 %v2621_v3, %v8633_v9  ;;  %v2699_v20 = vrot.slane %v2595_v27, 4 }
0x159a   :  { %v2634_v29 = vpop.permute.xlu0 %2633  ;;  %v2632_v58 = vpop.permute.xlu1 %2631  ;;  %v2745_v14 = vsel %vm45_vm4, %v2609_v55, %v2709_v34  ;;  %v2711_v1 = vrot.slane %v2627_v56, 4  ;;  %v2712_v54 = vrot.slane %v2628_v10, 4 }
0x159b   :  { %v7934_v21 = vpack.c.bf16 %v2745_v14, %v2741_v50  ;;  %v2638_v18 = vsel %vm269_vm5, %v2632_v58, %v2634_v29 }
0x159c   :  { %v2642_v27 = vmul.f32 %v2638_v18, %v8679_v47 }
0x159d   :  { %7935 = vmatpush1.bf16.msra.mxu0 %v7934_v21 }
0x159e   :  { %v2666_v34 = vpop.permute.xlu0 %2665  ;;  %v2664_v35 = vpop.permute.xlu1 %2663 }
0x15a2   :  { %v2602_v4 = vpop.permute.xlu0 %2601  ;;  %v2570_v40 = vpop.permute.xlu1 %2569 }
0x15a3   :  { %v2605_v55 = vsel %vm189_vm3, %v2602_v4, %v2604_v36  ;;  %v2606_v32 = vsel %vm189_vm3, %v2600_v23, %v2602_v4  ;;  %v2573_v50 = vsel %vm110_vm2, %v2570_v40, %v2572_v33  ;;  %v2574_v14 = vsel %vm110_vm2, %v2568_v45, %v2570_v40 }
0x15a4   :  { %v2611_v6 = vmul.f32 %v2606_v32, %v8663_v39  ;;  %v2612_v3 = vmul.f32 %v2605_v55, %v8667_v41  ;;  %v2579_v2 = vmul.f32 %v2574_v14, %v8671_v42  ;;  %v2580_v21 = vmul.f32 %v2573_v50, %v8675_v43 }
0x15a5   :  { %v2670_v36 = vsel %vm349_vm6, %v2664_v35, %v2666_v34  ;;  %v2722_v50 = vrot.slane %v2642_v27, 4 }
0x15a6   :  { %v2662_v23 = vpop.permute.xlu0 %2661  ;;  %v2630_v26 = vpop.permute.xlu1 %2629  ;;  %v2744_v33 = vsel %vm45_vm4, %v2580_v21, %v2700_v38  ;;  %v2748_v56 = vsel %vm45_vm4, %v2612_v3, %v2712_v54  ;;  %v2743_v45 = vsel %vm45_vm4, %v2579_v2, %v2699_v20  ;;  %v2747_v10 = vsel %vm45_vm4, %v2611_v6, %v2711_v1 }
0x15a7   :  { %v2671_v4 = vsel %vm349_vm6, %v2662_v23, %v2664_v35  ;;  %v7940_v40 = vpack.c.bf16 %v2748_v56, %v2744_v33  ;;  %v7942_v55 = vpack.c.bf16 %v2747_v10, %v2743_v45  ;;  %v2674_v18 = vmul.f32 %v2670_v36, %v8683_v48 }
0x15a8   :  { %v2639_v32 = vsel %vm269_vm5, %v2630_v26, %v2632_v58  ;;  %v2673_v38 = vmul.f32 %v2671_v4, %v8708_v46  ;;  %v2750_v58 = vsel %vm45_vm4, %v9866_v37, %v2722_v50 }
0x15a9   :  { %7941 = vmatprep.subr.bf16.mxu1 %v7940_v40  ;;  %v2734_v1 = vrot.slane %v2674_v18, 4  ;;  %v2641_v35 = vmul.f32 %v2639_v32, %v8722_v52 }
0x15aa   :  { %v2650_v14 = vpop.permute.xlu0 %2649  ;;  %7943 = vmatpush1.bf16.msra.mxu1 %v7942_v55  ;;  %v2648_v54 = vpop.permute.xlu1 %2647  ;;  %v2733_v3 = vrot.slane %v2673_v38, 4 }
0x15ab   :  { %v2654_v20 = vsel %vm309_vm7, %v2648_v54, %v2650_v14  ;;  %v2721_v10 = vrot.slane %v2641_v35, 4 }
0x15ac   :  { %v2658_v6 = vmul.f32 %v2654_v20, %v8725_v24 }
0x15ae   :  { %v2646_v2 = vpop.permute.xlu0 %2645  ;;  %v2636_v21 = vpop.permute.xlu1 %2635  ;;  %v2754_v27 = vsel %vm45_vm4, %v2658_v6, %v2734_v1  ;;  %v2749_v6 = vsel %vm45_vm4, %v9864_v19, %v2721_v10 }
0x15af   :  { %v2655_v36 = vsel %vm309_vm7, %v2646_v2, %v2648_v54  ;;  %v2637_v33 = vsel %vm269_vm5, %v2634_v29, %v2636_v21  ;;  %v2640_v56 = vsel %vm269_vm5, %v2636_v21, %v2630_v26  ;;  %v7936_v45 = vpack.c.bf16 %v2754_v27, %v2750_v58 }
0x15b0   :  { %v2657_v4 = vmul.f32 %v2655_v36, %v8733_v57  ;;  %v2643_v40 = vmul.f32 %v2637_v33, %v8736_v59  ;;  %v2644_v55 = vmul.f32 %v2640_v56, %v8741_v62 }
0x15b1   :  { %7937 = vmatprep.subr.bf16.mxu0 %v7936_v45 }
0x15b2   :  { %v2724_v37 = vrot.slane %v2644_v55, 4  ;;  %v2652_v18 = vpop.permute.xlu0 %2651  ;;  %v2668_v32 = vpop.permute.xlu1 %2667  ;;  %v2753_v50 = vsel %vm45_vm4, %v2657_v4, %v2733_v3  ;;  %v2723_v20 = vrot.slane %v2643_v40, 4 }
0x15b3   :  { %v2653_v29 = vsel %vm309_vm7, %v2650_v14, %v2652_v18  ;;  %v2656_v26 = vsel %vm309_vm7, %v2652_v18, %v2646_v2  ;;  %v2669_v38 = vsel %vm349_vm6, %v2666_v34, %v2668_v32  ;;  %v2672_v54 = vsel %vm349_vm6, %v2668_v32, %v2662_v23 }
0x15b4   :  { %v2675_v1 = vmul.f32 %v2669_v38, %v8745_v8  ;;  %v2676_v35 = vmul.f32 %v2672_v54, %v8752_v31  ;;  %v7938_v3 = vpack.c.bf16 %v2753_v50, %v2749_v6  ;;  %v2659_v14 = vmul.f32 %v2653_v29, %v8769_v22  ;;  %v7775_v50 = vld [vmem:[%s12585_s1 + $0x14] sm:$0xf] }
0x15b5   :  { %v2660_v21 = vmul.f32 %v2656_v26, %v8772_v16  ;;  %v2752_v36 = vsel %vm45_vm4, %v9877_v51, %v2724_v37  ;;  %v2751_v56 = vsel %vm45_vm4, %v9892_v30, %v2723_v20 }
0x15b6   :  { %v2735_v2 = vrot.slane %v2675_v1, 4  ;;  %v2736_v58 = vrot.slane %v2676_v35, 4  ;;  %v2682_v27 = vpop.permute.xlu0 %2681  ;;  %v2680_v34 = vpop.permute.xlu1 %2679  ;;  %7939 = vmatpush1.bf16.msra.mxu0 %v7938_v3 }
0x15b7   :  { %v2686_v23 = vsel %vm389_vm8, %v2680_v34, %v2682_v27 }
0x15b8   :  { %v2690_v33 = vmul.f32 %v2686_v23, %v8776_v61  ;;  %v2756_v19 = vsel %vm45_vm4, %v2660_v21, %v2736_v58  ;;  %v2755_v45 = vsel %vm45_vm4, %v2659_v14, %v2735_v2 }
0x15b9   :  { %v7944_v10 = vpack.c.bf16 %v2756_v19, %v2752_v36  ;;  %v7946_v4 = vpack.c.bf16 %v2755_v45, %v2751_v56 }
0x15ba   :  { %v2684_v40 = vpop.permute.xlu0 %2683  ;;  %7776 = vmatprep.subr.msk.mxu0 %vm45_vm4, %v2690_v33  ;;  %v2678_v55 = vpop.permute.xlu1 %2677 }
0x15bb   :  { %v2685_v18 = vsel %vm389_vm8, %v2682_v27, %v2684_v40  ;;  %v2687_v51 = vsel %vm389_vm8, %v2678_v55, %v2680_v34  ;;  %v2688_v37 = vsel %vm389_vm8, %v2684_v40, %v2678_v55  ;;  %7945 = vmatprep.subr.bf16.mxu1 %v7944_v10 }
0x15bc   :  { %v2689_v30 = vmul.f32 %v2687_v51, %v8796_v12  ;;  %v2692_v32 = vmul.f32 %v2688_v37, %v8799_v49  ;;  %7947 = vmatpush1.bf16.msra.mxu1 %v7946_v4  ;;  %v2691_v29 = vmul.f32 %v2685_v18, %v8809_v28 }
0x15be   :  { %7777 = vmatpush1.msk.msra.mxu0 %vm45_vm4, %v2689_v30  ;;  %7779 = vmatprep.subr.msk.mxu1 %vm45_vm4, %v2692_v32 }
0x15bf   :  { %7778 = vmatmul.mubr.msk.f32.vlgmr.msra.gmra.mrb[10].mxu0 %vm492_vm9, %v7775_v50 }
0x15c0   :  { %7780 = vmatpush1.msk.msra.mxu1 %vm45_vm4, %v2691_v29  ;;  %3355 = vmatprep.mubr.f32.mxu0 %v12657_v17 }
0x15c1   :  { %7781 = vmatmul.mubr.msk.f32.vlgmr.msra.gmra.mrb[10].mxu1 %vm492_vm9, %v7775_v50 }
0x15c2   :  { %3426 = vmatprep.mubr.f32.mxu1 %v12657_v17 }
0x15cb   :  { %v2761_v26 = vpop.permute.xlu1 %2760 }
0x1692   :  { %v2844_v38 = vpop.f32.mrb[10].mxu0 }
0x1693   :  { %v2845_v54 = vadd.f32 %v2844_v38, %v2761_v26  ;;  %v2846_v20 = vpop.f32.mrb[11].mxu0 }
0x1694   :  { %v2847_v1 = vadd.f32 %v2846_v20, %v2761_v26  ;;  %v2915_v35 = vpop.f32.mrb[10].mxu1 }
0x1695   :  { %v2920_v6 = vmul.f32 0.01, %v2845_v54  ;;  %v2916_v3 = vadd.f32 %v2915_v35, %v2761_v26  ;;  %v2917_v14 = vpop.f32.mrb[11].mxu1 }
0x1696   :  { %v2921_v21 = vmul.f32 0.01, %v2847_v1  ;;  %v2918_v2 = vadd.f32 %v2917_v14, %v2761_v26 }
0x1697   :  { %v10066_v58 = vmax.f32 %v2845_v54, %v2920_v6  ;;  %v2922_v27 = vmul.f32 0.01, %v2916_v3 }
0x1698   :  { %v10068_v34 = vmax.f32 %v2847_v1, %v2921_v21  ;;  %v2923_v23 = vmul.f32 0.01, %v2918_v2 }
0x1699   :  { %v10070_v36 = vmax.f32 %v2916_v3, %v2922_v27  ;;  %v2928_v33 = vmul.f32 %v10066_v58, %v10066_v58 }
0x169a   :  { %v2929_v19 = vmul.f32 %v10068_v34, %v10068_v34  ;;  %v10076_v56 = vmax.f32 %v2918_v2, %v2923_v23 }
0x169b   :  { %v2930_v45 = vmul.f32 %v10070_v36, %v10070_v36  ;;  %v2936_v10 = vrot.slane %v2928_v33, 4 }
0x169c   :  { %v2937_v4 = vrot.slane %v2929_v19, 4  ;;  %v2931_v40 = vmul.f32 %v10076_v56, %v10076_v56 }
0x169d   :  { %v2938_v55 = vrot.slane %v2930_v45, 4  ;;  %v2944_v18 = vsel %vm45_vm4, %v10066_v58, %v2936_v10 }
0x169e   :  { %v2945_v51 = vsel %vm45_vm4, %v10068_v34, %v2937_v4  ;;  %v2939_v37 = vrot.slane %v2931_v40, 4 }
0x169f   :  { %v2946_v30 = vsel %vm45_vm4, %v10070_v36, %v2938_v55  ;;  %v2948_v32 = vadd.f32 %v2945_v51, %v2944_v18 }
0x16a0   :  { %v2947_v29 = vsel %vm45_vm4, %v10076_v56, %v2939_v37 }
0x16a1   :  { %v2949_v50 = vadd.f32 %v2948_v32, %v2946_v30 }
0x16a3   :  { %v2950_v26 = vadd.f32 %v2949_v50, %v2947_v29 }
0x16a5   :  { %2951 = vadd.xlane.f32.xlu0 %v2950_v26 }
0x1732   :  { %v2952_v38 = vpop.xlane.xlu0 %2951 }
0x1733   :  { %v2961_v54 = vrot.slane %v2952_v38, 4  ;;  %v2953_v4 = vmul.f32 0.001953125, %v2952_v38 }
0x1735   :  { %v2963_v20 = vsel %vm693_vm10, %v2961_v54, 0.0  ;;  %v2954_v40 = vmul.f32 %v2953_v4, %v2953_v4 }
0x1736   :  { %2964 = vadd.xlane.f32.xlu1 %v2963_v20 }
0x1737   :  { %v2956_v55 = vrot.slane %v2954_v40, 4 }
0x1739   :  { %v2958_v18 = vsub.f32 %v2953_v4, %v2956_v55 }
0x173b   :  { %v2959_v51 = vmax.f32 %v2958_v18, 0.0 }
0x17c3   :  { %v2965_v1 = vpop.xlane.xlu1 %2964 }
0x17c4   :  { %v2966_v35 = vrot.slane %v2965_v1, 4 }
0x17c6   :  { %v2967_v6 = vadd.f32 %v2966_v35, %v2965_v1 }
0x17c8   :  { %v2968_v3 = vrot.slane %v2967_v6, 2 }
0x17ca   :  { %v2969_v14 = vadd.f32 %v2968_v3, %v2967_v6 }
0x17cc   :  { %v2970_v21 = vrot.slane %v2969_v14, 1 }
0x17ce   :  { %v2971_v2 = vadd.f32 %v2970_v21, %v2969_v14 }
0x17d0   :  { %8128 = vpush %v2971_v2 }
0x1801   :  { %s8129_s18 = spop %8128 }
0x1802   :  { %v2973_v27 = vstv %s8129_s18 }
0x1803   :  { %8274 = vrsqrt.f32 %v2973_v27  ;;  %vm2976_vm11 = vcmp.eq.f32.partialorder %v2973_v27, inf  ;;  %v2979_v19 = vand.u32 2147483648, %v2973_v27  ;;  %vm2978_vm12 = vcmp.eq.f32.partialorder %v2973_v27, 0.0 }
0x180d   :  { %v8275_v23 = vpop.eup %8274 }
0x180e   :  { %v2975_v33 = vmul.f32 %v8275_v23, %v2973_v27 }
0x1810   :  { %v2977_v45 = vsel %vm2976_vm11, %v2973_v27, %v2975_v33 }
0x1811   :  { %v2980_v10 = vsel %vm2978_vm12, %v2979_v19, %v2977_v45 }
0x1812   :  { %8130 = vpush %v2980_v10 }
0x1843   :  { %s8131_s19 = spop %8130 }
0x1844   :  { %s2982_s20 = sadd.f32 1e-06, %s8131_s19 }
0x1846   :  { %s2983_s7 = smul.f32 %s2982_s20, %s2982_s20  ;;  %v2988_v29 = vstv %s2982_s20 }
0x1848   :  { %v2984_v37 = vstv %s2983_s7 }
0x1849   :  { %v2985_v30 = vmul.f32 %v2984_v37, %v2959_v51 }
0x184b   :  { %v2986_v32 = vadd.f32 1e-05, %v2985_v30 }
0x184d   :  { %8276 = vrsqrt.f32 %v2986_v32 }
0x1857   :  { %v8277_v50 = vpop.eup %8276 }
0x1858   :  { %v2989_v26 = vmul.f32 %v8277_v50, %v2988_v29 }
0x185a   :  { %v2991_v54 = vrot.slane %v2989_v26, 4 }
0x185c   :  { %2992 = vrot.lane.b32.xlu0 %v2991_v54, %s8367_s0 }
0x18ce   :  { %v2993_v20 = vpop.permute.xlu0 %2992 }
0x18cf   :  { %v2995_v38 = vmul.f32 %v9853_v60, %v2993_v20 }
0x18d1   :  { %v3005_v1 = vmul.f32 %v2995_v38, %v2953_v4  ;;  %2998 = vperm.xlu1 %8221, %v2995_v38   ;;  %v12676_v38 = vld [vmem:[#allocation3_spill] sm:$0xff] }
0x18d3   :  { %v3006_v35 = vsub.f32 %v9859_v13, %v3005_v1 }
0x18d5   :  { %3009 = vperm.xlu0 %8222, %v3006_v35  }
0x1950   :  { %v2999_v6 = vpop.permute.xlu1 %2998 }
0x1951   :  { %v3001_v3 = vmul.f32 %v2999_v6, %v10066_v58  ;;  %v3002_v2 = vmul.f32 %v2999_v6, %v10068_v34  ;;  %v3004_v27 = vmul.f32 %v2999_v6, %v10076_v56  ;;  %v3003_v58 = vmul.f32 %v2999_v6, %v10070_v36  ;;  %v10170_v56 = vld [vmem:[%s12583_s2] sm:$0xf] }
0x1952   :  { %v8368_v36 = vmov 6  }
0x1953   :  { %8223 = vset.pattern.permute.xlu0 %v8368_v36  ;;  %8224 = vset.pattern.permute.xlu1 %v8368_v36 }
0x1954   :  { %v3010_v14 = vpop.permute.xlu0 %3009 }
0x1955   :  { %v10094_v21 = vadd.f32 %v3010_v14, %v3001_v3  ;;  %v10102_v60 = vadd.f32 %v3010_v14, %v3002_v2  ;;  %v10104_v13 = vadd.f32 %v3010_v14, %v3004_v27  ;;  %v10127_v34 = vadd.f32 %v3010_v14, %v3003_v58  ;;  %v12677_v3 = vld [vmem:[#allocation5_spill] sm:$0xff] }
0x1957   :  { %3126 = vrot.lane.b32.xlu0 %v10094_v21, %s8348_s29  ;;  %3094 = vrot.lane.b32.xlu1 %v10094_v21, %s8349_s30  ;;  %12675 = vst [vmem:[#allocation2_spill] sm:$0xff] %v10104_v13 }
0x195b   :  { %3100 = vrot.lane.b32.xlu0 %v10104_v13, %s8349_s30  ;;  %3096 = vrot.lane.b32.xlu1 %v10102_v60, %s8349_s30 }
0x195f   :  { %3078 = vrot.lane.b32.xlu0 %v10094_v21, %s8350_s11  ;;  %3128 = vrot.lane.b32.xlu1 %v10102_v60, %s8348_s29 }
0x1963   :  { %3110 = vrot.lane.b32.xlu0 %v10094_v21, %s8351_s12  ;;  %3132 = vrot.lane.b32.xlu1 %v10104_v13, %s8348_s29 }
0x1967   :  { %3084 = vrot.lane.b32.xlu0 %v10104_v13, %s8350_s11  ;;  %3080 = vrot.lane.b32.xlu1 %v10102_v60, %s8350_s11 }
0x196b   :  { %3116 = vrot.lane.b32.xlu0 %v10104_v13, %s8351_s12  ;;  %3112 = vrot.lane.b32.xlu1 %v10102_v60, %s8351_s12 }
0x196f   :  { %3144 = vrot.lane.b32.xlu0 %v10102_v60, %s8352_s13  ;;  %3098 = vrot.lane.b32.xlu1 %v10127_v34, %s8349_s30 }
0x1973   :  { %3176 = vrot.lane.b32.xlu0 %v10102_v60, %s8353_s14  ;;  %3130 = vrot.lane.b32.xlu1 %v10127_v34, %s8348_s29 }
0x1977   :  { %3082 = vrot.lane.b32.xlu0 %v10127_v34, %s8350_s11  ;;  %3146 = vrot.lane.b32.xlu1 %v10127_v34, %s8352_s13 }
0x197b   :  { %3142 = vrot.lane.b32.xlu0 %v10094_v21, %s8352_s13  ;;  %3178 = vrot.lane.b32.xlu1 %v10127_v34, %s8353_s14 }
0x197f   :  { %3160 = vrot.lane.b32.xlu0 %v10102_v60, %s8354_s15  ;;  %3114 = vrot.lane.b32.xlu1 %v10127_v34, %s8351_s12 }
0x1983   :  { %3148 = vrot.lane.b32.xlu0 %v10104_v13, %s8352_s13  ;;  %3174 = vrot.lane.b32.xlu1 %v10094_v21, %s8353_s14 }
0x1987   :  { %3180 = vrot.lane.b32.xlu0 %v10104_v13, %s8353_s14  ;;  %3162 = vrot.lane.b32.xlu1 %v10127_v34, %s8354_s15 }
0x198b   :  { %3192 = vrot.lane.b32.xlu0 %v10102_v60, %s8357_s16  ;;  %3158 = vrot.lane.b32.xlu1 %v10094_v21, %s8354_s15 }
0x198f   :  { %3190 = vrot.lane.b32.xlu0 %v10094_v21, %s8357_s16  ;;  %3164 = vrot.lane.b32.xlu1 %v10104_v13, %s8354_s15 }
0x1993   :  { %3194 = vrot.lane.b32.xlu1 %v10127_v34, %s8357_s16  ;;  %3273 = vperm.xlu0 %8223, %v10170_v56  }
0x1997   :  { %3196 = vrot.lane.b32.xlu1 %v10104_v13, %s8357_s16 }
0x19c9   :  { %v3127_v23 = vpop.permute.xlu0 %3126  ;;  %v3095_v33 = vpop.permute.xlu1 %3094 }
0x19cd   :  { %v3101_v19 = vpop.permute.xlu0 %3100  ;;  %v3097_v45 = vpop.permute.xlu1 %3096 }
0x19ce   :  { %v3105_v18 = vsel %vm149_vm0, %v3101_v19, %v3095_v33  ;;  %v3104_v51 = vsel %vm149_vm0, %v3095_v33, %v3097_v45 }
0x19cf   :  { %v3106_v29 = vmul.f32 %v3105_v18, %v12673_v44  ;;  %v3107_v26 = vmul.f32 %v3104_v51, %v12660_v25 }
0x19d1   :  { %v3079_v10 = vpop.permute.xlu0 %3078  ;;  %v3129_v4 = vpop.permute.xlu1 %3128  ;;  %v3210_v58 = vrot.slane %v3106_v29, 4  ;;  %v3211_v36 = vrot.slane %v3107_v26, 4 }
0x19d2   :  { %v3136_v37 = vsel %vm229_vm1, %v3127_v23, %v3129_v4 }
0x19d3   :  { %v3139_v1 = vmul.f32 %v3136_v37, %v12676_v38  ;;  %v12678_v37 = vld [vmem:[#allocation6_spill] sm:$0xff] }
0x19d5   :  { %v3111_v40 = vpop.permute.xlu0 %3110  ;;  %v3133_v55 = vpop.permute.xlu1 %3132  ;;  %v3223_v18 = vrot.slane %v3139_v1, 4 }
0x19d6   :  { %v3137_v30 = vsel %vm229_vm1, %v3133_v55, %v3127_v23 }
0x19d7   :  { %v3138_v35 = vmul.f32 %v3137_v30, %v12672_v0 }
0x19d9   :  { %v3085_v32 = vpop.permute.xlu0 %3084  ;;  %v3081_v50 = vpop.permute.xlu1 %3080 }
0x19da   :  { %v3089_v54 = vsel %vm110_vm2, %v3085_v32, %v3079_v10  ;;  %v3088_v20 = vsel %vm110_vm2, %v3079_v10, %v3081_v50  ;;  %v3222_v10 = vrot.slane %v3138_v35, 4 }
0x19db   :  { %v3090_v6 = vmul.f32 %v3089_v54, %v12674_v15  ;;  %v3091_v14 = vmul.f32 %v3088_v20, %v12677_v3 }
0x19dd   :  { %v3117_v2 = vpop.permute.xlu0 %3116  ;;  %v3113_v27 = vpop.permute.xlu1 %3112  ;;  %v3255_v20 = vsel %vm45_vm4, %v3091_v14, %v3211_v36  ;;  %v3254_v29 = vsel %vm45_vm4, %v3090_v6, %v3210_v58 }
0x19de   :  { %v3121_v23 = vsel %vm189_vm3, %v3117_v2, %v3111_v40  ;;  %v3120_v33 = vsel %vm189_vm3, %v3111_v40, %v3113_v27 }
0x19df   :  { %v3122_v51 = vmul.f32 %v3121_v23, %v8609_v53  ;;  %v3123_v30 = vmul.f32 %v3120_v33, %v12678_v37 }
0x19e1   :  { %v3145_v44 = vpop.permute.xlu0 %3144  ;;  %v3099_v54 = vpop.permute.xlu1 %3098  ;;  %v3259_v15 = vsel %vm45_vm4, %v3123_v30, %v3223_v18  ;;  %v3258_v26 = vsel %vm45_vm4, %v3122_v51, %v3222_v10 }
0x19e2   :  { %v7948_v0 = vpack.c.bf16 %v3259_v15, %v3255_v20  ;;  %v7950_v3 = vpack.c.bf16 %v3258_v26, %v3254_v29  ;;  %v3102_v33 = vsel %vm149_vm0, %v3099_v54, %v3101_v19  ;;  %v3103_v6 = vsel %vm149_vm0, %v3097_v45, %v3099_v54 }
0x19e3   :  { %v3109_v15 = vmul.f32 %v3102_v33, %v8625_v5  ;;  %v3108_v10 = vmul.f32 %v3103_v6, %v8622_v63 }
0x19e4   :  { %7949 = vmatprep.subr.bf16.mxu0 %v7948_v0 }
0x19e5   :  { %v3177_v40 = vpop.permute.xlu0 %3176  ;;  %7951 = vmatpush1.bf16.msra.mxu0 %v7950_v3  ;;  %v3131_v1 = vpop.permute.xlu1 %3130  ;;  %v3212_v33 = vrot.slane %v3108_v10, 4 }
0x19e6   :  { %v3134_v14 = vsel %vm229_vm1, %v3131_v1, %v3133_v55  ;;  %v3135_v36 = vsel %vm229_vm1, %v3129_v4, %v3131_v1  ;;  %v3213_v4 = vrot.slane %v3109_v15, 4 }
0x19e7   :  { %v3140_v18 = vmul.f32 %v3135_v36, %v8628_v7  ;;  %v3141_v19 = vmul.f32 %v3134_v14, %v8633_v9 }
0x19e9   :  { %v3083_v35 = vpop.permute.xlu0 %3082  ;;  %v3147_v23 = vpop.permute.xlu1 %3146  ;;  %v3224_v26 = vrot.slane %v3140_v18, 4 }
0x19ea   :  { %v3086_v3 = vsel %vm110_vm2, %v3083_v35, %v3085_v32  ;;  %v3087_v55 = vsel %vm110_vm2, %v3081_v50, %v3083_v35  ;;  %v3151_v20 = vsel %vm269_vm5, %v3145_v44, %v3147_v23  ;;  %v3225_v50 = vrot.slane %v3141_v19, 4 }
0x19eb   :  { %v3093_v51 = vmul.f32 %v3086_v3, %v8675_v43  ;;  %v3092_v54 = vmul.f32 %v3087_v55, %v8671_v42  ;;  %v3155_v36 = vmul.f32 %v3151_v20, %v8679_v47 }
0x19ed   :  { %v3143_v0 = vpop.permute.xlu0 %3142  ;;  %v3179_v58 = vpop.permute.xlu1 %3178  ;;  %v3257_v3 = vsel %vm45_vm4, %v3093_v51, %v3213_v4  ;;  %v3256_v55 = vsel %vm45_vm4, %v3092_v54, %v3212_v33 }
0x19ee   :  { %v3183_v14 = vsel %vm349_vm6, %v3177_v40, %v3179_v58  ;;  %v3152_v18 = vsel %vm269_vm5, %v3143_v0, %v3145_v44 }
0x19ef   :  { %v3187_v10 = vmul.f32 %v3183_v14, %v8683_v48  ;;  %v3154_v4 = vmul.f32 %v3152_v18, %v8722_v52 }
0x19f1   :  { %v3161_v45 = vpop.permute.xlu0 %3160  ;;  %v3115_v30 = vpop.permute.xlu1 %3114  ;;  %v3234_v14 = vrot.slane %v3154_v4, 4 }
0x19f2   :  { %v3118_v32 = vsel %vm189_vm3, %v3115_v30, %v3117_v2  ;;  %v3119_v29 = vsel %vm189_vm3, %v3113_v27, %v3115_v30 }
0x19f3   :  { %v3124_v1 = vmul.f32 %v3119_v29, %v8663_v39  ;;  %v3125_v35 = vmul.f32 %v3118_v32, %v8667_v41  ;;  %v3235_v32 = vrot.slane %v3155_v36, 4 }
0x19f5   :  { %v3149_v6 = vpop.permute.xlu0 %3148  ;;  %v3175_v15 = vpop.permute.xlu1 %3174  ;;  %v3261_v2 = vsel %vm45_vm4, %v3125_v35, %v3225_v50  ;;  %v3260_v27 = vsel %vm45_vm4, %v3124_v1, %v3224_v26  ;;  %v3247_v50 = vrot.slane %v3187_v10, 4 }
0x19f6   :  { %v7956_v19 = vpack.c.bf16 %v3261_v2, %v3257_v3  ;;  %v7958_v30 = vpack.c.bf16 %v3260_v27, %v3256_v55  ;;  %v3184_v20 = vsel %vm349_vm6, %v3175_v15, %v3177_v40  ;;  %v3153_v51 = vsel %vm269_vm5, %v3149_v6, %v3143_v0 }
0x19f7   :  { %v3150_v44 = vsel %vm269_vm5, %v3147_v23, %v3149_v6  ;;  %v3186_v1 = vmul.f32 %v3184_v20, %v8708_v46  ;;  %v3157_v35 = vmul.f32 %v3153_v51, %v8741_v62  ;;  %v3263_v3 = vsel %vm45_vm4, %v10102_v60, %v3235_v32 }
0x19f8   :  { %7957 = vmatprep.subr.bf16.mxu1 %v7956_v19  ;;  %v3156_v36 = vmul.f32 %v3150_v44, %v8736_v59  ;;  %v3262_v32 = vsel %vm45_vm4, %v10094_v21, %v3234_v14 }
0x19f9   :  { %v3181_v29 = vpop.permute.xlu0 %3180  ;;  %7959 = vmatpush1.bf16.msra.mxu1 %v7958_v30  ;;  %v3163_v26 = vpop.permute.xlu1 %3162  ;;  %v3246_v19 = vrot.slane %v3186_v1, 4  ;;  %v3237_v10 = vrot.slane %v3157_v35, 4 }
0x19fa   :  { %v3167_v54 = vsel %vm309_vm7, %v3161_v45, %v3163_v26  ;;  %v3182_v33 = vsel %vm349_vm6, %v3179_v58, %v3181_v29  ;;  %v3185_v0 = vsel %vm349_vm6, %v3181_v29, %v3175_v15  ;;  %v3236_v30 = vrot.slane %v3156_v36, 4 }
0x19fb   :  { %v3171_v40 = vmul.f32 %v3167_v54, %v8725_v24  ;;  %v3188_v58 = vmul.f32 %v3182_v33, %v8745_v8  ;;  %v3189_v55 = vmul.f32 %v3185_v0, %v8752_v31  ;;  %v3265_v35 = vsel %vm45_vm4, %v10104_v13, %v3237_v10 }
0x19fc   :  { %v3264_v14 = vsel %vm45_vm4, %v10127_v34, %v3236_v30 }
0x19fd   :  { %v3193_v23 = vpop.permute.xlu0 %3192  ;;  %v3159_v6 = vpop.permute.xlu1 %3158  ;;  %v3267_v2 = vsel %vm45_vm4, %v3171_v40, %v3247_v50  ;;  %v3248_v54 = vrot.slane %v3188_v58, 4  ;;  %v3249_v50 = vrot.slane %v3189_v55, 4 }
0x19fe   :  { %v3168_v27 = vsel %vm309_vm7, %v3159_v6, %v3161_v45  ;;  %v7952_v18 = vpack.c.bf16 %v3267_v2, %v3263_v3 }
0x19ff   :  { %v3170_v15 = vmul.f32 %v3168_v27, %v8733_v57 }
0x1a00   :  { %7953 = vmatprep.subr.bf16.mxu0 %v7952_v18 }
0x1a01   :  { %v3165_v20 = vpop.permute.xlu1 %3164  ;;  %v3266_v4 = vsel %vm45_vm4, %v3170_v15, %v3246_v19  ;;  %v3191_v51 = vpop.permute.xlu0 %3190  ;;  %v7782_v19 = vld [vmem:[%s12585_s1 + $0x18] sm:$0xf] }
0x1a02   :  { %v3166_v45 = vsel %vm309_vm7, %v3163_v26, %v3165_v20  ;;  %v3169_v29 = vsel %vm309_vm7, %v3165_v20, %v3159_v6  ;;  %v7954_v44 = vpack.c.bf16 %v3266_v4, %v3262_v32  ;;  %v3200_v33 = vsel %vm389_vm8, %v3191_v51, %v3193_v23 }
0x1a03   :  { %v3172_v1 = vmul.f32 %v3166_v45, %v8769_v22  ;;  %v3173_v40 = vmul.f32 %v3169_v29, %v8772_v16  ;;  %v3202_v18 = vmul.f32 %v3200_v33, %v8796_v12 }
0x1a04   :  { %7955 = vmatpush1.bf16.msra.mxu0 %v7954_v44 }
0x1a05   :  { %v3195_v0 = vpop.permute.xlu1 %3194  ;;  %v3269_v26 = vsel %vm45_vm4, %v3173_v40, %v3249_v50  ;;  %v3268_v36 = vsel %vm45_vm4, %v3172_v1, %v3248_v54 }
0x1a06   :  { %v3199_v6 = vsel %vm389_vm8, %v3193_v23, %v3195_v0  ;;  %v7960_v3 = vpack.c.bf16 %v3269_v26, %v3265_v35  ;;  %v7962_v2 = vpack.c.bf16 %v3268_v36, %v3264_v14 }
0x1a07   :  { %v3203_v27 = vmul.f32 %v3199_v6, %v8776_v61 }
0x1a08   :  { %7961 = vmatprep.subr.bf16.mxu1 %v7960_v3 }
0x1a09   :  { %7783 = vmatprep.subr.msk.mxu0 %vm45_vm4, %v3203_v27  ;;  %7963 = vmatpush1.bf16.msra.mxu1 %v7962_v2  ;;  %v3197_v58 = vpop.permute.xlu1 %3196 }
0x1a0a   :  { %v3198_v55 = vsel %vm389_vm8, %v3195_v0, %v3197_v58  ;;  %v3201_v23 = vsel %vm389_vm8, %v3197_v58, %v3191_v51  ;;  %7784 = vmatpush1.msk.msra.mxu0 %vm45_vm4, %v3202_v18 }
0x1a0b   :  { %v3204_v15 = vmul.f32 %v3198_v55, %v8809_v28  ;;  %v3205_v10 = vmul.f32 %v3201_v23, %v8799_v49  ;;  %7785 = vmatmul.mubr.msk.f32.vlgmr.msra.gmra.mrb[12].mxu0 %vm492_vm9, %v7782_v19 }
0x1a0c   :  { %3806 = vmatprep.mubr.f32.mxu0 %v12657_v17 }
0x1a0d   :  { %7786 = vmatprep.subr.msk.mxu1 %vm45_vm4, %v3205_v10 }
0x1a0e   :  { %7787 = vmatpush1.msk.msra.mxu1 %vm45_vm4, %v3204_v15 }
0x1a0f   :  { %7788 = vmatmul.mubr.msk.f32.vlgmr.msra.gmra.mrb[12].mxu1 %vm492_vm9, %v7782_v19 }
0x1a10   :  { %3877 = vmatprep.mubr.f32.mxu1 %v12657_v17 }
0x1a12   :  { %v3274_v30 = vpop.permute.xlu0 %3273 }
0x1ade   :  { %v3357_v20 = vpop.f32.mrb[12].mxu0 }
0x1adf   :  { %v3358_v32 = vadd.f32 %v3357_v20, %v3274_v30  ;;  %v3359_v4 = vpop.f32.mrb[13].mxu0 }
0x1ae0   :  { %v3360_v51 = vadd.f32 %v3359_v4, %v3274_v30 }
0x1ae1   :  { %v3433_v45 = vmul.f32 0.01, %v3358_v32 }
0x1ae2   :  { %v3434_v29 = vmul.f32 0.01, %v3360_v51  ;;  %v3428_v44 = vpop.f32.mrb[12].mxu1 }
0x1ae3   :  { %v10302_v54 = vmax.f32 %v3358_v32, %v3433_v45  ;;  %v3429_v50 = vadd.f32 %v3428_v44, %v3274_v30  ;;  %v3430_v1 = vpop.f32.mrb[13].mxu1 }
0x1ae4   :  { %v10304_v40 = vmax.f32 %v3360_v51, %v3434_v29  ;;  %v3431_v35 = vadd.f32 %v3430_v1, %v3274_v30 }
0x1ae5   :  { %v3441_v33 = vmul.f32 %v10302_v54, %v10302_v54  ;;  %v3435_v0 = vmul.f32 0.01, %v3429_v50 }
0x1ae6   :  { %v3442_v26 = vmul.f32 %v10304_v40, %v10304_v40  ;;  %v3436_v14 = vmul.f32 0.01, %v3431_v35 }
0x1ae7   :  { %v3449_v36 = vrot.slane %v3441_v33, 4  ;;  %v10310_v6 = vmax.f32 %v3429_v50, %v3435_v0 }
0x1ae8   :  { %v3450_v3 = vrot.slane %v3442_v26, 4  ;;  %v10312_v2 = vmax.f32 %v3431_v35, %v3436_v14 }
0x1ae9   :  { %v3457_v27 = vsel %vm45_vm4, %v10302_v54, %v3449_v36  ;;  %v3443_v18 = vmul.f32 %v10310_v6, %v10310_v6 }
0x1aea   :  { %v3458_v19 = vsel %vm45_vm4, %v10304_v40, %v3450_v3  ;;  %v3444_v58 = vmul.f32 %v10312_v2, %v10312_v2 }
0x1aeb   :  { %v3451_v55 = vrot.slane %v3443_v18, 4  ;;  %v3461_v23 = vadd.f32 %v3458_v19, %v3457_v27 }
0x1aec   :  { %v3452_v15 = vrot.slane %v3444_v58, 4 }
0x1aed   :  { %v3459_v10 = vsel %vm45_vm4, %v10310_v6, %v3451_v55 }
0x1aee   :  { %v3460_v30 = vsel %vm45_vm4, %v10312_v2, %v3452_v15  ;;  %v3462_v20 = vadd.f32 %v3461_v23, %v3459_v10 }
0x1af0   :  { %v3463_v32 = vadd.f32 %v3462_v20, %v3460_v30 }
0x1af2   :  { %3464 = vadd.xlane.f32.xlu1 %v3463_v32 }
0x1b7f   :  { %v3465_v4 = vpop.xlane.xlu1 %3464 }
0x1b80   :  { %v3474_v51 = vrot.slane %v3465_v4, 4  ;;  %v3466_v19 = vmul.f32 0.001953125, %v3465_v4  ;;  %v10330_v4 = vld [vmem:[%s12586_s3] sm:$0xf] }
0x1b81   :  { %12679 = vst [vmem:[#allocation10_spill] sm:$0xff] %v10330_v4 }
0x1b82   :  { %v3476_v45 = vsel %vm693_vm10, %v3474_v51, 0.0  ;;  %v3467_v58 = vmul.f32 %v3466_v19, %v3466_v19 }
0x1b83   :  { %3477 = vadd.xlane.f32.xlu0 %v3476_v45 }
0x1b84   :  { %v3469_v55 = vrot.slane %v3467_v58, 4 }
0x1b86   :  { %v3471_v23 = vsub.f32 %v3466_v19, %v3469_v55 }
0x1b88   :  { %v3472_v15 = vmax.f32 %v3471_v23, 0.0 }
0x1c10   :  { %v3478_v29 = vpop.xlane.xlu0 %3477 }
0x1c11   :  { %v3479_v44 = vrot.slane %v3478_v29, 4 }
0x1c13   :  { %v3480_v50 = vadd.f32 %v3479_v44, %v3478_v29 }
0x1c15   :  { %v3481_v1 = vrot.slane %v3480_v50, 2 }
0x1c17   :  { %v3482_v35 = vadd.f32 %v3481_v1, %v3480_v50 }
0x1c19   :  { %v3483_v33 = vrot.slane %v3482_v35, 1 }
0x1c1b   :  { %v3484_v0 = vadd.f32 %v3483_v33, %v3482_v35  ;;  %v10336_v35 = vld [vmem:[%s12587_s4] sm:$0xf] }
0x1c1c   :  { %12680 = vst [vmem:[#allocation11_spill] sm:$0xff] %v10336_v35 }
0x1c1d   :  { %8132 = vpush %v3484_v0 }
0x1c4e   :  { %s8133_s26 = spop %8132 }
0x1c4f   :  { %v3486_v26 = vstv %s8133_s26 }
0x1c50   :  { %8278 = vrsqrt.f32 %v3486_v26  ;;  %vm3489_vm13 = vcmp.eq.f32.partialorder %v3486_v26, inf  ;;  %v3492_v3 = vand.u32 2147483648, %v3486_v26  ;;  %vm3491_vm14 = vcmp.eq.f32.partialorder %v3486_v26, 0.0 }
0x1c5a   :  { %v8279_v14 = vpop.eup %8278 }
0x1c5b   :  { %v3488_v36 = vmul.f32 %v8279_v14, %v3486_v26 }
0x1c5d   :  { %v3490_v27 = vsel %vm3489_vm13, %v3486_v26, %v3488_v36 }
0x1c5e   :  { %v3493_v18 = vsel %vm3491_vm14, %v3492_v3, %v3490_v27 }
0x1c5f   :  { %8134 = vpush %v3493_v18 }
0x1c90   :  { %s8135_s27 = spop %8134 }
0x1c91   :  { %s3495_s28 = sadd.f32 1e-06, %s8135_s27 }
0x1c93   :  { %s3496_s9 = smul.f32 %s3495_s28, %s3495_s28  ;;  %v3501_v51 = vstv %s3495_s28  ;;  %s8371_s28 = smov 7  }
0x1c95   :  { %v3497_v10 = vstv %s3496_s9 }
0x1c96   :  { %v3498_v30 = vmul.f32 %v3497_v10, %v3472_v15 }
0x1c98   :  { %v3499_v20 = vadd.f32 1e-05, %v3498_v30 }
0x1c9a   :  { %8280 = vrsqrt.f32 %v3499_v20 }
0x1ca4   :  { %v8281_v32 = vpop.eup %8280 }
0x1ca5   :  { %v3502_v45 = vmul.f32 %v8281_v32, %v3501_v51 }
0x1ca7   :  { %v3504_v29 = vrot.slane %v3502_v45, 4 }
0x1ca9   :  { %3505 = vrot.lane.b32.xlu1 %v3504_v29, %s8369_s10 }
0x1d1b   :  { %v3506_v44 = vpop.permute.xlu1 %3505 }
0x1d1c   :  { %v3508_v50 = vmul.f32 %v10330_v4, %v3506_v44 }
0x1d1e   :  { %v3518_v1 = vmul.f32 %v3508_v50, %v3466_v19  ;;  %3511 = vperm.xlu0 %8223, %v3508_v50   ;;  %v12681_v19 = vmov 3   ;;  %v12682_v50 = vld [vmem:[#allocation5_spill] sm:$0xff] }
0x1d20   :  { %v3519_v33 = vsub.f32 %v10336_v35, %v3518_v1 }
0x1d22   :  { %3522 = vperm.xlu1 %8224, %v3519_v33  }
0x1d9d   :  { %v3512_v0 = vpop.permute.xlu0 %3511 }
0x1d9e   :  { %v3514_v26 = vmul.f32 %v3512_v0, %v10302_v54  ;;  %v3515_v14 = vmul.f32 %v3512_v0, %v10304_v40  ;;  %v3517_v18 = vmul.f32 %v3512_v0, %v10312_v2  ;;  %v3516_v40 = vmul.f32 %v3512_v0, %v10310_v6 }
0x1d9f   :  { %v12620_v6 = vmov 7  }
0x1da0   :  { %8225 = vset.pattern.permute.xlu1 %v12620_v6  ;;  %8227 = vset.pattern.permute.xlu0 %v12620_v6 }
0x1da1   :  { %v3523_v36 = vpop.permute.xlu1 %3522 }
0x1da2   :  { %v10341_v3 = vadd.f32 %v3523_v36, %v3514_v26  ;;  %v10343_v27 = vadd.f32 %v3523_v36, %v3515_v14  ;;  %v10354_v54 = vadd.f32 %v3523_v36, %v3517_v18  ;;  %v10369_v2 = vadd.f32 %v3523_v36, %v3516_v40 }
0x1da4   :  { %3547 = vrot.lane.b32.xlu0 %v10343_v27, %s8349_s30  ;;  %3545 = vrot.lane.b32.xlu1 %v10341_v3, %s8349_s30 }
0x1da8   :  { %3579 = vrot.lane.b32.xlu0 %v10343_v27, %s8348_s29  ;;  %3577 = vrot.lane.b32.xlu1 %v10341_v3, %s8348_s29 }
0x1dac   :  { %3583 = vrot.lane.b32.xlu0 %v10354_v54, %s8348_s29  ;;  %3551 = vrot.lane.b32.xlu1 %v10354_v54, %s8349_s30 }
0x1db0   :  { %3531 = vrot.lane.b32.xlu0 %v10343_v27, %s8350_s11  ;;  %3529 = vrot.lane.b32.xlu1 %v10341_v3, %s8350_s11 }
0x1db4   :  { %3563 = vrot.lane.b32.xlu0 %v10343_v27, %s8351_s12  ;;  %3561 = vrot.lane.b32.xlu1 %v10341_v3, %s8351_s12 }
0x1db8   :  { %3549 = vrot.lane.b32.xlu0 %v10369_v2, %s8349_s30  ;;  %3535 = vrot.lane.b32.xlu1 %v10354_v54, %s8350_s11 }
0x1dbc   :  { %3581 = vrot.lane.b32.xlu0 %v10369_v2, %s8348_s29  ;;  %3567 = vrot.lane.b32.xlu1 %v10354_v54, %s8351_s12 }
0x1dc0   :  { %3597 = vrot.lane.b32.xlu0 %v10369_v2, %s8352_s13  ;;  %3595 = vrot.lane.b32.xlu1 %v10343_v27, %s8352_s13 }
0x1dc4   :  { %3629 = vrot.lane.b32.xlu0 %v10369_v2, %s8353_s14  ;;  %3627 = vrot.lane.b32.xlu1 %v10343_v27, %s8353_s14 }
0x1dc8   :  { %3565 = vrot.lane.b32.xlu0 %v10369_v2, %s8351_s12  ;;  %3533 = vrot.lane.b32.xlu1 %v10369_v2, %s8350_s11 }
0x1dcc   :  { %3625 = vrot.lane.b32.xlu0 %v10341_v3, %s8353_s14  ;;  %3593 = vrot.lane.b32.xlu1 %v10341_v3, %s8352_s13 }
0x1dd0   :  { %3613 = vrot.lane.b32.xlu0 %v10369_v2, %s8354_s15  ;;  %3611 = vrot.lane.b32.xlu1 %v10343_v27, %s8354_s15 }
0x1dd4   :  { %3609 = vrot.lane.b32.xlu0 %v10341_v3, %s8354_s15  ;;  %3599 = vrot.lane.b32.xlu1 %v10354_v54, %s8352_s13 }
0x1dd8   :  { %3615 = vrot.lane.b32.xlu0 %v10354_v54, %s8354_s15  ;;  %3631 = vrot.lane.b32.xlu1 %v10354_v54, %s8353_s14 }
0x1ddc   :  { %3645 = vrot.lane.b32.xlu0 %v10369_v2, %s8357_s16  ;;  %3643 = vrot.lane.b32.xlu1 %v10343_v27, %s8357_s16 }
0x1de0   :  { %3647 = vrot.lane.b32.xlu0 %v10354_v54, %s8357_s16  ;;  %3641 = vrot.lane.b32.xlu1 %v10341_v3, %s8357_s16 }
0x1de4   :  { %3724 = vperm.xlu1 %8225, %v10170_v56  }
0x1de8   :  { %8226 = vset.pattern.permute.xlu1 %v12681_v19 }
0x1e16   :  { %v3548_v58 = vpop.permute.xlu0 %3547  ;;  %v3546_v55 = vpop.permute.xlu1 %3545 }
0x1e17   :  { %v3555_v20 = vsel %vm149_vm0, %v3546_v55, %v3548_v58 }
0x1e18   :  { %v3558_v56 = vmul.f32 %v3555_v20, %v12660_v25  ;;  %v12684_v25 = vld [vmem:[#allocation8_spill] sm:$0xff] }
0x1e1a   :  { %v3580_v23 = vpop.permute.xlu0 %3579  ;;  %v3578_v15 = vpop.permute.xlu1 %3577  ;;  %v3662_v14 = vrot.slane %v3558_v56, 4  ;;  %v12683_v56 = vld [vmem:[#allocation7_spill] sm:$0xff] }
0x1e1b   :  { %v3587_v32 = vsel %vm229_vm1, %v3578_v15, %v3580_v23 }
0x1e1c   :  { %v3590_v44 = vmul.f32 %v3587_v32, %v12676_v38 }
0x1e1e   :  { %v3584_v10 = vpop.permute.xlu0 %3583  ;;  %v3552_v30 = vpop.permute.xlu1 %3551  ;;  %v3674_v36 = vrot.slane %v3590_v44, 4 }
0x1e1f   :  { %v3588_v40 = vsel %vm229_vm1, %v3584_v10, %v3578_v15  ;;  %v3556_v19 = vsel %vm149_vm0, %v3552_v30, %v3546_v55 }
0x1e20   :  { %v3589_v44 = vmul.f32 %v3588_v40, %v12683_v56 }
0x1e22   :  { %v3532_v51 = vpop.permute.xlu0 %3531  ;;  %v3530_v45 = vpop.permute.xlu1 %3529  ;;  %v3673_v13 = vrot.slane %v3589_v44, 4 }
0x1e23   :  { %v3539_v29 = vsel %vm110_vm2, %v3530_v45, %v3532_v51 }
0x1e24   :  { %v3542_v1 = vmul.f32 %v3539_v29, %v12682_v50 }
0x1e26   :  { %v3564_v33 = vpop.permute.xlu0 %3563  ;;  %v3562_v0 = vpop.permute.xlu1 %3561  ;;  %v3706_v32 = vsel %vm45_vm4, %v3542_v1, %v3662_v14 }
0x1e27   :  { %v3571_v26 = vsel %vm189_vm3, %v3562_v0, %v3564_v33 }
0x1e28   :  { %v3574_v18 = vmul.f32 %v3571_v26, %v12678_v37  ;;  %v3557_v26 = vmul.f32 %v3556_v19, %v12684_v25  ;;  %v12685_v37 = vld [vmem:[#allocation9_spill] sm:$0xff] }
0x1e2a   :  { %v3550_v20 = vpop.permute.xlu0 %3549  ;;  %v3536_v6 = vpop.permute.xlu1 %3535  ;;  %v3710_v29 = vsel %vm45_vm4, %v3574_v18, %v3674_v36  ;;  %v3661_v1 = vrot.slane %v3557_v26, 4 }
0x1e2b   :  { %v3540_v50 = vsel %vm110_vm2, %v3536_v6, %v3530_v45  ;;  %v7964_v38 = vpack.c.bf16 %v3710_v29, %v3706_v32  ;;  %v3554_v45 = vsel %vm149_vm0, %v3548_v58, %v3550_v20 }
0x1e2c   :  { %v3541_v15 = vmul.f32 %v3540_v50, %v12685_v37  ;;  %v3553_v50 = vsel %vm149_vm0, %v3550_v20, %v3552_v30  ;;  %v3559_v29 = vmul.f32 %v3554_v45, %v8622_v63 }
0x1e2d   :  { %7965 = vmatprep.subr.bf16.mxu0 %v7964_v38  ;;  %v3560_v58 = vmul.f32 %v3553_v50, %v8625_v5 }
0x1e2e   :  { %v3582_v35 = vpop.permute.xlu0 %3581  ;;  %v3568_v4 = vpop.permute.xlu1 %3567  ;;  %v3705_v40 = vsel %vm45_vm4, %v3541_v15, %v3661_v1 }
0x1e2f   :  { %v3572_v55 = vsel %vm189_vm3, %v3568_v4, %v3562_v0  ;;  %v3585_v19 = vsel %vm229_vm1, %v3582_v35, %v3584_v10  ;;  %v3586_v0 = vsel %vm229_vm1, %v3580_v23, %v3582_v35  ;;  %v3664_v30 = vrot.slane %v3560_v58, 4 }
0x1e30   :  { %v3573_v14 = vmul.f32 %v3572_v55, %v8609_v53  ;;  %v3591_v44 = vmul.f32 %v3586_v0, %v8628_v7  ;;  %v3592_v26 = vmul.f32 %v3585_v19, %v8633_v9  ;;  %v3663_v55 = vrot.slane %v3559_v29, 4 }
0x1e32   :  { %v3598_v36 = vpop.permute.xlu0 %3597  ;;  %v3596_v18 = vpop.permute.xlu1 %3595  ;;  %v3709_v38 = vsel %vm45_vm4, %v3573_v14, %v3673_v13  ;;  %v3675_v20 = vrot.slane %v3591_v44, 4  ;;  %v3676_v1 = vrot.slane %v3592_v26, 4 }
0x1e33   :  { %v7966_v32 = vpack.c.bf16 %v3709_v38, %v3705_v40  ;;  %v3602_v10 = vsel %vm269_vm5, %v3596_v18, %v3598_v36 }
0x1e34   :  { %v3606_v29 = vmul.f32 %v3602_v10, %v8679_v47 }
0x1e35   :  { %7967 = vmatpush1.bf16.msra.mxu0 %v7966_v32 }
0x1e36   :  { %v3630_v13 = vpop.permute.xlu0 %3629  ;;  %v3628_v15 = vpop.permute.xlu1 %3627 }
0x1e3a   :  { %v3566_v35 = vpop.permute.xlu0 %3565  ;;  %v3534_v23 = vpop.permute.xlu1 %3533 }
0x1e3b   :  { %v3569_v14 = vsel %vm189_vm3, %v3566_v35, %v3568_v4  ;;  %v3570_v45 = vsel %vm189_vm3, %v3564_v33, %v3566_v35  ;;  %v3537_v40 = vsel %vm110_vm2, %v3534_v23, %v3536_v6  ;;  %v3538_v38 = vsel %vm110_vm2, %v3532_v51, %v3534_v23 }
0x1e3c   :  { %v3575_v50 = vmul.f32 %v3570_v45, %v8663_v39  ;;  %v3576_v19 = vmul.f32 %v3569_v14, %v8667_v41  ;;  %v3543_v0 = vmul.f32 %v3538_v38, %v8671_v42  ;;  %v3544_v32 = vmul.f32 %v3537_v40, %v8675_v43 }
0x1e3d   :  { %v3634_v4 = vsel %vm349_vm6, %v3628_v15, %v3630_v13  ;;  %v3686_v40 = vrot.slane %v3606_v29, 4 }
0x1e3e   :  { %v3626_v33 = vpop.permute.xlu0 %3625  ;;  %v3594_v58 = vpop.permute.xlu1 %3593  ;;  %v3708_v6 = vsel %vm45_vm4, %v3544_v32, %v3664_v30  ;;  %v3712_v44 = vsel %vm45_vm4, %v3576_v19, %v3676_v1  ;;  %v3707_v51 = vsel %vm45_vm4, %v3543_v0, %v3663_v55  ;;  %v3711_v26 = vsel %vm45_vm4, %v3575_v50, %v3675_v20 }
0x1e3f   :  { %v3635_v35 = vsel %vm349_vm6, %v3626_v33, %v3628_v15  ;;  %v7972_v23 = vpack.c.bf16 %v3712_v44, %v3708_v6  ;;  %v7974_v14 = vpack.c.bf16 %v3711_v26, %v3707_v51  ;;  %v3638_v10 = vmul.f32 %v3634_v4, %v8683_v48 }
0x1e40   :  { %v3603_v45 = vsel %vm269_vm5, %v3594_v58, %v3596_v18  ;;  %v3637_v30 = vmul.f32 %v3635_v35, %v8708_v46  ;;  %v3714_v18 = vsel %vm45_vm4, %v10343_v27, %v3686_v40 }
0x1e41   :  { %7973 = vmatprep.subr.bf16.mxu1 %v7972_v23  ;;  %v3698_v20 = vrot.slane %v3638_v10, 4  ;;  %v3605_v15 = vmul.f32 %v3603_v45, %v8722_v52 }
0x1e42   :  { %v3614_v38 = vpop.permute.xlu0 %3613  ;;  %7975 = vmatpush1.bf16.msra.mxu1 %v7974_v14  ;;  %v3612_v1 = vpop.permute.xlu1 %3611  ;;  %v3697_v19 = vrot.slane %v3637_v30, 4 }
0x1e43   :  { %v3618_v55 = vsel %vm309_vm7, %v3612_v1, %v3614_v38  ;;  %v3685_v26 = vrot.slane %v3605_v15, 4 }
0x1e44   :  { %v3622_v50 = vmul.f32 %v3618_v55, %v8725_v24 }
0x1e46   :  { %v3610_v0 = vpop.permute.xlu0 %3609  ;;  %v3600_v32 = vpop.permute.xlu1 %3599  ;;  %v3718_v29 = vsel %vm45_vm4, %v3622_v50, %v3698_v20  ;;  %v3713_v50 = vsel %vm45_vm4, %v10341_v3, %v3685_v26 }
0x1e47   :  { %v3619_v4 = vsel %vm309_vm7, %v3610_v0, %v3612_v1  ;;  %v3601_v6 = vsel %vm269_vm5, %v3598_v36, %v3600_v32  ;;  %v3604_v44 = vsel %vm269_vm5, %v3600_v32, %v3594_v58  ;;  %v7968_v51 = vpack.c.bf16 %v3718_v29, %v3714_v18 }
0x1e48   :  { %v3621_v35 = vmul.f32 %v3619_v4, %v8733_v57  ;;  %v3607_v23 = vmul.f32 %v3601_v6, %v8736_v59  ;;  %v3608_v14 = vmul.f32 %v3604_v44, %v8741_v62 }
0x1e49   :  { %7969 = vmatprep.subr.bf16.mxu0 %v7968_v51 }
0x1e4a   :  { %v3688_v27 = vrot.slane %v3608_v14, 4  ;;  %v3616_v10 = vpop.permute.xlu0 %3615  ;;  %v3632_v45 = vpop.permute.xlu1 %3631  ;;  %v3717_v40 = vsel %vm45_vm4, %v3621_v35, %v3697_v19  ;;  %v3687_v55 = vrot.slane %v3607_v23, 4 }
0x1e4b   :  { %v3617_v36 = vsel %vm309_vm7, %v3614_v38, %v3616_v10  ;;  %v3620_v58 = vsel %vm309_vm7, %v3616_v10, %v3610_v0  ;;  %v3633_v30 = vsel %vm349_vm6, %v3630_v13, %v3632_v45  ;;  %v3636_v1 = vsel %vm349_vm6, %v3632_v45, %v3626_v33 }
0x1e4c   :  { %v3639_v20 = vmul.f32 %v3633_v30, %v8745_v8  ;;  %v3640_v15 = vmul.f32 %v3636_v1, %v8752_v31  ;;  %v7970_v19 = vpack.c.bf16 %v3717_v40, %v3713_v50  ;;  %v3623_v38 = vmul.f32 %v3617_v36, %v8769_v22  ;;  %v7789_v40 = vld [vmem:[%s12585_s1 + $0x1c] sm:$0xf] }
0x1e4d   :  { %v3624_v32 = vmul.f32 %v3620_v58, %v8772_v16  ;;  %v3716_v4 = vsel %vm45_vm4, %v10354_v54, %v3688_v27  ;;  %v3715_v44 = vsel %vm45_vm4, %v10369_v2, %v3687_v55  ;;  %v3016_v50 = vmul.f32 %v10094_v21, %v10094_v21 }
0x1e4e   :  { %v3699_v0 = vrot.slane %v3639_v20, 4  ;;  %v3700_v18 = vrot.slane %v3640_v15, 4  ;;  %v3646_v29 = vpop.permute.xlu0 %3645  ;;  %v3644_v13 = vpop.permute.xlu1 %3643  ;;  %7971 = vmatpush1.bf16.msra.mxu0 %v7970_v19  ;;  %v3017_v19 = vmul.f32 %v10102_v60, %v10102_v60 }
0x1e4f   :  { %v3650_v33 = vsel %vm389_vm8, %v3644_v13, %v3646_v29 }
0x1e50   :  { %v3654_v6 = vmul.f32 %v3650_v33, %v8776_v61  ;;  %v3720_v3 = vsel %vm45_vm4, %v3624_v32, %v3700_v18  ;;  %v3719_v51 = vsel %vm45_vm4, %v3623_v38, %v3699_v0 }
0x1e51   :  { %v7976_v26 = vpack.c.bf16 %v3720_v3, %v3716_v4  ;;  %v7978_v35 = vpack.c.bf16 %v3719_v51, %v3715_v44  ;;  %v3024_v3 = vrot.slane %v3016_v50, 4  ;;  %v3025_v44 = vrot.slane %v3017_v19, 4 }
0x1e52   :  { %v3648_v23 = vpop.permute.xlu0 %3647  ;;  %7790 = vmatprep.subr.msk.mxu0 %vm45_vm4, %v3654_v6  ;;  %v3642_v14 = vpop.permute.xlu1 %3641 }
0x1e53   :  { %v3649_v10 = vsel %vm389_vm8, %v3646_v29, %v3648_v23  ;;  %v3651_v54 = vsel %vm389_vm8, %v3642_v14, %v3644_v13  ;;  %v3652_v27 = vsel %vm389_vm8, %v3648_v23, %v3642_v14  ;;  %7977 = vmatprep.subr.bf16.mxu1 %v7976_v26  ;;  %v3018_v14 = vmul.f32 %v10127_v34, %v10127_v34 }
0x1e54   :  { %v3653_v2 = vmul.f32 %v3651_v54, %v8796_v12  ;;  %v3656_v45 = vmul.f32 %v3652_v27, %v8799_v49  ;;  %7979 = vmatpush1.bf16.msra.mxu1 %v7978_v35  ;;  %v3655_v36 = vmul.f32 %v3649_v10, %v8809_v28 }
0x1e56   :  { %7791 = vmatpush1.msk.msra.mxu0 %vm45_vm4, %v3653_v2  ;;  %7793 = vmatprep.subr.msk.mxu1 %vm45_vm4, %v3656_v45  ;;  %v3032_v45 = vsel %vm45_vm4, %v10094_v21, %v3024_v3 }
0x1e57   :  { %7792 = vmatmul.mubr.msk.f32.vlgmr.msra.gmra.mrb[14].mxu0 %vm492_vm9, %v7789_v40 }
0x1e58   :  { %7794 = vmatpush1.msk.msra.mxu1 %vm45_vm4, %v3655_v36  ;;  %4321 = vmatprep.mubr.f32.mxu0 %v12657_v17 }
0x1e59   :  { %7795 = vmatmul.mubr.msk.f32.vlgmr.msra.gmra.mrb[14].mxu1 %vm492_vm9, %v7789_v40  ;;  %v3033_v40 = vsel %vm45_vm4, %v10102_v60, %v3025_v44 }
0x1e5a   :  { %4392 = vmatprep.mubr.f32.mxu1 %v12657_v17 }
0x1e63   :  { %v3725_v58 = vpop.permute.xlu1 %3724 }
0x1f2a   :  { %v3808_v30 = vpop.f32.mrb[14].mxu0 }
0x1f2b   :  { %v3809_v1 = vadd.f32 %v3808_v30, %v3725_v58  ;;  %v3810_v55 = vpop.f32.mrb[15].mxu0 }
0x1f2c   :  { %v3811_v20 = vadd.f32 %v3810_v55, %v3725_v58  ;;  %v3879_v15 = vpop.f32.mrb[14].mxu1  ;;  %v12686_v55 = vld [vmem:[#allocation2_spill] sm:$0xff] }
0x1f2d   :  { %v3884_v38 = vmul.f32 0.01, %v3809_v1  ;;  %v3880_v32 = vadd.f32 %v3879_v15, %v3725_v58  ;;  %v3881_v0 = vpop.f32.mrb[15].mxu1  ;;  %v3026_v15 = vrot.slane %v3018_v14, 4 }
0x1f2e   :  { %v3885_v18 = vmul.f32 0.01, %v3811_v20  ;;  %v3882_v29 = vadd.f32 %v3881_v0, %v3725_v58 }
0x1f2f   :  { %v10550_v13 = vmax.f32 %v3809_v1, %v3884_v38  ;;  %v3886_v33 = vmul.f32 0.01, %v3880_v32  ;;  %v3036_v38 = vadd.f32 %v3033_v40, %v3032_v45 }
0x1f30   :  { %v10552_v4 = vmax.f32 %v3811_v20, %v3885_v18  ;;  %v3887_v6 = vmul.f32 0.01, %v3882_v29  ;;  %v3019_v20 = vmul.f32 %v12686_v55, %v12686_v55 }
0x1f31   :  { %v10554_v51 = vmax.f32 %v3880_v32, %v3886_v33  ;;  %v3892_v26 = vmul.f32 %v10550_v13, %v10550_v13 }
0x1f32   :  { %v3893_v35 = vmul.f32 %v10552_v4, %v10552_v4  ;;  %v10560_v23 = vmax.f32 %v3882_v29, %v3887_v6  ;;  %v3027_v18 = vrot.slane %v3019_v20, 4  ;;  %v3034_v29 = vsel %vm45_vm4, %v10127_v34, %v3026_v15 }
0x1f33   :  { %v3894_v10 = vmul.f32 %v10554_v51, %v10554_v51  ;;  %v3900_v54 = vrot.slane %v3892_v26, 4  ;;  %v3037_v6 = vadd.f32 %v3036_v38, %v3034_v29 }
0x1f34   :  { %v3901_v27 = vrot.slane %v3893_v35, 4  ;;  %v3895_v2 = vmul.f32 %v10560_v23, %v10560_v23  ;;  %v3035_v3 = vsel %vm45_vm4, %v12686_v55, %v3027_v18 }
0x1f35   :  { %v3902_v36 = vrot.slane %v3894_v10, 4  ;;  %v3908_v58 = vsel %vm45_vm4, %v10550_v13, %v3900_v54  ;;  %v3038_v44 = vadd.f32 %v3037_v6, %v3035_v3 }
0x1f36   :  { %v3909_v30 = vsel %vm45_vm4, %v10552_v4, %v3901_v27  ;;  %v3903_v1 = vrot.slane %v3895_v2, 4 }
0x1f37   :  { %v3910_v50 = vsel %vm45_vm4, %v10554_v51, %v3902_v36  ;;  %v3912_v19 = vadd.f32 %v3909_v30, %v3908_v58 }
0x1f38   :  { %v3911_v0 = vsel %vm45_vm4, %v10560_v23, %v3903_v1 }
0x1f39   :  { %v3913_v32 = vadd.f32 %v3912_v19, %v3910_v50 }
0x1f3b   :  { %v3914_v33 = vadd.f32 %v3913_v32, %v3911_v0 }
0x1f3d   :  { %3915 = vadd.xlane.f32.xlu0 %v3914_v33 }
0x1f41   :  { %3039 = vadd.xlane.f32.xlu0 %v3038_v44 }
0x1fca   :  { %v3916_v26 = vpop.xlane.xlu0 %3915 }
0x1fcb   :  { %v3925_v35 = vrot.slane %v3916_v26, 4  ;;  %v3917_v44 = vmul.f32 0.001953125, %v3916_v26 }
0x1fcd   :  { %v3927_v14 = vsel %vm693_vm10, %v3925_v35, 0.0  ;;  %v3918_v35 = vmul.f32 %v3917_v44, %v3917_v44 }
0x1fce   :  { %3928 = vadd.xlane.f32.xlu1 %v3927_v14  ;;  %v3040_v10 = vpop.xlane.xlu0 %3039 }
0x1fcf   :  { %v3041_v54 = vmul.f32 0.001953125, %v3040_v10  ;;  %v3920_v14 = vrot.slane %v3918_v35, 4 }
0x1fd1   :  { %v3042_v27 = vmul.f32 %v3041_v54, %v3041_v54  ;;  %v3922_v10 = vsub.f32 %v3917_v44, %v3920_v14 }
0x1fd3   :  { %v3044_v2 = vrot.slane %v3042_v27, 4  ;;  %v3923_v27 = vmax.f32 %v3922_v10, 0.0 }
0x1fd5   :  { %v3046_v45 = vsub.f32 %v3041_v54, %v3044_v2 }
0x1fd7   :  { %v3047_v40 = vmax.f32 %v3046_v45, 0.0 }
0x1fd9   :  { %v3050_v36 = vadd.f32 1e-05, %v3047_v40 }
0x1fdb   :  { %8282 = vrsqrt.f32 %v3050_v36 }
0x1fe5   :  { %v8283_v58 = vpop.eup %8282 }
0x1fe6   :  { %v3053_v30 = vrot.slane %v8283_v58, 4  ;;  %v3048_v58 = vld [vmem:[%s12588_s5] sm:$0xf] }
0x1fe8   :  { %3054 = vrot.lane.b32.xlu0 %v3053_v30, %s8363_s17 }
0x205a   :  { %v3055_v30 = vpop.permute.xlu0 %3054 }
0x205b   :  { %v3929_v1 = vpop.xlane.xlu1 %3928  ;;  %v3057_v26 = vmul.f32 %v3055_v30, %v3048_v58 }
0x205c   :  { %v3930_v20 = vrot.slane %v3929_v1, 4 }
0x205e   :  { %v3931_v15 = vadd.f32 %v3930_v20, %v3929_v1 }
0x2060   :  { %v3932_v50 = vrot.slane %v3931_v15, 2 }
0x2062   :  { %v3933_v19 = vadd.f32 %v3932_v50, %v3931_v15  ;;  %v3067_v50 = vmul.f32 %v3057_v26, %v3041_v54 }
0x2064   :  { %v3934_v38 = vrot.slane %v3933_v19, 1 }
0x2066   :  { %v3935_v32 = vadd.f32 %v3934_v38, %v3933_v19  ;;  %v3049_v19 = vld [vmem:[%s12589_s6] sm:$0xf] }
0x2067   :  { %v3068_v38 = vsub.f32 %v3049_v19, %v3067_v50 }
0x2068   :  { %8136 = vpush %v3935_v32  ;;  %v12687_v32 = vmov 7  }
0x2099   :  { %s8137_s22 = spop %8136 }
0x209a   :  { %v3937_v0 = vstv %s8137_s22 }
0x209b   :  { %8284 = vrsqrt.f32 %v3937_v0  ;;  %vm3940_vm15 = vcmp.eq.f32.partialorder %v3937_v0, inf  ;;  %v3943_v33 = vand.u32 2147483648, %v3937_v0  ;;  %vm3942_vm11 = vcmp.eq.f32.partialorder %v3937_v0, 0.0 }
0x20a5   :  { %v8285_v18 = vpop.eup %8284 }
0x20a6   :  { %v3939_v29 = vmul.f32 %v8285_v18, %v3937_v0  ;;  %v12688_v18 = vld [vmem:[#allocation10_spill] sm:$0xff] }
0x20a8   :  { %v3941_v6 = vsel %vm3940_vm15, %v3937_v0, %v3939_v29 }
0x20a9   :  { %v3944_v3 = vsel %vm3942_vm11, %v3943_v33, %v3941_v6  ;;  %v12689_v6 = vld [vmem:[#allocation11_spill] sm:$0xff] }
0x20aa   :  { %8138 = vpush %v3944_v3 }
0x20db   :  { %s8139_s17 = spop %8138 }
0x20dc   :  { %s3946_s23 = sadd.f32 1e-06, %s8139_s17 }
0x20de   :  { %s3947_s25 = smul.f32 %s3946_s23, %s3946_s23  ;;  %v3952_v1 = vstv %s3946_s23  ;;  %s8373_s23 = smov 8  }
0x20e0   :  { %v3948_v2 = vstv %s3947_s25 }
0x20e1   :  { %v3949_v45 = vmul.f32 %v3948_v2, %v3923_v27 }
0x20e3   :  { %v3950_v40 = vadd.f32 1e-05, %v3949_v45 }
0x20e5   :  { %8286 = vrsqrt.f32 %v3950_v40 }
0x20ef   :  { %v8287_v36 = vpop.eup %8286 }
0x20f0   :  { %v3953_v20 = vmul.f32 %v8287_v36, %v3952_v1 }
0x20f2   :  { %v3955_v15 = vrot.slane %v3953_v20, 4 }
0x20f4   :  { %3956 = vrot.lane.b32.xlu1 %v3955_v15, %s8371_s28 }
0x20f8   :  { %3060 = vperm.xlu1 %8226, %v3057_v26  }
0x20fc   :  { %3071 = vperm.xlu1 %8226, %v3068_v38  }
0x2100   :  { %8228 = vset.pattern.permute.xlu1 %v12687_v32 }
0x2166   :  { %v3957_v0 = vpop.permute.xlu1 %3956 }
0x2167   :  { %v3959_v29 = vmul.f32 %v12688_v18, %v3957_v0 }
0x2169   :  { %v3969_v33 = vmul.f32 %v3959_v29, %v3917_v44  ;;  %3962 = vperm.xlu0 %8227, %v3959_v29  }
0x216b   :  { %v3970_v3 = vsub.f32 %v12689_v6, %v3969_v33 }
0x216d   :  { %3973 = vperm.xlu1 %8228, %v3970_v3  }
0x2177   :  { %v3061_v35 = vpop.permute.xlu1 %3060 }
0x2178   :  { %v3063_v10 = vmul.f32 %v3061_v35, %v10094_v21  ;;  %v3064_v27 = vmul.f32 %v3061_v35, %v10102_v60  ;;  %v3066_v21 = vmul.f32 %v3061_v35, %v12686_v55  ;;  %v3065_v55 = vmul.f32 %v3061_v35, %v10127_v34 }
0x2179   :  { %v8372_v34 = vmov 8  }
0x217a   :  { %8229 = vset.pattern.permute.xlu0 %v8372_v34  ;;  %8230 = vset.pattern.permute.xlu1 %v8372_v34 }
0x217b   :  { %v3072_v14 = vpop.permute.xlu1 %3071 }
0x217c   :  { %v3074_v36 = vadd.f32 %v3072_v14, %v3063_v10  ;;  %v3075_v58 = vadd.f32 %v3072_v14, %v3064_v27  ;;  %v3076_v50 = vadd.f32 %v3072_v14, %v3065_v55  ;;  %v12691_v27 = vld [vmem:[#allocation4_spill] sm:$0xff] }
0x21e8   :  { %v3963_v54 = vpop.permute.xlu0 %3962 }
0x21e9   :  { %v3965_v2 = vmul.f32 %v3963_v54, %v10550_v13  ;;  %v3966_v45 = vmul.f32 %v3963_v54, %v10552_v4  ;;  %v3968_v26 = vmul.f32 %v3963_v54, %v10560_v23  ;;  %v3077_v13 = vadd.f32 %v3072_v14, %v3066_v21 }
0x21ea   :  { %v3967_v23 = vmul.f32 %v3963_v54, %v10554_v51  ;;  %v10681_v51 = vld [vmem:[%s12583_s2] sm:$0xf] }
0x21ec   :  { %v3974_v40 = vpop.permute.xlu1 %3973 }
0x21ed   :  { %v3976_v30 = vadd.f32 %v3974_v40, %v3965_v2  ;;  %v3977_v44 = vadd.f32 %v3974_v40, %v3966_v45  ;;  %v3979_v60 = vadd.f32 %v3974_v40, %v3968_v26  ;;  %v3978_v15 = vadd.f32 %v3974_v40, %v3967_v23  ;;  %v12692_v45 = vld [vmem:[#allocation3_spill] sm:$0xff] }
0x21ef   :  { %v10602_v1 = vadd.f32 %v3976_v30, %v3074_v36  ;;  %v10604_v20 = vadd.f32 %v3977_v44, %v3075_v58  ;;  %v10616_v4 = vadd.f32 %v3979_v60, %v3077_v13  ;;  %v10632_v19 = vadd.f32 %v3978_v15, %v3076_v50  ;;  %v12693_v36 = vld [vmem:[#allocation5_spill] sm:$0xff]  ;;  %v12694_v13 = vld [vmem:[#allocation6_spill] sm:$0xff] }
0x21f1   :  { %4062 = vrot.lane.b32.xlu1 %v10604_v20, %s8349_s30  ;;  %4060 = vrot.lane.b32.xlu0 %v10602_v1, %s8349_s30  ;;  %12690 = vst [vmem:[#allocation2_spill] sm:$0xff] %v10616_v4 }
0x21f5   :  { %4094 = vrot.lane.b32.xlu1 %v10604_v20, %s8348_s29  ;;  %4092 = vrot.lane.b32.xlu0 %v10602_v1, %s8348_s29 }
0x21f9   :  { %4098 = vrot.lane.b32.xlu1 %v10616_v4, %s8348_s29  ;;  %4066 = vrot.lane.b32.xlu0 %v10616_v4, %s8349_s30 }
0x21fd   :  { %4046 = vrot.lane.b32.xlu1 %v10604_v20, %s8350_s11  ;;  %4044 = vrot.lane.b32.xlu0 %v10602_v1, %s8350_s11 }
0x2201   :  { %4078 = vrot.lane.b32.xlu1 %v10604_v20, %s8351_s12  ;;  %4076 = vrot.lane.b32.xlu0 %v10602_v1, %s8351_s12 }
0x2205   :  { %4064 = vrot.lane.b32.xlu1 %v10632_v19, %s8349_s30  ;;  %4050 = vrot.lane.b32.xlu0 %v10616_v4, %s8350_s11 }
0x2209   :  { %4096 = vrot.lane.b32.xlu1 %v10632_v19, %s8348_s29  ;;  %4082 = vrot.lane.b32.xlu0 %v10616_v4, %s8351_s12 }
0x220d   :  { %4112 = vrot.lane.b32.xlu1 %v10632_v19, %s8352_s13  ;;  %4110 = vrot.lane.b32.xlu0 %v10604_v20, %s8352_s13 }
0x2211   :  { %4144 = vrot.lane.b32.xlu1 %v10632_v19, %s8353_s14  ;;  %4142 = vrot.lane.b32.xlu0 %v10604_v20, %s8353_s14 }
0x2215   :  { %4080 = vrot.lane.b32.xlu1 %v10632_v19, %s8351_s12  ;;  %4048 = vrot.lane.b32.xlu0 %v10632_v19, %s8350_s11 }
0x2219   :  { %4140 = vrot.lane.b32.xlu1 %v10602_v1, %s8353_s14  ;;  %4108 = vrot.lane.b32.xlu0 %v10602_v1, %s8352_s13 }
0x221d   :  { %4128 = vrot.lane.b32.xlu1 %v10632_v19, %s8354_s15  ;;  %4126 = vrot.lane.b32.xlu0 %v10604_v20, %s8354_s15 }
0x2221   :  { %4124 = vrot.lane.b32.xlu1 %v10602_v1, %s8354_s15  ;;  %4114 = vrot.lane.b32.xlu0 %v10616_v4, %s8352_s13 }
0x2225   :  { %4130 = vrot.lane.b32.xlu1 %v10616_v4, %s8354_s15  ;;  %4146 = vrot.lane.b32.xlu0 %v10616_v4, %s8353_s14 }
0x2229   :  { %4160 = vrot.lane.b32.xlu1 %v10632_v19, %s8357_s16  ;;  %4158 = vrot.lane.b32.xlu0 %v10604_v20, %s8357_s16 }
0x222d   :  { %4162 = vrot.lane.b32.xlu1 %v10616_v4, %s8357_s16  ;;  %4156 = vrot.lane.b32.xlu0 %v10602_v1, %s8357_s16 }
0x2231   :  { %4239 = vperm.xlu0 %8229, %v10681_v51  }
0x2263   :  { %v4063_v38 = vpop.permute.xlu1 %4062  ;;  %v4061_v0 = vpop.permute.xlu0 %4060 }
0x2264   :  { %v4070_v3 = vsel %vm149_vm0, %v4061_v0, %v4063_v38 }
0x2265   :  { %v4073_v2 = vmul.f32 %v4070_v3, %v12691_v27 }
0x2267   :  { %v4095_v18 = vpop.permute.xlu1 %4094  ;;  %v4093_v29 = vpop.permute.xlu0 %4092  ;;  %v4177_v21 = vrot.slane %v4073_v2, 4 }
0x2268   :  { %v4102_v35 = vsel %vm229_vm1, %v4093_v29, %v4095_v18 }
0x2269   :  { %v4105_v40 = vmul.f32 %v4102_v35, %v12692_v45 }
0x226b   :  { %v4099_v33 = vpop.permute.xlu1 %4098  ;;  %v4067_v6 = vpop.permute.xlu0 %4066  ;;  %v4189_v60 = vrot.slane %v4105_v40, 4 }
0x226c   :  { %v4103_v55 = vsel %vm229_vm1, %v4099_v33, %v4093_v29  ;;  %v4071_v15 = vsel %vm149_vm0, %v4067_v6, %v4061_v0 }
0x226d   :  { %v4104_v2 = vmul.f32 %v4103_v55, %v12683_v56  ;;  %v4072_v40 = vmul.f32 %v4071_v15, %v12684_v25 }
0x226f   :  { %v4047_v14 = vpop.permute.xlu1 %4046  ;;  %v4045_v54 = vpop.permute.xlu0 %4044 }
0x2270   :  { %v4054_v10 = vsel %vm110_vm2, %v4045_v54, %v4047_v14 }
0x2271   :  { %v4057_v58 = vmul.f32 %v4054_v10, %v12693_v36  ;;  %v4188_v36 = vrot.slane %v4104_v2, 4 }
0x2273   :  { %v4079_v30 = vpop.permute.xlu1 %4078  ;;  %v4077_v44 = vpop.permute.xlu0 %4076  ;;  %v4221_v3 = vsel %vm45_vm4, %v4057_v58, %v4177_v21  ;;  %v4176_v58 = vrot.slane %v4072_v40, 4 }
0x2274   :  { %v4086_v26 = vsel %vm189_vm3, %v4077_v44, %v4079_v30 }
0x2275   :  { %v4089_v23 = vmul.f32 %v4086_v26, %v12694_v13 }
0x2277   :  { %v4065_v50 = vpop.permute.xlu1 %4064  ;;  %v4051_v34 = vpop.permute.xlu0 %4050  ;;  %v4225_v35 = vsel %vm45_vm4, %v4089_v23, %v4189_v60 }
0x2278   :  { %v4055_v10 = vsel %vm110_vm2, %v4051_v34, %v4045_v54  ;;  %v7980_v32 = vpack.c.bf16 %v4225_v35, %v4221_v3  ;;  %v4069_v54 = vsel %vm149_vm0, %v4063_v38, %v4065_v50  ;;  %v4068_v15 = vsel %vm149_vm0, %v4065_v50, %v4067_v6 }
0x2279   :  { %v4056_v29 = vmul.f32 %v4055_v10, %v12685_v37  ;;  %v4074_v10 = vmul.f32 %v4069_v54, %v8622_v63  ;;  %v4075_v38 = vmul.f32 %v4068_v15, %v8625_v5 }
0x227a   :  { %7981 = vmatprep.subr.bf16.mxu0 %v7980_v32 }
0x227b   :  { %v4097_v26 = vpop.permute.xlu1 %4096  ;;  %v4083_v13 = vpop.permute.xlu0 %4082  ;;  %v4220_v55 = vsel %vm45_vm4, %v4056_v29, %v4176_v58  ;;  %v4179_v6 = vrot.slane %v4075_v38, 4 }
0x227c   :  { %v4087_v0 = vsel %vm189_vm3, %v4083_v13, %v4077_v44  ;;  %v4100_v3 = vsel %vm229_vm1, %v4097_v26, %v4099_v33  ;;  %v4101_v44 = vsel %vm229_vm1, %v4095_v18, %v4097_v26 }
0x227d   :  { %v4088_v21 = vmul.f32 %v4087_v0, %v8609_v53  ;;  %v4106_v2 = vmul.f32 %v4101_v44, %v8628_v7  ;;  %v4107_v40 = vmul.f32 %v4100_v3, %v8633_v9  ;;  %v4178_v0 = vrot.slane %v4074_v10, 4 }
0x227f   :  { %v4113_v60 = vpop.permute.xlu1 %4112  ;;  %v4111_v23 = vpop.permute.xlu0 %4110  ;;  %v4224_v32 = vsel %vm45_vm4, %v4088_v21, %v4188_v36  ;;  %v4190_v50 = vrot.slane %v4106_v2, 4  ;;  %v4191_v58 = vrot.slane %v4107_v40, 4 }
0x2280   :  { %v7982_v35 = vpack.c.bf16 %v4224_v32, %v4220_v55  ;;  %v4117_v33 = vsel %vm269_vm5, %v4111_v23, %v4113_v60 }
0x2281   :  { %v4121_v10 = vmul.f32 %v4117_v33, %v8679_v47 }
0x2282   :  { %7983 = vmatpush1.bf16.msra.mxu0 %v7982_v35 }
0x2283   :  { %v4145_v36 = vpop.permute.xlu1 %4144  ;;  %v4143_v29 = vpop.permute.xlu0 %4142 }
0x2287   :  { %v4081_v18 = vpop.permute.xlu1 %4080  ;;  %v4049_v26 = vpop.permute.xlu0 %4048 }
0x2288   :  { %v4084_v21 = vsel %vm189_vm3, %v4081_v18, %v4083_v13  ;;  %v4085_v54 = vsel %vm189_vm3, %v4079_v30, %v4081_v18  ;;  %v4052_v55 = vsel %vm110_vm2, %v4049_v26, %v4051_v34  ;;  %v4053_v32 = vsel %vm110_vm2, %v4047_v14, %v4049_v26 }
0x2289   :  { %v4090_v15 = vmul.f32 %v4085_v54, %v8663_v39  ;;  %v4091_v3 = vmul.f32 %v4084_v21, %v8667_v41  ;;  %v4058_v44 = vmul.f32 %v4053_v32, %v8671_v42  ;;  %v4059_v35 = vmul.f32 %v4052_v55, %v8675_v43 }
0x228a   :  { %v4149_v13 = vsel %vm349_vm6, %v4143_v29, %v4145_v36  ;;  %v4201_v55 = vrot.slane %v4121_v10, 4 }
0x228b   :  { %v4141_v30 = vpop.permute.xlu1 %4140  ;;  %v4109_v38 = vpop.permute.xlu0 %4108  ;;  %v4223_v34 = vsel %vm45_vm4, %v4059_v35, %v4179_v6  ;;  %v4227_v2 = vsel %vm45_vm4, %v4091_v3, %v4191_v58  ;;  %v4222_v14 = vsel %vm45_vm4, %v4058_v44, %v4178_v0  ;;  %v4226_v40 = vsel %vm45_vm4, %v4090_v15, %v4190_v50 }
0x228c   :  { %v4150_v18 = vsel %vm349_vm6, %v4141_v30, %v4143_v29  ;;  %v7988_v26 = vpack.c.bf16 %v4227_v2, %v4223_v34  ;;  %v7990_v21 = vpack.c.bf16 %v4226_v40, %v4222_v14  ;;  %v4153_v33 = vmul.f32 %v4149_v13, %v8683_v48 }
0x228d   :  { %v4118_v54 = vsel %vm269_vm5, %v4109_v38, %v4111_v23  ;;  %v4152_v6 = vmul.f32 %v4150_v18, %v8708_v46  ;;  %v4229_v23 = vsel %vm45_vm4, %v10604_v20, %v4201_v55 }
0x228e   :  { %7989 = vmatprep.subr.bf16.mxu1 %v7988_v26  ;;  %v4213_v50 = vrot.slane %v4153_v33, 4  ;;  %v4120_v29 = vmul.f32 %v4118_v54, %v8722_v52 }
0x228f   :  { %v4129_v32 = vpop.permute.xlu1 %4128  ;;  %7991 = vmatpush1.bf16.msra.mxu1 %v7990_v21  ;;  %v4127_v58 = vpop.permute.xlu0 %4126  ;;  %v4212_v3 = vrot.slane %v4152_v6, 4 }
0x2290   :  { %v4133_v0 = vsel %vm309_vm7, %v4127_v58, %v4129_v32  ;;  %v4200_v40 = vrot.slane %v4120_v29, 4 }
0x2291   :  { %v4137_v15 = vmul.f32 %v4133_v0, %v8725_v24 }
0x2293   :  { %v4125_v44 = vpop.permute.xlu1 %4124  ;;  %v4115_v35 = vpop.permute.xlu0 %4114  ;;  %v4233_v10 = vsel %vm45_vm4, %v4137_v15, %v4213_v50 }
0x2294   :  { %v4134_v13 = vsel %vm309_vm7, %v4125_v44, %v4127_v58  ;;  %v4116_v34 = vsel %vm269_vm5, %v4113_v60, %v4115_v35  ;;  %v4119_v2 = vsel %vm269_vm5, %v4115_v35, %v4109_v38  ;;  %v7984_v14 = vpack.c.bf16 %v4233_v10, %v4229_v23 }
0x2295   :  { %v4136_v18 = vmul.f32 %v4134_v13, %v8733_v57  ;;  %v4122_v26 = vmul.f32 %v4116_v34, %v8736_v59  ;;  %v4123_v21 = vmul.f32 %v4119_v2, %v8741_v62 }
0x2296   :  { %7985 = vmatprep.subr.bf16.mxu0 %v7984_v14 }
0x2297   :  { %v4203_v33 = vrot.slane %v4123_v21, 4  ;;  %v4131_v54 = vpop.permute.xlu1 %4130  ;;  %v4147_v55 = vpop.permute.xlu0 %4146  ;;  %v4232_v6 = vsel %vm45_vm4, %v4136_v18, %v4212_v3  ;;  %v4202_v50 = vrot.slane %v4122_v26, 4  ;;  %v4228_v3 = vsel %vm45_vm4, %v10602_v1, %v4200_v40 }
0x2298   :  { %v4132_v60 = vsel %vm309_vm7, %v4129_v32, %v4131_v54  ;;  %v4135_v38 = vsel %vm309_vm7, %v4131_v54, %v4125_v44  ;;  %v4148_v58 = vsel %vm349_vm6, %v4145_v36, %v4147_v55  ;;  %v4151_v0 = vsel %vm349_vm6, %v4147_v55, %v4141_v30 }
0x2299   :  { %v4154_v29 = vmul.f32 %v4148_v58, %v8745_v8  ;;  %v4155_v15 = vmul.f32 %v4151_v0, %v8752_v31  ;;  %v7986_v35 = vpack.c.bf16 %v4232_v6, %v4228_v3  ;;  %v4138_v32 = vmul.f32 %v4132_v60, %v8769_v22  ;;  %v7796_v0 = vld [vmem:[%s12585_s1 + $0x20] sm:$0xf] }
0x229a   :  { %v4139_v23 = vmul.f32 %v4135_v38, %v8772_v16  ;;  %v4231_v34 = vsel %vm45_vm4, %v10616_v4, %v4203_v33  ;;  %v4230_v40 = vsel %vm45_vm4, %v10632_v19, %v4202_v50 }
0x229b   :  { %v4214_v44 = vrot.slane %v4154_v29, 4  ;;  %v4215_v10 = vrot.slane %v4155_v15, 4  ;;  %v4161_v13 = vpop.permute.xlu1 %4160  ;;  %v4159_v36 = vpop.permute.xlu0 %4158  ;;  %7987 = vmatpush1.bf16.msra.mxu0 %v7986_v35 }
0x229c   :  { %v4165_v30 = vsel %vm389_vm8, %v4159_v36, %v4161_v13 }
0x229d   :  { %v4169_v2 = vmul.f32 %v4165_v30, %v8776_v61  ;;  %v4235_v14 = vsel %vm45_vm4, %v4139_v23, %v4215_v10  ;;  %v4234_v18 = vsel %vm45_vm4, %v4138_v32, %v4214_v44 }
0x229e   :  { %v7992_v26 = vpack.c.bf16 %v4235_v14, %v4231_v34  ;;  %v7994_v21 = vpack.c.bf16 %v4234_v18, %v4230_v40 }
0x229f   :  { %v4163_v54 = vpop.permute.xlu1 %4162  ;;  %7797 = vmatprep.subr.msk.mxu0 %vm45_vm4, %v4169_v2  ;;  %v4157_v55 = vpop.permute.xlu0 %4156 }
0x22a0   :  { %v4164_v6 = vsel %vm389_vm8, %v4161_v13, %v4163_v54  ;;  %v4166_v33 = vsel %vm389_vm8, %v4157_v55, %v4159_v36  ;;  %v4167_v60 = vsel %vm389_vm8, %v4163_v54, %v4157_v55  ;;  %7993 = vmatprep.subr.bf16.mxu1 %v7992_v26 }
0x22a1   :  { %v4168_v38 = vmul.f32 %v4166_v33, %v8796_v12  ;;  %v4171_v58 = vmul.f32 %v4167_v60, %v8799_v49  ;;  %7995 = vmatpush1.bf16.msra.mxu1 %v7994_v21  ;;  %v4170_v50 = vmul.f32 %v4164_v6, %v8809_v28 }
0x22a3   :  { %7798 = vmatpush1.msk.msra.mxu0 %vm45_vm4, %v4168_v38  ;;  %7800 = vmatprep.subr.msk.mxu1 %vm45_vm4, %v4171_v58 }
0x22a4   :  { %7799 = vmatmul.mubr.msk.f32.vlgmr.msra.gmra.mrb[16].mxu0 %vm492_vm9, %v7796_v0 }
0x22a5   :  { %7801 = vmatpush1.msk.msra.mxu1 %vm45_vm4, %v4170_v50  ;;  %4772 = vmatprep.mubr.f32.mxu0 %v12657_v17 }
0x22a6   :  { %7802 = vmatmul.mubr.msk.f32.vlgmr.msra.gmra.mrb[16].mxu1 %vm492_vm9, %v7796_v0 }
0x22a7   :  { %4843 = vmatprep.mubr.f32.mxu1 %v12657_v17 }
0x22b0   :  { %v4240_v29 = vpop.permute.xlu0 %4239 }
0x2377   :  { %v4323_v15 = vpop.f32.mrb[16].mxu0 }
0x2378   :  { %v4324_v3 = vadd.f32 %v4323_v15, %v4240_v29  ;;  %v4325_v35 = vpop.f32.mrb[17].mxu0 }
0x2379   :  { %v4326_v32 = vadd.f32 %v4325_v35, %v4240_v29  ;;  %v4394_v23 = vpop.f32.mrb[16].mxu1 }
0x237a   :  { %v4399_v44 = vmul.f32 0.01, %v4324_v3  ;;  %v4395_v10 = vadd.f32 %v4394_v23, %v4240_v29  ;;  %v4396_v13 = vpop.f32.mrb[17].mxu1 }
0x237b   :  { %v4400_v36 = vmul.f32 0.01, %v4326_v32  ;;  %v4397_v30 = vadd.f32 %v4396_v13, %v4240_v29 }
0x237c   :  { %v10811_v34 = vmax.f32 %v4324_v3, %v4399_v44  ;;  %v4401_v2 = vmul.f32 0.01, %v4395_v10 }
0x237d   :  { %v10813_v14 = vmax.f32 %v4326_v32, %v4400_v36  ;;  %v4402_v40 = vmul.f32 0.01, %v4397_v30 }
0x237e   :  { %v10815_v18 = vmax.f32 %v4395_v10, %v4401_v2  ;;  %v4407_v26 = vmul.f32 %v10811_v34, %v10811_v34 }
0x237f   :  { %v4408_v21 = vmul.f32 %v10813_v14, %v10813_v14  ;;  %v10821_v54 = vmax.f32 %v4397_v30, %v4402_v40 }
0x2380   :  { %v4409_v55 = vmul.f32 %v10815_v18, %v10815_v18  ;;  %v4415_v6 = vrot.slane %v4407_v26, 4 }
0x2381   :  { %v4416_v33 = vrot.slane %v4408_v21, 4  ;;  %v4410_v60 = vmul.f32 %v10821_v54, %v10821_v54 }
0x2382   :  { %v4417_v38 = vrot.slane %v4409_v55, 4  ;;  %v4423_v58 = vsel %vm45_vm4, %v10811_v34, %v4415_v6 }
0x2383   :  { %v4424_v0 = vsel %vm45_vm4, %v10813_v14, %v4416_v33  ;;  %v4418_v50 = vrot.slane %v4410_v60, 4 }
0x2384   :  { %v4425_v29 = vsel %vm45_vm4, %v10815_v18, %v4417_v38  ;;  %v4427_v15 = vadd.f32 %v4424_v0, %v4423_v58 }
0x2385   :  { %v4426_v35 = vsel %vm45_vm4, %v10821_v54, %v4418_v50 }
0x2386   :  { %v4428_v3 = vadd.f32 %v4427_v15, %v4425_v29 }
0x2388   :  { %v4429_v32 = vadd.f32 %v4428_v3, %v4426_v35 }
0x238a   :  { %4430 = vadd.xlane.f32.xlu1 %v4429_v32 }
0x2417   :  { %v4431_v23 = vpop.xlane.xlu1 %4430 }
0x2418   :  { %v4440_v44 = vrot.slane %v4431_v23, 4  ;;  %v4432_v0 = vmul.f32 0.001953125, %v4431_v23  ;;  %v10839_v23 = vld [vmem:[%s12586_s3] sm:$0xf] }
0x2419   :  { %12695 = vst [vmem:[#allocation10_spill] sm:$0xff] %v10839_v23 }
0x241a   :  { %v4442_v10 = vsel %vm693_vm10, %v4440_v44, 0.0  ;;  %v4433_v50 = vmul.f32 %v4432_v0, %v4432_v0 }
0x241b   :  { %4443 = vadd.xlane.f32.xlu0 %v4442_v10 }
0x241c   :  { %v4435_v29 = vrot.slane %v4433_v50, 4 }
0x241e   :  { %v4437_v15 = vsub.f32 %v4432_v0, %v4435_v29  ;;  %v12697_v29 = vmov 4  }
0x2420   :  { %v4438_v3 = vmax.f32 %v4437_v15, 0.0 }
0x24a8   :  { %v4444_v13 = vpop.xlane.xlu0 %4443 }
0x24a9   :  { %v4445_v36 = vrot.slane %v4444_v13, 4 }
0x24ab   :  { %v4446_v30 = vadd.f32 %v4445_v36, %v4444_v13 }
0x24ad   :  { %v4447_v2 = vrot.slane %v4446_v30, 2 }
0x24af   :  { %v4448_v40 = vadd.f32 %v4447_v2, %v4446_v30 }
0x24b1   :  { %v4449_v26 = vrot.slane %v4448_v40, 1 }
0x24b3   :  { %v4450_v21 = vadd.f32 %v4449_v26, %v4448_v40 }
0x24b5   :  { %8140 = vpush %v4450_v21  ;;  %v10845_v21 = vld [vmem:[%s12587_s4] sm:$0xf] }
0x24b6   :  { %12696 = vst [vmem:[#allocation11_spill] sm:$0xff] %v10845_v21 }
0x24e6   :  { %s8141_s0 = spop %8140 }
0x24e7   :  { %v4452_v55 = vstv %s8141_s0 }
0x24e8   :  { %8288 = vrsqrt.f32 %v4452_v55  ;;  %vm4455_vm12 = vcmp.eq.f32.partialorder %v4452_v55, inf  ;;  %v4458_v60 = vand.u32 2147483648, %v4452_v55  ;;  %vm4457_vm13 = vcmp.eq.f32.partialorder %v4452_v55, 0.0 }
0x24f2   :  { %v8289_v6 = vpop.eup %8288 }
0x24f3   :  { %v4454_v33 = vmul.f32 %v8289_v6, %v4452_v55 }
0x24f5   :  { %v4456_v38 = vsel %vm4455_vm12, %v4452_v55, %v4454_v33 }
0x24f6   :  { %v4459_v58 = vsel %vm4457_vm13, %v4458_v60, %v4456_v38 }
0x24f7   :  { %8142 = vpush %v4459_v58 }
0x2528   :  { %s8143_s21 = spop %8142 }
0x2529   :  { %s4461_s22 = sadd.f32 1e-06, %s8143_s21 }
0x252b   :  { %s4462_s17 = smul.f32 %s4461_s22, %s4461_s22  ;;  %v4467_v13 = vstv %s4461_s22  ;;  %s8375_s22 = smov 9  }
0x252d   :  { %v4463_v35 = vstv %s4462_s17  ;;  %s8381_s17 = smov 12  }
0x252e   :  { %v4464_v32 = vmul.f32 %v4463_v35, %v4438_v3 }
0x2530   :  { %v4465_v44 = vadd.f32 1e-05, %v4464_v32 }
0x2532   :  { %8290 = vrsqrt.f32 %v4465_v44 }
0x253c   :  { %v8291_v10 = vpop.eup %8290 }
0x253d   :  { %v4468_v36 = vmul.f32 %v8291_v10, %v4467_v13 }
0x253f   :  { %v4470_v30 = vrot.slane %v4468_v36, 4 }
0x2541   :  { %4471 = vrot.lane.b32.xlu1 %v4470_v30, %s8373_s23 }
0x25b3   :  { %v4472_v2 = vpop.permute.xlu1 %4471 }
0x25b4   :  { %v4474_v40 = vmul.f32 %v10839_v23, %v4472_v2 }
0x25b6   :  { %v4484_v26 = vmul.f32 %v4474_v40, %v4432_v0  ;;  %4477 = vperm.xlu0 %8229, %v4474_v40  }
0x25b8   :  { %v4485_v55 = vsub.f32 %v10845_v21, %v4484_v26 }
0x25ba   :  { %4488 = vperm.xlu1 %8230, %v4485_v55   ;;  %v12698_v55 = vld [vmem:[#allocation5_spill] sm:$0xff] }
0x2635   :  { %v4478_v6 = vpop.permute.xlu0 %4477 }
0x2636   :  { %v4480_v33 = vmul.f32 %v4478_v6, %v10811_v34  ;;  %v4481_v60 = vmul.f32 %v4478_v6, %v10813_v14  ;;  %v4483_v0 = vmul.f32 %v4478_v6, %v10821_v54  ;;  %v4482_v14 = vmul.f32 %v4478_v6, %v10815_v18 }
0x2637   :  { %v12629_v18 = vmov 9  }
0x2638   :  { %8231 = vset.pattern.permute.xlu1 %v12629_v18  ;;  %8233 = vset.pattern.permute.xlu0 %v12629_v18 }
0x2639   :  { %v4489_v38 = vpop.permute.xlu1 %4488 }
0x263a   :  { %v10850_v58 = vadd.f32 %v4489_v38, %v4480_v33  ;;  %v10852_v50 = vadd.f32 %v4489_v38, %v4481_v60  ;;  %v10863_v34 = vadd.f32 %v4489_v38, %v4483_v0  ;;  %v10878_v54 = vadd.f32 %v4489_v38, %v4482_v14 }
0x263c   :  { %4513 = vrot.lane.b32.xlu0 %v10852_v50, %s8349_s30  ;;  %4511 = vrot.lane.b32.xlu1 %v10850_v58, %s8349_s30 }
0x2640   :  { %4545 = vrot.lane.b32.xlu0 %v10852_v50, %s8348_s29  ;;  %4543 = vrot.lane.b32.xlu1 %v10850_v58, %s8348_s29 }
0x2644   :  { %4549 = vrot.lane.b32.xlu0 %v10863_v34, %s8348_s29  ;;  %4517 = vrot.lane.b32.xlu1 %v10863_v34, %s8349_s30 }
0x2648   :  { %4497 = vrot.lane.b32.xlu0 %v10852_v50, %s8350_s11  ;;  %4495 = vrot.lane.b32.xlu1 %v10850_v58, %s8350_s11 }
0x264c   :  { %4529 = vrot.lane.b32.xlu0 %v10852_v50, %s8351_s12  ;;  %4527 = vrot.lane.b32.xlu1 %v10850_v58, %s8351_s12 }
0x2650   :  { %4515 = vrot.lane.b32.xlu0 %v10878_v54, %s8349_s30  ;;  %4501 = vrot.lane.b32.xlu1 %v10863_v34, %s8350_s11 }
0x2654   :  { %4547 = vrot.lane.b32.xlu0 %v10878_v54, %s8348_s29  ;;  %4533 = vrot.lane.b32.xlu1 %v10863_v34, %s8351_s12 }
0x2658   :  { %4563 = vrot.lane.b32.xlu0 %v10878_v54, %s8352_s13  ;;  %4561 = vrot.lane.b32.xlu1 %v10852_v50, %s8352_s13 }
0x265c   :  { %4595 = vrot.lane.b32.xlu0 %v10878_v54, %s8353_s14  ;;  %4593 = vrot.lane.b32.xlu1 %v10852_v50, %s8353_s14 }
0x2660   :  { %4531 = vrot.lane.b32.xlu0 %v10878_v54, %s8351_s12  ;;  %4499 = vrot.lane.b32.xlu1 %v10878_v54, %s8350_s11 }
0x2664   :  { %4591 = vrot.lane.b32.xlu0 %v10850_v58, %s8353_s14  ;;  %4559 = vrot.lane.b32.xlu1 %v10850_v58, %s8352_s13 }
0x2668   :  { %4579 = vrot.lane.b32.xlu0 %v10878_v54, %s8354_s15  ;;  %4577 = vrot.lane.b32.xlu1 %v10852_v50, %s8354_s15 }
0x266c   :  { %4575 = vrot.lane.b32.xlu0 %v10850_v58, %s8354_s15  ;;  %4565 = vrot.lane.b32.xlu1 %v10863_v34, %s8352_s13 }
0x2670   :  { %4581 = vrot.lane.b32.xlu0 %v10863_v34, %s8354_s15  ;;  %4597 = vrot.lane.b32.xlu1 %v10863_v34, %s8353_s14 }
0x2674   :  { %4611 = vrot.lane.b32.xlu0 %v10878_v54, %s8357_s16  ;;  %4609 = vrot.lane.b32.xlu1 %v10852_v50, %s8357_s16 }
0x2678   :  { %4613 = vrot.lane.b32.xlu0 %v10863_v34, %s8357_s16  ;;  %4607 = vrot.lane.b32.xlu1 %v10850_v58, %s8357_s16 }
0x267c   :  { %4690 = vperm.xlu1 %8231, %v10681_v51  }
0x2680   :  { %8232 = vset.pattern.permute.xlu1 %v12697_v29  ;;  %v12699_v29 = vld [vmem:[#allocation6_spill] sm:$0xff] }
0x26ae   :  { %v4514_v15 = vpop.permute.xlu0 %4513  ;;  %v4512_v3 = vpop.permute.xlu1 %4511 }
0x26af   :  { %v4521_v13 = vsel %vm149_vm0, %v4512_v3, %v4514_v15 }
0x26b0   :  { %v4524_v51 = vmul.f32 %v4521_v13, %v12691_v27 }
0x26b2   :  { %v4546_v35 = vpop.permute.xlu0 %4545  ;;  %v4544_v32 = vpop.permute.xlu1 %4543  ;;  %v4628_v0 = vrot.slane %v4524_v51, 4 }
0x26b3   :  { %v4553_v36 = vsel %vm229_vm1, %v4544_v32, %v4546_v35 }
0x26b4   :  { %v4556_v26 = vmul.f32 %v4553_v36, %v12692_v45 }
0x26b6   :  { %v4550_v44 = vpop.permute.xlu0 %4549  ;;  %v4518_v10 = vpop.permute.xlu1 %4517  ;;  %v4640_v14 = vrot.slane %v4556_v26, 4 }
0x26b7   :  { %v4554_v21 = vsel %vm229_vm1, %v4550_v44, %v4544_v32  ;;  %v4522_v23 = vsel %vm149_vm0, %v4518_v10, %v4512_v3 }
0x26b8   :  { %v4555_v51 = vmul.f32 %v4554_v21, %v12683_v56  ;;  %v4523_v26 = vmul.f32 %v4522_v23, %v12684_v25 }
0x26ba   :  { %v4498_v30 = vpop.permute.xlu0 %4497  ;;  %v4496_v2 = vpop.permute.xlu1 %4495  ;;  %v4639_v4 = vrot.slane %v4555_v51, 4 }
0x26bb   :  { %v4505_v40 = vsel %vm110_vm2, %v4496_v2, %v4498_v30 }
0x26bc   :  { %v4508_v6 = vmul.f32 %v4505_v40, %v12698_v55 }
0x26be   :  { %v4530_v33 = vpop.permute.xlu0 %4529  ;;  %v4528_v60 = vpop.permute.xlu1 %4527  ;;  %v4672_v36 = vsel %vm45_vm4, %v4508_v6, %v4628_v0  ;;  %v4627_v6 = vrot.slane %v4523_v26, 4 }
0x26bf   :  { %v4537_v38 = vsel %vm189_vm3, %v4528_v60, %v4530_v33 }
0x26c0   :  { %v4540_v18 = vmul.f32 %v4537_v38, %v12699_v29 }
0x26c2   :  { %v4516_v13 = vpop.permute.xlu0 %4515  ;;  %v4502_v27 = vpop.permute.xlu1 %4501  ;;  %v4676_v40 = vsel %vm45_vm4, %v4540_v18, %v4640_v14 }
0x26c3   :  { %v4506_v55 = vsel %vm110_vm2, %v4502_v27, %v4496_v2  ;;  %v7996_v45 = vpack.c.bf16 %v4676_v40, %v4672_v36  ;;  %v4520_v2 = vsel %vm149_vm0, %v4514_v15, %v4516_v13  ;;  %v4519_v23 = vsel %vm149_vm0, %v4516_v13, %v4518_v10 }
0x26c4   :  { %v4507_v32 = vmul.f32 %v4506_v55, %v12685_v37  ;;  %v4525_v40 = vmul.f32 %v4520_v2, %v8622_v63  ;;  %v4526_v15 = vmul.f32 %v4519_v23, %v8625_v5 }
0x26c5   :  { %7997 = vmatprep.subr.bf16.mxu0 %v7996_v45 }
0x26c6   :  { %v4548_v38 = vpop.permute.xlu0 %4547  ;;  %v4534_v29 = vpop.permute.xlu1 %4533  ;;  %v4671_v21 = vsel %vm45_vm4, %v4507_v32, %v4627_v6  ;;  %v4630_v10 = vrot.slane %v4526_v15, 4 }
0x26c7   :  { %v4538_v3 = vsel %vm189_vm3, %v4534_v29, %v4528_v60  ;;  %v4551_v55 = vsel %vm229_vm1, %v4548_v38, %v4550_v44  ;;  %v4552_v60 = vsel %vm229_vm1, %v4546_v35, %v4548_v38 }
0x26c8   :  { %v4539_v18 = vmul.f32 %v4538_v3, %v8609_v53  ;;  %v4557_v51 = vmul.f32 %v4552_v60, %v8628_v7  ;;  %v4558_v26 = vmul.f32 %v4551_v55, %v8633_v9  ;;  %v4629_v3 = vrot.slane %v4525_v40, 4 }
0x26ca   :  { %v4564_v0 = vpop.permute.xlu0 %4563  ;;  %v4562_v14 = vpop.permute.xlu1 %4561  ;;  %v4675_v45 = vsel %vm45_vm4, %v4539_v18, %v4639_v4  ;;  %v4641_v13 = vrot.slane %v4557_v51, 4  ;;  %v4642_v6 = vrot.slane %v4558_v26, 4 }
0x26cb   :  { %v7998_v36 = vpack.c.bf16 %v4675_v45, %v4671_v21  ;;  %v4568_v44 = vsel %vm269_vm5, %v4562_v14, %v4564_v0 }
0x26cc   :  { %v4572_v40 = vmul.f32 %v4568_v44, %v8679_v47 }
0x26cd   :  { %7999 = vmatpush1.bf16.msra.mxu0 %v7998_v36 }
0x26ce   :  { %v4596_v4 = vpop.permute.xlu0 %4595  ;;  %v4594_v32 = vpop.permute.xlu1 %4593 }
0x26d2   :  { %v4532_v35 = vpop.permute.xlu0 %4531  ;;  %v4500_v38 = vpop.permute.xlu1 %4499 }
0x26d3   :  { %v4535_v18 = vsel %vm189_vm3, %v4532_v35, %v4534_v29  ;;  %v4536_v2 = vsel %vm189_vm3, %v4530_v33, %v4532_v35  ;;  %v4503_v21 = vsel %vm110_vm2, %v4500_v38, %v4502_v27  ;;  %v4504_v45 = vsel %vm110_vm2, %v4498_v30, %v4500_v38 }
0x26d4   :  { %v4541_v23 = vmul.f32 %v4536_v2, %v8663_v39  ;;  %v4542_v55 = vmul.f32 %v4535_v18, %v8667_v41  ;;  %v4509_v60 = vmul.f32 %v4504_v45, %v8671_v42  ;;  %v4510_v36 = vmul.f32 %v4503_v21, %v8675_v43 }
0x26d5   :  { %v4600_v29 = vsel %vm349_vm6, %v4594_v32, %v4596_v4  ;;  %v4652_v21 = vrot.slane %v4572_v40, 4 }
0x26d6   :  { %v4592_v33 = vpop.permute.xlu0 %4591  ;;  %v4560_v15 = vpop.permute.xlu1 %4559  ;;  %v4674_v27 = vsel %vm45_vm4, %v4510_v36, %v4630_v10  ;;  %v4678_v51 = vsel %vm45_vm4, %v4542_v55, %v4642_v6  ;;  %v4673_v30 = vsel %vm45_vm4, %v4509_v60, %v4629_v3  ;;  %v4677_v26 = vsel %vm45_vm4, %v4541_v23, %v4641_v13 }
0x26d7   :  { %v4601_v35 = vsel %vm349_vm6, %v4592_v33, %v4594_v32  ;;  %v8004_v38 = vpack.c.bf16 %v4678_v51, %v4674_v27  ;;  %v8006_v18 = vpack.c.bf16 %v4677_v26, %v4673_v30  ;;  %v4604_v44 = vmul.f32 %v4600_v29, %v8683_v48 }
0x26d8   :  { %v4569_v2 = vsel %vm269_vm5, %v4560_v15, %v4562_v14  ;;  %v4603_v10 = vmul.f32 %v4601_v35, %v8708_v46  ;;  %v4680_v14 = vsel %vm45_vm4, %v10852_v50, %v4652_v21 }
0x26d9   :  { %8005 = vmatprep.subr.bf16.mxu1 %v8004_v38  ;;  %v4664_v13 = vrot.slane %v4604_v44, 4  ;;  %v4571_v32 = vmul.f32 %v4569_v2, %v8722_v52 }
0x26da   :  { %v4580_v45 = vpop.permute.xlu0 %4579  ;;  %8007 = vmatpush1.bf16.msra.mxu1 %v8006_v18  ;;  %v4578_v6 = vpop.permute.xlu1 %4577  ;;  %v4663_v55 = vrot.slane %v4603_v10, 4 }
0x26db   :  { %v4584_v3 = vsel %vm309_vm7, %v4578_v6, %v4580_v45  ;;  %v4651_v26 = vrot.slane %v4571_v32, 4 }
0x26dc   :  { %v4588_v23 = vmul.f32 %v4584_v3, %v8725_v24 }
0x26de   :  { %v4576_v60 = vpop.permute.xlu0 %4575  ;;  %v4566_v36 = vpop.permute.xlu1 %4565  ;;  %v4684_v40 = vsel %vm45_vm4, %v4588_v23, %v4664_v13  ;;  %v4679_v23 = vsel %vm45_vm4, %v10850_v58, %v4651_v26 }
0x26df   :  { %v4585_v29 = vsel %vm309_vm7, %v4576_v60, %v4578_v6  ;;  %v4567_v27 = vsel %vm269_vm5, %v4564_v0, %v4566_v36  ;;  %v4570_v51 = vsel %vm269_vm5, %v4566_v36, %v4560_v15  ;;  %v8000_v30 = vpack.c.bf16 %v4684_v40, %v4680_v14 }
0x26e0   :  { %v4587_v35 = vmul.f32 %v4585_v29, %v8733_v57  ;;  %v4573_v38 = vmul.f32 %v4567_v27, %v8736_v59  ;;  %v4574_v18 = vmul.f32 %v4570_v51, %v8741_v62 }
0x26e1   :  { %8001 = vmatprep.subr.bf16.mxu0 %v8000_v30 }
0x26e2   :  { %v4654_v50 = vrot.slane %v4574_v18, 4  ;;  %v4582_v44 = vpop.permute.xlu0 %4581  ;;  %v4598_v2 = vpop.permute.xlu1 %4597  ;;  %v4683_v21 = vsel %vm45_vm4, %v4587_v35, %v4663_v55  ;;  %v4653_v3 = vrot.slane %v4573_v38, 4 }
0x26e3   :  { %v4583_v0 = vsel %vm309_vm7, %v4580_v45, %v4582_v44  ;;  %v4586_v15 = vsel %vm309_vm7, %v4582_v44, %v4576_v60  ;;  %v4599_v10 = vsel %vm349_vm6, %v4596_v4, %v4598_v2  ;;  %v4602_v6 = vsel %vm349_vm6, %v4598_v2, %v4592_v33 }
0x26e4   :  { %v4605_v13 = vmul.f32 %v4599_v10, %v8745_v8  ;;  %v4606_v32 = vmul.f32 %v4602_v6, %v8752_v31  ;;  %v8002_v55 = vpack.c.bf16 %v4683_v21, %v4679_v23  ;;  %v4589_v45 = vmul.f32 %v4583_v0, %v8769_v22  ;;  %v7803_v21 = vld [vmem:[%s12585_s1 + $0x24] sm:$0xf] }
0x26e5   :  { %v4590_v36 = vmul.f32 %v4586_v15, %v8772_v16  ;;  %v4682_v29 = vsel %vm45_vm4, %v10863_v34, %v4654_v50  ;;  %v4681_v51 = vsel %vm45_vm4, %v10878_v54, %v4653_v3  ;;  %v3984_v23 = vmul.f32 %v10602_v1, %v10602_v1 }
0x26e6   :  { %v4665_v60 = vrot.slane %v4605_v13, 4  ;;  %v4666_v14 = vrot.slane %v4606_v32, 4  ;;  %v4612_v40 = vpop.permute.xlu0 %4611  ;;  %v4610_v4 = vpop.permute.xlu1 %4609  ;;  %8003 = vmatpush1.bf16.msra.mxu0 %v8002_v55  ;;  %v3985_v55 = vmul.f32 %v10604_v20, %v10604_v20 }
0x26e7   :  { %v4616_v33 = vsel %vm389_vm8, %v4610_v4, %v4612_v40 }
0x26e8   :  { %v4620_v27 = vmul.f32 %v4616_v33, %v8776_v61  ;;  %v4686_v58 = vsel %vm45_vm4, %v4590_v36, %v4666_v14  ;;  %v4685_v30 = vsel %vm45_vm4, %v4589_v45, %v4665_v60 }
0x26e9   :  { %v8008_v26 = vpack.c.bf16 %v4686_v58, %v4682_v29  ;;  %v8010_v35 = vpack.c.bf16 %v4685_v30, %v4681_v51  ;;  %v3992_v58 = vrot.slane %v3984_v23, 4  ;;  %v3993_v51 = vrot.slane %v3985_v55, 4 }
0x26ea   :  { %v4614_v38 = vpop.permute.xlu0 %4613  ;;  %7804 = vmatprep.subr.msk.mxu0 %vm45_vm4, %v4620_v27  ;;  %v4608_v18 = vpop.permute.xlu1 %4607 }
0x26eb   :  { %v4615_v44 = vsel %vm389_vm8, %v4612_v40, %v4614_v38  ;;  %v4617_v34 = vsel %vm389_vm8, %v4608_v18, %v4610_v4  ;;  %v4618_v50 = vsel %vm389_vm8, %v4614_v38, %v4608_v18  ;;  %8009 = vmatprep.subr.bf16.mxu1 %v8008_v26  ;;  %v3986_v18 = vmul.f32 %v10632_v19, %v10632_v19 }
0x26ec   :  { %v4619_v54 = vmul.f32 %v4617_v34, %v8796_v12  ;;  %v4622_v2 = vmul.f32 %v4618_v50, %v8799_v49  ;;  %8011 = vmatpush1.bf16.msra.mxu1 %v8010_v35  ;;  %v4621_v0 = vmul.f32 %v4615_v44, %v8809_v28 }
0x26ee   :  { %7805 = vmatpush1.msk.msra.mxu0 %vm45_vm4, %v4619_v54  ;;  %7807 = vmatprep.subr.msk.mxu1 %vm45_vm4, %v4622_v2  ;;  %v4000_v2 = vsel %vm45_vm4, %v10602_v1, %v3992_v58 }
0x26ef   :  { %7806 = vmatmul.mubr.msk.f32.vlgmr.msra.gmra.mrb[18].mxu0 %vm492_vm9, %v7803_v21 }
0x26f0   :  { %7808 = vmatpush1.msk.msra.mxu1 %vm45_vm4, %v4621_v0  ;;  %5227 = vmatprep.mubr.f32.mxu0 %v12657_v17 }
0x26f1   :  { %7809 = vmatmul.mubr.msk.f32.vlgmr.msra.gmra.mrb[18].mxu1 %vm492_vm9, %v7803_v21  ;;  %v4001_v21 = vsel %vm45_vm4, %v10604_v20, %v3993_v51 }
0x26f2   :  { %5298 = vmatprep.mubr.f32.mxu1 %v12657_v17 }
0x26fb   :  { %v4691_v15 = vpop.permute.xlu1 %4690 }
0x27c2   :  { %v4774_v10 = vpop.f32.mrb[18].mxu0 }
0x27c3   :  { %v4775_v6 = vadd.f32 %v4774_v10, %v4691_v15  ;;  %v4776_v3 = vpop.f32.mrb[19].mxu0 }
0x27c4   :  { %v4777_v13 = vadd.f32 %v4776_v3, %v4691_v15  ;;  %v4845_v32 = vpop.f32.mrb[18].mxu1  ;;  %v12700_v3 = vld [vmem:[#allocation2_spill] sm:$0xff] }
0x27c5   :  { %v4850_v45 = vmul.f32 0.01, %v4775_v6  ;;  %v4846_v36 = vadd.f32 %v4845_v32, %v4691_v15  ;;  %v4847_v60 = vpop.f32.mrb[19].mxu1  ;;  %v3994_v32 = vrot.slane %v3986_v18, 4 }
0x27c6   :  { %v4851_v14 = vmul.f32 0.01, %v4777_v13  ;;  %v4848_v40 = vadd.f32 %v4847_v60, %v4691_v15 }
0x27c7   :  { %v11059_v4 = vmax.f32 %v4775_v6, %v4850_v45  ;;  %v4852_v33 = vmul.f32 0.01, %v4846_v36  ;;  %v4004_v45 = vadd.f32 %v4001_v21, %v4000_v2 }
0x27c8   :  { %v11061_v29 = vmax.f32 %v4777_v13, %v4851_v14  ;;  %v4853_v27 = vmul.f32 0.01, %v4848_v40  ;;  %v3987_v13 = vmul.f32 %v12700_v3, %v12700_v3 }
0x27c9   :  { %v11063_v30 = vmax.f32 %v4846_v36, %v4852_v33  ;;  %v4858_v26 = vmul.f32 %v11059_v4, %v11059_v4 }
0x27ca   :  { %v4859_v35 = vmul.f32 %v11061_v29, %v11061_v29  ;;  %v11069_v38 = vmax.f32 %v4848_v40, %v4853_v27  ;;  %v3995_v14 = vrot.slane %v3987_v13, 4  ;;  %v4002_v40 = vsel %vm45_vm4, %v10632_v19, %v3994_v32 }
0x27cb   :  { %v4860_v44 = vmul.f32 %v11063_v30, %v11063_v30  ;;  %v4866_v34 = vrot.slane %v4858_v26, 4  ;;  %v4005_v27 = vadd.f32 %v4004_v45, %v4002_v40 }
0x27cc   :  { %v4867_v50 = vrot.slane %v4859_v35, 4  ;;  %v4861_v54 = vmul.f32 %v11069_v38, %v11069_v38  ;;  %v4003_v58 = vsel %vm45_vm4, %v12700_v3, %v3995_v14 }
0x27cd   :  { %v4868_v0 = vrot.slane %v4860_v44, 4  ;;  %v4874_v15 = vsel %vm45_vm4, %v11059_v4, %v4866_v34  ;;  %v4006_v51 = vadd.f32 %v4005_v27, %v4003_v58 }
0x27ce   :  { %v4875_v10 = vsel %vm45_vm4, %v11061_v29, %v4867_v50  ;;  %v4869_v6 = vrot.slane %v4861_v54, 4 }
0x27cf   :  { %v4876_v23 = vsel %vm45_vm4, %v11063_v30, %v4868_v0  ;;  %v4878_v55 = vadd.f32 %v4875_v10, %v4874_v15 }
0x27d0   :  { %v4877_v60 = vsel %vm45_vm4, %v11069_v38, %v4869_v6 }
0x27d1   :  { %v4879_v36 = vadd.f32 %v4878_v55, %v4876_v23 }
0x27d3   :  { %v4880_v33 = vadd.f32 %v4879_v36, %v4877_v60 }
0x27d5   :  { %4881 = vadd.xlane.f32.xlu0 %v4880_v33 }
0x27d9   :  { %4007 = vadd.xlane.f32.xlu0 %v4006_v51 }
0x2862   :  { %v4882_v26 = vpop.xlane.xlu0 %4881 }
0x2863   :  { %v4891_v35 = vrot.slane %v4882_v26, 4  ;;  %v4883_v51 = vmul.f32 0.001953125, %v4882_v26 }
0x2865   :  { %v4893_v18 = vsel %vm693_vm10, %v4891_v35, 0.0  ;;  %v4884_v35 = vmul.f32 %v4883_v51, %v4883_v51 }
0x2866   :  { %4894 = vadd.xlane.f32.xlu1 %v4893_v18  ;;  %v4008_v44 = vpop.xlane.xlu0 %4007 }
0x2867   :  { %v4009_v34 = vmul.f32 0.001953125, %v4008_v44  ;;  %v4886_v18 = vrot.slane %v4884_v35, 4 }
0x2869   :  { %v4010_v50 = vmul.f32 %v4009_v34, %v4009_v34  ;;  %v4888_v44 = vsub.f32 %v4883_v51, %v4886_v18 }
0x286b   :  { %v4012_v54 = vrot.slane %v4010_v50, 4  ;;  %v4889_v50 = vmax.f32 %v4888_v44, 0.0 }
0x286d   :  { %v4014_v2 = vsub.f32 %v4009_v34, %v4012_v54 }
0x286f   :  { %v4015_v21 = vmax.f32 %v4014_v2, 0.0 }
0x2871   :  { %v4016_v0 = vadd.f32 1e-05, %v4015_v21 }
0x2873   :  { %8292 = vrsqrt.f32 %v4016_v0 }
0x287d   :  { %v8293_v15 = vpop.eup %8292 }
0x287e   :  { %v4019_v10 = vrot.slane %v8293_v15, 4 }
0x2880   :  { %4020 = vrot.lane.b32.xlu0 %v4019_v10, %s8365_s24 }
0x28f2   :  { %v4021_v15 = vpop.permute.xlu0 %4020 }
0x28f3   :  { %v4895_v6 = vpop.xlane.xlu1 %4894 }
0x28f4   :  { %v4896_v13 = vrot.slane %v4895_v6, 4 }
0x28f6   :  { %v4897_v32 = vadd.f32 %v4896_v13, %v4895_v6  ;;  %v8335_v13 = vld [vmem:[%s12588_s5] sm:$0xf] }
0x28f7   :  { %v4023_v26 = vmul.f32 %v8335_v13, %v4021_v15 }
0x28f8   :  { %v4898_v23 = vrot.slane %v4897_v32, 2 }
0x28fa   :  { %v4899_v55 = vadd.f32 %v4898_v23, %v4897_v32  ;;  %v4033_v23 = vmul.f32 %v4023_v26, %v4009_v34 }
0x28fc   :  { %v4900_v45 = vrot.slane %v4899_v55, 1 }
0x28fe   :  { %v4901_v36 = vadd.f32 %v4900_v45, %v4899_v55  ;;  %v8336_v55 = vld [vmem:[%s12589_s6] sm:$0xf] }
0x28ff   :  { %v4034_v45 = vsub.f32 %v8336_v55, %v4033_v23 }
0x2900   :  { %8144 = vpush %v4901_v36  ;;  %v12701_v36 = vmov 9  }
0x2931   :  { %s8145_s19 = spop %8144 }
0x2932   :  { %v4903_v60 = vstv %s8145_s19 }
0x2933   :  { %8294 = vrsqrt.f32 %v4903_v60  ;;  %vm4906_vm14 = vcmp.eq.f32.partialorder %v4903_v60, inf  ;;  %v4909_v33 = vand.u32 2147483648, %v4903_v60  ;;  %vm4908_vm15 = vcmp.eq.f32.partialorder %v4903_v60, 0.0 }
0x293d   :  { %v8295_v14 = vpop.eup %8294 }
0x293e   :  { %v4905_v40 = vmul.f32 %v8295_v14, %v4903_v60  ;;  %v12702_v14 = vld [vmem:[#allocation10_spill] sm:$0xff] }
0x2940   :  { %v4907_v27 = vsel %vm4906_vm14, %v4903_v60, %v4905_v40 }
0x2941   :  { %v4910_v58 = vsel %vm4908_vm15, %v4909_v33, %v4907_v27  ;;  %v12703_v27 = vld [vmem:[#allocation11_spill] sm:$0xff] }
0x2942   :  { %8146 = vpush %v4910_v58 }
0x2973   :  { %s8147_s24 = spop %8146 }
0x2974   :  { %s4912_s20 = sadd.f32 1e-06, %s8147_s24 }
0x2976   :  { %s4913_s7 = smul.f32 %s4912_s20, %s4912_s20  ;;  %v4918_v10 = vstv %s4912_s20  ;;  %s8377_s20 = smov 10  }
0x2978   :  { %v4914_v54 = vstv %s4913_s7 }
0x2979   :  { %v4915_v2 = vmul.f32 %v4914_v54, %v4889_v50 }
0x297b   :  { %v4916_v21 = vadd.f32 1e-05, %v4915_v2 }
0x297d   :  { %8296 = vrsqrt.f32 %v4916_v21 }
0x2987   :  { %v8297_v0 = vpop.eup %8296 }
0x2988   :  { %v4919_v6 = vmul.f32 %v8297_v0, %v4918_v10 }
0x298a   :  { %v4921_v32 = vrot.slane %v4919_v6, 4 }
0x298c   :  { %4922 = vrot.lane.b32.xlu1 %v4921_v32, %s8375_s22 }
0x2990   :  { %4026 = vperm.xlu1 %8232, %v4023_v26  }
0x2994   :  { %4037 = vperm.xlu1 %8232, %v4034_v45  }
0x2998   :  { %8234 = vset.pattern.permute.xlu1 %v12701_v36 }
0x29fe   :  { %v4923_v60 = vpop.permute.xlu1 %4922 }
0x29ff   :  { %v4925_v40 = vmul.f32 %v12702_v14, %v4923_v60 }
0x2a01   :  { %v4935_v33 = vmul.f32 %v4925_v40, %v4883_v51  ;;  %4928 = vperm.xlu0 %8233, %v4925_v40  }
0x2a03   :  { %v4936_v58 = vsub.f32 %v12703_v27, %v4935_v33 }
0x2a05   :  { %4939 = vperm.xlu1 %8234, %v4936_v58  }
0x2a0f   :  { %v4027_v35 = vpop.permute.xlu1 %4026 }
0x2a10   :  { %v4029_v44 = vmul.f32 %v4027_v35, %v10602_v1  ;;  %v4030_v50 = vmul.f32 %v4027_v35, %v10604_v20  ;;  %v4032_v1 = vmul.f32 %v4027_v35, %v12700_v3  ;;  %v4031_v3 = vmul.f32 %v4027_v35, %v10632_v19 }
0x2a11   :  { %v8376_v19 = vmov 10  }
0x2a12   :  { %8235 = vset.pattern.permute.xlu0 %v8376_v19  ;;  %8236 = vset.pattern.permute.xlu1 %v8376_v19 }
0x2a13   :  { %v4038_v18 = vpop.permute.xlu1 %4037 }
0x2a14   :  { %v4040_v0 = vadd.f32 %v4038_v18, %v4029_v44  ;;  %v4041_v15 = vadd.f32 %v4038_v18, %v4030_v50  ;;  %v4042_v23 = vadd.f32 %v4038_v18, %v4031_v3  ;;  %v12704_v44 = vld [vmem:[#allocation4_spill] sm:$0xff] }
0x2a80   :  { %v4929_v34 = vpop.permute.xlu0 %4928 }
0x2a81   :  { %v4931_v54 = vmul.f32 %v4929_v34, %v11059_v4  ;;  %v4932_v2 = vmul.f32 %v4929_v34, %v11061_v29  ;;  %v4934_v26 = vmul.f32 %v4929_v34, %v11069_v38  ;;  %v4043_v4 = vadd.f32 %v4038_v18, %v4032_v1 }
0x2a82   :  { %v4933_v38 = vmul.f32 %v4929_v34, %v11063_v30  ;;  %v11189_v30 = vld [vmem:[%s12583_s2] sm:$0xf] }
0x2a84   :  { %v4940_v21 = vpop.permute.xlu1 %4939 }
0x2a85   :  { %v4942_v10 = vadd.f32 %v4940_v21, %v4931_v54  ;;  %v4943_v51 = vadd.f32 %v4940_v21, %v4932_v2  ;;  %v4945_v20 = vadd.f32 %v4940_v21, %v4934_v26  ;;  %v4944_v32 = vadd.f32 %v4940_v21, %v4933_v38  ;;  %v12705_v54 = vld [vmem:[#allocation3_spill] sm:$0xff]  ;;  %v12706_v21 = vld [vmem:[#allocation5_spill] sm:$0xff] }
0x2a87   :  { %v11110_v6 = vadd.f32 %v4942_v10, %v4040_v0  ;;  %v11112_v13 = vadd.f32 %v4943_v51, %v4041_v15  ;;  %v11124_v29 = vadd.f32 %v4945_v20, %v4043_v4  ;;  %v11140_v55 = vadd.f32 %v4944_v32, %v4042_v23  ;;  %v12707_v20 = vld [vmem:[#allocation6_spill] sm:$0xff] }
0x2a89   :  { %4968 = vrot.lane.b32.xlu1 %v11112_v13, %s8349_s30  ;;  %4966 = vrot.lane.b32.xlu0 %v11110_v6, %s8349_s30 }
0x2a8d   :  { %5000 = vrot.lane.b32.xlu1 %v11112_v13, %s8348_s29  ;;  %4998 = vrot.lane.b32.xlu0 %v11110_v6, %s8348_s29 }
0x2a91   :  { %5004 = vrot.lane.b32.xlu1 %v11124_v29, %s8348_s29  ;;  %4972 = vrot.lane.b32.xlu0 %v11124_v29, %s8349_s30 }
0x2a95   :  { %4952 = vrot.lane.b32.xlu1 %v11112_v13, %s8350_s11  ;;  %4950 = vrot.lane.b32.xlu0 %v11110_v6, %s8350_s11 }
0x2a99   :  { %4984 = vrot.lane.b32.xlu1 %v11112_v13, %s8351_s12  ;;  %4982 = vrot.lane.b32.xlu0 %v11110_v6, %s8351_s12 }
0x2a9d   :  { %4970 = vrot.lane.b32.xlu1 %v11140_v55, %s8349_s30  ;;  %4956 = vrot.lane.b32.xlu0 %v11124_v29, %s8350_s11 }
0x2aa1   :  { %5002 = vrot.lane.b32.xlu1 %v11140_v55, %s8348_s29  ;;  %4988 = vrot.lane.b32.xlu0 %v11124_v29, %s8351_s12 }
0x2aa5   :  { %5018 = vrot.lane.b32.xlu1 %v11140_v55, %s8352_s13  ;;  %5016 = vrot.lane.b32.xlu0 %v11112_v13, %s8352_s13 }
0x2aa9   :  { %5050 = vrot.lane.b32.xlu1 %v11140_v55, %s8353_s14  ;;  %5048 = vrot.lane.b32.xlu0 %v11112_v13, %s8353_s14 }
0x2aad   :  { %4986 = vrot.lane.b32.xlu1 %v11140_v55, %s8351_s12  ;;  %4954 = vrot.lane.b32.xlu0 %v11140_v55, %s8350_s11 }
0x2ab1   :  { %5046 = vrot.lane.b32.xlu1 %v11110_v6, %s8353_s14  ;;  %5014 = vrot.lane.b32.xlu0 %v11110_v6, %s8352_s13 }
0x2ab5   :  { %5034 = vrot.lane.b32.xlu1 %v11140_v55, %s8354_s15  ;;  %5032 = vrot.lane.b32.xlu0 %v11112_v13, %s8354_s15 }
0x2ab9   :  { %5030 = vrot.lane.b32.xlu1 %v11110_v6, %s8354_s15  ;;  %5020 = vrot.lane.b32.xlu0 %v11124_v29, %s8352_s13 }
0x2abd   :  { %5036 = vrot.lane.b32.xlu1 %v11124_v29, %s8354_s15  ;;  %5052 = vrot.lane.b32.xlu0 %v11124_v29, %s8353_s14 }
0x2ac1   :  { %5066 = vrot.lane.b32.xlu1 %v11140_v55, %s8357_s16  ;;  %5064 = vrot.lane.b32.xlu0 %v11112_v13, %s8357_s16 }
0x2ac5   :  { %5068 = vrot.lane.b32.xlu1 %v11124_v29, %s8357_s16  ;;  %5062 = vrot.lane.b32.xlu0 %v11110_v6, %s8357_s16 }
0x2ac9   :  { %5145 = vperm.xlu0 %8235, %v11189_v30  }
0x2afb   :  { %v4969_v45 = vpop.permute.xlu1 %4968  ;;  %v4967_v36 = vpop.permute.xlu0 %4966 }
0x2afc   :  { %v4976_v27 = vsel %vm149_vm0, %v4967_v36, %v4969_v45 }
0x2afd   :  { %v4979_v50 = vmul.f32 %v4976_v27, %v12704_v44 }
0x2aff   :  { %v5001_v60 = vpop.permute.xlu1 %5000  ;;  %v4999_v14 = vpop.permute.xlu0 %4998  ;;  %v5083_v26 = vrot.slane %v4979_v50, 4 }
0x2b00   :  { %v5008_v58 = vsel %vm229_vm1, %v4999_v14, %v5001_v60 }
0x2b01   :  { %v5011_v2 = vmul.f32 %v5008_v58, %v12705_v54 }
0x2b03   :  { %v5005_v40 = vpop.permute.xlu1 %5004  ;;  %v4973_v33 = vpop.permute.xlu0 %4972  ;;  %v5095_v1 = vrot.slane %v5011_v2, 4 }
0x2b04   :  { %v5009_v38 = vsel %vm229_vm1, %v5005_v40, %v4999_v14  ;;  %v4977_v3 = vsel %vm149_vm0, %v4973_v33, %v4967_v36 }
0x2b05   :  { %v5010_v50 = vmul.f32 %v5009_v38, %v12683_v56  ;;  %v4978_v2 = vmul.f32 %v4977_v3, %v12684_v25 }
0x2b07   :  { %v4953_v35 = vpop.permute.xlu1 %4952  ;;  %v4951_v18 = vpop.permute.xlu0 %4950 }
0x2b08   :  { %v4960_v34 = vsel %vm110_vm2, %v4951_v18, %v4953_v35 }
0x2b09   :  { %v4963_v0 = vmul.f32 %v4960_v34, %v12706_v21  ;;  %v5094_v21 = vrot.slane %v5010_v50, 4 }
0x2b0b   :  { %v4985_v15 = vpop.permute.xlu1 %4984  ;;  %v4983_v10 = vpop.permute.xlu0 %4982  ;;  %v5127_v19 = vsel %vm45_vm4, %v4963_v0, %v5083_v26  ;;  %v5082_v0 = vrot.slane %v4978_v2, 4 }
0x2b0c   :  { %v4992_v51 = vsel %vm189_vm3, %v4983_v10, %v4985_v15 }
0x2b0d   :  { %v4995_v4 = vmul.f32 %v4992_v51, %v12707_v20 }
0x2b0f   :  { %v4971_v32 = vpop.permute.xlu1 %4970  ;;  %v4957_v23 = vpop.permute.xlu0 %4956  ;;  %v5131_v27 = vsel %vm45_vm4, %v4995_v4, %v5095_v1 }
0x2b10   :  { %v4961_v58 = vsel %vm110_vm2, %v4957_v23, %v4951_v18  ;;  %v8012_v34 = vpack.c.bf16 %v5131_v27, %v5127_v19  ;;  %v4975_v18 = vsel %vm149_vm0, %v4969_v45, %v4971_v32  ;;  %v4974_v19 = vsel %vm149_vm0, %v4971_v32, %v4973_v33 }
0x2b11   :  { %v4962_v14 = vmul.f32 %v4961_v58, %v12685_v37  ;;  %v4981_v45 = vmul.f32 %v4974_v19, %v8625_v5 }
0x2b12   :  { %8013 = vmatprep.subr.bf16.mxu0 %v8012_v34  ;;  %v4980_v34 = vmul.f32 %v4975_v18, %v8622_v63 }
0x2b13   :  { %v5003_v51 = vpop.permute.xlu1 %5002  ;;  %v4989_v20 = vpop.permute.xlu0 %4988  ;;  %v5126_v38 = vsel %vm45_vm4, %v4962_v14, %v5082_v0  ;;  %v5085_v33 = vrot.slane %v4981_v45, 4 }
0x2b14   :  { %v4993_v36 = vsel %vm189_vm3, %v4989_v20, %v4983_v10  ;;  %v5006_v27 = vsel %vm229_vm1, %v5003_v51, %v5005_v40  ;;  %v5007_v10 = vsel %vm229_vm1, %v5001_v60, %v5003_v51 }
0x2b15   :  { %v4994_v26 = vmul.f32 %v4993_v36, %v8609_v53  ;;  %v5012_v50 = vmul.f32 %v5007_v10, %v8628_v7  ;;  %v5013_v2 = vmul.f32 %v5006_v27, %v8633_v9  ;;  %v5084_v36 = vrot.slane %v4980_v34, 4 }
0x2b17   :  { %v5019_v1 = vpop.permute.xlu1 %5018  ;;  %v5017_v4 = vpop.permute.xlu0 %5016  ;;  %v5130_v3 = vsel %vm45_vm4, %v4994_v26, %v5094_v21  ;;  %v5096_v32 = vrot.slane %v5012_v50, 4  ;;  %v5097_v0 = vrot.slane %v5013_v2, 4 }
0x2b18   :  { %v8014_v58 = vpack.c.bf16 %v5130_v3, %v5126_v38  ;;  %v5023_v40 = vsel %vm269_vm5, %v5017_v4, %v5019_v1 }
0x2b19   :  { %v5027_v34 = vmul.f32 %v5023_v40, %v8679_v47 }
0x2b1a   :  { %8015 = vmatpush1.bf16.msra.mxu0 %v8014_v58 }
0x2b1b   :  { %v5051_v21 = vpop.permute.xlu1 %5050  ;;  %v5049_v14 = vpop.permute.xlu0 %5048 }
0x2b1f   :  { %v4987_v60 = vpop.permute.xlu1 %4986  ;;  %v4955_v51 = vpop.permute.xlu0 %4954 }
0x2b20   :  { %v4990_v26 = vsel %vm189_vm3, %v4987_v60, %v4989_v20  ;;  %v4991_v18 = vsel %vm189_vm3, %v4985_v15, %v4987_v60  ;;  %v4958_v38 = vsel %vm110_vm2, %v4955_v51, %v4957_v23  ;;  %v4959_v3 = vsel %vm110_vm2, %v4953_v35, %v4955_v51 }
0x2b21   :  { %v4996_v19 = vmul.f32 %v4991_v18, %v8663_v39  ;;  %v4997_v27 = vmul.f32 %v4990_v26, %v8667_v41  ;;  %v4964_v10 = vmul.f32 %v4959_v3, %v8671_v42  ;;  %v4965_v58 = vmul.f32 %v4958_v38, %v8675_v43 }
0x2b22   :  { %v5055_v20 = vsel %vm349_vm6, %v5049_v14, %v5051_v21  ;;  %v5107_v38 = vrot.slane %v5027_v34, 4 }
0x2b23   :  { %v5047_v15 = vpop.permute.xlu1 %5046  ;;  %v5015_v45 = vpop.permute.xlu0 %5014  ;;  %v5129_v23 = vsel %vm45_vm4, %v4965_v58, %v5085_v33  ;;  %v5133_v50 = vsel %vm45_vm4, %v4997_v27, %v5097_v0  ;;  %v5128_v35 = vsel %vm45_vm4, %v4964_v10, %v5084_v36  ;;  %v5132_v2 = vsel %vm45_vm4, %v4996_v19, %v5096_v32 }
0x2b24   :  { %v5056_v60 = vsel %vm349_vm6, %v5047_v15, %v5049_v14  ;;  %v8020_v51 = vpack.c.bf16 %v5133_v50, %v5129_v23  ;;  %v8022_v26 = vpack.c.bf16 %v5132_v2, %v5128_v35  ;;  %v5059_v40 = vmul.f32 %v5055_v20, %v8683_v48 }
0x2b25   :  { %v5024_v18 = vsel %vm269_vm5, %v5015_v45, %v5017_v4  ;;  %v5058_v33 = vmul.f32 %v5056_v60, %v8708_v46  ;;  %v5135_v4 = vsel %vm45_vm4, %v11112_v13, %v5107_v38 }
0x2b26   :  { %8021 = vmatprep.subr.bf16.mxu1 %v8020_v51  ;;  %v5119_v32 = vrot.slane %v5059_v40, 4  ;;  %v5026_v14 = vmul.f32 %v5024_v18, %v8722_v52 }
0x2b27   :  { %v5035_v3 = vpop.permute.xlu1 %5034  ;;  %8023 = vmatpush1.bf16.msra.mxu1 %v8022_v26  ;;  %v5033_v0 = vpop.permute.xlu0 %5032  ;;  %v5118_v27 = vrot.slane %v5058_v33, 4 }
0x2b28   :  { %v5039_v36 = vsel %vm309_vm7, %v5033_v0, %v5035_v3  ;;  %v5106_v2 = vrot.slane %v5026_v14, 4 }
0x2b29   :  { %v5043_v19 = vmul.f32 %v5039_v36, %v8725_v24 }
0x2b2b   :  { %v5031_v10 = vpop.permute.xlu1 %5030  ;;  %v5021_v58 = vpop.permute.xlu0 %5020  ;;  %v5139_v34 = vsel %vm45_vm4, %v5043_v19, %v5119_v32  ;;  %v5134_v19 = vsel %vm45_vm4, %v11110_v6, %v5106_v2 }
0x2b2c   :  { %v5040_v20 = vsel %vm309_vm7, %v5031_v10, %v5033_v0  ;;  %v5022_v23 = vsel %vm269_vm5, %v5019_v1, %v5021_v58  ;;  %v5025_v50 = vsel %vm269_vm5, %v5021_v58, %v5015_v45  ;;  %v8016_v35 = vpack.c.bf16 %v5139_v34, %v5135_v4 }
0x2b2d   :  { %v5042_v60 = vmul.f32 %v5040_v20, %v8733_v57  ;;  %v5028_v51 = vmul.f32 %v5022_v23, %v8736_v59  ;;  %v5029_v26 = vmul.f32 %v5025_v50, %v8741_v62 }
0x2b2e   :  { %8017 = vmatprep.subr.bf16.mxu0 %v8016_v35 }
0x2b2f   :  { %v5109_v13 = vrot.slane %v5029_v26, 4  ;;  %v5037_v40 = vpop.permute.xlu1 %5036  ;;  %v5053_v18 = vpop.permute.xlu0 %5052  ;;  %v5138_v38 = vsel %vm45_vm4, %v5042_v60, %v5118_v27  ;;  %v5108_v36 = vrot.slane %v5028_v51, 4 }
0x2b30   :  { %v5038_v1 = vsel %vm309_vm7, %v5035_v3, %v5037_v40  ;;  %v5041_v45 = vsel %vm309_vm7, %v5037_v40, %v5031_v10  ;;  %v5054_v33 = vsel %vm349_vm6, %v5051_v21, %v5053_v18  ;;  %v5057_v0 = vsel %vm349_vm6, %v5053_v18, %v5047_v15 }
0x2b31   :  { %v5060_v32 = vmul.f32 %v5054_v33, %v8745_v8  ;;  %v5061_v14 = vmul.f32 %v5057_v0, %v8752_v31  ;;  %v8018_v27 = vpack.c.bf16 %v5138_v38, %v5134_v19  ;;  %v5044_v3 = vmul.f32 %v5038_v1, %v8769_v22  ;;  %v7810_v38 = vld [vmem:[%s12585_s1 + $0x28] sm:$0xf] }
0x2b32   :  { %v5045_v58 = vmul.f32 %v5041_v45, %v8772_v16  ;;  %v5137_v20 = vsel %vm45_vm4, %v11124_v29, %v5109_v13  ;;  %v5136_v50 = vsel %vm45_vm4, %v11140_v55, %v5108_v36 }
0x2b33   :  { %v5120_v10 = vrot.slane %v5060_v32, 4  ;;  %v5121_v4 = vrot.slane %v5061_v14, 4  ;;  %v5067_v34 = vpop.permute.xlu1 %5066  ;;  %v5065_v21 = vpop.permute.xlu0 %5064  ;;  %8019 = vmatpush1.bf16.msra.mxu0 %v8018_v27 }
0x2b34   :  { %v5071_v15 = vsel %vm389_vm8, %v5065_v21, %v5067_v34 }
0x2b35   :  { %v5075_v23 = vmul.f32 %v5071_v15, %v8776_v61  ;;  %v5141_v6 = vsel %vm45_vm4, %v5045_v58, %v5121_v4  ;;  %v5140_v35 = vsel %vm45_vm4, %v5044_v3, %v5120_v10 }
0x2b36   :  { %v8024_v2 = vpack.c.bf16 %v5141_v6, %v5137_v20  ;;  %v8026_v60 = vpack.c.bf16 %v5140_v35, %v5136_v50 }
0x2b37   :  { %v5069_v51 = vpop.permute.xlu1 %5068  ;;  %7811 = vmatprep.subr.msk.mxu0 %vm45_vm4, %v5075_v23  ;;  %v5063_v26 = vpop.permute.xlu0 %5062 }
0x2b38   :  { %v5070_v40 = vsel %vm389_vm8, %v5067_v34, %v5069_v51  ;;  %v5072_v29 = vsel %vm389_vm8, %v5063_v26, %v5065_v21  ;;  %v5073_v13 = vsel %vm389_vm8, %v5069_v51, %v5063_v26  ;;  %8025 = vmatprep.subr.bf16.mxu1 %v8024_v2 }
0x2b39   :  { %v5074_v55 = vmul.f32 %v5072_v29, %v8796_v12  ;;  %v5077_v18 = vmul.f32 %v5073_v13, %v8799_v49  ;;  %8027 = vmatpush1.bf16.msra.mxu1 %v8026_v60  ;;  %v5076_v1 = vmul.f32 %v5070_v40, %v8809_v28 }
0x2b3b   :  { %7812 = vmatpush1.msk.msra.mxu0 %vm45_vm4, %v5074_v55  ;;  %7814 = vmatprep.subr.msk.mxu1 %vm45_vm4, %v5077_v18 }
0x2b3c   :  { %7813 = vmatmul.mubr.msk.f32.vlgmr.msra.gmra.mrb[20].mxu0 %vm492_vm9, %v7810_v38 }
0x2b3d   :  { %7815 = vmatpush1.msk.msra.mxu1 %vm45_vm4, %v5076_v1  ;;  %5678 = vmatprep.mubr.f32.mxu0 %v12657_v17 }
0x2b3e   :  { %7816 = vmatmul.mubr.msk.f32.vlgmr.msra.gmra.mrb[20].mxu1 %vm492_vm9, %v7810_v38 }
0x2b3f   :  { %5749 = vmatprep.mubr.f32.mxu1 %v12657_v17 }
0x2b48   :  { %v5146_v45 = vpop.permute.xlu0 %5145 }
0x2c0f   :  { %v5229_v33 = vpop.f32.mrb[20].mxu0 }
0x2c10   :  { %v5230_v0 = vadd.f32 %v5229_v33, %v5146_v45  ;;  %v5231_v36 = vpop.f32.mrb[21].mxu0 }
0x2c11   :  { %v5232_v32 = vadd.f32 %v5231_v36, %v5146_v45  ;;  %v5300_v14 = vpop.f32.mrb[20].mxu1 }
0x2c12   :  { %v5305_v19 = vmul.f32 0.01, %v5230_v0  ;;  %v5301_v27 = vadd.f32 %v5300_v14, %v5146_v45  ;;  %v5302_v3 = vpop.f32.mrb[21].mxu1 }
0x2c13   :  { %v5306_v58 = vmul.f32 0.01, %v5232_v32  ;;  %v5303_v10 = vadd.f32 %v5302_v3, %v5146_v45 }
0x2c14   :  { %v11319_v4 = vmax.f32 %v5230_v0, %v5305_v19  ;;  %v5307_v34 = vmul.f32 0.01, %v5301_v27 }
0x2c15   :  { %v11321_v21 = vmax.f32 %v5232_v32, %v5306_v58  ;;  %v5308_v15 = vmul.f32 0.01, %v5303_v10 }
0x2c16   :  { %v11323_v20 = vmax.f32 %v5301_v27, %v5307_v34  ;;  %v5313_v23 = vmul.f32 %v11319_v4, %v11319_v4 }
0x2c17   :  { %v5314_v6 = vmul.f32 %v11321_v21, %v11321_v21  ;;  %v11329_v50 = vmax.f32 %v5303_v10, %v5308_v15 }
0x2c18   :  { %v5315_v35 = vmul.f32 %v11323_v20, %v11323_v20  ;;  %v5321_v2 = vrot.slane %v5313_v23, 4 }
0x2c19   :  { %v5322_v60 = vrot.slane %v5314_v6, 4  ;;  %v5316_v51 = vmul.f32 %v11329_v50, %v11329_v50 }
0x2c1a   :  { %v5323_v26 = vrot.slane %v5315_v35, 4  ;;  %v5329_v40 = vsel %vm45_vm4, %v11319_v4, %v5321_v2 }
0x2c1b   :  { %v5330_v29 = vsel %vm45_vm4, %v11321_v21, %v5322_v60  ;;  %v5324_v13 = vrot.slane %v5316_v51, 4 }
0x2c1c   :  { %v5331_v55 = vsel %vm45_vm4, %v11323_v20, %v5323_v26  ;;  %v5333_v18 = vadd.f32 %v5330_v29, %v5329_v40 }
0x2c1d   :  { %v5332_v1 = vsel %vm45_vm4, %v11329_v50, %v5324_v13 }
0x2c1e   :  { %v5334_v38 = vadd.f32 %v5333_v18, %v5331_v55 }
0x2c20   :  { %v5335_v45 = vadd.f32 %v5334_v38, %v5332_v1 }
0x2c22   :  { %5336 = vadd.xlane.f32.xlu1 %v5335_v45 }
0x2caf   :  { %v5337_v33 = vpop.xlane.xlu1 %5336 }
0x2cb0   :  { %v5346_v0 = vrot.slane %v5337_v33, 4  ;;  %v5338_v60 = vmul.f32 0.001953125, %v5337_v33  ;;  %v11347_v33 = vld [vmem:[%s12586_s3] sm:$0xf] }
0x2cb2   :  { %v5348_v36 = vsel %vm693_vm10, %v5346_v0, 0.0  ;;  %v5339_v51 = vmul.f32 %v5338_v60, %v5338_v60 }
0x2cb3   :  { %5349 = vadd.xlane.f32.xlu0 %v5348_v36 }
0x2cb4   :  { %v5341_v26 = vrot.slane %v5339_v51, 4 }
0x2cb6   :  { %v5343_v40 = vsub.f32 %v5338_v60, %v5341_v26 }
0x2cb8   :  { %v5344_v29 = vmax.f32 %v5343_v40, 0.0 }
0x2d40   :  { %v5350_v32 = vpop.xlane.xlu0 %5349 }
0x2d41   :  { %v5351_v14 = vrot.slane %v5350_v32, 4 }
0x2d43   :  { %v5352_v19 = vadd.f32 %v5351_v14, %v5350_v32 }
0x2d45   :  { %v5353_v27 = vrot.slane %v5352_v19, 2 }
0x2d47   :  { %v5354_v3 = vadd.f32 %v5353_v27, %v5352_v19  ;;  %v11353_v19 = vld [vmem:[%s12587_s4] sm:$0xf] }
0x2d49   :  { %v5355_v58 = vrot.slane %v5354_v3, 1 }
0x2d4b   :  { %v5356_v10 = vadd.f32 %v5355_v58, %v5354_v3 }
0x2d4d   :  { %8148 = vpush %v5356_v10 }
0x2d7e   :  { %s8149_s10 = spop %8148 }
0x2d7f   :  { %v5358_v34 = vstv %s8149_s10  ;;  %s8379_s10 = smov 11  }
0x2d80   :  { %8298 = vrsqrt.f32 %v5358_v34  ;;  %vm5361_vm11 = vcmp.eq.f32.partialorder %v5358_v34, inf  ;;  %v5364_v6 = vand.u32 2147483648, %v5358_v34  ;;  %vm5363_vm12 = vcmp.eq.f32.partialorder %v5358_v34, 0.0 }
0x2d8a   :  { %v8299_v15 = vpop.eup %8298 }
0x2d8b   :  { %v5360_v23 = vmul.f32 %v8299_v15, %v5358_v34 }
0x2d8d   :  { %v5362_v35 = vsel %vm5361_vm11, %v5358_v34, %v5360_v23 }
0x2d8e   :  { %v5365_v2 = vsel %vm5363_vm12, %v5364_v6, %v5362_v35 }
0x2d8f   :  { %8150 = vpush %v5365_v2 }
0x2dc0   :  { %s8151_s18 = spop %8150 }
0x2dc1   :  { %s5367_s19 = sadd.f32 1e-06, %s8151_s18 }
0x2dc3   :  { %s5368_s24 = smul.f32 %s5367_s19, %s5367_s19  ;;  %v5373_v1 = vstv %s5367_s19 }
0x2dc5   :  { %v5369_v13 = vstv %s5368_s24 }
0x2dc6   :  { %v5370_v55 = vmul.f32 %v5369_v13, %v5344_v29 }
0x2dc8   :  { %v5371_v18 = vadd.f32 1e-05, %v5370_v55 }
0x2dca   :  { %8300 = vrsqrt.f32 %v5371_v18 }
0x2dd4   :  { %v8301_v38 = vpop.eup %8300 }
0x2dd5   :  { %v5374_v45 = vmul.f32 %v8301_v38, %v5373_v1 }
0x2dd7   :  { %v5376_v0 = vrot.slane %v5374_v45, 4  ;;  %v12708_v45 = vld [vmem:[#allocation5_spill] sm:$0xff] }
0x2dd9   :  { %5377 = vrot.lane.b32.xlu1 %v5376_v0, %s8377_s20 }
0x2e4b   :  { %v5378_v36 = vpop.permute.xlu1 %5377 }
0x2e4c   :  { %v5380_v32 = vmul.f32 %v11347_v33, %v5378_v36 }
0x2e4e   :  { %v5390_v14 = vmul.f32 %v5380_v32, %v5338_v60  ;;  %5383 = vperm.xlu0 %8235, %v5380_v32  }
0x2e50   :  { %v5391_v27 = vsub.f32 %v11353_v19, %v5390_v14 }
0x2e52   :  { %5394 = vperm.xlu1 %8236, %v5391_v27  }
0x2ecd   :  { %v5384_v3 = vpop.permute.xlu0 %5383 }
0x2ece   :  { %v5386_v58 = vmul.f32 %v5384_v3, %v11319_v4  ;;  %v5387_v10 = vmul.f32 %v5384_v3, %v11321_v21  ;;  %v5389_v6 = vmul.f32 %v5384_v3, %v11329_v50  ;;  %v5388_v21 = vmul.f32 %v5384_v3, %v11323_v20 }
0x2ecf   :  { %v8378_v20 = vmov 11  }
0x2ed0   :  { %8237 = vset.pattern.permute.xlu1 %v8378_v20  ;;  %8238 = vset.pattern.permute.xlu0 %v8378_v20 }
0x2ed1   :  { %v5395_v34 = vpop.permute.xlu1 %5394 }
0x2ed2   :  { %v11358_v15 = vadd.f32 %v5395_v34, %v5386_v58  ;;  %v11360_v23 = vadd.f32 %v5395_v34, %v5387_v10  ;;  %v11371_v4 = vadd.f32 %v5395_v34, %v5389_v6  ;;  %v11386_v50 = vadd.f32 %v5395_v34, %v5388_v21  ;;  %v12709_v58 = vld [vmem:[#allocation6_spill] sm:$0xff] }
0x2ed4   :  { %5419 = vrot.lane.b32.xlu0 %v11360_v23, %s8349_s30  ;;  %5417 = vrot.lane.b32.xlu1 %v11358_v15, %s8349_s30 }
0x2ed8   :  { %5451 = vrot.lane.b32.xlu0 %v11360_v23, %s8348_s29  ;;  %5449 = vrot.lane.b32.xlu1 %v11358_v15, %s8348_s29 }
0x2edc   :  { %5455 = vrot.lane.b32.xlu0 %v11371_v4, %s8348_s29  ;;  %5423 = vrot.lane.b32.xlu1 %v11371_v4, %s8349_s30 }
0x2ee0   :  { %5403 = vrot.lane.b32.xlu0 %v11360_v23, %s8350_s11  ;;  %5401 = vrot.lane.b32.xlu1 %v11358_v15, %s8350_s11 }
0x2ee4   :  { %5435 = vrot.lane.b32.xlu0 %v11360_v23, %s8351_s12  ;;  %5433 = vrot.lane.b32.xlu1 %v11358_v15, %s8351_s12 }
0x2ee8   :  { %5421 = vrot.lane.b32.xlu0 %v11386_v50, %s8349_s30  ;;  %5407 = vrot.lane.b32.xlu1 %v11371_v4, %s8350_s11 }
0x2eec   :  { %5453 = vrot.lane.b32.xlu0 %v11386_v50, %s8348_s29  ;;  %5439 = vrot.lane.b32.xlu1 %v11371_v4, %s8351_s12 }
0x2ef0   :  { %5469 = vrot.lane.b32.xlu0 %v11386_v50, %s8352_s13  ;;  %5467 = vrot.lane.b32.xlu1 %v11360_v23, %s8352_s13 }
0x2ef4   :  { %5501 = vrot.lane.b32.xlu0 %v11386_v50, %s8353_s14  ;;  %5499 = vrot.lane.b32.xlu1 %v11360_v23, %s8353_s14 }
0x2ef8   :  { %5437 = vrot.lane.b32.xlu0 %v11386_v50, %s8351_s12  ;;  %5405 = vrot.lane.b32.xlu1 %v11386_v50, %s8350_s11 }
0x2efc   :  { %5497 = vrot.lane.b32.xlu0 %v11358_v15, %s8353_s14  ;;  %5465 = vrot.lane.b32.xlu1 %v11358_v15, %s8352_s13 }
0x2f00   :  { %5485 = vrot.lane.b32.xlu0 %v11386_v50, %s8354_s15  ;;  %5483 = vrot.lane.b32.xlu1 %v11360_v23, %s8354_s15 }
0x2f04   :  { %5481 = vrot.lane.b32.xlu0 %v11358_v15, %s8354_s15  ;;  %5471 = vrot.lane.b32.xlu1 %v11371_v4, %s8352_s13 }
0x2f08   :  { %5487 = vrot.lane.b32.xlu0 %v11371_v4, %s8354_s15  ;;  %5503 = vrot.lane.b32.xlu1 %v11371_v4, %s8353_s14 }
0x2f0c   :  { %5517 = vrot.lane.b32.xlu0 %v11386_v50, %s8357_s16  ;;  %5515 = vrot.lane.b32.xlu1 %v11360_v23, %s8357_s16 }
0x2f10   :  { %5519 = vrot.lane.b32.xlu0 %v11371_v4, %s8357_s16  ;;  %5513 = vrot.lane.b32.xlu1 %v11358_v15, %s8357_s16 }
0x2f14   :  { %5596 = vperm.xlu1 %8237, %v11189_v30  }
0x2f46   :  { %v5420_v35 = vpop.permute.xlu0 %5419  ;;  %v5418_v2 = vpop.permute.xlu1 %5417 }
0x2f47   :  { %v5427_v29 = vsel %vm149_vm0, %v5418_v2, %v5420_v35 }
0x2f48   :  { %v5430_v1 = vmul.f32 %v5427_v29, %v12704_v44 }
0x2f4a   :  { %v5452_v60 = vpop.permute.xlu0 %5451  ;;  %v5450_v51 = vpop.permute.xlu1 %5449  ;;  %v5534_v27 = vrot.slane %v5430_v1, 4 }
0x2f4b   :  { %v5459_v13 = vsel %vm229_vm1, %v5450_v51, %v5452_v60 }
0x2f4c   :  { %v5462_v30 = vmul.f32 %v5459_v13, %v12705_v54 }
0x2f4e   :  { %v5456_v26 = vpop.permute.xlu0 %5455  ;;  %v5424_v40 = vpop.permute.xlu1 %5423  ;;  %v5546_v3 = vrot.slane %v5462_v30, 4 }
0x2f4f   :  { %v5460_v34 = vsel %vm229_vm1, %v5456_v26, %v5450_v51  ;;  %v5428_v6 = vsel %vm149_vm0, %v5424_v40, %v5418_v2 }
0x2f50   :  { %v5461_v1 = vmul.f32 %v5460_v34, %v12683_v56  ;;  %v5429_v30 = vmul.f32 %v5428_v6, %v12684_v25 }
0x2f52   :  { %v5404_v55 = vpop.permute.xlu0 %5403  ;;  %v5402_v18 = vpop.permute.xlu1 %5401  ;;  %v5545_v54 = vrot.slane %v5461_v1, 4 }
0x2f53   :  { %v5411_v38 = vsel %vm110_vm2, %v5402_v18, %v5404_v55 }
0x2f54   :  { %v5414_v0 = vmul.f32 %v5411_v38, %v12708_v45 }
0x2f56   :  { %v5436_v36 = vpop.permute.xlu0 %5435  ;;  %v5434_v32 = vpop.permute.xlu1 %5433  ;;  %v5578_v29 = vsel %vm45_vm4, %v5414_v0, %v5534_v27  ;;  %v5533_v0 = vrot.slane %v5429_v30, 4 }
0x2f57   :  { %v5443_v14 = vsel %vm189_vm3, %v5434_v32, %v5436_v36 }
0x2f58   :  { %v5446_v10 = vmul.f32 %v5443_v14, %v12709_v58 }
0x2f5a   :  { %v5422_v21 = vpop.permute.xlu0 %5421  ;;  %v5408_v20 = vpop.permute.xlu1 %5407  ;;  %v5582_v13 = vsel %vm45_vm4, %v5446_v10, %v5546_v3 }
0x2f5b   :  { %v5412_v38 = vsel %vm110_vm2, %v5408_v20, %v5402_v18  ;;  %v8028_v45 = vpack.c.bf16 %v5582_v13, %v5578_v29  ;;  %v5426_v18 = vsel %vm149_vm0, %v5420_v35, %v5422_v21  ;;  %v5425_v6 = vsel %vm149_vm0, %v5422_v21, %v5424_v40 }
0x2f5c   :  { %v5413_v51 = vmul.f32 %v5412_v38, %v12685_v37  ;;  %v5431_v38 = vmul.f32 %v5426_v18, %v8622_v63  ;;  %v5432_v35 = vmul.f32 %v5425_v6, %v8625_v5 }
0x2f5d   :  { %8029 = vmatprep.subr.bf16.mxu0 %v8028_v45 }
0x2f5e   :  { %v5454_v14 = vpop.permute.xlu0 %5453  ;;  %v5440_v58 = vpop.permute.xlu1 %5439  ;;  %v5577_v34 = vsel %vm45_vm4, %v5413_v51, %v5533_v0  ;;  %v5536_v40 = vrot.slane %v5432_v35, 4 }
0x2f5f   :  { %v5444_v2 = vsel %vm189_vm3, %v5440_v58, %v5434_v32  ;;  %v5457_v29 = vsel %vm229_vm1, %v5454_v14, %v5456_v26  ;;  %v5458_v32 = vsel %vm229_vm1, %v5452_v60, %v5454_v14 }
0x2f60   :  { %v5445_v27 = vmul.f32 %v5444_v2, %v8609_v53  ;;  %v5463_v1 = vmul.f32 %v5458_v32, %v8628_v7  ;;  %v5464_v30 = vmul.f32 %v5457_v29, %v8633_v9  ;;  %v5535_v2 = vrot.slane %v5431_v38, 4 }
0x2f62   :  { %v5470_v3 = vpop.permute.xlu0 %5469  ;;  %v5468_v10 = vpop.permute.xlu1 %5467  ;;  %v5581_v45 = vsel %vm45_vm4, %v5445_v27, %v5545_v54  ;;  %v5547_v21 = vrot.slane %v5463_v1, 4  ;;  %v5548_v0 = vrot.slane %v5464_v30, 4 }
0x2f63   :  { %v8030_v13 = vpack.c.bf16 %v5581_v45, %v5577_v34  ;;  %v5474_v26 = vsel %vm269_vm5, %v5468_v10, %v5470_v3 }
0x2f64   :  { %v5478_v38 = vmul.f32 %v5474_v26, %v8679_v47 }
0x2f65   :  { %8031 = vmatpush1.bf16.msra.mxu0 %v8030_v13 }
0x2f66   :  { %v5502_v54 = vpop.permute.xlu0 %5501  ;;  %v5500_v51 = vpop.permute.xlu1 %5499 }
0x2f6a   :  { %v5438_v60 = vpop.permute.xlu0 %5437  ;;  %v5406_v14 = vpop.permute.xlu1 %5405 }
0x2f6b   :  { %v5441_v27 = vsel %vm189_vm3, %v5438_v60, %v5440_v58  ;;  %v5442_v18 = vsel %vm189_vm3, %v5436_v36, %v5438_v60  ;;  %v5409_v34 = vsel %vm110_vm2, %v5406_v14, %v5408_v20  ;;  %v5410_v45 = vsel %vm110_vm2, %v5404_v55, %v5406_v14 }
0x2f6c   :  { %v5447_v6 = vmul.f32 %v5442_v18, %v8663_v39  ;;  %v5448_v29 = vmul.f32 %v5441_v27, %v8667_v41  ;;  %v5415_v32 = vmul.f32 %v5410_v45, %v8671_v42  ;;  %v5416_v13 = vmul.f32 %v5409_v34, %v8675_v43 }
0x2f6d   :  { %v5506_v58 = vsel %vm349_vm6, %v5500_v51, %v5502_v54  ;;  %v5558_v34 = vrot.slane %v5478_v38, 4 }
0x2f6e   :  { %v5498_v36 = vpop.permute.xlu0 %5497  ;;  %v5466_v35 = vpop.permute.xlu1 %5465  ;;  %v5580_v20 = vsel %vm45_vm4, %v5416_v13, %v5536_v40  ;;  %v5584_v1 = vsel %vm45_vm4, %v5448_v29, %v5548_v0  ;;  %v5579_v55 = vsel %vm45_vm4, %v5415_v32, %v5535_v2  ;;  %v5583_v30 = vsel %vm45_vm4, %v5447_v6, %v5547_v21 }
0x2f6f   :  { %v5507_v60 = vsel %vm349_vm6, %v5498_v36, %v5500_v51  ;;  %v8036_v14 = vpack.c.bf16 %v5584_v1, %v5580_v20  ;;  %v8038_v27 = vpack.c.bf16 %v5583_v30, %v5579_v55  ;;  %v5510_v26 = vmul.f32 %v5506_v58, %v8683_v48 }
0x2f70   :  { %v5475_v18 = vsel %vm269_vm5, %v5466_v35, %v5468_v10  ;;  %v5509_v40 = vmul.f32 %v5507_v60, %v8708_v46  ;;  %v5586_v10 = vsel %vm45_vm4, %v11360_v23, %v5558_v34 }
0x2f71   :  { %8037 = vmatprep.subr.bf16.mxu1 %v8036_v14  ;;  %v5570_v21 = vrot.slane %v5510_v26, 4  ;;  %v5477_v51 = vmul.f32 %v5475_v18, %v8722_v52 }
0x2f72   :  { %v5486_v45 = vpop.permute.xlu0 %5485  ;;  %8039 = vmatpush1.bf16.msra.mxu1 %v8038_v27  ;;  %v5484_v0 = vpop.permute.xlu1 %5483  ;;  %v5569_v29 = vrot.slane %v5509_v40, 4 }
0x2f73   :  { %v5490_v2 = vsel %vm309_vm7, %v5484_v0, %v5486_v45  ;;  %v5557_v30 = vrot.slane %v5477_v51, 4 }
0x2f74   :  { %v5494_v6 = vmul.f32 %v5490_v2, %v8725_v24 }
0x2f76   :  { %v5482_v32 = vpop.permute.xlu0 %5481  ;;  %v5472_v13 = vpop.permute.xlu1 %5471  ;;  %v5590_v38 = vsel %vm45_vm4, %v5494_v6, %v5570_v21  ;;  %v5585_v6 = vsel %vm45_vm4, %v11358_v15, %v5557_v30 }
0x2f77   :  { %v5491_v58 = vsel %vm309_vm7, %v5482_v32, %v5484_v0  ;;  %v5473_v20 = vsel %vm269_vm5, %v5470_v3, %v5472_v13  ;;  %v5476_v1 = vsel %vm269_vm5, %v5472_v13, %v5466_v35  ;;  %v8032_v55 = vpack.c.bf16 %v5590_v38, %v5586_v10 }
0x2f78   :  { %v5493_v60 = vmul.f32 %v5491_v58, %v8733_v57  ;;  %v5479_v14 = vmul.f32 %v5473_v20, %v8736_v59  ;;  %v5480_v27 = vmul.f32 %v5476_v1, %v8741_v62 }
0x2f79   :  { %8033 = vmatprep.subr.bf16.mxu0 %v8032_v55 }
0x2f7a   :  { %v5560_v23 = vrot.slane %v5480_v27, 4  ;;  %v5488_v26 = vpop.permute.xlu0 %5487  ;;  %v5504_v18 = vpop.permute.xlu1 %5503  ;;  %v5589_v34 = vsel %vm45_vm4, %v5493_v60, %v5569_v29  ;;  %v5559_v2 = vrot.slane %v5479_v14, 4 }
0x2f7b   :  { %v5489_v3 = vsel %vm309_vm7, %v5486_v45, %v5488_v26  ;;  %v5492_v35 = vsel %vm309_vm7, %v5488_v26, %v5482_v32  ;;  %v5505_v40 = vsel %vm349_vm6, %v5502_v54, %v5504_v18  ;;  %v5508_v0 = vsel %vm349_vm6, %v5504_v18, %v5498_v36 }
0x2f7c   :  { %v5511_v21 = vmul.f32 %v5505_v40, %v8745_v8  ;;  %v5512_v51 = vmul.f32 %v5508_v0, %v8752_v31  ;;  %v8034_v29 = vpack.c.bf16 %v5589_v34, %v5585_v6  ;;  %v5495_v45 = vmul.f32 %v5489_v3, %v8769_v22  ;;  %v7817_v34 = vld [vmem:[%s12585_s1 + $0x2c] sm:$0xf] }
0x2f7d   :  { %v5496_v13 = vmul.f32 %v5492_v35, %v8772_v16  ;;  %v5588_v58 = vsel %vm45_vm4, %v11371_v4, %v5560_v23  ;;  %v5587_v1 = vsel %vm45_vm4, %v11386_v50, %v5559_v2 }
0x2f7e   :  { %v5571_v32 = vrot.slane %v5511_v21, 4  ;;  %v5572_v10 = vrot.slane %v5512_v51, 4  ;;  %v5518_v38 = vpop.permute.xlu0 %5517  ;;  %v5516_v54 = vpop.permute.xlu1 %5515  ;;  %8035 = vmatpush1.bf16.msra.mxu0 %v8034_v29 }
0x2f7f   :  { %v5522_v36 = vsel %vm389_vm8, %v5516_v54, %v5518_v38 }
0x2f80   :  { %v5526_v20 = vmul.f32 %v5522_v36, %v8776_v61  ;;  %v5592_v15 = vsel %vm45_vm4, %v5496_v13, %v5572_v10  ;;  %v5591_v55 = vsel %vm45_vm4, %v5495_v45, %v5571_v32 }
0x2f81   :  { %v8040_v30 = vpack.c.bf16 %v5592_v15, %v5588_v58  ;;  %v8042_v60 = vpack.c.bf16 %v5591_v55, %v5587_v1 }
0x2f82   :  { %v5520_v14 = vpop.permute.xlu0 %5519  ;;  %7818 = vmatprep.subr.msk.mxu0 %vm45_vm4, %v5526_v20  ;;  %v5514_v27 = vpop.permute.xlu1 %5513 }
0x2f83   :  { %v5521_v26 = vsel %vm389_vm8, %v5518_v38, %v5520_v14  ;;  %v5523_v4 = vsel %vm389_vm8, %v5514_v27, %v5516_v54  ;;  %v5524_v23 = vsel %vm389_vm8, %v5520_v14, %v5514_v27  ;;  %8041 = vmatprep.subr.bf16.mxu1 %v8040_v30 }
0x2f84   :  { %v5525_v50 = vmul.f32 %v5523_v4, %v8796_v12  ;;  %v5528_v18 = vmul.f32 %v5524_v23, %v8799_v49  ;;  %8043 = vmatpush1.bf16.msra.mxu1 %v8042_v60  ;;  %v5527_v3 = vmul.f32 %v5521_v26, %v8809_v28 }
0x2f86   :  { %7819 = vmatpush1.msk.msra.mxu0 %vm45_vm4, %v5525_v50  ;;  %7821 = vmatprep.subr.msk.mxu1 %vm45_vm4, %v5528_v18 }
0x2f87   :  { %7820 = vmatmul.mubr.msk.f32.vlgmr.msra.gmra.mrb[22].mxu0 %vm492_vm9, %v7817_v34 }
0x2f88   :  { %7822 = vmatpush1.msk.msra.mxu1 %vm45_vm4, %v5527_v3  ;;  %6129 = vmatprep.mubr.f32.mxu0 %v12657_v17 }
0x2f89   :  { %7823 = vmatmul.mubr.msk.f32.vlgmr.msra.gmra.mrb[22].mxu1 %vm492_vm9, %v7817_v34 }
0x2f8a   :  { %6200 = vmatprep.mubr.f32.mxu1 %v12657_v17 }
0x2f93   :  { %v5597_v35 = vpop.permute.xlu1 %5596 }
0x305a   :  { %v5680_v40 = vpop.f32.mrb[22].mxu0 }
0x305b   :  { %v5681_v0 = vadd.f32 %v5680_v40, %v5597_v35  ;;  %v5682_v2 = vpop.f32.mrb[23].mxu0 }
0x305c   :  { %v5683_v21 = vadd.f32 %v5682_v2, %v5597_v35  ;;  %v5751_v51 = vpop.f32.mrb[22].mxu1 }
0x305d   :  { %v5756_v6 = vmul.f32 0.01, %v5681_v0  ;;  %v5752_v29 = vadd.f32 %v5751_v51, %v5597_v35  ;;  %v5753_v45 = vpop.f32.mrb[23].mxu1 }
0x305e   :  { %v5757_v13 = vmul.f32 0.01, %v5683_v21  ;;  %v5754_v32 = vadd.f32 %v5753_v45, %v5597_v35 }
0x305f   :  { %v11560_v10 = vmax.f32 %v5681_v0, %v5756_v6  ;;  %v5758_v38 = vmul.f32 0.01, %v5752_v29 }
0x3060   :  { %v11562_v54 = vmax.f32 %v5683_v21, %v5757_v13  ;;  %v5759_v36 = vmul.f32 0.01, %v5754_v32 }
0x3061   :  { %v11564_v58 = vmax.f32 %v5752_v29, %v5758_v38  ;;  %v5764_v20 = vmul.f32 %v11560_v10, %v11560_v10 }
0x3062   :  { %v5765_v15 = vmul.f32 %v11562_v54, %v11562_v54  ;;  %v11570_v1 = vmax.f32 %v5754_v32, %v5759_v36 }
0x3063   :  { %v5766_v55 = vmul.f32 %v11564_v58, %v11564_v58  ;;  %v5772_v30 = vrot.slane %v5764_v20, 4 }
0x3064   :  { %v5773_v60 = vrot.slane %v5765_v15, 4  ;;  %v5767_v14 = vmul.f32 %v11570_v1, %v11570_v1 }
0x3065   :  { %v5774_v27 = vrot.slane %v5766_v55, 4  ;;  %v5780_v26 = vsel %vm45_vm4, %v11560_v10, %v5772_v30 }
0x3066   :  { %v5781_v4 = vsel %vm45_vm4, %v11562_v54, %v5773_v60  ;;  %v5775_v23 = vrot.slane %v5767_v14, 4 }
0x3067   :  { %v5782_v50 = vsel %vm45_vm4, %v11564_v58, %v5774_v27  ;;  %v5784_v18 = vadd.f32 %v5781_v4, %v5780_v26 }
0x3068   :  { %v5783_v3 = vsel %vm45_vm4, %v11570_v1, %v5775_v23 }
0x3069   :  { %v5785_v34 = vadd.f32 %v5784_v18, %v5782_v50 }
0x306b   :  { %v5786_v35 = vadd.f32 %v5785_v34, %v5783_v3 }
0x306d   :  { %5787 = vadd.xlane.f32.xlu0 %v5786_v35 }
0x30fa   :  { %v5788_v40 = vpop.xlane.xlu0 %5787 }
0x30fb   :  { %v5797_v0 = vrot.slane %v5788_v40, 4  ;;  %v5789_v60 = vmul.f32 0.001953125, %v5788_v40 }
0x30fd   :  { %v5799_v2 = vsel %vm693_vm10, %v5797_v0, 0.0  ;;  %v5790_v14 = vmul.f32 %v5789_v60, %v5789_v60 }
0x30fe   :  { %5800 = vadd.xlane.f32.xlu1 %v5799_v2 }
0x30ff   :  { %v5792_v27 = vrot.slane %v5790_v14, 4 }
0x3101   :  { %v5794_v26 = vsub.f32 %v5789_v60, %v5792_v27 }
0x3103   :  { %v5795_v4 = vmax.f32 %v5794_v26, 0.0 }
0x318b   :  { %v5801_v21 = vpop.xlane.xlu1 %5800 }
0x318c   :  { %v5802_v51 = vrot.slane %v5801_v21, 4 }
0x318e   :  { %v5803_v6 = vadd.f32 %v5802_v51, %v5801_v21 }
0x3190   :  { %v5804_v29 = vrot.slane %v5803_v6, 2 }
0x3192   :  { %v5805_v45 = vadd.f32 %v5804_v29, %v5803_v6 }
0x3194   :  { %v5806_v13 = vrot.slane %v5805_v45, 1 }
0x3196   :  { %v5807_v32 = vadd.f32 %v5806_v13, %v5805_v45 }
0x3198   :  { %8152 = vpush %v5807_v32 }
0x31c9   :  { %s8153_s25 = spop %8152 }
0x31ca   :  { %v5809_v38 = vstv %s8153_s25 }
0x31cb   :  { %8302 = vrsqrt.f32 %v5809_v38  ;;  %vm5812_vm13 = vcmp.eq.f32.partialorder %v5809_v38, inf  ;;  %v5815_v15 = vand.u32 2147483648, %v5809_v38  ;;  %vm5814_vm14 = vcmp.eq.f32.partialorder %v5809_v38, 0.0 }
0x31d5   :  { %v8303_v36 = vpop.eup %8302 }
0x31d6   :  { %v5811_v20 = vmul.f32 %v8303_v36, %v5809_v38 }
0x31d8   :  { %v5813_v55 = vsel %vm5812_vm13, %v5809_v38, %v5811_v20 }
0x31d9   :  { %v5816_v30 = vsel %vm5814_vm14, %v5815_v15, %v5813_v55 }
0x31da   :  { %8154 = vpush %v5816_v30 }
0x320b   :  { %s8155_s26 = spop %8154 }
0x320c   :  { %s5818_s27 = sadd.f32 1e-06, %s8155_s26 }
0x320e   :  { %s5819_s9 = smul.f32 %s5818_s27, %s5818_s27  ;;  %v5824_v3 = vstv %s5818_s27  ;;  %s8385_s27 = smov 14  }
0x3210   :  { %v5820_v23 = vstv %s5819_s9 }
0x3211   :  { %v5821_v50 = vmul.f32 %v5820_v23, %v5795_v4 }
0x3213   :  { %v5822_v18 = vadd.f32 1e-05, %v5821_v50 }
0x3215   :  { %8304 = vrsqrt.f32 %v5822_v18 }
0x321f   :  { %v8305_v34 = vpop.eup %8304 }
0x3220   :  { %v5825_v35 = vmul.f32 %v8305_v34, %v5824_v3 }
0x3222   :  { %v5827_v0 = vrot.slane %v5825_v35, 4 }
0x3224   :  { %5828 = vrot.lane.b32.xlu0 %v5827_v0, %s8379_s10 }
0x3296   :  { %v5829_v2 = vpop.permute.xlu0 %5828 }
0x3297   :  { %v5831_v40 = vmul.f32 %v11347_v33, %v5829_v2 }
0x3299   :  { %v5841_v21 = vmul.f32 %v5831_v40, %v5789_v60  ;;  %5834 = vperm.xlu1 %8237, %v5831_v40   ;;  %v12710_v40 = vld [vmem:[#allocation3_spill] sm:$0xff] }
0x329b   :  { %v5842_v51 = vsub.f32 %v11353_v19, %v5841_v21 }
0x329d   :  { %5845 = vperm.xlu0 %8238, %v5842_v51  }
0x3318   :  { %v5835_v6 = vpop.permute.xlu1 %5834 }
0x3319   :  { %v5837_v29 = vmul.f32 %v5835_v6, %v11560_v10  ;;  %v5838_v32 = vmul.f32 %v5835_v6, %v11562_v54  ;;  %v5840_v38 = vmul.f32 %v5835_v6, %v11570_v1  ;;  %v5839_v10 = vmul.f32 %v5835_v6, %v11564_v58  ;;  %v11664_v1 = vld [vmem:[%s12583_s2] sm:$0xf] }
0x331a   :  { %v8380_v58 = vmov 12  }
0x331b   :  { %8239 = vset.pattern.permute.xlu0 %v8380_v58  ;;  %8240 = vset.pattern.permute.xlu1 %v8380_v58 }
0x331c   :  { %v5846_v45 = vpop.permute.xlu0 %5845 }
0x331d   :  { %v11588_v13 = vadd.f32 %v5846_v45, %v5837_v29  ;;  %v11596_v33 = vadd.f32 %v5846_v45, %v5838_v32  ;;  %v11598_v19 = vadd.f32 %v5846_v45, %v5840_v38  ;;  %v11621_v54 = vadd.f32 %v5846_v45, %v5839_v10  ;;  %v12711_v29 = vld [vmem:[#allocation5_spill] sm:$0xff] }
0x331f   :  { %5900 = vrot.lane.b32.xlu0 %v11588_v13, %s8348_s29  ;;  %5868 = vrot.lane.b32.xlu1 %v11588_v13, %s8349_s30 }
0x3323   :  { %5874 = vrot.lane.b32.xlu0 %v11598_v19, %s8349_s30  ;;  %5870 = vrot.lane.b32.xlu1 %v11596_v33, %s8349_s30 }
0x3327   :  { %5852 = vrot.lane.b32.xlu0 %v11588_v13, %s8350_s11  ;;  %5902 = vrot.lane.b32.xlu1 %v11596_v33, %s8348_s29 }
0x332b   :  { %5884 = vrot.lane.b32.xlu0 %v11588_v13, %s8351_s12  ;;  %5906 = vrot.lane.b32.xlu1 %v11598_v19, %s8348_s29 }
0x332f   :  { %5858 = vrot.lane.b32.xlu0 %v11598_v19, %s8350_s11  ;;  %5854 = vrot.lane.b32.xlu1 %v11596_v33, %s8350_s11 }
0x3333   :  { %5890 = vrot.lane.b32.xlu0 %v11598_v19, %s8351_s12  ;;  %5886 = vrot.lane.b32.xlu1 %v11596_v33, %s8351_s12 }
0x3337   :  { %5918 = vrot.lane.b32.xlu0 %v11596_v33, %s8352_s13  ;;  %5872 = vrot.lane.b32.xlu1 %v11621_v54, %s8349_s30 }
0x333b   :  { %5950 = vrot.lane.b32.xlu0 %v11596_v33, %s8353_s14  ;;  %5904 = vrot.lane.b32.xlu1 %v11621_v54, %s8348_s29 }
0x333f   :  { %5856 = vrot.lane.b32.xlu0 %v11621_v54, %s8350_s11  ;;  %5920 = vrot.lane.b32.xlu1 %v11621_v54, %s8352_s13 }
0x3343   :  { %5916 = vrot.lane.b32.xlu0 %v11588_v13, %s8352_s13  ;;  %5952 = vrot.lane.b32.xlu1 %v11621_v54, %s8353_s14 }
0x3347   :  { %5934 = vrot.lane.b32.xlu0 %v11596_v33, %s8354_s15  ;;  %5888 = vrot.lane.b32.xlu1 %v11621_v54, %s8351_s12 }
0x334b   :  { %5922 = vrot.lane.b32.xlu0 %v11598_v19, %s8352_s13  ;;  %5948 = vrot.lane.b32.xlu1 %v11588_v13, %s8353_s14 }
0x334f   :  { %5954 = vrot.lane.b32.xlu0 %v11598_v19, %s8353_s14  ;;  %5936 = vrot.lane.b32.xlu1 %v11621_v54, %s8354_s15 }
0x3353   :  { %5966 = vrot.lane.b32.xlu0 %v11596_v33, %s8357_s16  ;;  %5932 = vrot.lane.b32.xlu1 %v11588_v13, %s8354_s15 }
0x3357   :  { %5964 = vrot.lane.b32.xlu0 %v11588_v13, %s8357_s16  ;;  %5938 = vrot.lane.b32.xlu1 %v11598_v19, %s8354_s15 }
0x335b   :  { %5968 = vrot.lane.b32.xlu1 %v11621_v54, %s8357_s16  ;;  %6047 = vperm.xlu0 %8239, %v11664_v1  }
0x335f   :  { %5970 = vrot.lane.b32.xlu1 %v11598_v19, %s8357_s16 }
0x3391   :  { %v5901_v36 = vpop.permute.xlu0 %5900  ;;  %v5869_v20 = vpop.permute.xlu1 %5868 }
0x3395   :  { %v5875_v15 = vpop.permute.xlu0 %5874  ;;  %v5871_v55 = vpop.permute.xlu1 %5870 }
0x3396   :  { %v5879_v26 = vsel %vm149_vm0, %v5875_v15, %v5869_v20  ;;  %v5878_v4 = vsel %vm149_vm0, %v5869_v20, %v5871_v55 }
0x3397   :  { %v5880_v3 = vmul.f32 %v5879_v26, %v12684_v25  ;;  %v5881_v35 = vmul.f32 %v5878_v4, %v12704_v44 }
0x3399   :  { %v5853_v30 = vpop.permute.xlu0 %5852  ;;  %v5903_v60 = vpop.permute.xlu1 %5902  ;;  %v5984_v10 = vrot.slane %v5880_v3, 4  ;;  %v5985_v58 = vrot.slane %v5881_v35, 4 }
0x339a   :  { %v5910_v23 = vsel %vm229_vm1, %v5901_v36, %v5903_v60 }
0x339b   :  { %v5913_v21 = vmul.f32 %v5910_v23, %v12710_v40  ;;  %v12712_v23 = vld [vmem:[#allocation6_spill] sm:$0xff] }
0x339d   :  { %v5885_v14 = vpop.permute.xlu0 %5884  ;;  %v5907_v27 = vpop.permute.xlu1 %5906  ;;  %v5997_v26 = vrot.slane %v5913_v21, 4 }
0x339e   :  { %v5911_v50 = vsel %vm229_vm1, %v5907_v27, %v5901_v36 }
0x339f   :  { %v5912_v51 = vmul.f32 %v5911_v50, %v12683_v56 }
0x33a1   :  { %v5859_v18 = vpop.permute.xlu0 %5858  ;;  %v5855_v34 = vpop.permute.xlu1 %5854 }
0x33a2   :  { %v5863_v0 = vsel %vm110_vm2, %v5859_v18, %v5853_v30  ;;  %v5862_v2 = vsel %vm110_vm2, %v5853_v30, %v5855_v34  ;;  %v5996_v30 = vrot.slane %v5912_v51, 4 }
0x33a3   :  { %v5864_v6 = vmul.f32 %v5863_v0, %v12685_v37  ;;  %v5865_v45 = vmul.f32 %v5862_v2, %v12711_v29 }
0x33a5   :  { %v5891_v32 = vpop.permute.xlu0 %5890  ;;  %v5887_v38 = vpop.permute.xlu1 %5886  ;;  %v6029_v2 = vsel %vm45_vm4, %v5865_v45, %v5985_v58  ;;  %v6028_v3 = vsel %vm45_vm4, %v5864_v6, %v5984_v10 }
0x33a6   :  { %v5895_v36 = vsel %vm189_vm3, %v5891_v32, %v5885_v14  ;;  %v5894_v20 = vsel %vm189_vm3, %v5885_v14, %v5887_v38 }
0x33a7   :  { %v5896_v4 = vmul.f32 %v5895_v36, %v8609_v53  ;;  %v5897_v50 = vmul.f32 %v5894_v20, %v12712_v23 }
0x33a9   :  { %v5919_v25 = vpop.permute.xlu0 %5918  ;;  %v5873_v0 = vpop.permute.xlu1 %5872  ;;  %v6033_v37 = vsel %vm45_vm4, %v5897_v50, %v5997_v26  ;;  %v6032_v35 = vsel %vm45_vm4, %v5896_v4, %v5996_v30 }
0x33aa   :  { %v8044_v56 = vpack.c.bf16 %v6033_v37, %v6029_v2  ;;  %v8046_v29 = vpack.c.bf16 %v6032_v35, %v6028_v3  ;;  %v5876_v20 = vsel %vm149_vm0, %v5873_v0, %v5875_v15  ;;  %v5877_v6 = vsel %vm149_vm0, %v5871_v55, %v5873_v0 }
0x33ab   :  { %v5883_v37 = vmul.f32 %v5876_v20, %v8625_v5  ;;  %v5882_v30 = vmul.f32 %v5877_v6, %v8622_v63 }
0x33ac   :  { %8045 = vmatprep.subr.bf16.mxu0 %v8044_v56 }
0x33ad   :  { %v5951_v14 = vpop.permute.xlu0 %5950  ;;  %8047 = vmatpush1.bf16.msra.mxu0 %v8046_v29  ;;  %v5905_v21 = vpop.permute.xlu1 %5904  ;;  %v5986_v20 = vrot.slane %v5882_v30, 4 }
0x33ae   :  { %v5908_v45 = vsel %vm229_vm1, %v5905_v21, %v5907_v27  ;;  %v5909_v58 = vsel %vm229_vm1, %v5903_v60, %v5905_v21  ;;  %v5987_v60 = vrot.slane %v5883_v37, 4 }
0x33af   :  { %v5914_v26 = vmul.f32 %v5909_v58, %v8628_v7  ;;  %v5915_v15 = vmul.f32 %v5908_v45, %v8633_v9 }
0x33b1   :  { %v5857_v51 = vpop.permute.xlu0 %5856  ;;  %v5921_v36 = vpop.permute.xlu1 %5920  ;;  %v5998_v35 = vrot.slane %v5914_v26, 4 }
0x33b2   :  { %v5860_v29 = vsel %vm110_vm2, %v5857_v51, %v5859_v18  ;;  %v5861_v27 = vsel %vm110_vm2, %v5855_v34, %v5857_v51  ;;  %v5925_v2 = vsel %vm269_vm5, %v5919_v25, %v5921_v36  ;;  %v5999_v34 = vrot.slane %v5915_v15, 4 }
0x33b3   :  { %v5867_v4 = vmul.f32 %v5860_v29, %v8675_v43  ;;  %v5866_v0 = vmul.f32 %v5861_v27, %v8671_v42  ;;  %v5929_v58 = vmul.f32 %v5925_v2, %v8679_v47 }
0x33b5   :  { %v5917_v56 = vpop.permute.xlu0 %5916  ;;  %v5953_v10 = vpop.permute.xlu1 %5952  ;;  %v6031_v29 = vsel %vm45_vm4, %v5867_v4, %v5987_v60  ;;  %v6030_v27 = vsel %vm45_vm4, %v5866_v0, %v5986_v20 }
0x33b6   :  { %v5957_v45 = vsel %vm349_vm6, %v5951_v14, %v5953_v10  ;;  %v5926_v26 = vsel %vm269_vm5, %v5917_v56, %v5919_v25 }
0x33b7   :  { %v5961_v30 = vmul.f32 %v5957_v45, %v8683_v48  ;;  %v5928_v60 = vmul.f32 %v5926_v26, %v8722_v52 }
0x33b9   :  { %v5935_v55 = vpop.permute.xlu0 %5934  ;;  %v5889_v50 = vpop.permute.xlu1 %5888  ;;  %v6008_v45 = vrot.slane %v5928_v60, 4 }
0x33ba   :  { %v5892_v18 = vsel %vm189_vm3, %v5889_v50, %v5891_v32  ;;  %v5893_v3 = vsel %vm189_vm3, %v5887_v38, %v5889_v50 }
0x33bb   :  { %v5898_v21 = vmul.f32 %v5893_v3, %v8663_v39  ;;  %v5899_v51 = vmul.f32 %v5892_v18, %v8667_v41  ;;  %v6009_v18 = vrot.slane %v5929_v58, 4 }
0x33bd   :  { %v5923_v6 = vpop.permute.xlu0 %5922  ;;  %v5949_v37 = vpop.permute.xlu1 %5948  ;;  %v6035_v32 = vsel %vm45_vm4, %v5899_v51, %v5999_v34  ;;  %v6034_v38 = vsel %vm45_vm4, %v5898_v21, %v5998_v35  ;;  %v6021_v34 = vrot.slane %v5961_v30, 4 }
0x33be   :  { %v8052_v15 = vpack.c.bf16 %v6035_v32, %v6031_v29  ;;  %v8054_v50 = vpack.c.bf16 %v6034_v38, %v6030_v27  ;;  %v5958_v2 = vsel %vm349_vm6, %v5949_v37, %v5951_v14  ;;  %v5927_v4 = vsel %vm269_vm5, %v5923_v6, %v5917_v56 }
0x33bf   :  { %v5924_v25 = vsel %vm269_vm5, %v5921_v36, %v5923_v6  ;;  %v5960_v21 = vmul.f32 %v5958_v2, %v8708_v46  ;;  %v5931_v51 = vmul.f32 %v5927_v4, %v8741_v62  ;;  %v6037_v29 = vsel %vm45_vm4, %v11596_v33, %v6009_v18 }
0x33c0   :  { %8053 = vmatprep.subr.bf16.mxu1 %v8052_v15  ;;  %v5930_v58 = vmul.f32 %v5924_v25, %v8736_v59  ;;  %v6036_v33 = vsel %vm45_vm4, %v11588_v13, %v6008_v45 }
0x33c1   :  { %v5955_v3 = vpop.permute.xlu0 %5954  ;;  %8055 = vmatpush1.bf16.msra.mxu1 %v8054_v50  ;;  %v5937_v35 = vpop.permute.xlu1 %5936  ;;  %v6020_v15 = vrot.slane %v5960_v21, 4  ;;  %v6011_v30 = vrot.slane %v5931_v51, 4 }
0x33c2   :  { %v5941_v0 = vsel %vm309_vm7, %v5935_v55, %v5937_v35  ;;  %v5956_v20 = vsel %vm349_vm6, %v5953_v10, %v5955_v3  ;;  %v5959_v56 = vsel %vm349_vm6, %v5955_v3, %v5949_v37  ;;  %v6010_v50 = vrot.slane %v5930_v58, 4 }
0x33c3   :  { %v5945_v14 = vmul.f32 %v5941_v0, %v8725_v24  ;;  %v5962_v10 = vmul.f32 %v5956_v20, %v8745_v8  ;;  %v5963_v27 = vmul.f32 %v5959_v56, %v8752_v31  ;;  %v6039_v13 = vsel %vm45_vm4, %v11598_v19, %v6011_v30 }
0x33c4   :  { %v6038_v20 = vsel %vm45_vm4, %v11621_v54, %v6010_v50 }
0x33c5   :  { %v5967_v36 = vpop.permute.xlu0 %5966  ;;  %v5933_v6 = vpop.permute.xlu1 %5932  ;;  %v6041_v32 = vsel %vm45_vm4, %v5945_v14, %v6021_v34  ;;  %v6022_v25 = vrot.slane %v5962_v10, 4  ;;  %v6023_v0 = vrot.slane %v5963_v27, 4 }
0x33c6   :  { %v5942_v38 = vsel %vm309_vm7, %v5933_v6, %v5935_v55  ;;  %v8048_v26 = vpack.c.bf16 %v6041_v32, %v6037_v29  ;;  %v7824_v32 = vld [vmem:[%s12585_s1 + $0x30] sm:$0xf] }
0x33c7   :  { %v5944_v37 = vmul.f32 %v5942_v38, %v8733_v57 }
0x33c8   :  { %8049 = vmatprep.subr.bf16.mxu0 %v8048_v26 }
0x33c9   :  { %v5939_v2 = vpop.permute.xlu1 %5938  ;;  %v6040_v18 = vsel %vm45_vm4, %v5944_v37, %v6020_v15  ;;  %v5965_v60 = vpop.permute.xlu0 %5964 }
0x33ca   :  { %v5940_v55 = vsel %vm309_vm7, %v5937_v35, %v5939_v2  ;;  %v5943_v4 = vsel %vm309_vm7, %v5939_v2, %v5933_v6  ;;  %v8050_v3 = vpack.c.bf16 %v6040_v18, %v6036_v33  ;;  %v5974_v14 = vsel %vm389_vm8, %v5965_v60, %v5967_v36 }
0x33cb   :  { %v5946_v34 = vmul.f32 %v5940_v55, %v8769_v22  ;;  %v5947_v21 = vmul.f32 %v5943_v4, %v8772_v16  ;;  %v5976_v19 = vmul.f32 %v5974_v14, %v8796_v12 }
0x33cc   :  { %8051 = vmatpush1.bf16.msra.mxu0 %v8050_v3 }
0x33cd   :  { %v5969_v51 = vpop.permute.xlu1 %5968  ;;  %v6043_v35 = vsel %vm45_vm4, %v5947_v21, %v6023_v0  ;;  %v6042_v56 = vsel %vm45_vm4, %v5946_v34, %v6022_v25 }
0x33ce   :  { %v5973_v45 = vsel %vm389_vm8, %v5967_v36, %v5969_v51  ;;  %v8056_v58 = vpack.c.bf16 %v6043_v35, %v6039_v13  ;;  %v8058_v6 = vpack.c.bf16 %v6042_v56, %v6038_v20 }
0x33cf   :  { %v5977_v29 = vmul.f32 %v5973_v45, %v8776_v61 }
0x33d0   :  { %8057 = vmatprep.subr.bf16.mxu1 %v8056_v58 }
0x33d1   :  { %7825 = vmatprep.subr.msk.mxu0 %vm45_vm4, %v5977_v29  ;;  %8059 = vmatpush1.bf16.msra.mxu1 %v8058_v6  ;;  %v5971_v54 = vpop.permute.xlu1 %5970 }
0x33d2   :  { %v5972_v38 = vsel %vm389_vm8, %v5969_v51, %v5971_v54  ;;  %v5975_v36 = vsel %vm389_vm8, %v5971_v54, %v5965_v60  ;;  %7826 = vmatpush1.msk.msra.mxu0 %vm45_vm4, %v5976_v19 }
0x33d3   :  { %v5978_v26 = vmul.f32 %v5972_v38, %v8809_v28  ;;  %v5979_v15 = vmul.f32 %v5975_v36, %v8799_v49  ;;  %7827 = vmatmul.mubr.msk.f32.vlgmr.msra.gmra.mrb[24].mxu0 %vm492_vm9, %v7824_v32 }
0x33d4   :  { %6580 = vmatprep.mubr.f32.mxu0 %v12657_v17 }
0x33d5   :  { %7828 = vmatprep.subr.msk.mxu1 %vm45_vm4, %v5979_v15 }
0x33d6   :  { %7829 = vmatpush1.msk.msra.mxu1 %vm45_vm4, %v5978_v26 }
0x33d7   :  { %7830 = vmatmul.mubr.msk.f32.vlgmr.msra.gmra.mrb[24].mxu1 %vm492_vm9, %v7824_v32 }
0x33d8   :  { %6651 = vmatprep.mubr.f32.mxu1 %v12657_v17 }
0x33da   :  { %v6048_v10 = vpop.permute.xlu0 %6047 }
0x34a6   :  { %v6131_v27 = vpop.f32.mrb[24].mxu0 }
0x34a7   :  { %v6132_v37 = vadd.f32 %v6131_v27, %v6048_v10  ;;  %v6133_v30 = vpop.f32.mrb[25].mxu0 }
0x34a8   :  { %v6134_v50 = vadd.f32 %v6133_v30, %v6048_v10 }
0x34a9   :  { %v6207_v2 = vmul.f32 0.01, %v6132_v37 }
0x34aa   :  { %v6208_v33 = vmul.f32 0.01, %v6134_v50  ;;  %v6202_v18 = vpop.f32.mrb[24].mxu1 }
0x34ab   :  { %v11796_v60 = vmax.f32 %v6132_v37, %v6207_v2  ;;  %v6203_v55 = vadd.f32 %v6202_v18, %v6048_v10  ;;  %v6204_v4 = vpop.f32.mrb[25].mxu1 }
0x34ac   :  { %v11798_v3 = vmax.f32 %v6134_v50, %v6208_v33  ;;  %v6205_v25 = vadd.f32 %v6204_v4, %v6048_v10 }
0x34ad   :  { %v6215_v0 = vmul.f32 %v11796_v60, %v11796_v60  ;;  %v6209_v34 = vmul.f32 0.01, %v6203_v55 }
0x34ae   :  { %v6216_v21 = vmul.f32 %v11798_v3, %v11798_v3  ;;  %v6210_v13 = vmul.f32 0.01, %v6205_v25 }
0x34af   :  { %v6223_v14 = vrot.slane %v6215_v0, 4  ;;  %v11804_v51 = vmax.f32 %v6203_v55, %v6209_v34 }
0x34b0   :  { %v6224_v35 = vrot.slane %v6216_v21, 4  ;;  %v11806_v20 = vmax.f32 %v6205_v25, %v6210_v13 }
0x34b1   :  { %v6231_v56 = vsel %vm45_vm4, %v11796_v60, %v6223_v14  ;;  %v6217_v45 = vmul.f32 %v11804_v51, %v11804_v51 }
0x34b2   :  { %v6232_v58 = vsel %vm45_vm4, %v11798_v3, %v6224_v35  ;;  %v6218_v6 = vmul.f32 %v11806_v20, %v11806_v20 }
0x34b3   :  { %v6225_v29 = vrot.slane %v6217_v45, 4  ;;  %v6235_v19 = vadd.f32 %v6232_v58, %v6231_v56 }
0x34b4   :  { %v6226_v32 = vrot.slane %v6218_v6, 4 }
0x34b5   :  { %v6233_v54 = vsel %vm45_vm4, %v11804_v51, %v6225_v29 }
0x34b6   :  { %v6234_v38 = vsel %vm45_vm4, %v11806_v20, %v6226_v32  ;;  %v6236_v36 = vadd.f32 %v6235_v19, %v6233_v54 }
0x34b8   :  { %v6237_v26 = vadd.f32 %v6236_v36, %v6234_v38 }
0x34ba   :  { %6238 = vadd.xlane.f32.xlu1 %v6237_v26 }
0x3547   :  { %v6239_v15 = vpop.xlane.xlu1 %6238 }
0x3548   :  { %v6248_v10 = vrot.slane %v6239_v15, 4  ;;  %v6240_v14 = vmul.f32 0.001953125, %v6239_v15  ;;  %v11824_v15 = vld [vmem:[%s12586_s3] sm:$0xf] }
0x354a   :  { %v6250_v27 = vsel %vm693_vm10, %v6248_v10, 0.0  ;;  %v6241_v35 = vmul.f32 %v6240_v14, %v6240_v14 }
0x354b   :  { %6251 = vadd.xlane.f32.xlu0 %v6250_v27 }
0x354c   :  { %v6243_v56 = vrot.slane %v6241_v35, 4 }
0x354e   :  { %v6245_v45 = vsub.f32 %v6240_v14, %v6243_v56 }
0x3550   :  { %v6246_v58 = vmax.f32 %v6245_v45, 0.0 }
0x35d8   :  { %v6252_v37 = vpop.xlane.xlu0 %6251 }
0x35d9   :  { %v6253_v30 = vrot.slane %v6252_v37, 4 }
0x35db   :  { %v6254_v50 = vadd.f32 %v6253_v30, %v6252_v37  ;;  %v11830_v37 = vld [vmem:[%s12587_s4] sm:$0xf] }
0x35dd   :  { %v6255_v2 = vrot.slane %v6254_v50, 2 }
0x35df   :  { %v6256_v33 = vadd.f32 %v6255_v2, %v6254_v50 }
0x35e1   :  { %v6257_v18 = vrot.slane %v6256_v33, 1 }
0x35e3   :  { %v6258_v55 = vadd.f32 %v6257_v18, %v6256_v33 }
0x35e5   :  { %8156 = vpush %v6258_v55 }
0x3616   :  { %s8157_s7 = spop %8156 }
0x3617   :  { %v6260_v4 = vstv %s8157_s7  ;;  %s8383_s7 = smov 13  }
0x3618   :  { %8306 = vrsqrt.f32 %v6260_v4  ;;  %vm6263_vm15 = vcmp.eq.f32.partialorder %v6260_v4, inf  ;;  %v6266_v34 = vand.u32 2147483648, %v6260_v4  ;;  %vm6265_vm11 = vcmp.eq.f32.partialorder %v6260_v4, 0.0 }
0x3622   :  { %v8307_v25 = vpop.eup %8306 }
0x3623   :  { %v6262_v0 = vmul.f32 %v8307_v25, %v6260_v4 }
0x3625   :  { %v6264_v21 = vsel %vm6263_vm15, %v6260_v4, %v6262_v0 }
0x3626   :  { %v6267_v13 = vsel %vm6265_vm11, %v6266_v34, %v6264_v21 }
0x3627   :  { %8158 = vpush %v6267_v13 }
0x3658   :  { %s8159_s0 = spop %8158 }
0x3659   :  { %s6269_s21 = sadd.f32 1e-06, %s8159_s0 }
0x365b   :  { %s6270_s22 = smul.f32 %s6269_s21, %s6269_s21  ;;  %v6275_v54 = vstv %s6269_s21 }
0x365d   :  { %v6271_v6 = vstv %s6270_s22 }
0x365e   :  { %v6272_v29 = vmul.f32 %v6271_v6, %v6246_v58 }
0x3660   :  { %v6273_v19 = vadd.f32 1e-05, %v6272_v29 }
0x3662   :  { %8308 = vrsqrt.f32 %v6273_v19 }
0x366c   :  { %v8309_v32 = vpop.eup %8308 }
0x366d   :  { %v6276_v38 = vmul.f32 %v8309_v32, %v6275_v54  ;;  %v12713_v32 = vld [vmem:[#allocation5_spill] sm:$0xff] }
0x366f   :  { %v6278_v36 = vrot.slane %v6276_v38, 4 }
0x3671   :  { %6279 = vrot.lane.b32.xlu1 %v6278_v36, %s8381_s17 }
0x36e3   :  { %v6280_v26 = vpop.permute.xlu1 %6279 }
0x36e4   :  { %v6282_v10 = vmul.f32 %v11824_v15, %v6280_v26 }
0x36e6   :  { %v6292_v27 = vmul.f32 %v6282_v10, %v6240_v14  ;;  %6285 = vperm.xlu0 %8239, %v6282_v10  }
0x36e8   :  { %v6293_v30 = vsub.f32 %v11830_v37, %v6292_v27 }
0x36ea   :  { %6296 = vperm.xlu1 %8240, %v6293_v30  }
0x3765   :  { %v6286_v50 = vpop.permute.xlu0 %6285 }
0x3766   :  { %v6288_v2 = vmul.f32 %v6286_v50, %v11796_v60  ;;  %v6289_v33 = vmul.f32 %v6286_v50, %v11798_v3  ;;  %v6291_v25 = vmul.f32 %v6286_v50, %v11806_v20  ;;  %v6290_v3 = vmul.f32 %v6286_v50, %v11804_v51 }
0x3767   :  { %v8382_v51 = vmov 13  }
0x3768   :  { %8241 = vset.pattern.permute.xlu1 %v8382_v51  ;;  %8242 = vset.pattern.permute.xlu0 %v8382_v51 }
0x3769   :  { %v6297_v18 = vpop.permute.xlu1 %6296 }
0x376a   :  { %v11835_v55 = vadd.f32 %v6297_v18, %v6288_v2  ;;  %v11837_v4 = vadd.f32 %v6297_v18, %v6289_v33  ;;  %v11848_v60 = vadd.f32 %v6297_v18, %v6291_v25  ;;  %v11863_v20 = vadd.f32 %v6297_v18, %v6290_v3 }
0x376c   :  { %6321 = vrot.lane.b32.xlu0 %v11837_v4, %s8349_s30  ;;  %6319 = vrot.lane.b32.xlu1 %v11835_v55, %s8349_s30 }
0x3770   :  { %6353 = vrot.lane.b32.xlu0 %v11837_v4, %s8348_s29  ;;  %6351 = vrot.lane.b32.xlu1 %v11835_v55, %s8348_s29 }
0x3774   :  { %6357 = vrot.lane.b32.xlu0 %v11848_v60, %s8348_s29  ;;  %6325 = vrot.lane.b32.xlu1 %v11848_v60, %s8349_s30 }
0x3778   :  { %6305 = vrot.lane.b32.xlu0 %v11837_v4, %s8350_s11  ;;  %6303 = vrot.lane.b32.xlu1 %v11835_v55, %s8350_s11 }
0x377c   :  { %6337 = vrot.lane.b32.xlu0 %v11837_v4, %s8351_s12  ;;  %6335 = vrot.lane.b32.xlu1 %v11835_v55, %s8351_s12 }
0x3780   :  { %6323 = vrot.lane.b32.xlu0 %v11863_v20, %s8349_s30  ;;  %6309 = vrot.lane.b32.xlu1 %v11848_v60, %s8350_s11 }
0x3784   :  { %6355 = vrot.lane.b32.xlu0 %v11863_v20, %s8348_s29  ;;  %6341 = vrot.lane.b32.xlu1 %v11848_v60, %s8351_s12 }
0x3788   :  { %6371 = vrot.lane.b32.xlu0 %v11863_v20, %s8352_s13  ;;  %6369 = vrot.lane.b32.xlu1 %v11837_v4, %s8352_s13 }
0x378c   :  { %6403 = vrot.lane.b32.xlu0 %v11863_v20, %s8353_s14  ;;  %6401 = vrot.lane.b32.xlu1 %v11837_v4, %s8353_s14 }
0x3790   :  { %6339 = vrot.lane.b32.xlu0 %v11863_v20, %s8351_s12  ;;  %6307 = vrot.lane.b32.xlu1 %v11863_v20, %s8350_s11 }
0x3794   :  { %6399 = vrot.lane.b32.xlu0 %v11835_v55, %s8353_s14  ;;  %6367 = vrot.lane.b32.xlu1 %v11835_v55, %s8352_s13 }
0x3798   :  { %6387 = vrot.lane.b32.xlu0 %v11863_v20, %s8354_s15  ;;  %6385 = vrot.lane.b32.xlu1 %v11837_v4, %s8354_s15 }
0x379c   :  { %6383 = vrot.lane.b32.xlu0 %v11835_v55, %s8354_s15  ;;  %6373 = vrot.lane.b32.xlu1 %v11848_v60, %s8352_s13 }
0x37a0   :  { %6389 = vrot.lane.b32.xlu0 %v11848_v60, %s8354_s15  ;;  %6405 = vrot.lane.b32.xlu1 %v11848_v60, %s8353_s14 }
0x37a4   :  { %6419 = vrot.lane.b32.xlu0 %v11863_v20, %s8357_s16  ;;  %6417 = vrot.lane.b32.xlu1 %v11837_v4, %s8357_s16 }
0x37a8   :  { %6421 = vrot.lane.b32.xlu0 %v11848_v60, %s8357_s16  ;;  %6415 = vrot.lane.b32.xlu1 %v11835_v55, %s8357_s16 }
0x37ac   :  { %6498 = vperm.xlu1 %8241, %v11664_v1  }
0x37de   :  { %v6322_v0 = vpop.permute.xlu0 %6321  ;;  %v6320_v34 = vpop.permute.xlu1 %6319 }
0x37df   :  { %v6329_v56 = vsel %vm149_vm0, %v6320_v34, %v6322_v0 }
0x37e0   :  { %v6332_v19 = vmul.f32 %v6329_v56, %v12704_v44 }
0x37e2   :  { %v6354_v21 = vpop.permute.xlu0 %6353  ;;  %v6352_v13 = vpop.permute.xlu1 %6351  ;;  %v6436_v10 = vrot.slane %v6332_v19, 4  ;;  %v12715_v19 = vld [vmem:[#allocation8_spill] sm:$0xff] }
0x37e3   :  { %v6361_v45 = vsel %vm229_vm1, %v6352_v13, %v6354_v21 }
0x37e4   :  { %v6364_v1 = vmul.f32 %v6361_v45, %v12710_v40  ;;  %v12714_v45 = vld [vmem:[#allocation7_spill] sm:$0xff] }
0x37e6   :  { %v6358_v14 = vpop.permute.xlu0 %6357  ;;  %v6326_v35 = vpop.permute.xlu1 %6325  ;;  %v6448_v27 = vrot.slane %v6364_v1, 4 }
0x37e7   :  { %v6362_v50 = vsel %vm229_vm1, %v6358_v14, %v6352_v13  ;;  %v6330_v2 = vsel %vm149_vm0, %v6326_v35, %v6320_v34 }
0x37e8   :  { %v6331_v1 = vmul.f32 %v6330_v2, %v12715_v19 }
0x37ea   :  { %v6306_v58 = vpop.permute.xlu0 %6305  ;;  %v6304_v6 = vpop.permute.xlu1 %6303 }
0x37eb   :  { %v6313_v29 = vsel %vm110_vm2, %v6304_v6, %v6306_v58 }
0x37ec   :  { %v6316_v54 = vmul.f32 %v6313_v29, %v12713_v32  ;;  %v6363_v29 = vmul.f32 %v6362_v50, %v12714_v45 }
0x37ee   :  { %v6338_v38 = vpop.permute.xlu0 %6337  ;;  %v6336_v36 = vpop.permute.xlu1 %6335  ;;  %v6480_v25 = vsel %vm45_vm4, %v6316_v54, %v6436_v10  ;;  %v6447_v40 = vrot.slane %v6363_v29, 4  ;;  %v6435_v54 = vrot.slane %v6331_v1, 4 }
0x37ef   :  { %v6345_v26 = vsel %vm189_vm3, %v6336_v36, %v6338_v38 }
0x37f0   :  { %v6348_v30 = vmul.f32 %v6345_v26, %v12712_v23  ;;  %v12716_v26 = vld [vmem:[#allocation9_spill] sm:$0xff] }
0x37f2   :  { %v6324_v33 = vpop.permute.xlu0 %6323  ;;  %v6310_v18 = vpop.permute.xlu1 %6309  ;;  %v6484_v3 = vsel %vm45_vm4, %v6348_v30, %v6448_v27 }
0x37f3   :  { %v6314_v51 = vsel %vm110_vm2, %v6310_v18, %v6304_v6  ;;  %v8060_v56 = vpack.c.bf16 %v6484_v3, %v6480_v25  ;;  %v6328_v6 = vsel %vm149_vm0, %v6322_v0, %v6324_v33  ;;  %v6327_v25 = vsel %vm149_vm0, %v6324_v33, %v6326_v35 }
0x37f4   :  { %v6315_v13 = vmul.f32 %v6314_v51, %v12716_v26  ;;  %v6334_v0 = vmul.f32 %v6327_v25, %v8625_v5 }
0x37f5   :  { %8061 = vmatprep.subr.bf16.mxu0 %v8060_v56  ;;  %v6333_v56 = vmul.f32 %v6328_v6, %v8622_v63 }
0x37f6   :  { %v6356_v23 = vpop.permute.xlu0 %6355  ;;  %v6342_v32 = vpop.permute.xlu1 %6341  ;;  %v6479_v50 = vsel %vm45_vm4, %v6315_v13, %v6435_v54  ;;  %v6438_v35 = vrot.slane %v6334_v0, 4 }
0x37f7   :  { %v6346_v34 = vsel %vm189_vm3, %v6342_v32, %v6336_v36  ;;  %v6359_v3 = vsel %vm229_vm1, %v6356_v23, %v6358_v14  ;;  %v6360_v36 = vsel %vm229_vm1, %v6354_v21, %v6356_v23 }
0x37f8   :  { %v6347_v10 = vmul.f32 %v6346_v34, %v8609_v53  ;;  %v6365_v29 = vmul.f32 %v6360_v36, %v8628_v7  ;;  %v6366_v1 = vmul.f32 %v6359_v3, %v8633_v9  ;;  %v6437_v34 = vrot.slane %v6333_v56, 4 }
0x37fa   :  { %v6372_v27 = vpop.permute.xlu0 %6371  ;;  %v6370_v30 = vpop.permute.xlu1 %6369  ;;  %v6483_v2 = vsel %vm45_vm4, %v6347_v10, %v6447_v40  ;;  %v6449_v33 = vrot.slane %v6365_v29, 4  ;;  %v6450_v54 = vrot.slane %v6366_v1, 4 }
0x37fb   :  { %v8062_v51 = vpack.c.bf16 %v6483_v2, %v6479_v50  ;;  %v6376_v14 = vsel %vm269_vm5, %v6370_v30, %v6372_v27 }
0x37fc   :  { %v6380_v56 = vmul.f32 %v6376_v14, %v8679_v47 }
0x37fd   :  { %8063 = vmatpush1.bf16.msra.mxu0 %v8062_v51 }
0x37fe   :  { %v6404_v40 = vpop.permute.xlu0 %6403  ;;  %v6402_v13 = vpop.permute.xlu1 %6401 }
0x3802   :  { %v6340_v23 = vpop.permute.xlu0 %6339  ;;  %v6308_v21 = vpop.permute.xlu1 %6307 }
0x3803   :  { %v6343_v10 = vsel %vm189_vm3, %v6340_v23, %v6342_v32  ;;  %v6344_v6 = vsel %vm189_vm3, %v6338_v38, %v6340_v23  ;;  %v6311_v50 = vsel %vm110_vm2, %v6308_v21, %v6310_v18  ;;  %v6312_v2 = vsel %vm110_vm2, %v6306_v58, %v6308_v21 }
0x3804   :  { %v6349_v25 = vmul.f32 %v6344_v6, %v8663_v39  ;;  %v6350_v3 = vmul.f32 %v6343_v10, %v8667_v41  ;;  %v6317_v36 = vmul.f32 %v6312_v2, %v8671_v42  ;;  %v6318_v51 = vmul.f32 %v6311_v50, %v8675_v43 }
0x3805   :  { %v6408_v32 = vsel %vm349_vm6, %v6402_v13, %v6404_v40 }
0x3806   :  { %v6485_v38 = vsel %vm45_vm4, %v6349_v25, %v6449_v33  ;;  %v6400_v0 = vpop.permute.xlu0 %6399  ;;  %v6368_v18 = vpop.permute.xlu1 %6367  ;;  %v6482_v29 = vsel %vm45_vm4, %v6318_v51, %v6438_v35  ;;  %v6486_v58 = vsel %vm45_vm4, %v6350_v3, %v6450_v54  ;;  %v6481_v1 = vsel %vm45_vm4, %v6317_v36, %v6437_v34 }
0x3807   :  { %v8068_v23 = vpack.c.bf16 %v6486_v58, %v6482_v29  ;;  %v8070_v21 = vpack.c.bf16 %v6485_v38, %v6481_v1  ;;  %v6412_v10 = vmul.f32 %v6408_v32, %v8683_v48  ;;  %v6409_v14 = vsel %vm349_vm6, %v6400_v0, %v6402_v13 }
0x3808   :  { %v6377_v6 = vsel %vm269_vm5, %v6368_v18, %v6370_v30  ;;  %v6460_v33 = vrot.slane %v6380_v56, 4  ;;  %v6411_v34 = vmul.f32 %v6409_v14, %v8708_v46 }
0x3809   :  { %8069 = vmatprep.subr.bf16.mxu1 %v8068_v23  ;;  %v6472_v54 = vrot.slane %v6412_v10, 4  ;;  %v6379_v25 = vmul.f32 %v6377_v6, %v8722_v52 }
0x380a   :  { %v6388_v50 = vpop.permute.xlu0 %6387  ;;  %8071 = vmatpush1.bf16.msra.mxu1 %v8070_v21  ;;  %v6386_v2 = vpop.permute.xlu1 %6385  ;;  %v6488_v30 = vsel %vm45_vm4, %v11837_v4, %v6460_v33  ;;  %v6471_v58 = vrot.slane %v6411_v34, 4 }
0x380b   :  { %v6392_v35 = vsel %vm309_vm7, %v6386_v2, %v6388_v50  ;;  %v6459_v1 = vrot.slane %v6379_v25, 4 }
0x380c   :  { %v6396_v3 = vmul.f32 %v6392_v35, %v8725_v24 }
0x380d   :  { %v6487_v34 = vsel %vm45_vm4, %v11835_v55, %v6459_v1 }
0x380e   :  { %v6384_v36 = vpop.permute.xlu0 %6383  ;;  %v6374_v13 = vpop.permute.xlu1 %6373  ;;  %v6492_v51 = vsel %vm45_vm4, %v6396_v3, %v6472_v54 }
0x380f   :  { %v6393_v56 = vsel %vm309_vm7, %v6384_v36, %v6386_v2  ;;  %v6375_v32 = vsel %vm269_vm5, %v6372_v27, %v6374_v13  ;;  %v6378_v38 = vsel %vm269_vm5, %v6374_v13, %v6368_v18  ;;  %v8064_v29 = vpack.c.bf16 %v6492_v51, %v6488_v30 }
0x3810   :  { %v6395_v23 = vmul.f32 %v6393_v56, %v8733_v57  ;;  %v6381_v21 = vmul.f32 %v6375_v32, %v8736_v59  ;;  %v6382_v4 = vmul.f32 %v6378_v38, %v8741_v62 }
0x3811   :  { %8065 = vmatprep.subr.bf16.mxu0 %v8064_v29 }
0x3812   :  { %v6491_v10 = vsel %vm45_vm4, %v6395_v23, %v6471_v58  ;;  %v6390_v14 = vpop.permute.xlu0 %6389  ;;  %v6406_v6 = vpop.permute.xlu1 %6405  ;;  %v6461_v2 = vrot.slane %v6381_v21, 4  ;;  %v6462_v25 = vrot.slane %v6382_v4, 4 }
0x3813   :  { %v6391_v27 = vsel %vm309_vm7, %v6388_v50, %v6390_v14  ;;  %v6407_v18 = vsel %vm349_vm6, %v6404_v40, %v6406_v6  ;;  %v6410_v33 = vsel %vm349_vm6, %v6406_v6, %v6400_v0  ;;  %v6394_v35 = vsel %vm309_vm7, %v6390_v14, %v6384_v36 }
0x3814   :  { %v6413_v54 = vmul.f32 %v6407_v18, %v8745_v8  ;;  %v6414_v3 = vmul.f32 %v6410_v33, %v8752_v31  ;;  %v8066_v13 = vpack.c.bf16 %v6491_v10, %v6487_v34  ;;  %v6397_v50 = vmul.f32 %v6391_v27, %v8769_v22  ;;  %v7831_v27 = vld [vmem:[%s12585_s1 + $0x34] sm:$0xf] }
0x3815   :  { %v6398_v0 = vmul.f32 %v6394_v35, %v8772_v16  ;;  %v6489_v32 = vsel %vm45_vm4, %v11863_v20, %v6461_v2  ;;  %v6490_v29 = vsel %vm45_vm4, %v11848_v60, %v6462_v25 }
0x3816   :  { %v6473_v30 = vrot.slane %v6413_v54, 4  ;;  %v6420_v40 = vpop.permute.xlu0 %6419  ;;  %v6418_v51 = vpop.permute.xlu1 %6417  ;;  %v6474_v56 = vrot.slane %v6414_v3, 4  ;;  %8067 = vmatpush1.bf16.msra.mxu0 %v8066_v13 }
0x3817   :  { %v6424_v36 = vsel %vm389_vm8, %v6418_v51, %v6420_v40 }
0x3818   :  { %v6493_v55 = vsel %vm45_vm4, %v6397_v50, %v6473_v30  ;;  %v6428_v38 = vmul.f32 %v6424_v36, %v8776_v61  ;;  %v6494_v58 = vsel %vm45_vm4, %v6398_v0, %v6474_v56 }
0x3819   :  { %v8074_v1 = vpack.c.bf16 %v6493_v55, %v6489_v32  ;;  %v8072_v4 = vpack.c.bf16 %v6494_v58, %v6490_v29 }
0x381a   :  { %v6422_v23 = vpop.permute.xlu0 %6421  ;;  %7832 = vmatprep.subr.msk.mxu0 %vm45_vm4, %v6428_v38  ;;  %v6416_v21 = vpop.permute.xlu1 %6415 }
0x381b   :  { %v6425_v10 = vsel %vm389_vm8, %v6416_v21, %v6418_v51  ;;  %v6426_v20 = vsel %vm389_vm8, %v6422_v23, %v6416_v21  ;;  %v6423_v14 = vsel %vm389_vm8, %v6420_v40, %v6422_v23  ;;  %8073 = vmatprep.subr.bf16.mxu1 %v8072_v4 }
0x381c   :  { %v6427_v6 = vmul.f32 %v6425_v10, %v8796_v12  ;;  %v6430_v60 = vmul.f32 %v6426_v20, %v8799_v49  ;;  %8075 = vmatpush1.bf16.msra.mxu1 %v8074_v1  ;;  %v6429_v18 = vmul.f32 %v6423_v14, %v8809_v28 }
0x381e   :  { %7833 = vmatpush1.msk.msra.mxu0 %vm45_vm4, %v6427_v6  ;;  %7835 = vmatprep.subr.msk.mxu1 %vm45_vm4, %v6430_v60 }
0x381f   :  { %7834 = vmatmul.mubr.msk.f32.vlgmr.msra.gmra.mrb[26].mxu0 %vm492_vm9, %v7831_v27 }
0x3820   :  { %7091 = vmatprep.mubr.f32.mxu0 %v12657_v17  ;;  %7836 = vmatpush1.msk.msra.mxu1 %vm45_vm4, %v6429_v18 }
0x3821   :  { %7837 = vmatmul.mubr.msk.f32.vlgmr.msra.gmra.mrb[26].mxu1 %vm492_vm9, %v7831_v27 }
0x3822   :  { %7162 = vmatprep.mubr.f32.mxu1 %v12657_v17 }
0x382b   :  { %v6499_v33 = vpop.permute.xlu1 %6498 }
0x38f2   :  { %v6582_v2 = vpop.f32.mrb[26].mxu0 }
0x38f3   :  { %v6583_v35 = vadd.f32 %v6582_v2, %v6499_v33  ;;  %v6584_v54 = vpop.f32.mrb[27].mxu0 }
0x38f4   :  { %v6585_v34 = vadd.f32 %v6584_v54, %v6499_v33  ;;  %v6653_v3 = vpop.f32.mrb[26].mxu1 }
0x38f5   :  { %v6658_v25 = vmul.f32 0.01, %v6583_v35  ;;  %v6654_v50 = vadd.f32 %v6653_v3, %v6499_v33  ;;  %v6655_v30 = vpop.f32.mrb[27].mxu1 }
0x38f6   :  { %v6659_v13 = vmul.f32 0.01, %v6585_v34  ;;  %v6656_v51 = vadd.f32 %v6655_v30, %v6499_v33 }
0x38f7   :  { %v12037_v40 = vmax.f32 %v6583_v35, %v6658_v25  ;;  %v6660_v56 = vmul.f32 0.01, %v6654_v50 }
0x38f8   :  { %v12039_v0 = vmax.f32 %v6585_v34, %v6659_v13  ;;  %v6661_v32 = vmul.f32 0.01, %v6656_v51 }
0x38f9   :  { %v6666_v36 = vmul.f32 %v12037_v40, %v12037_v40  ;;  %v12045_v38 = vmax.f32 %v6654_v50, %v6660_v56 }
0x38fa   :  { %v6667_v55 = vmul.f32 %v12039_v0, %v12039_v0  ;;  %v12047_v58 = vmax.f32 %v6656_v51, %v6661_v32 }
0x38fb   :  { %v6674_v29 = vrot.slane %v6666_v36, 4  ;;  %v6668_v23 = vmul.f32 %v12045_v38, %v12045_v38 }
0x38fc   :  { %v6675_v1 = vrot.slane %v6667_v55, 4  ;;  %v6669_v21 = vmul.f32 %v12047_v58, %v12047_v58 }
0x38fd   :  { %v6682_v4 = vsel %vm45_vm4, %v12037_v40, %v6674_v29  ;;  %v6676_v20 = vrot.slane %v6668_v23, 4 }
0x38fe   :  { %v6683_v10 = vsel %vm45_vm4, %v12039_v0, %v6675_v1  ;;  %v6677_v14 = vrot.slane %v6669_v21, 4 }
0x38ff   :  { %v6686_v6 = vadd.f32 %v6683_v10, %v6682_v4  ;;  %v6684_v60 = vsel %vm45_vm4, %v12045_v38, %v6676_v20 }
0x3900   :  { %v6685_v18 = vsel %vm45_vm4, %v12047_v58, %v6677_v14 }
0x3901   :  { %v6687_v27 = vadd.f32 %v6686_v6, %v6684_v60 }
0x3903   :  { %v6688_v33 = vadd.f32 %v6687_v27, %v6685_v18 }
0x3905   :  { %6689 = vadd.xlane.f32.xlu0 %v6688_v33 }
0x3992   :  { %v6690_v2 = vpop.xlane.xlu0 %6689 }
0x3993   :  { %v6699_v35 = vrot.slane %v6690_v2, 4  ;;  %v6691_v23 = vmul.f32 0.001953125, %v6690_v2 }
0x3995   :  { %v6701_v54 = vsel %vm693_vm10, %v6699_v35, 0.0  ;;  %v6692_v21 = vmul.f32 %v6691_v23, %v6691_v23 }
0x3996   :  { %6702 = vadd.xlane.f32.xlu1 %v6701_v54 }
0x3997   :  { %v6694_v4 = vrot.slane %v6692_v21, 4 }
0x3999   :  { %v6696_v10 = vsub.f32 %v6691_v23, %v6694_v4 }
0x399b   :  { %v6697_v20 = vmax.f32 %v6696_v10, 0.0 }
0x3a23   :  { %v6703_v34 = vpop.xlane.xlu1 %6702 }
0x3a24   :  { %v6704_v25 = vrot.slane %v6703_v34, 4 }
0x3a26   :  { %v6705_v3 = vadd.f32 %v6704_v25, %v6703_v34 }
0x3a28   :  { %v6706_v13 = vrot.slane %v6705_v3, 2 }
0x3a2a   :  { %v6707_v50 = vadd.f32 %v6706_v13, %v6705_v3 }
0x3a2c   :  { %v6708_v30 = vrot.slane %v6707_v50, 1 }
0x3a2e   :  { %v6709_v51 = vadd.f32 %v6708_v30, %v6707_v50 }
0x3a30   :  { %8160 = vpush %v6709_v51 }
0x3a61   :  { %s8161_s18 = spop %8160 }
0x3a62   :  { %v6711_v56 = vstv %s8161_s18 }
0x3a63   :  { %8310 = vrsqrt.f32 %v6711_v56  ;;  %vm6714_vm12 = vcmp.eq.f32.partialorder %v6711_v56, inf  ;;  %v6717_v55 = vand.u32 2147483648, %v6711_v56  ;;  %vm6716_vm13 = vcmp.eq.f32.partialorder %v6711_v56, 0.0 }
0x3a6d   :  { %v8311_v36 = vpop.eup %8310 }
0x3a6e   :  { %v6713_v32 = vmul.f32 %v8311_v36, %v6711_v56 }
0x3a70   :  { %v6715_v29 = vsel %vm6714_vm12, %v6711_v56, %v6713_v32 }
0x3a71   :  { %v6718_v1 = vsel %vm6716_vm13, %v6717_v55, %v6715_v29 }
0x3a72   :  { %8162 = vpush %v6718_v1 }
0x3aa3   :  { %s8163_s19 = spop %8162 }
0x3aa4   :  { %s6720_s24 = sadd.f32 1e-06, %s8163_s19 }
0x3aa6   :  { %s6721_s20 = smul.f32 %s6720_s24, %s6720_s24  ;;  %v6726_v18 = vstv %s6720_s24 }
0x3aa8   :  { %v6722_v14 = vstv %s6721_s20 }
0x3aa9   :  { %v6723_v6 = vmul.f32 %v6722_v14, %v6697_v20 }
0x3aab   :  { %v6724_v60 = vadd.f32 1e-05, %v6723_v6 }
0x3aad   :  { %8312 = vrsqrt.f32 %v6724_v60 }
0x3ab7   :  { %v8313_v27 = vpop.eup %8312 }
0x3ab8   :  { %v6727_v33 = vmul.f32 %v8313_v27, %v6726_v18 }
0x3aba   :  { %v6729_v35 = vrot.slane %v6727_v33, 4 }
0x3abc   :  { %6730 = vrot.lane.b32.xlu0 %v6729_v35, %s8383_s7 }
0x3b2e   :  { %v6731_v54 = vpop.permute.xlu0 %6730 }
0x3b2f   :  { %v6733_v2 = vmul.f32 %v11824_v15, %v6731_v54 }
0x3b31   :  { %v6743_v34 = vmul.f32 %v6733_v2, %v6691_v23  ;;  %6736 = vperm.xlu1 %8241, %v6733_v2   ;;  %v12717_v2 = vld [vmem:[#allocation3_spill] sm:$0xff] }
0x3b33   :  { %v6744_v25 = vsub.f32 %v11830_v37, %v6743_v34 }
0x3b35   :  { %6747 = vperm.xlu0 %8242, %v6744_v25  }
0x3bb0   :  { %v6737_v3 = vpop.permute.xlu1 %6736 }
0x3bb1   :  { %v6739_v13 = vmul.f32 %v6737_v3, %v12037_v40  ;;  %v6740_v51 = vmul.f32 %v6737_v3, %v12039_v0  ;;  %v6742_v56 = vmul.f32 %v6737_v3, %v12047_v58  ;;  %v6741_v40 = vmul.f32 %v6737_v3, %v12045_v38  ;;  %v12141_v58 = vld [vmem:[%s12583_s2] sm:$0xf] }
0x3bb2   :  { %v8384_v38 = vmov 14  }
0x3bb3   :  { %8243 = vset.pattern.permute.xlu0 %v8384_v38  ;;  %8244 = vset.pattern.permute.xlu1 %v8384_v38 }
0x3bb4   :  { %v6748_v50 = vpop.permute.xlu0 %6747 }
0x3bb5   :  { %v12065_v30 = vadd.f32 %v6748_v50, %v6739_v13  ;;  %v12073_v15 = vadd.f32 %v6748_v50, %v6740_v51  ;;  %v12075_v37 = vadd.f32 %v6748_v50, %v6742_v56  ;;  %v12098_v0 = vadd.f32 %v6748_v50, %v6741_v40  ;;  %v12718_v13 = vld [vmem:[#allocation5_spill] sm:$0xff] }
0x3bb7   :  { %6862 = vrot.lane.b32.xlu0 %v12065_v30, %s8348_s29  ;;  %6830 = vrot.lane.b32.xlu1 %v12065_v30, %s8349_s30 }
0x3bbb   :  { %6836 = vrot.lane.b32.xlu0 %v12075_v37, %s8349_s30  ;;  %6832 = vrot.lane.b32.xlu1 %v12073_v15, %s8349_s30 }
0x3bbf   :  { %6814 = vrot.lane.b32.xlu0 %v12065_v30, %s8350_s11  ;;  %6864 = vrot.lane.b32.xlu1 %v12073_v15, %s8348_s29 }
0x3bc3   :  { %6846 = vrot.lane.b32.xlu0 %v12065_v30, %s8351_s12  ;;  %6868 = vrot.lane.b32.xlu1 %v12075_v37, %s8348_s29 }
0x3bc7   :  { %6820 = vrot.lane.b32.xlu0 %v12075_v37, %s8350_s11  ;;  %6816 = vrot.lane.b32.xlu1 %v12073_v15, %s8350_s11 }
0x3bcb   :  { %6852 = vrot.lane.b32.xlu0 %v12075_v37, %s8351_s12  ;;  %6848 = vrot.lane.b32.xlu1 %v12073_v15, %s8351_s12 }
0x3bcf   :  { %6880 = vrot.lane.b32.xlu0 %v12073_v15, %s8352_s13  ;;  %6834 = vrot.lane.b32.xlu1 %v12098_v0, %s8349_s30 }
0x3bd3   :  { %6912 = vrot.lane.b32.xlu0 %v12073_v15, %s8353_s14  ;;  %6866 = vrot.lane.b32.xlu1 %v12098_v0, %s8348_s29 }
0x3bd7   :  { %6818 = vrot.lane.b32.xlu0 %v12098_v0, %s8350_s11  ;;  %6882 = vrot.lane.b32.xlu1 %v12098_v0, %s8352_s13 }
0x3bdb   :  { %6878 = vrot.lane.b32.xlu0 %v12065_v30, %s8352_s13  ;;  %6914 = vrot.lane.b32.xlu1 %v12098_v0, %s8353_s14 }
0x3bdf   :  { %6896 = vrot.lane.b32.xlu0 %v12073_v15, %s8354_s15  ;;  %6850 = vrot.lane.b32.xlu1 %v12098_v0, %s8351_s12 }
0x3be3   :  { %6884 = vrot.lane.b32.xlu0 %v12075_v37, %s8352_s13  ;;  %6910 = vrot.lane.b32.xlu1 %v12065_v30, %s8353_s14 }
0x3be7   :  { %6916 = vrot.lane.b32.xlu0 %v12075_v37, %s8353_s14  ;;  %6898 = vrot.lane.b32.xlu1 %v12098_v0, %s8354_s15 }
0x3beb   :  { %6928 = vrot.lane.b32.xlu0 %v12073_v15, %s8357_s16  ;;  %6894 = vrot.lane.b32.xlu1 %v12065_v30, %s8354_s15 }
0x3bef   :  { %6926 = vrot.lane.b32.xlu0 %v12065_v30, %s8357_s16  ;;  %6900 = vrot.lane.b32.xlu1 %v12075_v37, %s8354_s15 }
0x3bf3   :  { %6930 = vrot.lane.b32.xlu1 %v12098_v0, %s8357_s16  ;;  %7009 = vperm.xlu0 %8243, %v12141_v58  }
0x3bf7   :  { %6932 = vrot.lane.b32.xlu1 %v12075_v37, %s8357_s16 }
0x3c29   :  { %v6863_v36 = vpop.permute.xlu0 %6862  ;;  %v6831_v32 = vpop.permute.xlu1 %6830 }
0x3c2d   :  { %v6837_v55 = vpop.permute.xlu0 %6836  ;;  %v6833_v29 = vpop.permute.xlu1 %6832 }
0x3c2e   :  { %v6841_v10 = vsel %vm149_vm0, %v6837_v55, %v6831_v32  ;;  %v6840_v20 = vsel %vm149_vm0, %v6831_v32, %v6833_v29 }
0x3c2f   :  { %v6842_v18 = vmul.f32 %v6841_v10, %v12715_v19  ;;  %v6843_v33 = vmul.f32 %v6840_v20, %v12704_v44 }
0x3c31   :  { %v6815_v1 = vpop.permute.xlu0 %6814  ;;  %v6865_v23 = vpop.permute.xlu1 %6864  ;;  %v6946_v40 = vrot.slane %v6842_v18, 4  ;;  %v6947_v38 = vrot.slane %v6843_v33, 4 }
0x3c32   :  { %v6872_v14 = vsel %vm229_vm1, %v6863_v36, %v6865_v23 }
0x3c33   :  { %v6875_v34 = vmul.f32 %v6872_v14, %v12717_v2  ;;  %v12719_v14 = vld [vmem:[#allocation6_spill] sm:$0xff] }
0x3c35   :  { %v6847_v21 = vpop.permute.xlu0 %6846  ;;  %v6869_v4 = vpop.permute.xlu1 %6868  ;;  %v6959_v10 = vrot.slane %v6875_v34, 4 }
0x3c36   :  { %v6873_v6 = vsel %vm229_vm1, %v6869_v4, %v6863_v36 }
0x3c37   :  { %v6874_v25 = vmul.f32 %v6873_v6, %v12714_v45 }
0x3c39   :  { %v6821_v60 = vpop.permute.xlu0 %6820  ;;  %v6817_v27 = vpop.permute.xlu1 %6816 }
0x3c3a   :  { %v6825_v35 = vsel %vm110_vm2, %v6821_v60, %v6815_v1  ;;  %v6824_v54 = vsel %vm110_vm2, %v6815_v1, %v6817_v27  ;;  %v6958_v1 = vrot.slane %v6874_v25, 4 }
0x3c3b   :  { %v6826_v3 = vmul.f32 %v6825_v35, %v12716_v26  ;;  %v6827_v50 = vmul.f32 %v6824_v54, %v12718_v13 }
0x3c3d   :  { %v6853_v51 = vpop.permute.xlu0 %6852  ;;  %v6849_v56 = vpop.permute.xlu1 %6848  ;;  %v6990_v35 = vsel %vm45_vm4, %v6826_v3, %v6946_v40  ;;  %v6991_v18 = vsel %vm45_vm4, %v6827_v50, %v6947_v38 }
0x3c3e   :  { %v6857_v36 = vsel %vm189_vm3, %v6853_v51, %v6847_v21  ;;  %v6856_v32 = vsel %vm189_vm3, %v6847_v21, %v6849_v56 }
0x3c3f   :  { %v6858_v20 = vmul.f32 %v6857_v36, %v8609_v53  ;;  %v6859_v6 = vmul.f32 %v6856_v32, %v12719_v14 }
0x3c41   :  { %v6994_v54 = vsel %vm45_vm4, %v6858_v20, %v6958_v1  ;;  %v6881_v26 = vpop.permute.xlu0 %6880  ;;  %v6835_v19 = vpop.permute.xlu1 %6834  ;;  %v6995_v33 = vsel %vm45_vm4, %v6859_v6, %v6959_v10 }
0x3c42   :  { %v8076_v45 = vpack.c.bf16 %v6995_v33, %v6991_v18  ;;  %v8078_v13 = vpack.c.bf16 %v6994_v54, %v6990_v35  ;;  %v6838_v32 = vsel %vm149_vm0, %v6835_v19, %v6837_v55  ;;  %v6839_v50 = vsel %vm149_vm0, %v6833_v29, %v6835_v19 }
0x3c43   :  { %v6845_v38 = vmul.f32 %v6838_v32, %v8625_v5  ;;  %v6844_v20 = vmul.f32 %v6839_v50, %v8622_v63 }
0x3c44   :  { %8077 = vmatprep.subr.bf16.mxu0 %v8076_v45 }
0x3c45   :  { %v6913_v21 = vpop.permute.xlu0 %6912  ;;  %8079 = vmatpush1.bf16.msra.mxu0 %v8078_v13  ;;  %v6867_v34 = vpop.permute.xlu1 %6866  ;;  %v6948_v32 = vrot.slane %v6844_v20, 4 }
0x3c46   :  { %v6870_v3 = vsel %vm229_vm1, %v6867_v34, %v6869_v4  ;;  %v6871_v40 = vsel %vm229_vm1, %v6865_v23, %v6867_v34  ;;  %v6949_v23 = vrot.slane %v6845_v38, 4 }
0x3c47   :  { %v6876_v1 = vmul.f32 %v6871_v40, %v8628_v7  ;;  %v6877_v55 = vmul.f32 %v6870_v3, %v8633_v9 }
0x3c49   :  { %v6819_v25 = vpop.permute.xlu0 %6818  ;;  %v6883_v36 = vpop.permute.xlu1 %6882  ;;  %v6960_v33 = vrot.slane %v6876_v1, 4 }
0x3c4a   :  { %v6822_v13 = vsel %vm110_vm2, %v6819_v25, %v6821_v60  ;;  %v6823_v4 = vsel %vm110_vm2, %v6817_v27, %v6819_v25  ;;  %v6887_v54 = vsel %vm269_vm5, %v6881_v26, %v6883_v36  ;;  %v6961_v27 = vrot.slane %v6877_v55, 4 }
0x3c4b   :  { %v6829_v6 = vmul.f32 %v6822_v13, %v8675_v43  ;;  %v6828_v35 = vmul.f32 %v6823_v4, %v8671_v42  ;;  %v6891_v40 = vmul.f32 %v6887_v54, %v8679_v47 }
0x3c4d   :  { %v6879_v45 = vpop.permute.xlu0 %6878  ;;  %v6915_v10 = vpop.permute.xlu1 %6914  ;;  %v6992_v1 = vsel %vm45_vm4, %v6828_v35, %v6948_v32 }
0x3c4e   :  { %v6919_v3 = vsel %vm349_vm6, %v6913_v21, %v6915_v10  ;;  %v6888_v55 = vsel %vm269_vm5, %v6879_v45, %v6881_v26 }
0x3c4f   :  { %v6923_v20 = vmul.f32 %v6919_v3, %v8683_v48 }
0x3c51   :  { %v6897_v19 = vpop.permute.xlu0 %6896  ;;  %v6851_v29 = vpop.permute.xlu1 %6850 }
0x3c52   :  { %v6854_v60 = vsel %vm189_vm3, %v6851_v29, %v6853_v51  ;;  %v6855_v18 = vsel %vm189_vm3, %v6849_v56, %v6851_v29  ;;  %v6993_v51 = vsel %vm45_vm4, %v6829_v6, %v6949_v23 }
0x3c53   :  { %v6860_v34 = vmul.f32 %v6855_v18, %v8663_v39  ;;  %v6861_v25 = vmul.f32 %v6854_v60, %v8667_v41  ;;  %v6971_v60 = vrot.slane %v6891_v40, 4  ;;  %v6890_v18 = vmul.f32 %v6888_v55, %v8722_v52 }
0x3c55   :  { %v6996_v50 = vsel %vm45_vm4, %v6860_v34, %v6960_v33  ;;  %v6885_v38 = vpop.permute.xlu0 %6884  ;;  %v6911_v13 = vpop.permute.xlu1 %6910  ;;  %v6997_v56 = vsel %vm45_vm4, %v6861_v25, %v6961_v27  ;;  %v6983_v27 = vrot.slane %v6923_v20, 4  ;;  %v6970_v3 = vrot.slane %v6890_v18, 4 }
0x3c56   :  { %v8084_v4 = vpack.c.bf16 %v6997_v56, %v6993_v51  ;;  %v8086_v29 = vpack.c.bf16 %v6996_v50, %v6992_v1  ;;  %v6920_v54 = vsel %vm349_vm6, %v6911_v13, %v6913_v21  ;;  %v6886_v23 = vsel %vm269_vm5, %v6883_v36, %v6885_v38 }
0x3c57   :  { %v6889_v26 = vsel %vm269_vm5, %v6885_v38, %v6879_v45  ;;  %v6922_v34 = vmul.f32 %v6920_v54, %v8708_v46  ;;  %v6892_v25 = vmul.f32 %v6886_v23, %v8736_v59  ;;  %v6999_v38 = vsel %vm45_vm4, %v12073_v15, %v6971_v60 }
0x3c58   :  { %8085 = vmatprep.subr.bf16.mxu1 %v8084_v4  ;;  %v6893_v40 = vmul.f32 %v6889_v26, %v8741_v62 }
0x3c59   :  { %v6917_v6 = vpop.permute.xlu0 %6916  ;;  %8087 = vmatpush1.bf16.msra.mxu1 %v8086_v29  ;;  %v6899_v35 = vpop.permute.xlu1 %6898  ;;  %v6982_v55 = vrot.slane %v6922_v34, 4  ;;  %v6972_v20 = vrot.slane %v6892_v25, 4  ;;  %v6998_v29 = vsel %vm45_vm4, %v12065_v30, %v6970_v3 }
0x3c5a   :  { %v6903_v33 = vsel %vm309_vm7, %v6897_v19, %v6899_v35  ;;  %v6918_v32 = vsel %vm349_vm6, %v6915_v10, %v6917_v6  ;;  %v6921_v36 = vsel %vm349_vm6, %v6917_v6, %v6911_v13  ;;  %v6973_v54 = vrot.slane %v6893_v40, 4 }
0x3c5b   :  { %v6907_v21 = vmul.f32 %v6903_v33, %v8725_v24  ;;  %v6924_v10 = vmul.f32 %v6918_v32, %v8745_v8  ;;  %v6925_v4 = vmul.f32 %v6921_v36, %v8752_v31  ;;  %v7000_v25 = vsel %vm45_vm4, %v12098_v0, %v6972_v20 }
0x3c5c   :  { %v7001_v3 = vsel %vm45_vm4, %v12075_v37, %v6973_v54 }
0x3c5d   :  { %v6929_v45 = vpop.permute.xlu0 %6928  ;;  %v6895_v50 = vpop.permute.xlu1 %6894  ;;  %v7003_v51 = vsel %vm45_vm4, %v6907_v21, %v6983_v27  ;;  %v6984_v33 = vrot.slane %v6924_v10, 4  ;;  %v6985_v27 = vrot.slane %v6925_v4, 4 }
0x3c5e   :  { %v6904_v56 = vsel %vm309_vm7, %v6895_v50, %v6897_v19  ;;  %v8080_v1 = vpack.c.bf16 %v7003_v51, %v6999_v38 }
0x3c5f   :  { %v6906_v13 = vmul.f32 %v6904_v56, %v8733_v57 }
0x3c60   :  { %8081 = vmatprep.subr.bf16.mxu0 %v8080_v1 }
0x3c61   :  { %v7002_v60 = vsel %vm45_vm4, %v6906_v13, %v6982_v55  ;;  %v6901_v18 = vpop.permute.xlu1 %6900  ;;  %v6927_v23 = vpop.permute.xlu0 %6926  ;;  %v7838_v55 = vld [vmem:[%s12585_s1 + $0x38] sm:$0xf] }
0x3c62   :  { %v6902_v19 = vsel %vm309_vm7, %v6899_v35, %v6901_v18  ;;  %v6905_v6 = vsel %vm309_vm7, %v6901_v18, %v6895_v50  ;;  %v8082_v26 = vpack.c.bf16 %v7002_v60, %v6998_v29  ;;  %v6936_v32 = vsel %vm389_vm8, %v6927_v23, %v6929_v45 }
0x3c63   :  { %v6908_v34 = vmul.f32 %v6902_v19, %v8769_v22  ;;  %v6909_v21 = vmul.f32 %v6905_v6, %v8772_v16  ;;  %v6938_v1 = vmul.f32 %v6936_v32, %v8796_v12 }
0x3c64   :  { %8083 = vmatpush1.bf16.msra.mxu0 %v8082_v26 }
0x3c65   :  { %v7004_v36 = vsel %vm45_vm4, %v6908_v34, %v6984_v33  ;;  %v6931_v35 = vpop.permute.xlu1 %6930  ;;  %v7005_v40 = vsel %vm45_vm4, %v6909_v21, %v6985_v27 }
0x3c66   :  { %v6935_v50 = vsel %vm389_vm8, %v6929_v45, %v6931_v35  ;;  %v8088_v38 = vpack.c.bf16 %v7005_v40, %v7001_v3  ;;  %v8090_v51 = vpack.c.bf16 %v7004_v36, %v7000_v25 }
0x3c67   :  { %v6939_v56 = vmul.f32 %v6935_v50, %v8776_v61 }
0x3c68   :  { %8089 = vmatprep.subr.bf16.mxu1 %v8088_v38 }
0x3c69   :  { %7839 = vmatprep.subr.msk.mxu0 %vm45_vm4, %v6939_v56  ;;  %8091 = vmatpush1.bf16.msra.mxu1 %v8090_v51  ;;  %v6933_v10 = vpop.permute.xlu1 %6932 }
0x3c6a   :  { %v6934_v4 = vsel %vm389_vm8, %v6931_v35, %v6933_v10  ;;  %v6937_v45 = vsel %vm389_vm8, %v6933_v10, %v6927_v23  ;;  %7840 = vmatpush1.msk.msra.mxu0 %vm45_vm4, %v6938_v1 }
0x3c6b   :  { %v6940_v13 = vmul.f32 %v6934_v4, %v8809_v28  ;;  %v6941_v20 = vmul.f32 %v6937_v45, %v8799_v49  ;;  %7841 = vmatmul.mubr.msk.f32.vlgmr.msra.gmra.mrb[28].mxu0 %vm492_vm9, %v7838_v55 }
0x3c6c   :  { %7542 = vmatprep.mubr.f32.mxu0 %v12657_v17 }
0x3c6d   :  { %7842 = vmatprep.subr.msk.mxu1 %vm45_vm4, %v6941_v20 }
0x3c6e   :  { %7843 = vmatpush1.msk.msra.mxu1 %vm45_vm4, %v6940_v13 }
0x3c6f   :  { %7844 = vmatmul.mubr.msk.f32.vlgmr.msra.gmra.mrb[28].mxu1 %vm492_vm9, %v7838_v55 }
0x3c70   :  { %7613 = vmatprep.mubr.f32.mxu1 %v12657_v17 }
0x3c72   :  { %v7010_v29 = vpop.permute.xlu0 %7009 }
0x3d3e   :  { %v7093_v54 = vpop.f32.mrb[28].mxu0 }
0x3d3f   :  { %v7094_v60 = vadd.f32 %v7093_v54, %v7010_v29  ;;  %v7095_v18 = vpop.f32.mrb[29].mxu0 }
0x3d40   :  { %v7096_v23 = vadd.f32 %v7095_v18, %v7010_v29 }
0x3d41   :  { %v7169_v19 = vmul.f32 0.01, %v7094_v60 }
0x3d42   :  { %v7170_v6 = vmul.f32 0.01, %v7096_v23  ;;  %v7164_v26 = vpop.f32.mrb[28].mxu1 }
0x3d43   :  { %v12273_v33 = vmax.f32 %v7094_v60, %v7169_v19  ;;  %v7165_v27 = vadd.f32 %v7164_v26, %v7010_v29  ;;  %v7166_v34 = vpop.f32.mrb[29].mxu1 }
0x3d44   :  { %v12275_v21 = vmax.f32 %v7096_v23, %v7170_v6  ;;  %v7167_v25 = vadd.f32 %v7166_v34, %v7010_v29 }
0x3d45   :  { %v7177_v32 = vmul.f32 %v12273_v33, %v12273_v33  ;;  %v7171_v36 = vmul.f32 0.01, %v7165_v27 }
0x3d46   :  { %v7178_v17 = vmul.f32 %v12275_v21, %v12275_v21  ;;  %v7172_v35 = vmul.f32 0.01, %v7167_v25 }
0x3d47   :  { %v7185_v3 = vrot.slane %v7177_v32, 4  ;;  %v12281_v40 = vmax.f32 %v7165_v27, %v7171_v36 }
0x3d48   :  { %v7186_v50 = vrot.slane %v7178_v17, 4  ;;  %v12283_v38 = vmax.f32 %v7167_v25, %v7172_v35 }
0x3d49   :  { %v7193_v51 = vsel %vm45_vm4, %v12273_v33, %v7185_v3  ;;  %v7179_v56 = vmul.f32 %v12281_v40, %v12281_v40 }
0x3d4a   :  { %v7194_v1 = vsel %vm45_vm4, %v12275_v21, %v7186_v50  ;;  %v7180_v55 = vmul.f32 %v12283_v38, %v12283_v38 }
0x3d4b   :  { %v7187_v10 = vrot.slane %v7179_v56, 4  ;;  %v7197_v4 = vadd.f32 %v7194_v1, %v7193_v51 }
0x3d4c   :  { %v7188_v45 = vrot.slane %v7180_v55, 4 }
0x3d4d   :  { %v7195_v13 = vsel %vm45_vm4, %v12281_v40, %v7187_v10 }
0x3d4e   :  { %v7196_v20 = vsel %vm45_vm4, %v12283_v38, %v7188_v45  ;;  %v7198_v29 = vadd.f32 %v7197_v4, %v7195_v13 }
0x3d50   :  { %v7199_v54 = vadd.f32 %v7198_v29, %v7196_v20 }
0x3d52   :  { %7200 = vadd.xlane.f32.xlu1 %v7199_v54 }
0x3ddf   :  { %v7201_v60 = vpop.xlane.xlu1 %7200 }
0x3de0   :  { %v7210_v18 = vrot.slane %v7201_v60, 4  ;;  %v7202_v56 = vmul.f32 0.001953125, %v7201_v60  ;;  %v12301_v60 = vld [vmem:[%s12586_s3] sm:$0xf] }
0x3de1   :  { %12720 = vst [vmem:[#allocation2_spill] sm:$0xff] %v12301_v60 }
0x3de2   :  { %v7212_v23 = vsel %vm693_vm10, %v7210_v18, 0.0  ;;  %v7203_v1 = vmul.f32 %v7202_v56, %v7202_v56 }
0x3de3   :  { %7213 = vadd.xlane.f32.xlu0 %v7212_v23 }
0x3de4   :  { %v7205_v55 = vrot.slane %v7203_v1, 4 }
0x3de6   :  { %v7207_v10 = vsub.f32 %v7202_v56, %v7205_v55 }
0x3de8   :  { %v7208_v4 = vmax.f32 %v7207_v10, 0.0 }
0x3e70   :  { %v7214_v19 = vpop.xlane.xlu0 %7213 }
0x3e71   :  { %v7215_v6 = vrot.slane %v7214_v19, 4 }
0x3e73   :  { %v7216_v26 = vadd.f32 %v7215_v6, %v7214_v19 }
0x3e75   :  { %v7217_v27 = vrot.slane %v7216_v26, 2 }
0x3e77   :  { %v7218_v34 = vadd.f32 %v7217_v27, %v7216_v26  ;;  %v12307_v27 = vld [vmem:[%s12587_s4] sm:$0xf] }
0x3e78   :  { %12721 = vst [vmem:[#allocation10_spill] sm:$0xff] %v12307_v27 }
0x3e79   :  { %v7219_v25 = vrot.slane %v7218_v34, 1 }
0x3e7b   :  { %v7220_v32 = vadd.f32 %v7219_v25, %v7218_v34  ;;  %v12722_v25 = vmov 7  }
0x3e7d   :  { %8164 = vpush %v7220_v32 }
0x3eae   :  { %s8165_s17 = spop %8164 }
0x3eaf   :  { %v7222_v36 = vstv %s8165_s17 }
0x3eb0   :  { %8314 = vrsqrt.f32 %v7222_v36  ;;  %vm7225_vm14 = vcmp.eq.f32.partialorder %v7222_v36, inf  ;;  %v7228_v3 = vand.u32 2147483648, %v7222_v36  ;;  %vm7227_vm15 = vcmp.eq.f32.partialorder %v7222_v36, 0.0 }
0x3eba   :  { %v8315_v17 = vpop.eup %8314 }
0x3ebb   :  { %v7224_v35 = vmul.f32 %v8315_v17, %v7222_v36 }
0x3ebd   :  { %v7226_v50 = vsel %vm7225_vm14, %v7222_v36, %v7224_v35 }
0x3ebe   :  { %v7229_v51 = vsel %vm7227_vm15, %v7228_v3, %v7226_v50 }
0x3ebf   :  { %8166 = vpush %v7229_v51 }
0x3ef0   :  { %s8167_s23 = spop %8166 }
0x3ef1   :  { %s7231_s25 = sadd.f32 1e-06, %s8167_s23 }
0x3ef3   :  { %s7232_s26 = smul.f32 %s7231_s25, %s7231_s25  ;;  %v7237_v54 = vstv %s7231_s25 }
0x3ef5   :  { %v7233_v45 = vstv %s7232_s26 }
0x3ef6   :  { %v7234_v13 = vmul.f32 %v7233_v45, %v7208_v4 }
0x3ef8   :  { %v7235_v20 = vadd.f32 1e-05, %v7234_v13 }
0x3efa   :  { %8316 = vrsqrt.f32 %v7235_v20 }
0x3f04   :  { %v8317_v29 = vpop.eup %8316 }
0x3f05   :  { %v7238_v18 = vmul.f32 %v8317_v29, %v7237_v54 }
0x3f07   :  { %v7240_v23 = vrot.slane %v7238_v18, 4 }
0x3f09   :  { %7241 = vrot.lane.b32.xlu1 %v7240_v23, %s8385_s27 }
0x3f7b   :  { %v7242_v19 = vpop.permute.xlu1 %7241 }
0x3f7c   :  { %v7244_v6 = vmul.f32 %v12301_v60, %v7242_v19  ;;  %v12723_v19 = vld [vmem:[#allocation5_spill] sm:$0xff] }
0x3f7e   :  { %v7254_v26 = vmul.f32 %v7244_v6, %v7202_v56  ;;  %7247 = vperm.xlu0 %8243, %v7244_v6  }
0x3f80   :  { %v7255_v34 = vsub.f32 %v12307_v27, %v7254_v26 }
0x3f82   :  { %7258 = vperm.xlu1 %8244, %v7255_v34   ;;  %8247 = vset.pattern.permute.xlu0 %v12722_v25 }
0x3ffd   :  { %v7248_v32 = vpop.permute.xlu0 %7247 }
0x3ffe   :  { %v7250_v36 = vmul.f32 %v7248_v32, %v12273_v33  ;;  %v7251_v17 = vmul.f32 %v7248_v32, %v12275_v21  ;;  %v7253_v51 = vmul.f32 %v7248_v32, %v12283_v38  ;;  %v7252_v21 = vmul.f32 %v7248_v32, %v12281_v40 }
0x3fff   :  { %v12645_v40 = vmov 15  }
0x4000   :  { %8245 = vset.pattern.permute.xlu1 %v12645_v40 }
0x4001   :  { %v7259_v35 = vpop.permute.xlu1 %7258 }
0x4002   :  { %v12313_v3 = vadd.f32 %v7259_v35, %v7250_v36  ;;  %v12315_v50 = vadd.f32 %v7259_v35, %v7251_v17  ;;  %v12326_v33 = vadd.f32 %v7259_v35, %v7253_v51  ;;  %v12341_v38 = vadd.f32 %v7259_v35, %v7252_v21 }
0x4004   :  { %7283 = vrot.lane.b32.xlu0 %v12315_v50, %s8349_s30  ;;  %7281 = vrot.lane.b32.xlu1 %v12313_v3, %s8349_s30 }
0x4008   :  { %7315 = vrot.lane.b32.xlu0 %v12315_v50, %s8348_s29  ;;  %7313 = vrot.lane.b32.xlu1 %v12313_v3, %s8348_s29 }
0x400c   :  { %7319 = vrot.lane.b32.xlu0 %v12326_v33, %s8348_s29  ;;  %7287 = vrot.lane.b32.xlu1 %v12326_v33, %s8349_s30 }
0x4010   :  { %7267 = vrot.lane.b32.xlu0 %v12315_v50, %s8350_s11  ;;  %7265 = vrot.lane.b32.xlu1 %v12313_v3, %s8350_s11 }
0x4014   :  { %7299 = vrot.lane.b32.xlu0 %v12315_v50, %s8351_s12  ;;  %7297 = vrot.lane.b32.xlu1 %v12313_v3, %s8351_s12 }
0x4018   :  { %7285 = vrot.lane.b32.xlu0 %v12341_v38, %s8349_s30  ;;  %7271 = vrot.lane.b32.xlu1 %v12326_v33, %s8350_s11 }
0x401c   :  { %7317 = vrot.lane.b32.xlu0 %v12341_v38, %s8348_s29  ;;  %7303 = vrot.lane.b32.xlu1 %v12326_v33, %s8351_s12 }
0x4020   :  { %7333 = vrot.lane.b32.xlu0 %v12341_v38, %s8352_s13  ;;  %7331 = vrot.lane.b32.xlu1 %v12315_v50, %s8352_s13 }
0x4024   :  { %7365 = vrot.lane.b32.xlu0 %v12341_v38, %s8353_s14  ;;  %7363 = vrot.lane.b32.xlu1 %v12315_v50, %s8353_s14 }
0x4028   :  { %7301 = vrot.lane.b32.xlu0 %v12341_v38, %s8351_s12  ;;  %7269 = vrot.lane.b32.xlu1 %v12341_v38, %s8350_s11 }
0x402c   :  { %7361 = vrot.lane.b32.xlu0 %v12313_v3, %s8353_s14  ;;  %7329 = vrot.lane.b32.xlu1 %v12313_v3, %s8352_s13 }
0x4030   :  { %7349 = vrot.lane.b32.xlu0 %v12341_v38, %s8354_s15  ;;  %7347 = vrot.lane.b32.xlu1 %v12315_v50, %s8354_s15 }
0x4034   :  { %7345 = vrot.lane.b32.xlu0 %v12313_v3, %s8354_s15  ;;  %7335 = vrot.lane.b32.xlu1 %v12326_v33, %s8352_s13 }
0x4038   :  { %7351 = vrot.lane.b32.xlu0 %v12326_v33, %s8354_s15  ;;  %7367 = vrot.lane.b32.xlu1 %v12326_v33, %s8353_s14 }
0x403c   :  { %7381 = vrot.lane.b32.xlu0 %v12341_v38, %s8357_s16  ;;  %7379 = vrot.lane.b32.xlu1 %v12315_v50, %s8357_s16 }
0x4040   :  { %7383 = vrot.lane.b32.xlu0 %v12326_v33, %s8357_s16  ;;  %7377 = vrot.lane.b32.xlu1 %v12313_v3, %s8357_s16 }
0x4044   :  { %7460 = vperm.xlu1 %8245, %v12141_v58  }
0x4048   :  { %8246 = vset.pattern.permute.xlu1 %v12722_v25 }
0x4076   :  { %v7284_v56 = vpop.permute.xlu0 %7283  ;;  %v7282_v1 = vpop.permute.xlu1 %7281 }
0x4077   :  { %v7291_v13 = vsel %vm149_vm0, %v7282_v1, %v7284_v56 }
0x4078   :  { %v7294_v58 = vmul.f32 %v7291_v13, %v12704_v44 }
0x407a   :  { %v7316_v55 = vpop.permute.xlu0 %7315  ;;  %v7314_v10 = vpop.permute.xlu1 %7313  ;;  %v7398_v32 = vrot.slane %v7294_v58, 4  ;;  %v12724_v58 = vld [vmem:[#allocation7_spill] sm:$0xff] }
0x407b   :  { %v7323_v20 = vsel %vm229_vm1, %v7314_v10, %v7316_v55 }
0x407c   :  { %v7326_v23 = vmul.f32 %v7323_v20, %v12717_v2 }
0x407e   :  { %v7320_v4 = vpop.permute.xlu0 %7319  ;;  %v7288_v45 = vpop.permute.xlu1 %7287  ;;  %v7410_v36 = vrot.slane %v7326_v23, 4 }
0x407f   :  { %v7324_v35 = vsel %vm229_vm1, %v7320_v4, %v7314_v10  ;;  %v7292_v51 = vsel %vm149_vm0, %v7288_v45, %v7282_v1 }
0x4080   :  { %v7325_v23 = vmul.f32 %v7324_v35, %v12724_v58 }
0x4082   :  { %v7268_v29 = vpop.permute.xlu0 %7267  ;;  %v7266_v54 = vpop.permute.xlu1 %7265  ;;  %v7409_v60 = vrot.slane %v7325_v23, 4 }
0x4083   :  { %v7275_v18 = vsel %vm110_vm2, %v7266_v54, %v7268_v29 }
0x4084   :  { %v7278_v6 = vmul.f32 %v7275_v18, %v12723_v19  ;;  %v12725_v19 = vld [vmem:[#allocation8_spill] sm:$0xff] }
0x4086   :  { %v7300_v26 = vpop.permute.xlu0 %7299  ;;  %v7298_v34 = vpop.permute.xlu1 %7297  ;;  %v7442_v2 = vsel %vm45_vm4, %v7278_v6, %v7398_v32 }
0x4087   :  { %v7307_v25 = vsel %vm189_vm3, %v7298_v34, %v7300_v26 }
0x4088   :  { %v7310_v17 = vmul.f32 %v7307_v25, %v12719_v14  ;;  %v7293_v14 = vmul.f32 %v7292_v51, %v12725_v19  ;;  %v12726_v25 = vld [vmem:[#allocation9_spill] sm:$0xff] }
0x408a   :  { %v7286_v44 = vpop.permute.xlu0 %7285  ;;  %v7272_v21 = vpop.permute.xlu1 %7271  ;;  %v7446_v13 = vsel %vm45_vm4, %v7310_v17, %v7410_v36  ;;  %v7397_v6 = vrot.slane %v7293_v14, 4 }
0x408b   :  { %v7276_v20 = vsel %vm110_vm2, %v7272_v21, %v7266_v54  ;;  %v8092_v18 = vpack.c.bf16 %v7446_v13, %v7442_v2  ;;  %v7290_v54 = vsel %vm149_vm0, %v7284_v56, %v7286_v44  ;;  %v7289_v2 = vsel %vm149_vm0, %v7286_v44, %v7288_v45 }
0x408c   :  { %v7277_v10 = vmul.f32 %v7276_v20, %v12726_v25  ;;  %v7296_v56 = vmul.f32 %v7289_v2, %v8625_v5 }
0x408d   :  { %8093 = vmatprep.subr.bf16.mxu0 %v8092_v18 }
0x408e   :  { %v7318_v40 = vpop.permute.xlu0 %7317  ;;  %v7304_v27 = vpop.permute.xlu1 %7303  ;;  %v7441_v36 = vsel %vm45_vm4, %v7277_v10, %v7397_v6  ;;  %v7400_v45 = vrot.slane %v7296_v56, 4 }
0x408f   :  { %v7308_v1 = vsel %vm189_vm3, %v7304_v27, %v7298_v34  ;;  %v7321_v13 = vsel %vm229_vm1, %v7318_v40, %v7320_v4  ;;  %v7322_v34 = vsel %vm229_vm1, %v7316_v55, %v7318_v40 }
0x4090   :  { %v7309_v32 = vmul.f32 %v7308_v1, %v8609_v53  ;;  %v7295_v53 = vmul.f32 %v7290_v54, %v8622_v63  ;;  %v7327_v18 = vmul.f32 %v7322_v34, %v8628_v7 }
0x4092   :  { %v7445_v17 = vsel %vm45_vm4, %v7309_v32, %v7409_v60  ;;  %v7334_v35 = vpop.permute.xlu0 %7333  ;;  %v7332_v51 = vpop.permute.xlu1 %7331  ;;  %v7328_v60 = vmul.f32 %v7321_v13, %v8633_v9  ;;  %v7399_v19 = vrot.slane %v7295_v53, 4  ;;  %v7411_v44 = vrot.slane %v7327_v18, 4 }
0x4093   :  { %v8094_v20 = vpack.c.bf16 %v7445_v17, %v7441_v36  ;;  %v7338_v4 = vsel %vm269_vm5, %v7332_v51, %v7334_v35 }
0x4094   :  { %v7412_v14 = vrot.slane %v7328_v60, 4  ;;  %v7342_v32 = vmul.f32 %v7338_v4, %v8679_v47 }
0x4095   :  { %8095 = vmatpush1.bf16.msra.mxu0 %v8094_v20 }
0x4096   :  { %v7366_v58 = vpop.permute.xlu0 %7365  ;;  %v7364_v23 = vpop.permute.xlu1 %7363  ;;  %v7422_v2 = vrot.slane %v7342_v32, 4 }
0x409a   :  { %v7302_v40 = vpop.permute.xlu0 %7301  ;;  %v7270_v55 = vpop.permute.xlu1 %7269 }
0x409b   :  { %v7305_v63 = vsel %vm189_vm3, %v7302_v40, %v7304_v27  ;;  %v7306_v5 = vsel %vm189_vm3, %v7300_v26, %v7302_v40  ;;  %v7273_v7 = vsel %vm110_vm2, %v7270_v55, %v7272_v21  ;;  %v7274_v9 = vsel %vm110_vm2, %v7268_v29, %v7270_v55 }
0x409c   :  { %v7311_v25 = vmul.f32 %v7306_v5, %v8663_v39  ;;  %v7312_v10 = vmul.f32 %v7305_v63, %v8667_v41  ;;  %v7279_v1 = vmul.f32 %v7274_v9, %v8671_v42  ;;  %v7280_v6 = vmul.f32 %v7273_v7, %v8675_v43 }
0x409d   :  { %v7370_v27 = vsel %vm349_vm6, %v7364_v23, %v7366_v58 }
0x409e   :  { %v7447_v26 = vsel %vm45_vm4, %v7311_v25, %v7411_v44  ;;  %v7443_v21 = vsel %vm45_vm4, %v7279_v1, %v7399_v19  ;;  %v7362_v54 = vpop.permute.xlu0 %7361  ;;  %v7330_v36 = vpop.permute.xlu1 %7329  ;;  %v7444_v29 = vsel %vm45_vm4, %v7280_v6, %v7400_v45  ;;  %v7448_v39 = vsel %vm45_vm4, %v7312_v10, %v7412_v14 }
0x409f   :  { %v8100_v41 = vpack.c.bf16 %v7448_v39, %v7444_v29  ;;  %v8102_v17 = vpack.c.bf16 %v7447_v26, %v7443_v21  ;;  %v7374_v42 = vmul.f32 %v7370_v27, %v8683_v48  ;;  %v7371_v43 = vsel %vm349_vm6, %v7362_v54, %v7364_v23 }
0x40a0   :  { %v7339_v47 = vsel %vm269_vm5, %v7330_v36, %v7332_v51  ;;  %v7373_v56 = vmul.f32 %v7371_v43, %v8708_v46  ;;  %v7450_v51 = vsel %vm45_vm4, %v12315_v50, %v7422_v2 }
0x40a1   :  { %8101 = vmatprep.subr.bf16.mxu1 %v8100_v41  ;;  %v7434_v53 = vrot.slane %v7374_v42, 4  ;;  %v7341_v18 = vmul.f32 %v7339_v47, %v8722_v52  ;;  %v7845_v47 = vld [vmem:[%s12585_s1 + $0x3c] sm:$0xf] }
0x40a2   :  { %v7350_v13 = vpop.permute.xlu0 %7349  ;;  %8103 = vmatpush1.bf16.msra.mxu1 %v8102_v17  ;;  %v7348_v34 = vpop.permute.xlu1 %7347  ;;  %v7433_v52 = vrot.slane %v7373_v56, 4 }
0x40a3   :  { %v7354_v20 = vsel %vm309_vm7, %v7348_v34, %v7350_v13  ;;  %v7421_v4 = vrot.slane %v7341_v18, 4 }
0x40a4   :  { %v7358_v48 = vmul.f32 %v7354_v20, %v8725_v24  ;;  %v6754_v20 = vmul.f32 %v12065_v30, %v12065_v30 }
0x40a6   :  { %v7346_v60 = vpop.permute.xlu0 %7345  ;;  %v7336_v23 = vpop.permute.xlu1 %7335  ;;  %v7454_v19 = vsel %vm45_vm4, %v7358_v48, %v7434_v53  ;;  %v6755_v53 = vmul.f32 %v12073_v15, %v12073_v15 }
0x40a7   :  { %v7355_v45 = vsel %vm309_vm7, %v7346_v60, %v7348_v34  ;;  %v7337_v44 = vsel %vm269_vm5, %v7334_v35, %v7336_v23  ;;  %v7340_v46 = vsel %vm269_vm5, %v7336_v23, %v7330_v36  ;;  %v8096_v14 = vpack.c.bf16 %v7454_v19, %v7450_v51 }
0x40a8   :  { %v7357_v24 = vmul.f32 %v7355_v45, %v8733_v57  ;;  %v7343_v40 = vmul.f32 %v7337_v44, %v8736_v59  ;;  %v7344_v50 = vmul.f32 %v7340_v46, %v8741_v62  ;;  %v7449_v57 = vsel %vm45_vm4, %v12313_v3, %v7421_v4 }
0x40a9   :  { %8097 = vmatprep.subr.bf16.mxu0 %v8096_v14  ;;  %v6762_v44 = vrot.slane %v6754_v20, 4  ;;  %v6763_v46 = vrot.slane %v6755_v53, 4  ;;  %v8347_v53 = vld [vmem:[%s12589_s6] sm:$0xf] }
0x40aa   :  { %v7453_v55 = vsel %vm45_vm4, %v7357_v24, %v7433_v52  ;;  %v7352_v63 = vpop.permute.xlu0 %7351  ;;  %v7368_v5 = vpop.permute.xlu1 %7367  ;;  %v7423_v59 = vrot.slane %v7343_v40, 4  ;;  %v7424_v10 = vrot.slane %v7344_v50, 4  ;;  %v6756_v40 = vmul.f32 %v12098_v0, %v12098_v0 }
0x40ab   :  { %v7353_v35 = vsel %vm309_vm7, %v7350_v13, %v7352_v63  ;;  %v7369_v7 = vsel %vm349_vm6, %v7366_v58, %v7368_v5  ;;  %v7372_v9 = vsel %vm349_vm6, %v7368_v5, %v7362_v54  ;;  %v7356_v62 = vsel %vm309_vm7, %v7352_v63, %v7346_v60 }
0x40ac   :  { %v7375_v25 = vmul.f32 %v7369_v7, %v8745_v8  ;;  %v7376_v1 = vmul.f32 %v7372_v9, %v8752_v31  ;;  %v8098_v6 = vpack.c.bf16 %v7453_v55, %v7449_v57  ;;  %v7359_v32 = vmul.f32 %v7353_v35, %v8769_v22 }
0x40ad   :  { %v7360_v21 = vmul.f32 %v7356_v62, %v8772_v16  ;;  %v7451_v36 = vsel %vm45_vm4, %v12341_v38, %v7423_v59  ;;  %v7452_v22 = vsel %vm45_vm4, %v12326_v33, %v7424_v10  ;;  %v6770_v35 = vsel %vm45_vm4, %v12065_v30, %v6762_v44 }
0x40ae   :  { %v7435_v27 = vrot.slane %v7375_v25, 4  ;;  %v7382_v58 = vpop.permute.xlu0 %7381  ;;  %v7380_v26 = vpop.permute.xlu1 %7379  ;;  %v7436_v54 = vrot.slane %v7376_v1, 4  ;;  %8099 = vmatpush1.bf16.msra.mxu0 %v8098_v6  ;;  %v6771_v7 = vsel %vm45_vm4, %v12073_v15, %v6763_v46  ;;  %v6757_v25 = vmul.f32 %v12075_v37, %v12075_v37 }
0x40af   :  { %v7386_v3 = vsel %vm389_vm8, %v7380_v26, %v7382_v58  ;;  %v6764_v10 = vrot.slane %v6756_v40, 4 }
0x40b0   :  { %v7455_v8 = vsel %vm45_vm4, %v7359_v32, %v7435_v27  ;;  %v7390_v31 = vmul.f32 %v7386_v3, %v8776_v61  ;;  %v7456_v29 = vsel %vm45_vm4, %v7360_v21, %v7436_v54  ;;  %v6774_v32 = vadd.f32 %v6771_v7, %v6770_v35 }
0x40b1   :  { %v8106_v39 = vpack.c.bf16 %v7455_v8, %v7451_v36  ;;  %v8104_v17 = vpack.c.bf16 %v7456_v29, %v7452_v22  ;;  %v6765_v21 = vrot.slane %v6757_v25, 4  ;;  %v6772_v54 = vsel %vm45_vm4, %v12098_v0, %v6764_v10 }
0x40b2   :  { %v7384_v41 = vpop.permute.xlu0 %7383  ;;  %7846 = vmatprep.subr.msk.mxu0 %vm45_vm4, %v7390_v31  ;;  %v7378_v16 = vpop.permute.xlu1 %7377  ;;  %v6775_v36 = vadd.f32 %v6774_v32, %v6772_v54 }
0x40b3   :  { %v7387_v42 = vsel %vm389_vm8, %v7378_v16, %v7380_v26  ;;  %v7388_v38 = vsel %vm389_vm8, %v7384_v41, %v7378_v16  ;;  %v7385_v61 = vsel %vm389_vm8, %v7382_v58, %v7384_v41  ;;  %8105 = vmatprep.subr.bf16.mxu1 %v8104_v17  ;;  %v6773_v8 = vsel %vm45_vm4, %v12075_v37, %v6765_v21 }
0x40b4   :  { %v7389_v43 = vmul.f32 %v7387_v42, %v8796_v12  ;;  %v7392_v33 = vmul.f32 %v7388_v38, %v8799_v49  ;;  %8107 = vmatpush1.bf16.msra.mxu1 %v8106_v39  ;;  %v7391_v2 = vmul.f32 %v7385_v61, %v8809_v28  ;;  %v6776_v31 = vadd.f32 %v6775_v36, %v6773_v8 }
0x40b6   :  { %7847 = vmatpush1.msk.msra.mxu0 %vm45_vm4, %v7389_v43  ;;  %7849 = vmatprep.subr.msk.mxu1 %vm45_vm4, %v7392_v33 }
0x40b7   :  { %7848 = vmatmul.mubr.msk.f32.vlgmr.msra.gmra.mrb[30].mxu0 %vm492_vm9, %v7845_v47 }
0x40b8   :  { %7850 = vmatpush1.msk.msra.mxu1 %vm45_vm4, %v7391_v2 }
0x40b9   :  { %7851 = vmatmul.mubr.msk.f32.vlgmr.msra.gmra.mrb[30].mxu1 %vm492_vm9, %v7845_v47 }
0x40c3   :  { %v7461_v11 = vpop.permute.xlu1 %7460 }
0x418a   :  { %v7544_v12 = vpop.f32.mrb[30].mxu0 }
0x418b   :  { %v7545_v49 = vadd.f32 %v7544_v12, %v7461_v11  ;;  %v7546_v13 = vpop.f32.mrb[31].mxu0 }
0x418c   :  { %v7547_v34 = vadd.f32 %v7546_v13, %v7461_v11  ;;  %v7615_v18 = vpop.f32.mrb[30].mxu1 }
0x418d   :  { %v7620_v56 = vmul.f32 0.01, %v7545_v49  ;;  %v7616_v48 = vadd.f32 %v7615_v18, %v7461_v11  ;;  %v7617_v60 = vpop.f32.mrb[31].mxu1 }
0x418e   :  { %v7621_v28 = vmul.f32 0.01, %v7547_v34  ;;  %v7618_v51 = vadd.f32 %v7617_v60, %v7461_v11  ;;  %v8346_v11 = vld [vmem:[%s12588_s5] sm:$0xf]  ;;  %v12727_v60 = vmov 15  }
0x418f   :  { %v12519_v23 = vmax.f32 %v7545_v49, %v7620_v56  ;;  %v7622_v45 = vmul.f32 0.01, %v7616_v48 }
0x4190   :  { %v12521_v19 = vmax.f32 %v7547_v34, %v7621_v28  ;;  %v7623_v52 = vmul.f32 0.01, %v7618_v51 }
0x4191   :  { %v7628_v14 = vmul.f32 %v12519_v23, %v12519_v23  ;;  %v12527_v24 = vmax.f32 %v7616_v48, %v7622_v45 }
0x4192   :  { %v7629_v4 = vmul.f32 %v12521_v19, %v12521_v19  ;;  %v12531_v55 = vmax.f32 %v7618_v51, %v7623_v52 }
0x4193   :  { %v7636_v50 = vrot.slane %v7628_v14, 4  ;;  %v7630_v5 = vmul.f32 %v12527_v24, %v12527_v24 }
0x4194   :  { %v7637_v63 = vrot.slane %v7629_v4, 4  ;;  %v7631_v9 = vmul.f32 %v12531_v55, %v12531_v55 }
0x4195   :  { %v7644_v57 = vsel %vm45_vm4, %v12519_v23, %v7636_v50  ;;  %v7638_v62 = vrot.slane %v7630_v5, 4 }
0x4196   :  { %v7645_v59 = vsel %vm45_vm4, %v12521_v19, %v7637_v63  ;;  %v7639_v1 = vrot.slane %v7631_v9, 4 }
0x4197   :  { %v7648_v6 = vadd.f32 %v7645_v59, %v7644_v57  ;;  %v7646_v27 = vsel %vm45_vm4, %v12527_v24, %v7638_v62 }
0x4198   :  { %v7647_v26 = vsel %vm45_vm4, %v12531_v55, %v7639_v1 }
0x4199   :  { %v7649_v58 = vadd.f32 %v7648_v6, %v7646_v27  ;;  %v12728_v6 = vld [vmem:[#allocation2_spill] sm:$0xff] }
0x419b   :  { %v7650_v3 = vadd.f32 %v7649_v58, %v7647_v26  ;;  %v12729_v58 = vld [vmem:[#allocation10_spill] sm:$0xff] }
0x419d   :  { %7651 = vadd.xlane.f32.xlu0 %v7650_v3 }
0x41a1   :  { %6777 = vadd.xlane.f32.xlu0 %v6776_v31 }
0x422a   :  { %v7652_v22 = vpop.xlane.xlu0 %7651 }
0x422b   :  { %v7661_v29 = vrot.slane %v7652_v22, 4  ;;  %v7653_v40 = vmul.f32 0.001953125, %v7652_v22 }
0x422d   :  { %v7663_v39 = vsel %vm693_vm10, %v7661_v29, 0.0  ;;  %v7654_v50 = vmul.f32 %v7653_v40, %v7653_v40 }
0x422e   :  { %7664 = vadd.xlane.f32.xlu1 %v7663_v39  ;;  %v6778_v41 = vpop.xlane.xlu0 %6777 }
0x422f   :  { %v6779_v16 = vmul.f32 0.001953125, %v6778_v41  ;;  %v7656_v63 = vrot.slane %v7654_v50, 4 }
0x4231   :  { %v6780_v17 = vmul.f32 %v6779_v16, %v6779_v16  ;;  %v7658_v5 = vsub.f32 %v7653_v40, %v7656_v63 }
0x4233   :  { %v6782_v42 = vrot.slane %v6780_v17, 4  ;;  %v7659_v35 = vmax.f32 %v7658_v5, 0.0 }
0x4235   :  { %v6784_v38 = vsub.f32 %v6779_v16, %v6782_v42 }
0x4237   :  { %v6785_v61 = vmax.f32 %v6784_v38, 0.0 }
0x4239   :  { %v6786_v43 = vadd.f32 1e-05, %v6785_v61 }
0x423b   :  { %8318 = vrsqrt.f32 %v6786_v43 }
0x4245   :  { %v8319_v33 = vpop.eup %8318 }
0x4246   :  { %v6789_v47 = vrot.slane %v8319_v33, 4 }
0x4248   :  { %6790 = vrot.lane.b32.xlu0 %v6789_v47, %s8371_s28 }
0x42ba   :  { %v6791_v2 = vpop.permute.xlu0 %6790 }
0x42bb   :  { %v6793_v12 = vmul.f32 %v8346_v11, %v6791_v2  ;;  %v7665_v49 = vpop.xlane.xlu1 %7664 }
0x42bc   :  { %v7666_v13 = vrot.slane %v7665_v49, 4 }
0x42bd   :  { %v6803_v34 = vmul.f32 %v6793_v12, %v6779_v16 }
0x42be   :  { %v7667_v20 = vadd.f32 %v7666_v13, %v7665_v49 }
0x42bf   :  { %v6804_v56 = vsub.f32 %v8347_v53, %v6803_v34 }
0x42c0   :  { %v7668_v18 = vrot.slane %v7667_v20, 2 }
0x42c1   :  { %6807 = vperm.xlu0 %8247, %v6804_v56  }
0x42c2   :  { %v7669_v28 = vadd.f32 %v7668_v18, %v7667_v20 }
0x42c4   :  { %v7670_v48 = vrot.slane %v7669_v28, 1 }
0x42c5   :  { %8249 = vset.pattern.permute.xlu0 %v12727_v60 }
0x42c6   :  { %v7671_v51 = vadd.f32 %v7670_v48, %v7669_v28 }
0x42c8   :  { %8168 = vpush %v7671_v51 }
0x42f9   :  { %s8169_s13 = spop %8168 }
0x42fa   :  { %v7673_v45 = vstv %s8169_s13 }
0x42fb   :  { %8320 = vrsqrt.f32 %v7673_v45  ;;  %vm7676_vm0 = vcmp.eq.f32.partialorder %v7673_v45, inf  ;;  %v7679_v14 = vand.u32 2147483648, %v7673_v45  ;;  %vm7678_vm1 = vcmp.eq.f32.partialorder %v7673_v45, 0.0 }
0x4305   :  { %v8321_v44 = vpop.eup %8320 }
0x4306   :  { %v7675_v46 = vmul.f32 %v8321_v44, %v7673_v45 }
0x4308   :  { %v7677_v52 = vsel %vm7676_vm0, %v7673_v45, %v7675_v46 }
0x4309   :  { %v7680_v4 = vsel %vm7678_vm1, %v7679_v14, %v7677_v52 }
0x430a   :  { %8170 = vpush %v7680_v4 }
0x433b   :  { %s8171_s5 = spop %8170 }
0x433c   :  { %s7682_s6 = sadd.f32 1e-06, %s8171_s5 }
0x433e   :  { %s7683_s14 = smul.f32 %s7682_s6, %s7682_s6  ;;  %v7688_v62 = vstv %s7682_s6 }
0x4340   :  { %v7684_v7 = vstv %s7683_s14  ;;  %v6808_v22 = vpop.permute.xlu0 %6807 }
0x4341   :  { %v7685_v9 = vmul.f32 %v7684_v7, %v7659_v35 }
0x4343   :  { %v7686_v57 = vadd.f32 1e-05, %v7685_v9 }
0x4345   :  { %8322 = vrsqrt.f32 %v7686_v57 }
0x434f   :  { %v8323_v59 = vpop.eup %8322 }
0x4350   :  { %v7689_v25 = vmul.f32 %v8323_v59, %v7688_v62 }
0x4352   :  { %v7691_v10 = vrot.slane %v7689_v25, 4 }
0x4354   :  { %7692 = vrot.lane.b32.xlu1 %v7691_v10, %s8351_s12 }
0x4358   :  { %6796 = vperm.xlu1 %8246, %v6793_v12  }
0x435c   :  { %8248 = vset.pattern.permute.xlu1 %v12727_v60 }
0x43c6   :  { %v7693_v1 = vpop.permute.xlu1 %7692 }
0x43c7   :  { %v7695_v32 = vmul.f32 %v12728_v6, %v7693_v1 }
0x43c9   :  { %v7705_v27 = vmul.f32 %v7695_v32, %v7653_v40  ;;  %7698 = vperm.xlu1 %8248, %v7695_v32  }
0x43cb   :  { %v7706_v26 = vsub.f32 %v12729_v58, %v7705_v27 }
0x43cd   :  { %7709 = vperm.xlu1 %8248, %v7706_v26  }
0x43d7   :  { %v6797_v21 = vpop.permute.xlu1 %6796 }
0x43d8   :  { %v6799_v54 = vmul.f32 %v6797_v21, %v12065_v30  ;;  %v6800_v3 = vmul.f32 %v6797_v21, %v12073_v15  ;;  %v6801_v36 = vmul.f32 %v6797_v21, %v12098_v0  ;;  %v6802_v8 = vmul.f32 %v6797_v21, %v12075_v37 }
0x43da   :  { %v6810_v42 = vadd.f32 %v6808_v22, %v6799_v54  ;;  %v6811_v38 = vadd.f32 %v6808_v22, %v6800_v3  ;;  %v6812_v30 = vadd.f32 %v6808_v22, %v6801_v36  ;;  %v6813_v61 = vadd.f32 %v6808_v22, %v6802_v8 }
0x4448   :  { %v7699_v31 = vpop.permute.xlu1 %7698 }
0x4449   :  { %v7701_v29 = vmul.f32 %v7699_v31, %v12519_v23  ;;  %v7702_v39 = vmul.f32 %v7699_v31, %v12521_v19  ;;  %v7703_v41 = vmul.f32 %v7699_v31, %v12527_v24  ;;  %v7704_v16 = vmul.f32 %v7699_v31, %v12531_v55 }
0x444c   :  { %v7710_v17 = vpop.permute.xlu1 %7709 }
0x444d   :  { %v7712_v15 = vadd.f32 %v7710_v17, %v7701_v29  ;;  %v7713_v43 = vadd.f32 %v7710_v17, %v7702_v39  ;;  %v7714_v0 = vadd.f32 %v7710_v17, %v7703_v41  ;;  %v7715_v33 = vadd.f32 %v7710_v17, %v7704_v16 }
0x444f   :  { %v7716_v37 = vadd.f32 %v7712_v15, %v6810_v42  ;;  %v7717_v47 = vadd.f32 %v7713_v43, %v6811_v38  ;;  %v7718_v2 = vadd.f32 %v7714_v0, %v6812_v30  ;;  %v7719_v11 = vadd.f32 %v7715_v33, %v6813_v61 }
0x4451   :  { %v7724_v23 = vcombine.low %v7716_v37, %v7717_v47  ;;  %v7725_v12 = vcombine.low %v7718_v2, %v7719_v11 }
0x4453   :  { %7728 = vst [vmem:[%s12590_s8] sm:$0xff] %v7724_v23  ;;  %7729 = vst [vmem:[%s12590_s8 + $0x8] sm:$0xff] %v7725_v12 }

</bundles_post_ra>
